<compile_context>
chip_gen: v5e
topology: v5e:2x2
jax: 0.10.0
libtpu: 0.0.40
codegen_flags: <defaults>
</compile_context>

<pallas_src>
import functools

import jax
import jax.numpy as jnp
from jax import lax
from jax.experimental import pallas as pl
from jax.experimental.pallas import tpu as pltpu

EPS = 1e-5
LANE = 128


def _round_up(x, m):
    return (x + m - 1) // m * m


# ------------------------------ Pallas kernel -------------------------------

def _bottleneck_kernel(x_ref, w1_ref, b1_ref, w2_ref, b2_ref, w3_ref, b3_ref,
                       o_ref, ypad_ref, *, H, W, pad_rows):
    """Fused bottleneck for one image tile.

    x_ref : (HW, Cip)     bf16 channel-padded NHWC input (also the residual)
    w1_ref: (Cip, Pp)     bf16 conv1 weight with bn1 scale folded in
    b1_ref: (1,  Pp)      f32  bn1 shift
    w2_ref: (9, Pp, Pp)   bf16 conv2 taps (kh*3+kw, in, out), bn2 scale folded
    b2_ref: (1,  Pp)      f32  bn2 shift
    w3_ref: (Pp, Coutp)   bf16 conv3 weight with bn3 scale folded
    b3_ref: (1,  Coutp)   f32  bn3 shift
    o_ref : (HW, Coutp)   f32  output
    ypad_ref: (HW + 2*pad_rows, Pp) f32 VMEM slab (zero h-halo for conv2)
    """
    HW = H * W
    Pp = w2_ref.shape[-1]

    # ---- conv1 (1x1) + folded BN + ReLU ------------------------------------
    # bf16 MXU operands, f32 accumulate.  x_ref is not kept live to the
    # epilogue; it is re-read from VMEM at the residual add.
    y1 = jnp.dot(x_ref[...], w1_ref[...], preferred_element_type=jnp.float32)
    y1 = jnp.maximum(y1 + b1_ref[...], 0.0)                    # f32 (HW, Pp)

    # ---- conv2 (3x3, stride 1, pad 1), no HBM im2col -----------------------
    # Zero only the halo rows (the interior is fully overwritten every step).
    zero_halo = jnp.zeros((pad_rows, Pp), jnp.float32)
    ypad_ref[pl.ds(0, pad_rows), :] = zero_halo
    ypad_ref[pl.ds(pad_rows + HW, pad_rows), :] = zero_halo
    ypad_ref[pl.ds(pad_rows, HW), :] = y1

    # w-boundary masks; the h-direction halo is provided by the zero rows.
    col = lax.broadcasted_iota(jnp.int32, (HW, 1), 0) % W
    mask_l = (col > 0).astype(jnp.float32)       # no left neighbour at w == 0
    mask_r = (col < W - 1).astype(jnp.float32)   # no right neighbour at w == W-1

    acc = jnp.zeros((HW, Pp), jnp.float32)
    for dh in (-1, 0, 1):
        # Sublane-aligned slab load (pad_rows and W are multiples of 8).
        base = ypad_ref[pl.ds(pad_rows + dh * W, HW), :]        # f32 (HW, Pp)
        tap0 = (dh + 1) * 3
        # dw = 0: aligned patch, no mask.
        acc = acc + jnp.dot(base.astype(jnp.bfloat16), w2_ref[tap0 + 1],
                            preferred_element_type=jnp.float32)
        # dw = -1: previous flattened row; wrapped row removed by mask_l.
        left = pltpu.roll(base, shift=1, axis=0) * mask_l
        acc = acc + jnp.dot(left.astype(jnp.bfloat16), w2_ref[tap0 + 0],
                            preferred_element_type=jnp.float32)
        # dw = +1: next flattened row (shift HW-1 == -1); removed by mask_r.
        right = pltpu.roll(base, shift=HW - 1, axis=0) * mask_r
        acc = acc + jnp.dot(right.astype(jnp.bfloat16), w2_ref[tap0 + 2],
                            preferred_element_type=jnp.float32)
    y2 = jnp.maximum(acc + b2_ref[...], 0.0)                    # f32 (HW, Pp)

    # ---- conv3 (1x1) + folded BN + residual + ReLU -------------------------
    y3 = jnp.dot(y2.astype(jnp.bfloat16), w3_ref[...],
                 preferred_element_type=jnp.float32)
    y3 = y3 + b3_ref[...] + x_ref[...].astype(jnp.float32)      # identity residual
    o_ref[...] = jnp.maximum(y3, 0.0).astype(o_ref.dtype)


# --------------------------------- Wrapper ----------------------------------

def _fold_bn(gamma, beta, mean, var):
    scale = gamma / jnp.sqrt(var + EPS)
    shift = beta - mean * scale
    return scale, shift


def _pad_to(x, shape):
    pads = [(0, t - s) for s, t in zip(x.shape, shape)]
    return jnp.pad(x, pads)


def bottleneck_forward(x_nchw, params):
    """Bottleneck with stride=1, downsample=None (so inplanes == planes*4)."""
    N, Cin, H, W = x_nchw.shape
    P = params["w1"].shape[0]               # planes
    Cout = 4 * P
    assert Cout == Cin, "identity residual path requires inplanes == planes*4"
    HW = H * W
    # Alignment requirements of the whole-image tiling (see TODOs above).
    assert W % 8 == 0 and HW % 8 == 0, "needs spatial padding / H-tiling"

    Cip = _round_up(Cin, LANE)
    Pp = _round_up(P, LANE)
    Coutp = _round_up(Cout, LANE)
    assert Coutp == Cip

    # Layout: NCHW -> NHWC -> (N*H*W, C), channel-padded to a lane multiple so
    # every matmul/store is lane-dense.  bf16 activations for the MXU.
    x_nhwc = jnp.transpose(x_nchw, (0, 2, 3, 1)).astype(jnp.float32)
    x2d = _pad_to(x_nhwc.reshape(N * HW, Cin), (N * HW, Cip)).astype(jnp.bfloat16)

    # conv1 weight (P, Cin, 1, 1) -> (Cin, P); fold bn1 scale into columns.
    s1, b1 = _fold_bn(params["g1"], params["be1"], params["m1"], params["v1"])
    w1 = params["w1"][:, :, 0, 0].T * s1[None, :]
    w1p = _pad_to(w1, (Cip, Pp)).astype(jnp.bfloat16)
    b1p = _pad_to(b1.reshape(1, -1), (1, Pp))                 # f32

    # conv2 weight (P, P, 3, 3) -> (kh, kw, in, out) -> (9, P, P); fold bn2.
    s2, b2 = _fold_bn(params["g2"], params["be2"], params["m2"], params["v2"])
    w2 = jnp.transpose(params["w2"], (2, 3, 1, 0)).reshape(9, P, P)
    w2 = w2 * s2[None, None, :]
    w2p = _pad_to(w2, (9, Pp, Pp)).astype(jnp.bfloat16)
    b2p = _pad_to(b2.reshape(1, -1), (1, Pp))                 # f32

    # conv3 weight (4P, P, 1, 1) -> (P, 4P); fold bn3.
    s3, b3 = _fold_bn(params["g3"], params["be3"], params["m3"], params["v3"])
    w3 = params["w3"][:, :, 0, 0].T * s3[None, :]
    w3p = _pad_to(w3, (Pp, Coutp)).astype(jnp.bfloat16)
    b3p = _pad_to(b3.reshape(1, -1), (1, Coutp))              # f32

    # Vertical halo for the in-kernel 3x3 conv: need >= W+1 zero rows on each
    # side of the flattened image; round to a sublane multiple so all slab
    # stores/loads stay aligned.
    pad_rows = _round_up(W + 1, 8)

    kernel = functools.partial(_bottleneck_kernel, H=H, W=W, pad_rows=pad_rows)
    cparams = pltpu.CompilerParams(
        dimension_semantics=("parallel",),
        vmem_limit_bytes=32 * 1024 * 1024)

    def _run(single_buffer_weights):
        # Grid-invariant operands: single pipeline buffer (no dead 2nd copy).
        w_kw = ({"pipeline_mode": pl.Buffered(1)}
                if single_buffer_weights else {})
        return jax.block_until_ready(pl.pallas_call(
            kernel,
            out_shape=jax.ShapeDtypeStruct((N * HW, Coutp), jnp.float32),
            grid=(N,),
            in_specs=[
                pl.BlockSpec((HW, Cip), lambda n: (n, 0)),            # x (per image)
                pl.BlockSpec((Cip, Pp), lambda n: (0, 0), **w_kw),    # w1
                pl.BlockSpec((1, Pp), lambda n: (0, 0), **w_kw),      # bn1 shift
                pl.BlockSpec((9, Pp, Pp), lambda n: (0, 0, 0), **w_kw),  # w2 taps
                pl.BlockSpec((1, Pp), lambda n: (0, 0), **w_kw),      # bn2 shift
                pl.BlockSpec((Pp, Coutp), lambda n: (0, 0), **w_kw),  # w3
                pl.BlockSpec((1, Coutp), lambda n: (0, 0), **w_kw),   # bn3 shift
            ],
            out_specs=pl.BlockSpec((HW, Coutp), lambda n: (n, 0)),
            scratch_shapes=[pltpu.VMEM((HW + 2 * pad_rows, Pp), jnp.float32)],
            compiler_params=cparams,
        )(x2d, w1p, b1p, w2p, b2p, w3p, b3p))

    try:
        out = _run(True)
    except Exception:
        # Fallback if this JAX build rejects pipeline_mode=pl.Buffered(1).
        out = _run(False)

    out = out[:, :Cout].reshape(N, H, W, Cout)
    return jnp.transpose(out, (0, 3, 1, 2))                    # back to NCHW


# ---------------------------- Pure-JAX reference ----------------------------

def _ref_bn(y, gamma, beta, mean, var):
    inv = 1.0 / jnp.sqrt(var + EPS)
    return (y - mean[None, :, None, None]) * inv[None, :, None, None] * \
        gamma[None, :, None, None] + beta[None, :, None, None]


def bottleneck_ref(x, p):
    dn = ("NCHW", "OIHW", "NCHW")
    out = lax.conv_general_dilated(x, p["w1"], (1, 1), "VALID",
                                   dimension_numbers=dn)
    out = jax.nn.relu(_ref_bn(out, p["g1"], p["be1"], p["m1"], p["v1"]))
    out = lax.conv_general_dilated(out, p["w2"], (1, 1), ((1, 1), (1, 1)),
                                   dimension_numbers=dn)
    out = jax.nn.relu(_ref_bn(out, p["g2"], p["be2"], p["m2"], p["v2"]))
    out = lax.conv_general_dilated(out, p["w3"], (1, 1), "VALID",
                                   dimension_numbers=dn)
    out = _ref_bn(out, p["g3"], p["be3"], p["m3"], p["v3"])
    return jax.nn.relu(out + x)


# ----------------------------------- Main ------------------------------------

if __name__ == "__main__":
    key = jax.random.PRNGKey(0)
    planes = 4
    inplanes = planes * 4          # identity residual requires inplanes == 4*planes
    N, H, W = 2, 16, 16

    ks = jax.random.split(key, 16)
    params = {
        # conv weights (PyTorch OIHW shapes)
        "w1": 0.1 * jax.random.normal(ks[0], (planes, inplanes, 1, 1), jnp.float32),
        "w2": 0.1 * jax.random.normal(ks[1], (planes, planes, 3, 3), jnp.float32),
        "w3": 0.1 * jax.random.normal(ks[2], (planes * 4, planes, 1, 1), jnp.float32),
        # bn1
        "g1": 1.0 + 0.1 * jax.random.normal(ks[3], (planes,), jnp.float32),
        "be1": 0.1 * jax.random.normal(ks[4], (planes,), jnp.float32),
        "m1": 0.1 * jax.random.normal(ks[5], (planes,), jnp.float32),
        "v1": 0.5 + jax.random.uniform(ks[6], (planes,), jnp.float32),
        # bn2
        "g2": 1.0 + 0.1 * jax.random.normal(ks[7], (planes,), jnp.float32),
        "be2": 0.1 * jax.random.normal(ks[8], (planes,), jnp.float32),
        "m2": 0.1 * jax.random.normal(ks[9], (planes,), jnp.float32),
        "v2": 0.5 + jax.random.uniform(ks[10], (planes,), jnp.float32),
        # bn3
        "g3": 1.0 + 0.1 * jax.random.normal(ks[11], (planes * 4,), jnp.float32),
        "be3": 0.1 * jax.random.normal(ks[12], (planes * 4,), jnp.float32),
        "m3": 0.1 * jax.random.normal(ks[13], (planes * 4,), jnp.float32),
        "v3": 0.5 + jax.random.uniform(ks[14], (planes * 4,), jnp.float32),
    }

    x = jax.random.normal(ks[15], (N, inplanes, H, W), jnp.float32)

    out = jax.block_until_ready(bottleneck_forward(x, params))
    ref = jax.block_until_ready(bottleneck_ref(x, params))

    assert out.shape == (N, inplanes, H, W)
    # bf16 MXU operands -> looser tolerance than the previous all-f32 version.
    assert jnp.allclose(out, ref, atol=5e-2, rtol=5e-2), \
        f"max abs err {jnp.max(jnp.abs(out - ref))}"

    print("KERNEL_OK")
</pallas_src>

<mosaic_0001>
module attributes {stable_mosaic.version = 11 : i64} {
  func.func @_bottleneck_kernel(%arg0: i32, %arg1: memref<256x128xbf16, #tpu.memory_space<vmem>>, %arg2: memref<128x128xbf16, #tpu.memory_space<vmem>>, %arg3: memref<1x128xf32, #tpu.memory_space<vmem>>, %arg4: memref<9x128x128xbf16, #tpu.memory_space<vmem>>, %arg5: memref<1x128xf32, #tpu.memory_space<vmem>>, %arg6: memref<128x128xbf16, #tpu.memory_space<vmem>>, %arg7: memref<1x128xf32, #tpu.memory_space<vmem>>, %arg8: memref<256x128xf32, #tpu.memory_space<vmem>>, %arg9: memref<304x128xf32, #tpu.memory_space<vmem>>) attributes {dimension_semantics = [#tpu.dimension_semantics<parallel>], iteration_bounds = array<i64: 2>, scalar_prefetch = 0 : i64, scratch_operands = 1 : i64, tpu.core_type = #tpu.core_type<tc>, window_params = [{transform_indices = @transform_0, window_bounds = array<i64: 256, 128>}, {pipeline_mode = #tpu.pipeline_mode<synchronous>, transform_indices = @transform_1, window_bounds = array<i64: 128, 128>}, {pipeline_mode = #tpu.pipeline_mode<synchronous>, transform_indices = @transform_2, window_bounds = array<i64: 1, 128>}, {pipeline_mode = #tpu.pipeline_mode<synchronous>, transform_indices = @transform_3, window_bounds = array<i64: 9, 128, 128>}, {pipeline_mode = #tpu.pipeline_mode<synchronous>, transform_indices = @transform_4, window_bounds = array<i64: 1, 128>}, {pipeline_mode = #tpu.pipeline_mode<synchronous>, transform_indices = @transform_5, window_bounds = array<i64: 128, 128>}, {pipeline_mode = #tpu.pipeline_mode<synchronous>, transform_indices = @transform_6, window_bounds = array<i64: 1, 128>}, {transform_indices = @transform_7, window_bounds = array<i64: 256, 128>}]} {
    %c0 = arith.constant 0 : index
    %c0_0 = arith.constant 0 : index
    %0 = vector.load %arg1[%c0, %c0_0] : memref<256x128xbf16, #tpu.memory_space<vmem>>, vector<256x128xbf16>
    %c0_1 = arith.constant 0 : index
    %c0_2 = arith.constant 0 : index
    %1 = vector.load %arg2[%c0_1, %c0_2] : memref<128x128xbf16, #tpu.memory_space<vmem>>, vector<128x128xbf16>
    %cst = arith.constant dense<0.000000e+00> : vector<256x128xf32>
    %2 = tpu.matmul %0, %1, %cst {dimension_numbers = #tpu.dot_dimension_numbers<[1], [0], [0], [1], [0, 0, 1, 1], [], []>} : vector<256x128xbf16>, vector<128x128xbf16>, vector<256x128xf32> -> vector<256x128xf32>
    %c0_3 = arith.constant 0 : index
    %c0_4 = arith.constant 0 : index
    %3 = vector.load %arg3[%c0_3, %c0_4] : memref<1x128xf32, #tpu.memory_space<vmem>>, vector<1x128xf32>
    %4 = vector.broadcast %3 : vector<1x128xf32> to vector<256x128xf32>
    %5 = arith.addf %2, %4 : vector<256x128xf32>
    %cst_5 = arith.constant 0.000000e+00 : f32
    %6 = vector.broadcast %cst_5 : f32 to vector<256x128xf32>
    %7 = arith.maximumf %5, %6 : vector<256x128xf32>
    %cst_6 = arith.constant 0.000000e+00 : f32
    %8 = vector.broadcast %cst_6 : f32 to vector<24x128xf32>
    %c0_7 = arith.constant 0 : index
    %c0_8 = arith.constant 0 : index
    %9 = vector.load %arg9[%c0_7, %c0_8] : memref<304x128xf32, #tpu.memory_space<vmem>>, vector<24x128xf32>
    tpu.vector_store %arg9[%c0_7, %c0_8], %8 {strides = array<i32>} : memref<304x128xf32, #tpu.memory_space<vmem>>, vector<24x128xf32>,
    %c280 = arith.constant 280 : index
    %c0_9 = arith.constant 0 : index
    %10 = vector.load %arg9[%c280, %c0_9] : memref<304x128xf32, #tpu.memory_space<vmem>>, vector<24x128xf32>
    tpu.vector_store %arg9[%c280, %c0_9], %8 {strides = array<i32>} : memref<304x128xf32, #tpu.memory_space<vmem>>, vector<24x128xf32>,
    %c24 = arith.constant 24 : index
    %c0_10 = arith.constant 0 : index
    %11 = vector.load %arg9[%c24, %c0_10] : memref<304x128xf32, #tpu.memory_space<vmem>>, vector<256x128xf32>
    tpu.vector_store %arg9[%c24, %c0_10], %7 {strides = array<i32>} : memref<304x128xf32, #tpu.memory_space<vmem>>, vector<256x128xf32>,
    %12 = tpu.iota {dimensions = array<i32: 0>} : vector<256x1xi32>
    %c16_i32 = arith.constant 16 : i32
    %c0_i32 = arith.constant 0 : i32
    %13 = arith.cmpi eq, %c16_i32, %c0_i32 : i32
    %c1_i32 = arith.constant 1 : i32
    %14 = arith.select %13, %c1_i32, %c16_i32 : i32
    %15 = vector.broadcast %14 : i32 to vector<256x1xi32>
    %16 = arith.remsi %12, %15 : vector<256x1xi32>
    %c0_i32_11 = arith.constant 0 : i32
    %17 = vector.broadcast %c0_i32_11 : i32 to vector<256x1xi32>
    %18 = arith.cmpi ne, %16, %17 : vector<256x1xi32>
    %c0_i32_12 = arith.constant 0 : i32
    %19 = vector.broadcast %c0_i32_12 : i32 to vector<256x1xi32>
    %20 = arith.cmpi slt, %16, %19 : vector<256x1xi32>
    %c0_i32_13 = arith.constant 0 : i32
    %21 = arith.cmpi slt, %14, %c0_i32_13 : i32
    %22 = vector.broadcast %21 : i1 to vector<256x1xi1>
    %23 = vector.broadcast %22 : vector<256x1xi1> to vector<256x1xi1>
    %24 = arith.xori %20, %23 : vector<256x1xi1>
    %25 = arith.andi %24, %18 : vector<256x1xi1>
    %26 = vector.broadcast %14 : i32 to vector<256x1xi32>
    %27 = arith.addi %16, %26 : vector<256x1xi32>
    %28 = arith.select %25, %27, %16 : vector<256x1xi1>, vector<256x1xi32>
    %c0_i32_14 = arith.constant 0 : i32
    %29 = vector.broadcast %c0_i32_14 : i32 to vector<256x1xi32>
    %30 = arith.cmpi sgt, %28, %29 : vector<256x1xi32>
    %31 = arith.extui %30 : vector<256x1xi1> to vector<256x1xi32>
    %32 = arith.sitofp %31 : vector<256x1xi32> to vector<256x1xf32>
    %c15_i32 = arith.constant 15 : i32
    %33 = vector.broadcast %c15_i32 : i32 to vector<256x1xi32>
    %34 = arith.cmpi slt, %28, %33 : vector<256x1xi32>
    %35 = arith.extui %34 : vector<256x1xi1> to vector<256x1xi32>
    %36 = arith.sitofp %35 : vector<256x1xi32> to vector<256x1xf32>
    %cst_15 = arith.constant 0.000000e+00 : f32
    %37 = vector.broadcast %cst_15 : f32 to vector<256x128xf32>
    %c8 = arith.constant 8 : index
    %c0_16 = arith.constant 0 : index
    %38 = vector.load %arg9[%c8, %c0_16] : memref<304x128xf32, #tpu.memory_space<vmem>>, vector<256x128xf32>
    %39 = arith.truncf %38 : vector<256x128xf32> to vector<256x128xbf16>
    %c1 = arith.constant 1 : index
    %c0_17 = arith.constant 0 : index
    %c0_18 = arith.constant 0 : index
    %40 = vector.load %arg4[%c1, %c0_17, %c0_18] : memref<9x128x128xbf16, #tpu.memory_space<vmem>>, vector<1x128x128xbf16>
    %41 = vector.shape_cast %40 : vector<1x128x128xbf16> to vector<128x128xbf16>
    %cst_19 = arith.constant dense<0.000000e+00> : vector<256x128xf32>
    %42 = tpu.matmul %39, %41, %cst_19 {dimension_numbers = #tpu.dot_dimension_numbers<[1], [0], [0], [1], [0, 0, 1, 1], [], []>} : vector<256x128xbf16>, vector<128x128xbf16>, vector<256x128xf32> -> vector<256x128xf32>
    %43 = arith.addf %37, %42 : vector<256x128xf32>
    %c1_i32_20 = arith.constant 1 : i32
    %44 = tpu.dynamic_rotate %38 by %c1_i32_20 dim 0 : vector<256x128xf32>, i32 -> vector<256x128xf32>
    %45 = vector.broadcast %32 : vector<256x1xf32> to vector<256x128xf32>
    %46 = arith.mulf %44, %45 : vector<256x128xf32>
    %47 = arith.truncf %46 : vector<256x128xf32> to vector<256x128xbf16>
    %c0_21 = arith.constant 0 : index
    %c0_22 = arith.constant 0 : index
    %c0_23 = arith.constant 0 : index
    %48 = vector.load %arg4[%c0_21, %c0_22, %c0_23] : memref<9x128x128xbf16, #tpu.memory_space<vmem>>, vector<1x128x128xbf16>
    %49 = vector.shape_cast %48 : vector<1x128x128xbf16> to vector<128x128xbf16>
    %cst_24 = arith.constant dense<0.000000e+00> : vector<256x128xf32>
    %50 = tpu.matmul %47, %49, %cst_24 {dimension_numbers = #tpu.dot_dimension_numbers<[1], [0], [0], [1], [0, 0, 1, 1], [], []>} : vector<256x128xbf16>, vector<128x128xbf16>, vector<256x128xf32> -> vector<256x128xf32>
    %51 = arith.addf %43, %50 : vector<256x128xf32>
    %c255_i32 = arith.constant 255 : i32
    %52 = tpu.dynamic_rotate %38 by %c255_i32 dim 0 : vector<256x128xf32>, i32 -> vector<256x128xf32>
    %53 = vector.broadcast %36 : vector<256x1xf32> to vector<256x128xf32>
    %54 = arith.mulf %52, %53 : vector<256x128xf32>
    %55 = arith.truncf %54 : vector<256x128xf32> to vector<256x128xbf16>
    %c2 = arith.constant 2 : index
    %c0_25 = arith.constant 0 : index
    %c0_26 = arith.constant 0 : index
    %56 = vector.load %arg4[%c2, %c0_25, %c0_26] : memref<9x128x128xbf16, #tpu.memory_space<vmem>>, vector<1x128x128xbf16>
    %57 = vector.shape_cast %56 : vector<1x128x128xbf16> to vector<128x128xbf16>
    %cst_27 = arith.constant dense<0.000000e+00> : vector<256x128xf32>
    %58 = tpu.matmul %55, %57, %cst_27 {dimension_numbers = #tpu.dot_dimension_numbers<[1], [0], [0], [1], [0, 0, 1, 1], [], []>} : vector<256x128xbf16>, vector<128x128xbf16>, vector<256x128xf32> -> vector<256x128xf32>
    %59 = arith.addf %51, %58 : vector<256x128xf32>
    %c24_28 = arith.constant 24 : index
    %c0_29 = arith.constant 0 : index
    %60 = vector.load %arg9[%c24_28, %c0_29] : memref<304x128xf32, #tpu.memory_space<vmem>>, vector<256x128xf32>
    %61 = arith.truncf %60 : vector<256x128xf32> to vector<256x128xbf16>
    %c4 = arith.constant 4 : index
    %c0_30 = arith.constant 0 : index
    %c0_31 = arith.constant 0 : index
    %62 = vector.load %arg4[%c4, %c0_30, %c0_31] : memref<9x128x128xbf16, #tpu.memory_space<vmem>>, vector<1x128x128xbf16>
    %63 = vector.shape_cast %62 : vector<1x128x128xbf16> to vector<128x128xbf16>
    %cst_32 = arith.constant dense<0.000000e+00> : vector<256x128xf32>
    %64 = tpu.matmul %61, %63, %cst_32 {dimension_numbers = #tpu.dot_dimension_numbers<[1], [0], [0], [1], [0, 0, 1, 1], [], []>} : vector<256x128xbf16>, vector<128x128xbf16>, vector<256x128xf32> -> vector<256x128xf32>
    %65 = arith.addf %59, %64 : vector<256x128xf32>
    %c1_i32_33 = arith.constant 1 : i32
    %66 = tpu.dynamic_rotate %60 by %c1_i32_33 dim 0 : vector<256x128xf32>, i32 -> vector<256x128xf32>
    %67 = vector.broadcast %32 : vector<256x1xf32> to vector<256x128xf32>
    %68 = arith.mulf %66, %67 : vector<256x128xf32>
    %69 = arith.truncf %68 : vector<256x128xf32> to vector<256x128xbf16>
    %c3 = arith.constant 3 : index
    %c0_34 = arith.constant 0 : index
    %c0_35 = arith.constant 0 : index
    %70 = vector.load %arg4[%c3, %c0_34, %c0_35] : memref<9x128x128xbf16, #tpu.memory_space<vmem>>, vector<1x128x128xbf16>
    %71 = vector.shape_cast %70 : vector<1x128x128xbf16> to vector<128x128xbf16>
    %cst_36 = arith.constant dense<0.000000e+00> : vector<256x128xf32>
    %72 = tpu.matmul %69, %71, %cst_36 {dimension_numbers = #tpu.dot_dimension_numbers<[1], [0], [0], [1], [0, 0, 1, 1], [], []>} : vector<256x128xbf16>, vector<128x128xbf16>, vector<256x128xf32> -> vector<256x128xf32>
    %73 = arith.addf %65, %72 : vector<256x128xf32>
    %c255_i32_37 = arith.constant 255 : i32
    %74 = tpu.dynamic_rotate %60 by %c255_i32_37 dim 0 : vector<256x128xf32>, i32 -> vector<256x128xf32>
    %75 = vector.broadcast %36 : vector<256x1xf32> to vector<256x128xf32>
    %76 = arith.mulf %74, %75 : vector<256x128xf32>
    %77 = arith.truncf %76 : vector<256x128xf32> to vector<256x128xbf16>
    %c5 = arith.constant 5 : index
    %c0_38 = arith.constant 0 : index
    %c0_39 = arith.constant 0 : index
    %78 = vector.load %arg4[%c5, %c0_38, %c0_39] : memref<9x128x128xbf16, #tpu.memory_space<vmem>>, vector<1x128x128xbf16>
    %79 = vector.shape_cast %78 : vector<1x128x128xbf16> to vector<128x128xbf16>
    %cst_40 = arith.constant dense<0.000000e+00> : vector<256x128xf32>
    %80 = tpu.matmul %77, %79, %cst_40 {dimension_numbers = #tpu.dot_dimension_numbers<[1], [0], [0], [1], [0, 0, 1, 1], [], []>} : vector<256x128xbf16>, vector<128x128xbf16>, vector<256x128xf32> -> vector<256x128xf32>
    %81 = arith.addf %73, %80 : vector<256x128xf32>
    %c40 = arith.constant 40 : index
    %c0_41 = arith.constant 0 : index
    %82 = vector.load %arg9[%c40, %c0_41] : memref<304x128xf32, #tpu.memory_space<vmem>>, vector<256x128xf32>
    %83 = arith.truncf %82 : vector<256x128xf32> to vector<256x128xbf16>
    %c7 = arith.constant 7 : index
    %c0_42 = arith.constant 0 : index
    %c0_43 = arith.constant 0 : index
    %84 = vector.load %arg4[%c7, %c0_42, %c0_43] : memref<9x128x128xbf16, #tpu.memory_space<vmem>>, vector<1x128x128xbf16>
    %85 = vector.shape_cast %84 : vector<1x128x128xbf16> to vector<128x128xbf16>
    %cst_44 = arith.constant dense<0.000000e+00> : vector<256x128xf32>
    %86 = tpu.matmul %83, %85, %cst_44 {dimension_numbers = #tpu.dot_dimension_numbers<[1], [0], [0], [1], [0, 0, 1, 1], [], []>} : vector<256x128xbf16>, vector<128x128xbf16>, vector<256x128xf32> -> vector<256x128xf32>
    %87 = arith.addf %81, %86 : vector<256x128xf32>
    %c1_i32_45 = arith.constant 1 : i32
    %88 = tpu.dynamic_rotate %82 by %c1_i32_45 dim 0 : vector<256x128xf32>, i32 -> vector<256x128xf32>
    %89 = vector.broadcast %32 : vector<256x1xf32> to vector<256x128xf32>
    %90 = arith.mulf %88, %89 : vector<256x128xf32>
    %91 = arith.truncf %90 : vector<256x128xf32> to vector<256x128xbf16>
    %c6 = arith.constant 6 : index
    %c0_46 = arith.constant 0 : index
    %c0_47 = arith.constant 0 : index
    %92 = vector.load %arg4[%c6, %c0_46, %c0_47] : memref<9x128x128xbf16, #tpu.memory_space<vmem>>, vector<1x128x128xbf16>
    %93 = vector.shape_cast %92 : vector<1x128x128xbf16> to vector<128x128xbf16>
    %cst_48 = arith.constant dense<0.000000e+00> : vector<256x128xf32>
    %94 = tpu.matmul %91, %93, %cst_48 {dimension_numbers = #tpu.dot_dimension_numbers<[1], [0], [0], [1], [0, 0, 1, 1], [], []>} : vector<256x128xbf16>, vector<128x128xbf16>, vector<256x128xf32> -> vector<256x128xf32>
    %95 = arith.addf %87, %94 : vector<256x128xf32>
    %c255_i32_49 = arith.constant 255 : i32
    %96 = tpu.dynamic_rotate %82 by %c255_i32_49 dim 0 : vector<256x128xf32>, i32 -> vector<256x128xf32>
    %97 = vector.broadcast %36 : vector<256x1xf32> to vector<256x128xf32>
    %98 = arith.mulf %96, %97 : vector<256x128xf32>
    %99 = arith.truncf %98 : vector<256x128xf32> to vector<256x128xbf16>
    %c8_50 = arith.constant 8 : index
    %c0_51 = arith.constant 0 : index
    %c0_52 = arith.constant 0 : index
    %100 = vector.load %arg4[%c8_50, %c0_51, %c0_52] : memref<9x128x128xbf16, #tpu.memory_space<vmem>>, vector<1x128x128xbf16>
    %101 = vector.shape_cast %100 : vector<1x128x128xbf16> to vector<128x128xbf16>
    %cst_53 = arith.constant dense<0.000000e+00> : vector<256x128xf32>
    %102 = tpu.matmul %99, %101, %cst_53 {dimension_numbers = #tpu.dot_dimension_numbers<[1], [0], [0], [1], [0, 0, 1, 1], [], []>} : vector<256x128xbf16>, vector<128x128xbf16>, vector<256x128xf32> -> vector<256x128xf32>
    %103 = arith.addf %95, %102 : vector<256x128xf32>
    %c0_54 = arith.constant 0 : index
    %c0_55 = arith.constant 0 : index
    %104 = vector.load %arg5[%c0_54, %c0_55] : memref<1x128xf32, #tpu.memory_space<vmem>>, vector<1x128xf32>
    %105 = vector.broadcast %104 : vector<1x128xf32> to vector<256x128xf32>
    %106 = arith.addf %103, %105 : vector<256x128xf32>
    %cst_56 = arith.constant 0.000000e+00 : f32
    %107 = vector.broadcast %cst_56 : f32 to vector<256x128xf32>
    %108 = arith.maximumf %106, %107 : vector<256x128xf32>
    %109 = arith.truncf %108 : vector<256x128xf32> to vector<256x128xbf16>
    %c0_57 = arith.constant 0 : index
    %c0_58 = arith.constant 0 : index
    %110 = vector.load %arg6[%c0_57, %c0_58] : memref<128x128xbf16, #tpu.memory_space<vmem>>, vector<128x128xbf16>
    %cst_59 = arith.constant dense<0.000000e+00> : vector<256x128xf32>
    %111 = tpu.matmul %109, %110, %cst_59 {dimension_numbers = #tpu.dot_dimension_numbers<[1], [0], [0], [1], [0, 0, 1, 1], [], []>} : vector<256x128xbf16>, vector<128x128xbf16>, vector<256x128xf32> -> vector<256x128xf32>
    %c0_60 = arith.constant 0 : index
    %c0_61 = arith.constant 0 : index
    %112 = vector.load %arg7[%c0_60, %c0_61] : memref<1x128xf32, #tpu.memory_space<vmem>>, vector<1x128xf32>
    %113 = vector.broadcast %112 : vector<1x128xf32> to vector<256x128xf32>
    %114 = arith.addf %111, %113 : vector<256x128xf32>
    %c0_62 = arith.constant 0 : index
    %c0_63 = arith.constant 0 : index
    %115 = vector.load %arg1[%c0_62, %c0_63] : memref<256x128xbf16, #tpu.memory_space<vmem>>, vector<256x128xbf16>
    %116 = arith.extf %115 : vector<256x128xbf16> to vector<256x128xf32>
    %117 = arith.addf %114, %116 : vector<256x128xf32>
    %cst_64 = arith.constant 0.000000e+00 : f32
    %118 = vector.broadcast %cst_64 : f32 to vector<256x128xf32>
    %119 = arith.maximumf %117, %118 : vector<256x128xf32>
    %c0_65 = arith.constant 0 : index
    %c0_66 = arith.constant 0 : index
    %120 = vector.load %arg8[%c0_65, %c0_66] : memref<256x128xf32, #tpu.memory_space<vmem>>, vector<256x128xf32>
    tpu.vector_store %arg8[%c0_65, %c0_66], %119 {strides = array<i32>} : memref<256x128xf32, #tpu.memory_space<vmem>>, vector<256x128xf32>,
    return
  }
  func.func @transform_0(%arg0: i32) -> (i32, i32) {
    %c0_i32 = arith.constant 0 : i32
    %c0_i32_0 = arith.constant 0 : i32
    return %arg0, %c0_i32 : i32, i32
  }
  func.func @transform_1(%arg0: i32) -> (i32, i32) {
    %c0_i32 = arith.constant 0 : i32
    %c0_i32_0 = arith.constant 0 : i32
    %c0_i32_1 = arith.constant 0 : i32
    return %c0_i32, %c0_i32_0 : i32, i32
  }
  func.func @transform_2(%arg0: i32) -> (i32, i32) {
    %c0_i32 = arith.constant 0 : i32
    %c0_i32_0 = arith.constant 0 : i32
    %c0_i32_1 = arith.constant 0 : i32
    return %c0_i32, %c0_i32_0 : i32, i32
  }
  func.func @transform_3(%arg0: i32) -> (i32, i32, i32) {
    %c0_i32 = arith.constant 0 : i32
    %c0_i32_0 = arith.constant 0 : i32
    %c0_i32_1 = arith.constant 0 : i32
    %c0_i32_2 = arith.constant 0 : i32
    return %c0_i32, %c0_i32_0, %c0_i32_1 : i32, i32, i32
  }
  func.func @transform_4(%arg0: i32) -> (i32, i32) {
    %c0_i32 = arith.constant 0 : i32
    %c0_i32_0 = arith.constant 0 : i32
    %c0_i32_1 = arith.constant 0 : i32
    return %c0_i32, %c0_i32_0 : i32, i32
  }
  func.func @transform_5(%arg0: i32) -> (i32, i32) {
    %c0_i32 = arith.constant 0 : i32
    %c0_i32_0 = arith.constant 0 : i32
    %c0_i32_1 = arith.constant 0 : i32
    return %c0_i32, %c0_i32_0 : i32, i32
  }
  func.func @transform_6(%arg0: i32) -> (i32, i32) {
    %c0_i32 = arith.constant 0 : i32
    %c0_i32_0 = arith.constant 0 : i32
    %c0_i32_1 = arith.constant 0 : i32
    return %c0_i32, %c0_i32_0 : i32, i32
  }
  func.func @transform_7(%arg0: i32) -> (i32, i32) {
    %c0_i32 = arith.constant 0 : i32
    %c0_i32_0 = arith.constant 0 : i32
    return %arg0, %c0_i32 : i32, i32
  }
}

module attributes {stable_mosaic.version = 11 : i64} {
  func.func @_bottleneck_kernel(%arg0: i32, %arg1: memref<256x128xbf16, #tpu.memory_space<vmem>>, %arg2: memref<128x128xbf16, #tpu.memory_space<vmem>>, %arg3: memref<1x128xf32, #tpu.memory_space<vmem>>, %arg4: memref<9x128x128xbf16, #tpu.memory_space<vmem>>, %arg5: memref<1x128xf32, #tpu.memory_space<vmem>>, %arg6: memref<128x128xbf16, #tpu.memory_space<vmem>>, %arg7: memref<1x128xf32, #tpu.memory_space<vmem>>, %arg8: memref<256x128xf32, #tpu.memory_space<vmem>>, %arg9: memref<304x128xf32, #tpu.memory_space<vmem>>) attributes {dimension_semantics = [#tpu.dimension_semantics<parallel>], iteration_bounds = array<i64: 2>, scalar_prefetch = 0 : i64, scratch_operands = 1 : i64, tpu.core_type = #tpu.core_type<tc>, window_params = [{transform_indices = @transform_0, window_bounds = array<i64: 256, 128>}, {pipeline_mode = #tpu.pipeline_mode<synchronous>, transform_indices = @transform_1, window_bounds = array<i64: 128, 128>}, {pipeline_mode = #tpu.pipeline_mode<synchronous>, transform_indices = @transform_2, window_bounds = array<i64: 1, 128>}, {pipeline_mode = #tpu.pipeline_mode<synchronous>, transform_indices = @transform_3, window_bounds = array<i64: 9, 128, 128>}, {pipeline_mode = #tpu.pipeline_mode<synchronous>, transform_indices = @transform_4, window_bounds = array<i64: 1, 128>}, {pipeline_mode = #tpu.pipeline_mode<synchronous>, transform_indices = @transform_5, window_bounds = array<i64: 128, 128>}, {pipeline_mode = #tpu.pipeline_mode<synchronous>, transform_indices = @transform_6, window_bounds = array<i64: 1, 128>}, {transform_indices = @transform_7, window_bounds = array<i64: 256, 128>}]} {
    %c0 = arith.constant 0 : index
    %c0_0 = arith.constant 0 : index
    %0 = vector.load %arg1[%c0, %c0_0] : memref<256x128xbf16, #tpu.memory_space<vmem>>, vector<256x128xbf16>
    %c0_1 = arith.constant 0 : index
    %c0_2 = arith.constant 0 : index
    %1 = vector.load %arg2[%c0_1, %c0_2] : memref<128x128xbf16, #tpu.memory_space<vmem>>, vector<128x128xbf16>
    %cst = arith.constant dense<0.000000e+00> : vector<256x128xf32>
    %2 = tpu.matmul %0, %1, %cst {dimension_numbers = #tpu.dot_dimension_numbers<[1], [0], [0], [1], [0, 0, 1, 1], [], []>} : vector<256x128xbf16>, vector<128x128xbf16>, vector<256x128xf32> -> vector<256x128xf32>
    %c0_3 = arith.constant 0 : index
    %c0_4 = arith.constant 0 : index
    %3 = vector.load %arg3[%c0_3, %c0_4] : memref<1x128xf32, #tpu.memory_space<vmem>>, vector<1x128xf32>
    %4 = vector.broadcast %3 : vector<1x128xf32> to vector<256x128xf32>
    %5 = arith.addf %2, %4 : vector<256x128xf32>
    %cst_5 = arith.constant 0.000000e+00 : f32
    %6 = vector.broadcast %cst_5 : f32 to vector<256x128xf32>
    %7 = arith.maximumf %5, %6 : vector<256x128xf32>
    %cst_6 = arith.constant 0.000000e+00 : f32
    %8 = vector.broadcast %cst_6 : f32 to vector<24x128xf32>
    %c0_7 = arith.constant 0 : index
    %c0_8 = arith.constant 0 : index
    %9 = vector.load %arg9[%c0_7, %c0_8] : memref<304x128xf32, #tpu.memory_space<vmem>>, vector<24x128xf32>
    tpu.vector_store %arg9[%c0_7, %c0_8], %8 {strides = array<i32>} : memref<304x128xf32, #tpu.memory_space<vmem>>, vector<24x128xf32>,
    %c280 = arith.constant 280 : index
    %c0_9 = arith.constant 0 : index
    %10 = vector.load %arg9[%c280, %c0_9] : memref<304x128xf32, #tpu.memory_space<vmem>>, vector<24x128xf32>
    tpu.vector_store %arg9[%c280, %c0_9], %8 {strides = array<i32>} : memref<304x128xf32, #tpu.memory_space<vmem>>, vector<24x128xf32>,
    %c24 = arith.constant 24 : index
    %c0_10 = arith.constant 0 : index
    %11 = vector.load %arg9[%c24, %c0_10] : memref<304x128xf32, #tpu.memory_space<vmem>>, vector<256x128xf32>
    tpu.vector_store %arg9[%c24, %c0_10], %7 {strides = array<i32>} : memref<304x128xf32, #tpu.memory_space<vmem>>, vector<256x128xf32>,
    %12 = tpu.iota {dimensions = array<i32: 0>} : vector<256x1xi32>
    %c16_i32 = arith.constant 16 : i32
    %c0_i32 = arith.constant 0 : i32
    %13 = arith.cmpi eq, %c16_i32, %c0_i32 : i32
    %c1_i32 = arith.constant 1 : i32
    %14 = arith.select %13, %c1_i32, %c16_i32 : i32
    %15 = vector.broadcast %14 : i32 to vector<256x1xi32>
    %16 = arith.remsi %12, %15 : vector<256x1xi32>
    %c0_i32_11 = arith.constant 0 : i32
    %17 = vector.broadcast %c0_i32_11 : i32 to vector<256x1xi32>
    %18 = arith.cmpi ne, %16, %17 : vector<256x1xi32>
    %c0_i32_12 = arith.constant 0 : i32
    %19 = vector.broadcast %c0_i32_12 : i32 to vector<256x1xi32>
    %20 = arith.cmpi slt, %16, %19 : vector<256x1xi32>
    %c0_i32_13 = arith.constant 0 : i32
    %21 = arith.cmpi slt, %14, %c0_i32_13 : i32
    %22 = vector.broadcast %21 : i1 to vector<256x1xi1>
    %23 = vector.broadcast %22 : vector<256x1xi1> to vector<256x1xi1>
    %24 = arith.xori %20, %23 : vector<256x1xi1>
    %25 = arith.andi %24, %18 : vector<256x1xi1>
    %26 = vector.broadcast %14 : i32 to vector<256x1xi32>
    %27 = arith.addi %16, %26 : vector<256x1xi32>
    %28 = arith.select %25, %27, %16 : vector<256x1xi1>, vector<256x1xi32>
    %c0_i32_14 = arith.constant 0 : i32
    %29 = vector.broadcast %c0_i32_14 : i32 to vector<256x1xi32>
    %30 = arith.cmpi sgt, %28, %29 : vector<256x1xi32>
    %31 = arith.extui %30 : vector<256x1xi1> to vector<256x1xi32>
    %32 = arith.sitofp %31 : vector<256x1xi32> to vector<256x1xf32>
    %c15_i32 = arith.constant 15 : i32
    %33 = vector.broadcast %c15_i32 : i32 to vector<256x1xi32>
    %34 = arith.cmpi slt, %28, %33 : vector<256x1xi32>
    %35 = arith.extui %34 : vector<256x1xi1> to vector<256x1xi32>
    %36 = arith.sitofp %35 : vector<256x1xi32> to vector<256x1xf32>
    %cst_15 = arith.constant 0.000000e+00 : f32
    %37 = vector.broadcast %cst_15 : f32 to vector<256x128xf32>
    %c8 = arith.constant 8 : index
    %c0_16 = arith.constant 0 : index
    %38 = vector.load %arg9[%c8, %c0_16] : memref<304x128xf32, #tpu.memory_space<vmem>>, vector<256x128xf32>
    %39 = arith.truncf %38 : vector<256x128xf32> to vector<256x128xbf16>
    %c1 = arith.constant 1 : index
    %c0_17 = arith.constant 0 : index
    %c0_18 = arith.constant 0 : index
    %40 = vector.load %arg4[%c1, %c0_17, %c0_18] : memref<9x128x128xbf16, #tpu.memory_space<vmem>>, vector<1x128x128xbf16>
    %41 = vector.shape_cast %40 : vector<1x128x128xbf16> to vector<128x128xbf16>
    %cst_19 = arith.constant dense<0.000000e+00> : vector<256x128xf32>
    %42 = tpu.matmul %39, %41, %cst_19 {dimension_numbers = #tpu.dot_dimension_numbers<[1], [0], [0], [1], [0, 0, 1, 1], [], []>} : vector<256x128xbf16>, vector<128x128xbf16>, vector<256x128xf32> -> vector<256x128xf32>
    %43 = arith.addf %37, %42 : vector<256x128xf32>
    %c1_i32_20 = arith.constant 1 : i32
    %44 = tpu.dynamic_rotate %38 by %c1_i32_20 dim 0 : vector<256x128xf32>, i32 -> vector<256x128xf32>
    %45 = vector.broadcast %32 : vector<256x1xf32> to vector<256x128xf32>
    %46 = arith.mulf %44, %45 : vector<256x128xf32>
    %47 = arith.truncf %46 : vector<256x128xf32> to vector<256x128xbf16>
    %c0_21 = arith.constant 0 : index
    %c0_22 = arith.constant 0 : index
    %c0_23 = arith.constant 0 : index
    %48 = vector.load %arg4[%c0_21, %c0_22, %c0_23] : memref<9x128x128xbf16, #tpu.memory_space<vmem>>, vector<1x128x128xbf16>
    %49 = vector.shape_cast %48 : vector<1x128x128xbf16> to vector<128x128xbf16>
    %cst_24 = arith.constant dense<0.000000e+00> : vector<256x128xf32>
    %50 = tpu.matmul %47, %49, %cst_24 {dimension_numbers = #tpu.dot_dimension_numbers<[1], [0], [0], [1], [0, 0, 1, 1], [], []>} : vector<256x128xbf16>, vector<128x128xbf16>, vector<256x128xf32> -> vector<256x128xf32>
    %51 = arith.addf %43, %50 : vector<256x128xf32>
    %c255_i32 = arith.constant 255 : i32
    %52 = tpu.dynamic_rotate %38 by %c255_i32 dim 0 : vector<256x128xf32>, i32 -> vector<256x128xf32>
    %53 = vector.broadcast %36 : vector<256x1xf32> to vector<256x128xf32>
    %54 = arith.mulf %52, %53 : vector<256x128xf32>
    %55 = arith.truncf %54 : vector<256x128xf32> to vector<256x128xbf16>
    %c2 = arith.constant 2 : index
    %c0_25 = arith.constant 0 : index
    %c0_26 = arith.constant 0 : index
    %56 = vector.load %arg4[%c2, %c0_25, %c0_26] : memref<9x128x128xbf16, #tpu.memory_space<vmem>>, vector<1x128x128xbf16>
    %57 = vector.shape_cast %56 : vector<1x128x128xbf16> to vector<128x128xbf16>
    %cst_27 = arith.constant dense<0.000000e+00> : vector<256x128xf32>
    %58 = tpu.matmul %55, %57, %cst_27 {dimension_numbers = #tpu.dot_dimension_numbers<[1], [0], [0], [1], [0, 0, 1, 1], [], []>} : vector<256x128xbf16>, vector<128x128xbf16>, vector<256x128xf32> -> vector<256x128xf32>
    %59 = arith.addf %51, %58 : vector<256x128xf32>
    %c24_28 = arith.constant 24 : index
    %c0_29 = arith.constant 0 : index
    %60 = vector.load %arg9[%c24_28, %c0_29] : memref<304x128xf32, #tpu.memory_space<vmem>>, vector<256x128xf32>
    %61 = arith.truncf %60 : vector<256x128xf32> to vector<256x128xbf16>
    %c4 = arith.constant 4 : index
    %c0_30 = arith.constant 0 : index
    %c0_31 = arith.constant 0 : index
    %62 = vector.load %arg4[%c4, %c0_30, %c0_31] : memref<9x128x128xbf16, #tpu.memory_space<vmem>>, vector<1x128x128xbf16>
    %63 = vector.shape_cast %62 : vector<1x128x128xbf16> to vector<128x128xbf16>
    %cst_32 = arith.constant dense<0.000000e+00> : vector<256x128xf32>
    %64 = tpu.matmul %61, %63, %cst_32 {dimension_numbers = #tpu.dot_dimension_numbers<[1], [0], [0], [1], [0, 0, 1, 1], [], []>} : vector<256x128xbf16>, vector<128x128xbf16>, vector<256x128xf32> -> vector<256x128xf32>
    %65 = arith.addf %59, %64 : vector<256x128xf32>
    %c1_i32_33 = arith.constant 1 : i32
    %66 = tpu.dynamic_rotate %60 by %c1_i32_33 dim 0 : vector<256x128xf32>, i32 -> vector<256x128xf32>
    %67 = vector.broadcast %32 : vector<256x1xf32> to vector<256x128xf32>
    %68 = arith.mulf %66, %67 : vector<256x128xf32>
    %69 = arith.truncf %68 : vector<256x128xf32> to vector<256x128xbf16>
    %c3 = arith.constant 3 : index
    %c0_34 = arith.constant 0 : index
    %c0_35 = arith.constant 0 : index
    %70 = vector.load %arg4[%c3, %c0_34, %c0_35] : memref<9x128x128xbf16, #tpu.memory_space<vmem>>, vector<1x128x128xbf16>
    %71 = vector.shape_cast %70 : vector<1x128x128xbf16> to vector<128x128xbf16>
    %cst_36 = arith.constant dense<0.000000e+00> : vector<256x128xf32>
    %72 = tpu.matmul %69, %71, %cst_36 {dimension_numbers = #tpu.dot_dimension_numbers<[1], [0], [0], [1], [0, 0, 1, 1], [], []>} : vector<256x128xbf16>, vector<128x128xbf16>, vector<256x128xf32> -> vector<256x128xf32>
    %73 = arith.addf %65, %72 : vector<256x128xf32>
    %c255_i32_37 = arith.constant 255 : i32
    %74 = tpu.dynamic_rotate %60 by %c255_i32_37 dim 0 : vector<256x128xf32>, i32 -> vector<256x128xf32>
    %75 = vector.broadcast %36 : vector<256x1xf32> to vector<256x128xf32>
    %76 = arith.mulf %74, %75 : vector<256x128xf32>
    %77 = arith.truncf %76 : vector<256x128xf32> to vector<256x128xbf16>
    %c5 = arith.constant 5 : index
    %c0_38 = arith.constant 0 : index
    %c0_39 = arith.constant 0 : index
    %78 = vector.load %arg4[%c5, %c0_38, %c0_39] : memref<9x128x128xbf16, #tpu.memory_space<vmem>>, vector<1x128x128xbf16>
    %79 = vector.shape_cast %78 : vector<1x128x128xbf16> to vector<128x128xbf16>
    %cst_40 = arith.constant dense<0.000000e+00> : vector<256x128xf32>
    %80 = tpu.matmul %77, %79, %cst_40 {dimension_numbers = #tpu.dot_dimension_numbers<[1], [0], [0], [1], [0, 0, 1, 1], [], []>} : vector<256x128xbf16>, vector<128x128xbf16>, vector<256x128xf32> -> vector<256x128xf32>
    %81 = arith.addf %73, %80 : vector<256x128xf32>
    %c40 = arith.constant 40 : index
    %c0_41 = arith.constant 0 : index
    %82 = vector.load %arg9[%c40, %c0_41] : memref<304x128xf32, #tpu.memory_space<vmem>>, vector<256x128xf32>
    %83 = arith.truncf %82 : vector<256x128xf32> to vector<256x128xbf16>
    %c7 = arith.constant 7 : index
    %c0_42 = arith.constant 0 : index
    %c0_43 = arith.constant 0 : index
    %84 = vector.load %arg4[%c7, %c0_42, %c0_43] : memref<9x128x128xbf16, #tpu.memory_space<vmem>>, vector<1x128x128xbf16>
    %85 = vector.shape_cast %84 : vector<1x128x128xbf16> to vector<128x128xbf16>
    %cst_44 = arith.constant dense<0.000000e+00> : vector<256x128xf32>
    %86 = tpu.matmul %83, %85, %cst_44 {dimension_numbers = #tpu.dot_dimension_numbers<[1], [0], [0], [1], [0, 0, 1, 1], [], []>} : vector<256x128xbf16>, vector<128x128xbf16>, vector<256x128xf32> -> vector<256x128xf32>
    %87 = arith.addf %81, %86 : vector<256x128xf32>
    %c1_i32_45 = arith.constant 1 : i32
    %88 = tpu.dynamic_rotate %82 by %c1_i32_45 dim 0 : vector<256x128xf32>, i32 -> vector<256x128xf32>
    %89 = vector.broadcast %32 : vector<256x1xf32> to vector<256x128xf32>
    %90 = arith.mulf %88, %89 : vector<256x128xf32>
    %91 = arith.truncf %90 : vector<256x128xf32> to vector<256x128xbf16>
    %c6 = arith.constant 6 : index
    %c0_46 = arith.constant 0 : index
    %c0_47 = arith.constant 0 : index
    %92 = vector.load %arg4[%c6, %c0_46, %c0_47] : memref<9x128x128xbf16, #tpu.memory_space<vmem>>, vector<1x128x128xbf16>
    %93 = vector.shape_cast %92 : vector<1x128x128xbf16> to vector<128x128xbf16>
    %cst_48 = arith.constant dense<0.000000e+00> : vector<256x128xf32>
    %94 = tpu.matmul %91, %93, %cst_48 {dimension_numbers = #tpu.dot_dimension_numbers<[1], [0], [0], [1], [0, 0, 1, 1], [], []>} : vector<256x128xbf16>, vector<128x128xbf16>, vector<256x128xf32> -> vector<256x128xf32>
    %95 = arith.addf %87, %94 : vector<256x128xf32>
    %c255_i32_49 = arith.constant 255 : i32
    %96 = tpu.dynamic_rotate %82 by %c255_i32_49 dim 0 : vector<256x128xf32>, i32 -> vector<256x128xf32>
    %97 = vector.broadcast %36 : vector<256x1xf32> to vector<256x128xf32>
    %98 = arith.mulf %96, %97 : vector<256x128xf32>
    %99 = arith.truncf %98 : vector<256x128xf32> to vector<256x128xbf16>
    %c8_50 = arith.constant 8 : index
    %c0_51 = arith.constant 0 : index
    %c0_52 = arith.constant 0 : index
    %100 = vector.load %arg4[%c8_50, %c0_51, %c0_52] : memref<9x128x128xbf16, #tpu.memory_space<vmem>>, vector<1x128x128xbf16>
    %101 = vector.shape_cast %100 : vector<1x128x128xbf16> to vector<128x128xbf16>
    %cst_53 = arith.constant dense<0.000000e+00> : vector<256x128xf32>
    %102 = tpu.matmul %99, %101, %cst_53 {dimension_numbers = #tpu.dot_dimension_numbers<[1], [0], [0], [1], [0, 0, 1, 1], [], []>} : vector<256x128xbf16>, vector<128x128xbf16>, vector<256x128xf32> -> vector<256x128xf32>
    %103 = arith.addf %95, %102 : vector<256x128xf32>
    %c0_54 = arith.constant 0 : index
    %c0_55 = arith.constant 0 : index
    %104 = vector.load %arg5[%c0_54, %c0_55] : memref<1x128xf32, #tpu.memory_space<vmem>>, vector<1x128xf32>
    %105 = vector.broadcast %104 : vector<1x128xf32> to vector<256x128xf32>
    %106 = arith.addf %103, %105 : vector<256x128xf32>
    %cst_56 = arith.constant 0.000000e+00 : f32
    %107 = vector.broadcast %cst_56 : f32 to vector<256x128xf32>
    %108 = arith.maximumf %106, %107 : vector<256x128xf32>
    %109 = arith.truncf %108 : vector<256x128xf32> to vector<256x128xbf16>
    %c0_57 = arith.constant 0 : index
    %c0_58 = arith.constant 0 : index
    %110 = vector.load %arg6[%c0_57, %c0_58] : memref<128x128xbf16, #tpu.memory_space<vmem>>, vector<128x128xbf16>
    %cst_59 = arith.constant dense<0.000000e+00> : vector<256x128xf32>
    %111 = tpu.matmul %109, %110, %cst_59 {dimension_numbers = #tpu.dot_dimension_numbers<[1], [0], [0], [1], [0, 0, 1, 1], [], []>} : vector<256x128xbf16>, vector<128x128xbf16>, vector<256x128xf32> -> vector<256x128xf32>
    %c0_60 = arith.constant 0 : index
    %c0_61 = arith.constant 0 : index
    %112 = vector.load %arg7[%c0_60, %c0_61] : memref<1x128xf32, #tpu.memory_space<vmem>>, vector<1x128xf32>
    %113 = vector.broadcast %112 : vector<1x128xf32> to vector<256x128xf32>
    %114 = arith.addf %111, %113 : vector<256x128xf32>
    %c0_62 = arith.constant 0 : index
    %c0_63 = arith.constant 0 : index
    %115 = vector.load %arg1[%c0_62, %c0_63] : memref<256x128xbf16, #tpu.memory_space<vmem>>, vector<256x128xbf16>
    %116 = arith.extf %115 : vector<256x128xbf16> to vector<256x128xf32>
    %117 = arith.addf %114, %116 : vector<256x128xf32>
    %cst_64 = arith.constant 0.000000e+00 : f32
    %118 = vector.broadcast %cst_64 : f32 to vector<256x128xf32>
    %119 = arith.maximumf %117, %118 : vector<256x128xf32>
    %c0_65 = arith.constant 0 : index
    %c0_66 = arith.constant 0 : index
    %120 = vector.load %arg8[%c0_65, %c0_66] : memref<256x128xf32, #tpu.memory_space<vmem>>, vector<256x128xf32>
    tpu.vector_store %arg8[%c0_65, %c0_66], %119 {strides = array<i32>} : memref<256x128xf32, #tpu.memory_space<vmem>>, vector<256x128xf32>,
    return
  }
  func.func @transform_0(%arg0: i32) -> (i32, i32) {
    %c0_i32 = arith.constant 0 : i32
    %c0_i32_0 = arith.constant 0 : i32
    return %arg0, %c0_i32 : i32, i32
  }
  func.func @transform_1(%arg0: i32) -> (i32, i32) {
    %c0_i32 = arith.constant 0 : i32
    %c0_i32_0 = arith.constant 0 : i32
    %c0_i32_1 = arith.constant 0 : i32
    return %c0_i32, %c0_i32_0 : i32, i32
  }
  func.func @transform_2(%arg0: i32) -> (i32, i32) {
    %c0_i32 = arith.constant 0 : i32
    %c0_i32_0 = arith.constant 0 : i32
    %c0_i32_1 = arith.constant 0 : i32
    return %c0_i32, %c0_i32_0 : i32, i32
  }
  func.func @transform_3(%arg0: i32) -> (i32, i32, i32) {
    %c0_i32 = arith.constant 0 : i32
    %c0_i32_0 = arith.constant 0 : i32
    %c0_i32_1 = arith.constant 0 : i32
    %c0_i32_2 = arith.constant 0 : i32
    return %c0_i32, %c0_i32_0, %c0_i32_1 : i32, i32, i32
  }
  func.func @transform_4(%arg0: i32) -> (i32, i32) {
    %c0_i32 = arith.constant 0 : i32
    %c0_i32_0 = arith.constant 0 : i32
    %c0_i32_1 = arith.constant 0 : i32
    return %c0_i32, %c0_i32_0 : i32, i32
  }
  func.func @transform_5(%arg0: i32) -> (i32, i32) {
    %c0_i32 = arith.constant 0 : i32
    %c0_i32_0 = arith.constant 0 : i32
    %c0_i32_1 = arith.constant 0 : i32
    return %c0_i32, %c0_i32_0 : i32, i32
  }
  func.func @transform_6(%arg0: i32) -> (i32, i32) {
    %c0_i32 = arith.constant 0 : i32
    %c0_i32_0 = arith.constant 0 : i32
    %c0_i32_1 = arith.constant 0 : i32
    return %c0_i32, %c0_i32_0 : i32, i32
  }
  func.func @transform_7(%arg0: i32) -> (i32, i32) {
    %c0_i32 = arith.constant 0 : i32
    %c0_i32_0 = arith.constant 0 : i32
    return %arg0, %c0_i32 : i32, i32
  }
}

</mosaic_0001>

<bundles_post_ra>
// kernel: tpu_custom_call.1
= control target key start
LH: loop header
LB: loop body
LE: loop exit
PB: predicated region body
PF: predicated region fallthrough
CT: control target
= control target key end

     0   :  { %s7599_s0 = inlined_call_operand.hbm [shape: bf16[512,128], index: 0, kind: input, shape index: {}]   ;;  %s7600_s1 = inlined_call_operand.hbm [shape: bf16[128,128], index: 1, kind: input, shape index: {}]   ;;  %s7601_s2 = inlined_call_operand.vmem [shape: f32[1,128], index: 2, kind: input, shape index: {}]   ;;  %s7602_s3 = inlined_call_operand.hbm [shape: bf16[9,128,128], index: 3, kind: input, shape index: {}]   ;;  %s7603_s4 = inlined_call_operand.vmem [shape: f32[1,128], index: 4, kind: input, shape index: {}]   ;;  %s7604_s5 = inlined_call_operand.hbm [shape: bf16[128,128], index: 5, kind: input, shape index: {}]   ;;  %s7605_s6 = inlined_call_operand.vmem [shape: f32[1,128], index: 6, kind: input, shape index: {}]   ;;  %s7606_s7 = inlined_call_operand.hbm [shape: f32[512,128], index: 7, kind: output, shape index: {}]  }
   0x1   :  { %7746 = sst [smem:[#allocation126_spill]] %s7600_s1 }
   0x2   :  { %12 = vsyncpa [#allocation4], 0 }
   0x3   :  { %14 = vsyncpa [#allocation4 + $0x1], 0 }
   0x4   :  { %15 = vsyncpa [#allocation7], 0 }
   0x5   :  { %16 = vsyncpa [#allocation10], 0 }
   0x6   :  { %17 = vsyncpa [#allocation5], 0 }
   0x7   :  { %19 = vsyncpa [#allocation5 + $0x1], 0  ;;  %s5270_s24 = smov 0   ;;  %s5272_s25 = smov 0  }
   0x8   :  { %s5274_s26 = smov 0   ;;  %s5276_s27 = smov 0  }
   0x9 LB: > { %s5291_s28 = sadd.s32 4294967295, %s5219_s27   ;;  %s4261_s29 = sadd.s32 4294967294, %s5219_s27   ;;  %s5219_s27 = sphi %s5276_s27, %s8284_s27   ;;  %s5215_s26 = sphi %s5274_s26, %s8283_s26   ;;  %s5211_s25 = sphi %s5272_s25, %s8282_s25   ;;  %s5207_s24 = sphi %s5270_s24, %s8281_s24  }
   0xa   : > { %p45_p0 = scmp.ne.s32.totalorder %s5211_s25, %s5207_s24  ;;  %p46_p1 = scmp.eq.s32.totalorder %s5291_s28, 0 }
   0xb   : > { %p195_p2 = scmp.eq.s32.totalorder %s5291_s28, 1  ;;  %p201_p3 = scmp.eq.s32.totalorder %s4261_s29, 1 }
   0xc   : > { %p5300_p4 = por %p46_p1, %p45_p0  ;;  %p4262_p5 = scmp.ge.s32.totalorder %s5219_s27, 1 }
   0xd   : > { %p5305_p6 = por %p201_p3, %p45_p0  ;;  %p208_p7 = scmp.lt.s32.totalorder %s5219_s27, 3 }
   0xe   : > { %s7749_s1 = sld [smem:[#allocation126_spill]]  ;;  %s5221_s13 = smov [#allocation6]  }
   0xf   : > { %p5313_p8 = pnand %p4262_p5, %p208_p7  ;;  %s221_s14 = sshll.u32 %s5221_s13, 4  ;;  %s222_s14 = int_to_ptr.vmem [resolvable:$true] %s221_s14 }
  0x10   : > { %s236_s18 = sshll.u32 %s7602_s3, 4  ;;  %s7607_s19 = smov 64   ;;  %s237_s18 = int_to_ptr.hbm [resolvable:$true] %s236_s18 }
  0x11   : > { %p4954_p9 = pneg %p5313_p8  ;;  %s7608_s20 = smov 4  }
  0x12   : > { %s5224_s21 = smov [#allocation8]   ;;  %s253_s9 = sshll.u32 %s7604_s5, 4  ;;  %s254_s9 = int_to_ptr.hbm [resolvable:$true] %s253_s9 }
  0x13   : > { %p5321_p10 = pnand %p4954_p9, %p46_p1  ;;  %s238_s22 = sshll.u32 %s5224_s21, 4  ;;  %s239_s22 = int_to_ptr.vmem [resolvable:$true] %s238_s22 }
  0x14   : > { %s219_s11 = sshll.u32 %s7749_s1, 4  ;;  %s5225_s10 = smov [#allocation9]   ;;  %s220_s11 = int_to_ptr.hbm [resolvable:$true] %s219_s11 }
  0x15   : > { %4957 = dma.hbm_to_vmem [thread:$0]  (!%p5321_p10), %s220_s11, 1024, %s222_s14, [#allocation7], %s7607_s19, %s7607_s19, %s7608_s20  }
  0x16   : > { %4960 = dma.hbm_to_vmem [thread:$0]  (!%p5321_p10), %s237_s18, 9216, %s239_s22, [#allocation7], %s7607_s19, %s7607_s19, %s7608_s20  }
  0x17   : > { %s255_s11 = sshll.u32 %s5225_s10, 4  ;;  %s5343_s13 = sadd.s32 1, %s5219_s27   ;;  %s256_s11 = int_to_ptr.vmem [resolvable:$true] %s255_s11 }
  0x18   : > { %4963 = dma.hbm_to_vmem [thread:$0]  (!%p5321_p10), %s254_s9, 1024, %s256_s11, [#allocation10], %s7607_s19, %s7607_s19, %s7608_s20  }
  0x19   : > { %s29_s14 = ssub.s32 %s5219_s27, %s5343_s13  ;;  %s32_s16 = sadd.s32 1, %s5215_s26 }
  0x1a   : > { %p30_p12 = scmp.eq.s32.totalorder %s29_s14, 0  ;;  %p39_p13 = scmp.ne.s32.totalorder %s5215_s26, %s5211_s25 }
  0x1b   : > { %p40_p0 = scmp.eq.s32.totalorder %s5219_s27, 0  ;;  %p4975_p5 = scmp.lt.s32.totalorder %s5219_s27, 2 }
  0x1c   : > { %s5357_s17 = scalar_select %p30_p12, %s5215_s26, %s32_s16  }
  0x1d   : > { %p5361_p3 = por %p195_p2, %p39_p13  ;;  %s272_s21 = sand.u32 1, %s5215_s26  }
  0x1e   : > { %s4729_s15 = sshll.u32 %s5219_s27, 7  ;;  %p41_p7 = por %p40_p0, %p39_p13 }
  0x1f   : > { %s4267_s22 = sshll.u32 %s272_s21, 7  ;;  %s281_s9 = scalar_lea.hbm %s7599_s0, %s4729_s15 }
  0x20   : > { %s282_s10 = sshll.u32 %s281_s9, 4  ;;  %s276_s11 = scalar_lea.vmem [#allocation3], %s4267_s22  ;;  %s283_s10 = int_to_ptr.hbm [resolvable:$true] %s282_s10 }
  0x21   : > { %s284_s14 = sshll.u32 %s276_s11, 4  ;;  %p5371_p9 = pnand %p4975_p5, %p41_p7  ;;  %s285_s14 = int_to_ptr.vmem [resolvable:$true] %s284_s14 }
  0x22   : > { %s273_s19 = scalar_lea.sflag [#allocation4], %s272_s21  ;;  %s5115_s20 = sshra.s32 %s283_s10, 4  ;;  %s5116_s20 = int_to_ptr.hbm [resolvable:$true] %s5115_s20 }
  0x23   : > { %s5117_s1 = scalar_lea.hbm %s5116_s20, 128  ;;  %p5119_p10 = pneg %p5371_p9 }
  0x24   : > { %p5118_p2 = scmp.ne.s32.totalorder %s5116_s20, %s5117_s1  ;;  %s5122_s22 = scalar_lea.hbm %s7599_s0, 256 }
  0x25   : > { %p5123_p0 = scmp.lt.s32.totalorder %s5116_s20, %s7599_s0  ;;  %p5124_p5 = scmp.lt.s32.totalorder %s5122_s22, %s5117_s1 }
  0x26   : > { %p5120_p12 = pnand %p5119_p10, %p5118_p2 }
  0x27   : > { %p5125_p7 = por %p5124_p5, %p5123_p0 }
  0x28   : > { %p5121_p13 = pneg %p5120_p12 }
  0x2a   : > { %p5126_p11 = pnand %p5125_p7, %p5121_p13 }
  0x2c   : > { %5129 = shalt.err (!%p5126_p11)
}
  0x2d   : > { %s7754_s21 = smov 4   ;;  %s7755_s11 = smov 64  }
  0x2e   : > { %4967 = dma.hbm_to_vmem [thread:$0]  (!%p5371_p9), %s283_s10, 2048, %s285_s14, %s273_s19, %s7755_s11, %s7755_s11, %s7754_s21  }
  0x2f   : > { %296 = sbr.rel (%p5313_p8) target bundleno = 1337 (0x539), region = 48 }
  0x34   : > { %s5391_s15 = sand.u32 1, %s5211_s25  }
  0x35   : > { %s4271_s20 = sshll.u32 %s5391_s15, 7  ;;  %s299_s1 = scalar_lea.sflag [#allocation4], %s5391_s15 }
  0x36   : > { %s5395_s23 = scalar_lea.vmem [#allocation3], %s4271_s20 }
  0x37   : > { %5190 = dma.done.wait (%p5300_p4), %s299_s1, 2048  }
  0x38   : > { %5192 = vsyncadd (%p5300_p4), %s299_s1, 4294965248 }
  0x39   : > { %5194 = dma.done.wait (%p46_p1), [#allocation7], 10240  }
  0x3a   : > { %5196 = vsyncadd (%p46_p1), [#allocation7], 4294957056 }
  0x3b   : > { %5198 = dma.done.wait (%p46_p1), [#allocation10], 1024  }
  0x3c   : > { %5200 = vsyncadd (%p46_p1), [#allocation10], 4294966272  ;;  %v4753_v0 = vld [vmem:[#allocation6 + $0x38] sm:$0xff]  ;;  %v4752_v1 = vld [vmem:[#allocation6 + $0x30] sm:$0xff]  ;;  %v7609_v27 = vmov 0.0|0.0   ;;  %v706_v36 = vlaneseq  ;;  %s4275_s9 = sshll.u32 %s5391_s15, 8 }
  0x3d   : > { %547 = vmatpush.bf16.msra.mxu0 %v4753_v0  ;;  %4914 = vmatpush.bf16.msra.mxu3 %v4753_v0  ;;  %v4751_v2 = vld [vmem:[#allocation6 + $0x28] sm:$0xff]  ;;  %v4750_v3 = vld [vmem:[#allocation6 + $0x20] sm:$0xff]  ;;  %v4749_v4 = vld [vmem:[#allocation6 + $0x18] sm:$0xff]  ;;  %s7429_s21 = scalar_lea.vmem [#allocation11], %s4275_s9  ;;  %s4834_s11 = sshll.u32 %s5291_s28, 8 }
  0x3e   : > { %v4748_v5 = vld [vmem:[#allocation6 + $0x10] sm:$0xff]  ;;  %v4747_v6 = vld [vmem:[#allocation6 + $0x8] sm:$0xff]  ;;  %v4746_v7 = vld [vmem:[#allocation6] sm:$0xff]  ;;  %v5455_v41 = vshrl.u32 %v706_v36, 7  ;;  %s4155_s30 = scalar_lea.hbm %s7606_s7, %s4834_s11  ;;  %s4144_s19 = scalar_lea.sflag [#allocation5], %s5391_s15 }
  0x3f   : > { %v4730_v8 = vld [vmem:[%s5395_s23] sm:$0xff]  ;;  %v4731_v10 = vld [vmem:[%s5395_s23 + $0x8] sm:$0xff]  ;;  %v4732_v12 = vld [vmem:[%s5395_s23 + $0x10] sm:$0xff]  ;;  %s4158_s12 = sshll.u32 %s4155_s30, 4  ;;  %s5165_s22 = scalar_lea.hbm %s7606_s7, 512  ;;  %s4159_s12 = int_to_ptr.hbm [resolvable:$true] %s4158_s12 }
  0x40   : > { %v4742_v9 = vld [vmem:[%s5395_s23 + $0x60] sm:$0xff]  ;;  %v4743_v11 = vld [vmem:[%s5395_s23 + $0x68] sm:$0xff]  ;;  %v4744_v13 = vld [vmem:[%s5395_s23 + $0x70] sm:$0xff]  ;;  %v709_v48 = vadd.s32 16, %v5455_v41  ;;  %v708_v49 = vadd.s32 8, %v5455_v41  ;;  %v710_v50 = vadd.s32 24, %v5455_v41 }
  0x41   : > { %548 = vmatpush.bf16.msra.mxu0 %v4752_v1  ;;  %4915 = vmatpush.bf16.msra.mxu3 %v4752_v1  ;;  %v4733_v14 = vld [vmem:[%s5395_s23 + $0x18] sm:$0xff]  ;;  %v4734_v17 = vld [vmem:[%s5395_s23 + $0x20] sm:$0xff]  ;;  %v5421_v18 = vld [vmem:[#allocation8 + $0x70] sm:$0xff]  ;;  %v743_v53 = vand.u32 15, %v5455_v41  ;;  %vm1815_vm4 = vcmp.lt.s32.totalorder %v5455_v41, 7  ;;  %vm1412_vm5 = vcmp.lt.s32.totalorder %v5455_v41, 1 }
  0x42   : > { %v4745_v15 = vld [vmem:[%s5395_s23 + $0x78] sm:$0xff]  ;;  %v5424_v19 = vld [vmem:[#allocation8 + $0x68] sm:$0xff]  ;;  %v5427_v20 = vld [vmem:[#allocation8 + $0x60] sm:$0xff]  ;;  %v757_v57 = vand.u32 15, %v709_v48  ;;  %v750_v58 = vand.u32 15, %v708_v49  ;;  %v764_v60 = vand.u32 15, %v710_v50 }
  0x43   : > { %v5417_v16 = vld [vmem:[#allocation8 + $0x78] sm:$0xff]  ;;  %v4735_v22 = vld [vmem:[%s5395_s23 + $0x28] sm:$0xff]  ;;  %v5434_v23 = vld [vmem:[#allocation8 + $0x50] sm:$0xff]  ;;  %vm1123_vm0 = vcmp.gt.s32.totalorder %v743_v53, 0  ;;  %v711_v48 = vadd.s32 32, %v5455_v41  ;;  %s5159_s28 = sshra.s32 %s4159_s12, 4  ;;  %s5160_s28 = int_to_ptr.hbm [resolvable:$true] %s5159_s28 }
  0x44   : > { %1694 = vmatpush.bf16.msra.mxu2 %v5417_v16  ;;  %v5430_v21 = vld [vmem:[#allocation8 + $0x58] sm:$0xff]  ;;  %v5437_v24 = vld [vmem:[#allocation8 + $0x48] sm:$0xff]  ;;  %v5440_v25 = vld [vmem:[#allocation8 + $0x40] sm:$0xff]  ;;  %vm5475_vm1 = vcmp.gt.s32.totalorder %v757_v57, 0  ;;  %vm5479_vm2 = vcmp.lt.s32.totalorder %v750_v58, 15  ;;  %vm1222_vm3 = vcmp.lt.s32.totalorder %v764_v60, 15  ;;  %p5166_p11 = scmp.lt.s32.totalorder %s5160_s28, %s7606_s7 }
  0x45   : > { %549 = vmatpush.bf16.msra.mxu0 %v4751_v2  ;;  %4916 = vmatpush.bf16.msra.mxu3 %v4751_v2  ;;  %v4736_v26 = vld [vmem:[%s5395_s23 + $0x30] sm:$0xff]  ;;  %v4737_v28 = vld [vmem:[%s5395_s23 + $0x38] sm:$0xff]  ;;  %v4738_v31 = vld [vmem:[%s5395_s23 + $0x40] sm:$0xff]  ;;  %v771_v60 = vand.u32 15, %v711_v48  ;;  %s5161_s10 = scalar_lea.hbm %s5160_s28, 256 }
  0x46   : > { %v4769_v29 = vld [vmem:[#allocation8 + $0x38] sm:$0xff]  ;;  %v4768_v30 = vld [vmem:[#allocation8 + $0x30] sm:$0xff]  ;;  %v4767_v33 = vld [vmem:[#allocation8 + $0x28] sm:$0xff]  ;;  %p5162_p1 = scmp.ne.s32.totalorder %s5160_s28, %s5161_s10  ;;  %p5167_p9 = scmp.lt.s32.totalorder %s5165_s22, %s5161_s10 }
  0x47   : > { %1557 = vmatpush.bf16.msra.mxu1 %v4769_v29  ;;  %v4785_v34 = vld [vmem:[#allocation8 + $0x138] sm:$0xff]  ;;  %v5450_v35 = vld [vmem:[%s7601_s2] ss:$0 sm:$0xff]  ;;  %v4784_v39 = vld [vmem:[#allocation8 + $0x130] sm:$0xff]  ;;  %vm1127_vm7 = vcmp.gt.s32.totalorder %v771_v60, 0 }
  0x48   : > { %1695 = vmatpush.bf16.msra.mxu2 %v5421_v18  ;;  %v4766_v37 = vld [vmem:[#allocation8 + $0x20] sm:$0xff]  ;;  %v4765_v44 = vld [vmem:[#allocation8 + $0x18] sm:$0xff]  ;;  %v4783_v45 = vld [vmem:[#allocation8 + $0x128] sm:$0xff]  ;;  %p5163_p4 = pnand %p5162_p1, %p5361_p3  ;;  %p5168_p2 = por %p5167_p9, %p5166_p11 }
  0x49   : > { %550 = vmatpush.bf16.msra.mxu0 %v4750_v3  ;;  %4917 = vmatpush.bf16.msra.mxu3 %v4750_v3  ;;  %v4764_v52 = vld [vmem:[#allocation8 + $0x10] sm:$0xff]  ;;  %v4782_v55 = vld [vmem:[#allocation8 + $0x120] sm:$0xff]  ;;  %v4739_v56 = vld [vmem:[%s5395_s23 + $0x48] sm:$0xff]  ;;  %v7610_v3 = vmov 0.0  }
  0x4a   : > { %v4763_v62 = vld [vmem:[#allocation8 + $0x8] sm:$0xff]  ;;  %v4781_v63 = vld [vmem:[#allocation8 + $0x118] sm:$0xff]  ;;  %v4778_v50 = vld [vmem:[#allocation8 + $0x100] sm:$0xff]  ;;  %p5164_p8 = pneg %p5163_p4 }
  0x4b   : > { %1558 = vmatpush.bf16.msra.mxu1 %v4768_v30  ;;  %v4741_v60 = vld [vmem:[%s5395_s23 + $0x58] sm:$0xff] }
  0x4c   : > { %1696 = vmatpush.bf16.msra.mxu2 %v5424_v19  ;;  %p5169_p10 = pnand %p5168_p2, %p5164_p8 }
  0x4d   : > { %551 = vmatpush.bf16.msra.mxu0 %v4749_v4  ;;  %4918 = vmatpush.bf16.msra.mxu3 %v4749_v4  ;;  %v5484_v4 = vsel %vm1123_vm0, 1.0, %v7610_v3 }
  0x4f   : > { %1559 = vmatpush.bf16.msra.mxu1 %v4767_v33 }
  0x50   : > { %1697 = vmatpush.bf16.msra.mxu2 %v5427_v20 }
  0x51   : > { %552 = vmatpush.bf16.msra.mxu0 %v4748_v5  ;;  %4919 = vmatpush.bf16.msra.mxu3 %v4748_v5  ;;  %v5487_v5 = vrot.slane %v7610_v3, 7 }
  0x53   : > { %1560 = vmatpush.bf16.msra.mxu1 %v4766_v37  ;;  %7760 = vst [vmem:[#allocation16_spill] sm:$0xff] %v5487_v5 }
  0x54   : > { %1698 = vmatpush.bf16.msra.mxu2 %v5430_v21 }
  0x55   : > { %553 = vmatpush.bf16.msra.mxu0 %v4747_v6  ;;  %4920 = vmatpush.bf16.msra.mxu3 %v4747_v6 }
  0x57   : > { %1561 = vmatpush.bf16.msra.mxu1 %v4765_v44 }
  0x58   : > { %1699 = vmatpush.bf16.msra.mxu2 %v5434_v23 }
  0x59   : > { %554 = vmatpush.bf16.msra.mxu0 %v4746_v7  ;;  %4921 = vmatpush.bf16.msra.mxu3 %v4746_v7 }
  0x5b   : > { %1562 = vmatpush.bf16.msra.mxu1 %v4764_v52 }
  0x5c   : > { %555 = vmatmul.bf16.vlgmr.msra.gmra.mxu0 %v4730_v8  ;;  %615 = vmatmul.bf16.vlgmr.msra.gmra.mxu3 %v4742_v9 }
  0x5d   : > { %1700 = vmatpush.bf16.msra.mxu2 %v5437_v24  ;;  %4922 = vmatpush.bf16.msrb.mxu3 %v4769_v29 }
  0x5e   : > { %2195 = vmatpush.bf16.msrb.mxu0 %v4785_v34  ;;  %v4779_v34 = vld [vmem:[#allocation8 + $0x108] sm:$0xff] }
  0x5f   : > { %1563 = vmatpush.bf16.msra.mxu1 %v4763_v62 }
  0x61   : > { %1701 = vmatpush.bf16.msra.mxu2 %v5440_v25  ;;  %4923 = vmatpush.bf16.msrb.mxu3 %v4768_v30 }
  0x62   : > { %2196 = vmatpush.bf16.msrb.mxu0 %v4784_v39 }
  0x64   : > { %1702 = vmatmul.bf16.vlgmr.msra.gmra.mxu2 %v7609_v27 }
  0x65   : > { %4924 = vmatpush.bf16.msrb.mxu3 %v4767_v33 }
  0x66   : > { %2197 = vmatpush.bf16.msrb.mxu0 %v4783_v45 }
  0x69   : > { %4925 = vmatpush.bf16.msrb.mxu3 %v4766_v37 }
  0x6a   : > { %2198 = vmatpush.bf16.msrb.mxu0 %v4782_v55 }
  0x6c   : > { %560 = vmatmul.bf16.gmra.mxu0 %v4731_v10  ;;  %620 = vmatmul.bf16.gmra.mxu3 %v4743_v11  ;;  %v4762_v10 = vld [vmem:[#allocation8] sm:$0xff] }
  0x6d   : > { %4926 = vmatpush.bf16.msrb.mxu3 %v4765_v44  ;;  %1564 = vmatpush.bf16.msra.mxu1 %v4762_v10 }
  0x6e   : > { %2199 = vmatpush.bf16.msrb.mxu0 %v4781_v63 }
  0x71   : > { %4927 = vmatpush.bf16.msrb.mxu3 %v4764_v52  ;;  %v4740_v52 = vld [vmem:[%s5395_s23 + $0x50] sm:$0xff] }
  0x75   : > { %4928 = vmatpush.bf16.msrb.mxu3 %v4763_v62 }
  0x79   : > { %4929 = vmatpush.bf16.msrb.mxu3 %v4762_v10 }
  0x7c   : > { %565 = vmatmul.bf16.gmra.mxu0 %v4732_v12  ;;  %625 = vmatmul.bf16.gmra.mxu3 %v4744_v13  ;;  %v4780_v12 = vld [vmem:[#allocation8 + $0x110] sm:$0xff]  ;;  %v5500_v13 = vsel %vm5475_vm1, 1.0, %v7610_v3 }
  0x7d   : > { %2200 = vmatpush.bf16.msrb.mxu0 %v4780_v12  ;;  %4930 = vmatpush.bf16.msra.mxu3 %v5417_v16 }
  0x81   : > { %2201 = vmatpush.bf16.msrb.mxu0 %v4779_v34  ;;  %4931 = vmatpush.bf16.msra.mxu3 %v5421_v18 }
  0x85   : > { %2202 = vmatpush.bf16.msrb.mxu0 %v4778_v50  ;;  %4932 = vmatpush.bf16.msra.mxu3 %v5424_v19 }
  0x89   : > { %4933 = vmatpush.bf16.msra.mxu3 %v5427_v20 }
  0x8c   : > { %570 = vmatmul.bf16.gmra.mxu0 %v4733_v14  ;;  %630 = vmatmul.bf16.gmra.mxu3 %v4745_v15 }
  0x8d   : > { %4934 = vmatpush.bf16.msra.mxu3 %v5430_v21  ;;  %v714_v21 = vadd.s32 56, %v5455_v41 }
  0x91   : > { %4935 = vmatpush.bf16.msra.mxu3 %v5434_v23 }
  0x95   : > { %4936 = vmatpush.bf16.msra.mxu3 %v5437_v24 }
  0x99   : > { %4937 = vmatpush.bf16.msra.mxu3 %v5440_v25 }
  0x9c   : > { %575 = vmatmul.bf16.gmra.mxu0 %v4734_v17 }
  0xac   : > { %580 = vmatmul.bf16.gmra.mxu0 %v4735_v22  ;;  %v5515_v22 = vsel %vm1222_vm3, 1.0, %v7610_v3 }
  0xbc   : > { %585 = vmatmul.bf16.gmra.mxu0 %v4736_v26  ;;  %v5520_v26 = vsel %vm5479_vm2, 1.0, %v7610_v3 }
  0xbd   : > { %7762 = vst [vmem:[#allocation18_spill] sm:$0xff] %v5520_v26 }
  0xcc   : > { %590 = vmatmul.bf16.gmra.mxu0 %v4737_v28 }
  0xd9   : > { %v556_v32 = vpop.f32.mrf.mxu0 }
  0xda   : > { %v557_v40 = vadd.f32 %v5450_v35, %v556_v32 }
  0xdc   : > { %595 = vmatmul.bf16.gmra.mxu0 %v4738_v31  ;;  %v5458_v46 = vmax.f32 %v557_v40, 0.0 }
  0xde   : > { %v5523_v28 = vrot.slane %v5458_v46, 1 }
  0xdf   : > { %v5452_v38 = vpop.f32.mrf.mxu3 }
  0xe0   : > { %7763 = vst [vmem:[#allocation19_spill] sm:$0xff] %v5523_v28 }
  0xe1   : > { %v558_v42 = vpop.f32.mrf.mxu0 }
  0xe2   : > { %v559_v43 = vadd.f32 %v5450_v35, %v558_v42  ;;  %v712_v42 = vadd.s32 40, %v5455_v41 }
  0xe4   : > { %v5460_v47 = vmax.f32 %v559_v43, 0.0  ;;  %v778_v57 = vand.u32 15, %v712_v42 }
  0xe6   : > { %v5467_v51 = vpack.c.bf16 %v5460_v47, %v5458_v46  ;;  %v1383_v6 = vrot.slane %v5460_v47, 7  ;;  %v1786_v7 = vrot.slane %v5460_v47, 1  ;;  %vm1224_vm6 = vcmp.lt.s32.totalorder %v778_v57, 15 }
  0xe7   : > { %v5470_v54 = vpop.f32.mrf.mxu3 }
  0xe8   : > { %1707 = vmatmul.bf16.gmra.mxu2 %v5467_v51  ;;  %v5540_v36 = vsel %vm1815_vm4, %v5523_v28, %v1786_v7 }
  0xe9   : > { %v561_v59 = vpop.f32.mrf.mxu0  ;;  %7767 = vst [vmem:[#allocation23_spill] sm:$0xff] %v5540_v36 }
  0xea   : > { %v562_v61 = vadd.f32 %v5450_v35, %v561_v59 }
  0xec   : > { %v638_v0 = vmax.f32 %v562_v61, 0.0  ;;  %600 = vmatmul.bf16.gmra.mxu0 %v4739_v56 }
  0xee   : > { %v1384_v8 = vrot.slane %v638_v0, 7  ;;  %v5491_v9 = vrot.slane %v638_v0, 1 }
  0xef   : > { %v5494_v11 = vpop.f32.mrf.mxu3 }
  0xf0   : > { %7761 = vst [vmem:[#allocation17_spill] sm:$0xff] %v5491_v9  ;;  %v1843_v14 = vsel %vm1815_vm4, %v1786_v7, %v5491_v9  ;;  %v5509_v15 = vsel %vm1412_vm5, %v1383_v6, %v1384_v8  ;;  %v3209_v17 = vsel %vm1412_vm5, %v5487_v5, %v1384_v8  ;;  %v5583_v7 = vsel %vm1224_vm6, 1.0, %v7610_v3 }
  0xf1   : > { %v563_v29 = vpop.f32.mrf.mxu0  ;;  %v5527_v30 = vmul.f32 %v5500_v13, %v5509_v15  ;;  %v5530_v31 = vmul.f32 %v5484_v4, %v3209_v17  ;;  %v5534_v33 = vmul.f32 %v5520_v26, %v1843_v14  ;;  %v5543_v37 = vmul.f32 %v5515_v22, %v1843_v14 }
  0xf2   : > { %v564_v32 = vadd.f32 %v5450_v35, %v563_v29  ;;  %v713_v14 = vadd.s32 48, %v5455_v41 }
  0xf3   : > { %7764 = vst [vmem:[#allocation20_spill] sm:$0xff] %v5527_v30 }
  0xf4   : > { %7765 = vst [vmem:[#allocation21_spill] sm:$0xff] %v5530_v31  ;;  %v639_v39 = vmax.f32 %v564_v32, 0.0 }
  0xf5   : > { %7766 = vst [vmem:[#allocation22_spill] sm:$0xff] %v5534_v33  ;;  %v720_v33 = vadd.s32 104, %v5455_v41 }
  0xf6   : > { %7768 = vst [vmem:[#allocation24_spill] sm:$0xff] %v5543_v37  ;;  %v1385_v43 = vrot.slane %v639_v39, 7  ;;  %v1788_v44 = vrot.slane %v639_v39, 1  ;;  %v5550_v45 = vpack.c.bf16 %v639_v39, %v638_v0 }
  0xf7   : > { %v5554_v49 = vpop.f32.mrf.mxu3 }
  0xf8   : > { %7769 = vst [vmem:[#allocation25_spill] sm:$0xff] %v5550_v45  ;;  %1712 = vmatmul.bf16.gmra.mxu2 %v5550_v45  ;;  %v5560_v53 = vsel %vm1412_vm5, %v1384_v8, %v1385_v43  ;;  %v5565_v55 = vsel %vm1815_vm4, %v5491_v9, %v1788_v44  ;;  %v5586_v8 = vsel %vm1127_vm7, 1.0, %v7610_v3 }
  0xf9   : > { %7770 = vst [vmem:[#allocation26_spill] sm:$0xff] %v5560_v53  ;;  %v566_v56 = vpop.f32.mrf.mxu0 }
  0xfa   : > { %7771 = vst [vmem:[#allocation27_spill] sm:$0xff] %v5565_v55  ;;  %v567_v59 = vadd.f32 %v5450_v35, %v566_v56  ;;  %v5619_v56 = vrot.slane %v5458_v46, 7 }
  0xfc   : > { %v640_v61 = vmax.f32 %v567_v59, 0.0  ;;  %605 = vmatmul.bf16.gmra.mxu0 %v4740_v52  ;;  %v785_v52 = vand.u32 15, %v713_v14 }
  0xfe   : > { %v1386_v62 = vrot.slane %v640_v61, 7  ;;  %v1789_v63 = vrot.slane %v640_v61, 1  ;;  %vm1129_vm8 = vcmp.gt.s32.totalorder %v785_v52, 0 }
  0xff   : > { %v5574_v0 = vpop.f32.mrf.mxu3  ;;  %v5653_v52 = vsel %vm1129_vm8, 1.0, %v7610_v3 }
 0x100   : > { %v5578_v1 = vsel %vm1412_vm5, %v1385_v43, %v1386_v62  ;;  %v1841_v2 = vsel %vm1815_vm4, %v1788_v44, %v1789_v63  ;;  %v5675_v43 = vsel %vm1412_vm5, %v5619_v56, %v1383_v6  ;;  %v717_v6 = vadd.s32 80, %v5455_v41 }
 0x101   : > { %v568_v19 = vpop.f32.mrf.mxu0  ;;  %v5589_v10 = vmul.f32 %v5515_v22, %v1841_v2  ;;  %v5592_v20 = vmul.f32 %v5520_v26, %v1841_v2  ;;  %v5599_v17 = vmul.f32 %v5586_v8, %v5578_v1  ;;  %v5607_v34 = vmul.f32 %v5500_v13, %v5578_v1  ;;  %7779 = vst [vmem:[#allocation35_spill] sm:$0xff] %v5675_v43 }
 0x102   : > { %v569_v12 = vadd.f32 %v5450_v35, %v568_v19  ;;  %v5610_v39 = vmul.f32 %v5583_v7, %v1841_v2 }
 0x103   : > { %7772 = vst [vmem:[#allocation28_spill] sm:$0xff] %v5589_v10 }
 0x104   : > { %7773 = vst [vmem:[#allocation29_spill] sm:$0xff] %v5592_v20  ;;  %v641_v42 = vmax.f32 %v569_v12, 0.0  ;;  %v792_v12 = vand.u32 15, %v714_v21 }
 0x105   : > { %7774 = vst [vmem:[#allocation30_spill] sm:$0xff] %v5599_v17 }
 0x106   : > { %7775 = vst [vmem:[#allocation31_spill] sm:$0xff] %v5607_v34  ;;  %v1387_v44 = vrot.slane %v641_v42, 7  ;;  %v1790_v48 = vrot.slane %v641_v42, 1  ;;  %v5615_v50 = vpack.c.bf16 %v641_v42, %v640_v61  ;;  %vm1226_vm9 = vcmp.lt.s32.totalorder %v792_v12, 15 }
 0x107   : > { %7776 = vst [vmem:[#allocation32_spill] sm:$0xff] %v5610_v39  ;;  %v628_v57 = vpop.f32.mrf.mxu3 }
 0x108   : > { %7777 = vst [vmem:[#allocation33_spill] sm:$0xff] %v5615_v50  ;;  %v629_v59 = vadd.f32 %v5450_v35, %v628_v57  ;;  %1717 = vmatmul.bf16.gmra.mxu2 %v5615_v50  ;;  %v5626_v2 = vsel %vm1412_vm5, %v1386_v62, %v1387_v44  ;;  %v5630_v61 = vsel %vm1815_vm4, %v1789_v63, %v1790_v48 }
 0x109   : > { %v571_v19 = vpop.f32.mrf.mxu0  ;;  %v617_v62 = vadd.f32 %v5450_v35, %v5452_v38  ;;  %v1442_v63 = vsel %vm1412_vm5, %v5487_v5, %v5619_v56 }
 0x10a   : > { %v5636_v14 = vmax.f32 %v629_v59, 0.0  ;;  %v572_v42 = vadd.f32 %v5450_v35, %v571_v19  ;;  %v715_v59 = vadd.s32 64, %v5455_v41  ;;  %v5662_v27 = vmul.f32 %v5500_v13, %v1442_v63 }
 0x10c   : > { %v5647_v21 = vrot.slane %v5636_v14, 7  ;;  %v5649_v57 = vmax.f32 %v572_v42, 0.0  ;;  %610 = vmatmul.bf16.gmra.mxu0 %v4741_v60  ;;  %v5665_v60 = vmax.f32 %v617_v62, 0.0  ;;  %v619_v42 = vadd.f32 %v5450_v35, %v5470_v54 }
 0x10d   : > { %v799_v46 = vand.u32 15, %v715_v59  ;;  %v5684_v54 = vsel %vm1226_vm9, 1.0, %v7610_v3  ;;  %v622_v62 = vadd.f32 %v5450_v35, %v5494_v11  ;;  %v813_v11 = vand.u32 15, %v717_v6 }
 0x10e   : > { %v1388_v24 = vrot.slane %v5649_v57, 7  ;;  %v1791_v38 = vrot.slane %v5649_v57, 1  ;;  %v1444_v19 = vsel %vm1412_vm5, %v5647_v21, %v5487_v5  ;;  %7778 = vst [vmem:[#allocation34_spill] sm:$0xff] %v5665_v60  ;;  %v5714_v23 = vmax.f32 %v619_v42, 0.0 }
 0x10f   : > { %v631_v12 = vpop.f32.mrf.mxu3  ;;  %v1445_v32 = vmul.f32 %v5484_v4, %v1444_v19  ;;  %v5716_v29 = vmax.f32 %v622_v62, 0.0  ;;  %vm1131_vm10 = vcmp.gt.s32.totalorder %v799_v46, 0  ;;  %vm1133_vm11 = vcmp.gt.s32.totalorder %v813_v11, 0 }
 0x110   : > { %v5679_v13 = vsel %vm1412_vm5, %v1387_v44, %v1388_v24  ;;  %v1839_v25 = vsel %vm1815_vm4, %v1790_v48, %v1791_v38  ;;  %v624_v44 = vadd.f32 %v5450_v35, %v5554_v49  ;;  %v716_v48 = vadd.s32 72, %v5455_v41  ;;  %7785 = vst [vmem:[#allocation41_spill] sm:$0xff] %v5714_v23 }
 0x111   : > { %v573_v47 = vpop.f32.mrf.mxu0  ;;  %v1477_v63 = vpack.c.bf16 %v5487_v5, %v1445_v32  ;;  %v5691_v59 = vmul.f32 %v5583_v7, %v1839_v25  ;;  %v5699_v16 = vmul.f32 %v5653_v52, %v5679_v13  ;;  %v5705_v32 = vmul.f32 %v5586_v8, %v5679_v13  ;;  %7786 = vst [vmem:[#allocation42_spill] sm:$0xff] %v5716_v29 }
 0x112   : > { %v574_v19 = vadd.f32 %v5450_v35, %v573_v47  ;;  %v5708_v18 = vmul.f32 %v5684_v54, %v1839_v25  ;;  %v5711_v49 = vmul.f32 %v5515_v22, %v1839_v25  ;;  %v5726_v42 = vmax.f32 %v624_v44, 0.0 }
 0x113   : > { %7780 = vst [vmem:[#allocation36_spill] sm:$0xff] %v5691_v59  ;;  %1565 = vmatmul.bf16.vlgmr.msra.gmra.mxu1 %v1477_v63  ;;  %v1478_v63 = vpack.c.bf16 %v5675_v43, %v5662_v27  ;;  %v627_v25 = vadd.f32 %v5450_v35, %v5574_v0  ;;  %v1810_v27 = vrot.slane %v5714_v23, 1  ;;  %v7798_v31 = vrot.slane %v5665_v60, 1 }
 0x114   : > { %7781 = vst [vmem:[#allocation37_spill] sm:$0xff] %v5699_v16  ;;  %v643_v58 = vmax.f32 %v574_v19, 0.0  ;;  %v806_v19 = vand.u32 15, %v716_v48  ;;  %v7789_v48 = vmov 0.0   ;;  %v7816_v10 = vrot.slane %v5716_v29, 1 }
 0x115   : > { %7782 = vst [vmem:[#allocation38_spill] sm:$0xff] %v5705_v32  ;;  %v5744_v40 = vsel %vm1131_vm10, 1.0, %v7789_v48  ;;  %v5757_v47 = vmax.f32 %v627_v25, 0.0  ;;  %v5786_v25 = vadd.s32 96, %v5455_v41  ;;  %v5830_v26 = vsel %vm1815_vm4, %v7798_v31, %v1810_v27 }
 0x116   : > { %7783 = vst [vmem:[#allocation39_spill] sm:$0xff] %v5708_v18  ;;  %v1389_v3 = vrot.slane %v643_v58, 7  ;;  %v1792_v9 = vrot.slane %v643_v58, 1  ;;  %v5723_v5 = vpack.c.bf16 %v643_v58, %v5649_v57  ;;  %v5735_v58 = vmul.f32 %v5586_v8, %v5509_v15 }
 0x117   : > { %7784 = vst [vmem:[#allocation40_spill] sm:$0xff] %v5711_v49  ;;  %v633_v62 = vpop.f32.mrf.mxu3  ;;  %vm1228_vm12 = vcmp.lt.s32.totalorder %v806_v19, 15  ;;  %v718_v15 = vadd.s32 88, %v5455_v41  ;;  %v5789_v19 = vrot.slane %v5636_v14, 1  ;;  %v5847_v31 = vadd.s32 224, %v5455_v41 }
 0x118   : > { %7787 = vst [vmem:[#allocation43_spill] sm:$0xff] %v5723_v5  ;;  %v634_v6 = vadd.f32 %v5450_v35, %v633_v62  ;;  %1722 = vmatmul.bf16.gmra.mxu2 %v5723_v5  ;;  %v5739_v46 = vsel %vm1815_vm4, %v1791_v38, %v1792_v9  ;;  %v5753_v8 = vsel %vm1412_vm5, %v1388_v24, %v1389_v3  ;;  %v733_v38 = vadd.s32 208, %v5455_v41 }
 0x119   : > { %7788 = vst [vmem:[#allocation44_spill] sm:$0xff] %v5726_v42  ;;  %v576_v44 = vpop.f32.mrf.mxu0  ;;  %v632_v24 = vadd.f32 %v5450_v35, %v631_v12  ;;  %v1410_v12 = vrot.slane %v5757_v47, 7  ;;  %v7813_v16 = vrot.slane %v5757_v47, 1 }
 0x11a   : > { %v5746_v62 = vmax.f32 %v634_v6, 0.0  ;;  %v577_v22 = vadd.f32 %v5450_v35, %v576_v44  ;;  %v5764_v44 = vsel %vm1133_vm11, 1.0, %v7789_v48  ;;  %7799 = vst [vmem:[#allocation52_spill] sm:$0xff] %v5830_v26  ;;  %v721_v26 = vadd.s32 112, %v5455_v41 }
 0x11b   : > { %v5799_v39 = vmax.f32 %v632_v24, 0.0  ;;  %v732_v24 = vadd.s32 200, %v5455_v41 }
 0x11c   : > { %7790 = vst [vmem:[#allocation45_spill] sm:$0xff] %v5746_v62  ;;  %v5760_v11 = vrot.slane %v5746_v62, 7  ;;  %v644_v6 = vmax.f32 %v577_v22, 0.0  ;;  %2203 = vmatmul.bf16.vlgmr.msrb.gmra.mxu0 %v5467_v51  ;;  %v5778_v22 = vsel %vm1228_vm12, 1.0, %v7789_v48  ;;  %v7822_v62 = vrot.slane %v5716_v29, 7 }
 0x11d   : > { %7793 = vst [vmem:[#allocation48_spill] sm:$0xff] %v5799_v39 }
 0x11e   : > { %7791 = vst [vmem:[#allocation46_spill] sm:$0xff] %v5760_v11  ;;  %v1390_v57 = vrot.slane %v644_v6, 7  ;;  %v1793_v0 = vrot.slane %v644_v6, 1  ;;  %v2379_v51 = vsel %vm1412_vm5, %v5760_v11, %v5619_v56  ;;  %v820_v11 = vand.u32 15, %v718_v15 }
 0x11f   : > { %v5783_v18 = vmul.f32 %v5484_v4, %v2379_v51  ;;  %v925_v51 = vand.u32 15, %v733_v38  ;;  %v7797_v4 = vrot.slane %v5716_v29, 1 }
 0x120   : > { %v5793_v32 = vsel %vm1412_vm5, %v1389_v3, %v1390_v57  ;;  %v5797_v56 = vsel %vm1815_vm4, %v1792_v9, %v1793_v0  ;;  %v731_v3 = vadd.s32 192, %v5455_v41  ;;  %vm5833_vm13 = vcmp.lt.s32.totalorder %v820_v11, 15 }
 0x121   : > { %7792 = vst [vmem:[#allocation47_spill] sm:$0xff] %v5783_v18  ;;  %v578_v20 = vpop.f32.mrf.mxu0  ;;  %v5805_v34 = vmul.f32 %v5684_v54, %v5797_v56  ;;  %v5811_v9 = vmul.f32 %v5744_v40, %v5793_v32  ;;  %v5815_v15 = vmul.f32 %v5653_v52, %v5793_v32  ;;  %v5839_v38 = vmul.f32 %v5778_v22, %v5797_v56 }
 0x122   : > { %v579_v37 = vadd.f32 %v5450_v35, %v578_v20  ;;  %v5824_v20 = vsel %vm1815_vm4, %v1810_v27, %v7797_v4  ;;  %v734_v4 = vadd.s32 216, %v5455_v41  ;;  %vm5842_vm14 = vcmp.gt.s32.totalorder %v925_v51, 0 }
 0x123   : > { %7794 = vst [vmem:[#allocation49_spill] sm:$0xff] %v5805_v34  ;;  %1570 = vmatmul.bf16.gmra.mxu1 %v1478_v63  ;;  %v737_v63 = vadd.s32 240, %v5455_v41  ;;  %v918_v27 = vand.u32 15, %v732_v24  ;;  %v911_v43 = vand.u32 15, %v731_v3  ;;  %v5869_v3 = vsel %vm5842_vm14, 1.0, %v7789_v48 }
 0x124   : > { %7795 = vst [vmem:[#allocation50_spill] sm:$0xff] %v5811_v9  ;;  %v645_v28 = vmax.f32 %v579_v37, 0.0  ;;  %v730_v37 = vadd.s32 184, %v5455_v41  ;;  %v932_v51 = vand.u32 15, %v734_v4 }
 0x125   : > { %7796 = vst [vmem:[#allocation51_spill] sm:$0xff] %v5815_v15  ;;  %v953_v18 = vand.u32 15, %v737_v63  ;;  %vm1244_vm15 = vcmp.lt.s32.totalorder %v918_v27, 15  ;;  %vm1147_vm2 = vcmp.gt.s32.totalorder %v911_v43, 0  ;;  %v939_v43 = vand.u32 15, %v5847_v31 }
 0x126   : > { %7802 = vst [vmem:[#allocation53_spill] sm:$0xff] %v5839_v38  ;;  %v1391_v11 = vrot.slane %v645_v28, 7  ;;  %v1794_v17 = vrot.slane %v645_v28, 1  ;;  %v5850_v30 = vpack.c.bf16 %v645_v28, %v644_v6  ;;  %v5864_v28 = vsel %vm1244_vm15, 1.0, %v7789_v48 }
 0x127   : > { %vm1153_vm0 = vcmp.gt.s32.totalorder %v953_v18, 0  ;;  %v5891_v34 = vmul.f32 %v5864_v28, %v5824_v20  ;;  %v7811_v38 = vrot.slane %v5716_v29, 7  ;;  %vm1246_vm1 = vcmp.lt.s32.totalorder %v932_v51, 15 }
 0x128   : > { %7805 = vst [vmem:[#allocation54_spill] sm:$0xff] %v5850_v30  ;;  %1727 = vmatmul.bf16.gmra.mxu2 %v5850_v30  ;;  %v5857_v59 = vsel %vm1412_vm5, %v1390_v57, %v1391_v11  ;;  %v5861_v24 = vsel %vm1815_vm4, %v1793_v0, %v1794_v17  ;;  %v5872_v63 = vsel %vm1153_vm0, 1.0, %v7789_v48  ;;  %v7808_v57 = vrot.slane %v5726_v42, 7 }
 0x129   : > { %7806 = vst [vmem:[#allocation55_spill] sm:$0xff] %v5857_v59  ;;  %v581_v6 = vpop.f32.mrf.mxu0  ;;  %v904_v51 = vand.u32 15, %v730_v37  ;;  %v5940_v37 = vsel %vm5833_vm13, 1.0, %v7789_v48  ;;  %v7821_v31 = vrot.slane %v5726_v42, 7  ;;  %vm5993_vm6 = vcmp.gt.s32.totalorder %v939_v43, 0 }
 0x12a   : > { %7807 = vst [vmem:[#allocation56_spill] sm:$0xff] %v5872_v63  ;;  %v5878_v18 = vsel %vm1412_vm5, %v7808_v57, %v1410_v12  ;;  %v582_v4 = vadd.f32 %v5450_v35, %v581_v6  ;;  %v7812_v57 = vrot.slane %v5714_v23, 7  ;;  %v5904_v6 = vsel %vm1412_vm5, %v1410_v12, %v5647_v21 }
 0x12b   : > { %v5885_v27 = vmul.f32 %v5872_v63, %v5878_v18  ;;  %7810 = vst [vmem:[#allocation58_spill] sm:$0xff] %v5891_v34  ;;  %v7814_v63 = vrot.slane %v5726_v42, 1  ;;  %v5920_v12 = vsel %vm1246_vm1, 1.0, %v7789_v48  ;;  %vm1242_vm3 = vcmp.lt.s32.totalorder %v904_v51, 15 }
 0x12c   : > { %v5899_v0 = vsel %vm1412_vm5, %v7812_v57, %v7811_v38  ;;  %v646_v9 = vmax.f32 %v582_v4, 0.0  ;;  %2208 = vmatmul.bf16.gmra.mxu0 %v5550_v45  ;;  %v736_v45 = vadd.s32 232, %v5455_v41  ;;  %v5953_v57 = vsel %vm1147_vm2, 1.0, %v7789_v48 }
 0x12d   : > { %7809 = vst [vmem:[#allocation57_spill] sm:$0xff] %v5885_v27  ;;  %v5912_v15 = vsel %vm1815_vm4, %v7814_v63, %v7813_v16  ;;  %v7815_v55 = vmov %v7814_v63  ;;  %v5961_v27 = vsel %vm1412_vm5, %v7822_v62, %v7821_v31  ;;  %v5991_v51 = vmul.f32 %v5953_v57, %v5899_v0 }
 0x12e   : > { %v5928_v63 = vsel %vm1815_vm4, %v7816_v10, %v7815_v55  ;;  %v5932_v4 = vmul.f32 %v5920_v12, %v5912_v15  ;;  %v1392_v16 = vrot.slane %v646_v9, 7  ;;  %v1795_v38 = vrot.slane %v646_v9, 1 }
 0x12f   : > { %7817 = vst [vmem:[#allocation59_spill] sm:$0xff] %v5928_v63  ;;  %v5946_v10 = vmul.f32 %v5869_v3, %v5899_v0  ;;  %v6008_v29 = vmul.f32 %v5583_v7, %v5797_v56 }
 0x130   : > { %7818 = vst [vmem:[#allocation60_spill] sm:$0xff] %v5932_v4  ;;  %v5950_v34 = vsel %vm1412_vm5, %v1391_v11, %v1392_v16  ;;  %v1835_v55 = vsel %vm1815_vm4, %v1794_v17, %v1795_v38  ;;  %v946_v17 = vand.u32 15, %v736_v45  ;;  %v7826_v4 = vpack.c.bf16 %v5560_v53, %v5735_v58 }
 0x131   : > { %7819 = vst [vmem:[#allocation61_spill] sm:$0xff] %v5946_v10  ;;  %v583_v23 = vpop.f32.mrf.mxu0  ;;  %v5967_v11 = vmul.f32 %v5778_v22, %v1835_v55  ;;  %v5971_v36 = vmul.f32 %v5764_v44, %v5950_v34  ;;  %v5976_v31 = vmul.f32 %v5744_v40, %v5950_v34  ;;  %v5979_v62 = vmul.f32 %v5940_v37, %v1835_v55 }
 0x132   : > { %7820 = vst [vmem:[#allocation62_spill] sm:$0xff] %v5950_v34  ;;  %v584_v42 = vadd.f32 %v5450_v35, %v583_v23  ;;  %vm1248_vm7 = vcmp.lt.s32.totalorder %v946_v17, 15  ;;  %v834_v45 = vand.u32 15, %v720_v33  ;;  %v6017_v58 = vpack.c.bf16 %v5636_v14, %v5757_v47 }
 0x133   : > { %7823 = vst [vmem:[#allocation63_spill] sm:$0xff] %v5971_v36  ;;  %1575 = vmatmul.bf16.gmra.mxu1 %v7826_v4  ;;  %v6002_v4 = vsel %vm1242_vm3, 1.0, %v7789_v48  ;;  %v6034_v33 = vmul.f32 %v5920_v12, %v5824_v20  ;;  %v728_v36 = vadd.s32 168, %v5455_v41 }
 0x134   : > { %7824 = vst [vmem:[#allocation64_spill] sm:$0xff] %v5976_v31  ;;  %v647_v60 = vmax.f32 %v584_v42, 0.0  ;;  %v6011_v42 = vmul.f32 %v5684_v54, %v1835_v55  ;;  %v6038_v14 = vmul.f32 %v6002_v4, %v5824_v20  ;;  %v6050_v55 = vsel %vm1248_vm7, 1.0, %v7789_v48 }
 0x135   : > { %7825 = vst [vmem:[#allocation65_spill] sm:$0xff] %v5979_v62  ;;  %v7838_v20 = vrot.slane %v5799_v39, 1  ;;  %vm1232_vm8 = vcmp.lt.s32.totalorder %v834_v45, 15  ;;  %v1451_v45 = vmul.f32 %v5653_v52, %v5578_v1 }
 0x136   : > { %7827 = vst [vmem:[#allocation66_spill] sm:$0xff] %v5991_v51  ;;  %v1393_v43 = vrot.slane %v647_v60, 7  ;;  %v1796_v10 = vrot.slane %v647_v60, 1  ;;  %v6013_v53 = vpack.c.bf16 %v647_v60, %v646_v9  ;;  %v6043_v9 = vsel %vm5993_vm6, 1.0, %v7789_v48 }
 0x137   : > { %7830 = vst [vmem:[#allocation67_spill] sm:$0xff] %v6008_v29  ;;  %v6058_v7 = vsel %vm1815_vm4, %v5789_v19, %v7838_v20  ;;  %v6062_v34 = vmul.f32 %v6043_v9, %v5878_v18  ;;  %v7841_v20 = vrot.slane %v5757_v47, 1  ;;  %v6089_v47 = vsel %vm1232_vm8, 1.0, %v7789_v48 }
 0x138   : > { %7831 = vst [vmem:[#allocation68_spill] sm:$0xff] %v6011_v42  ;;  %1732 = vmatmul.bf16.gmra.mxu2 %v6013_v53  ;;  %v6026_v54 = vsel %vm1412_vm5, %v1392_v16, %v1393_v43  ;;  %v6030_v60 = vsel %vm1815_vm4, %v1795_v38, %v1796_v10  ;;  %v6068_v38 = vmul.f32 %v6050_v55, %v6058_v7 }
 0x139   : > { %7832 = vst [vmem:[#allocation69_spill] sm:$0xff] %v6013_v53  ;;  %v586_v56 = vpop.f32.mrf.mxu0  ;;  %v6078_v42 = vsel %vm1815_vm4, %v7841_v20, %v5789_v19  ;;  %v1480_v29 = vpack.c.bf16 %v5626_v2, %v1451_v45 }
 0x13a   : > { %7833 = vst [vmem:[#allocation70_spill] sm:$0xff] %v6017_v58  ;;  %v587_v17 = vadd.f32 %v5450_v35, %v586_v56 }
 0x13b   : > { %7834 = vst [vmem:[#allocation71_spill] sm:$0xff] %v6026_v54 }
 0x13c   : > { %7835 = vst [vmem:[#allocation72_spill] sm:$0xff] %v6034_v33  ;;  %v648_v16 = vmax.f32 %v587_v17, 0.0  ;;  %2213 = vmatmul.bf16.gmra.mxu0 %v5615_v50  ;;  %v7843_v17 = vand.u32 15, %v5786_v25 }
 0x13d   : > { %7836 = vst [vmem:[#allocation73_spill] sm:$0xff] %v6038_v14 }
 0x13e   : > { %7837 = vst [vmem:[#allocation74_spill] sm:$0xff] %v6050_v55  ;;  %v1394_v33 = vrot.slane %v648_v16, 7  ;;  %v1797_v49 = vrot.slane %v648_v16, 1  ;;  %vm1135_vm9 = vcmp.gt.s32.totalorder %v7843_v17, 0  ;;  %v6149_v17 = vmul.f32 %v5869_v3, %v5878_v18 }
 0x13f   : > { %7839 = vst [vmem:[#allocation75_spill] sm:$0xff] %v6062_v34  ;;  %v6099_v14 = vsel %vm1135_vm9, 1.0, %v7789_v48  ;;  %v6140_v34 = vmul.f32 %v6050_v55, %v5912_v15 }
 0x140   : > { %7840 = vst [vmem:[#allocation76_spill] sm:$0xff] %v6068_v38  ;;  %v6093_v20 = vsel %vm1412_vm5, %v1393_v43, %v1394_v33  ;;  %v1833_v56 = vsel %vm1815_vm4, %v1796_v10, %v1797_v49 }
 0x141   : > { %7842 = vst [vmem:[#allocation77_spill] sm:$0xff] %v6078_v42  ;;  %v588_v23 = vpop.f32.mrf.mxu0  ;;  %v6102_v25 = vmul.f32 %v5940_v37, %v1833_v56  ;;  %v6107_v52 = vmul.f32 %v6099_v14, %v6093_v20  ;;  %v6111_v43 = vmul.f32 %v5764_v44, %v6093_v20  ;;  %v6114_v10 = vmul.f32 %v6089_v47, %v1833_v56 }
 0x142   : > { %v589_v1 = vadd.f32 %v5450_v35, %v588_v23  ;;  %v6119_v45 = vmul.f32 %v5778_v22, %v1833_v56  ;;  %v722_v23 = vadd.s32 120, %v5455_v41  ;;  %7850 = vst [vmem:[#allocation84_spill] sm:$0xff] %v6140_v34 }
 0x143   : > { %7844 = vst [vmem:[#allocation78_spill] sm:$0xff] %v6107_v52  ;;  %1580 = vmatmul.bf16.gmra.mxu1 %v1480_v29  ;;  %v4793_v29 = vld [vmem:[#allocation8 + $0xf8] sm:$0xff]  ;;  %v6210_v52 = vpop.f32.mrf.mxu2 }
 0x144   : > { %7845 = vst [vmem:[#allocation79_spill] sm:$0xff] %v6111_v43  ;;  %v649_v50 = vmax.f32 %v589_v1, 0.0  ;;  %2493 = vmatpush.bf16.msrb.mxu1 %v4793_v29  ;;  %v848_v1 = vand.u32 15, %v722_v23  ;;  %v6155_v23 = vmul.f32 %v5864_v28, %v5912_v15  ;;  %v738_v29 = vadd.s32 248, %v5455_v41 }
 0x145   : > { %7846 = vst [vmem:[#allocation80_spill] sm:$0xff] %v6114_v10  ;;  %v6203_v10 = vrot.slane %v7789_v48, 1  ;;  %v723_v43 = vadd.s32 128, %v5455_v41 }
 0x146   : > { %7847 = vst [vmem:[#allocation81_spill] sm:$0xff] %v6119_v45  ;;  %v1395_v38 = vrot.slane %v649_v50, 7  ;;  %v1798_v62 = vrot.slane %v649_v50, 1  ;;  %v6126_v31 = vpack.c.bf16 %v649_v50, %v648_v16  ;;  %vm1234_vm10 = vcmp.lt.s32.totalorder %v848_v1, 15 }
 0x147   : > { %7851 = vst [vmem:[#allocation85_spill] sm:$0xff] %v6149_v17  ;;  %v6166_v15 = vsel %vm1234_vm10, 1.0, %v7789_v48  ;;  %v724_v45 = vadd.s32 136, %v5455_v41 }
 0x148   : > { %7848 = vst [vmem:[#allocation82_spill] sm:$0xff] %v6126_v31  ;;  %1737 = vmatmul.bf16.gmra.mxu2 %v6126_v31  ;;  %v6132_v22 = vsel %vm1412_vm5, %v1394_v33, %v1395_v38  ;;  %v6136_v56 = vsel %vm1815_vm4, %v1797_v49, %v1798_v62  ;;  %v841_v33 = vand.u32 15, %v721_v26  ;;  %v1453_v49 = vmul.f32 %v5744_v40, %v5679_v13 }
 0x149   : > { %7849 = vst [vmem:[#allocation83_spill] sm:$0xff] %v6132_v22  ;;  %v591_v50 = vpop.f32.mrf.mxu0  ;;  %v960_v26 = vand.u32 15, %v738_v29 }
 0x14a   : > { %v592_v51 = vadd.f32 %v5450_v35, %v591_v50  ;;  %7852 = vst [vmem:[#allocation86_spill] sm:$0xff] %v6155_v23  ;;  %vm1137_vm11 = vcmp.gt.s32.totalorder %v841_v33, 0  ;;  %v1481_v18 = vpack.c.bf16 %v5753_v8, %v1453_v49 }
 0x14b   : > { %v6176_v23 = vsel %vm1137_vm11, 1.0, %v7789_v48  ;;  %vm1250_vm12 = vcmp.lt.s32.totalorder %v960_v26, 15  ;;  %7857 = vst [vmem:[#allocation91_spill] sm:$0xff] %v6203_v10 }
 0x14c   : > { %v650_v55 = vmax.f32 %v592_v51, 0.0  ;;  %2218 = vmatmul.bf16.gmra.mxu0 %v5723_v5  ;;  %7859 = vst [vmem:[#allocation93_spill] sm:$0xff] %v6210_v52  ;;  %v6213_v26 = vsel %vm1250_vm12, 1.0, %v7789_v48 }
 0x14d   : > { %7860 = vst [vmem:[#allocation94_spill] sm:$0xff] %v6213_v26 }
 0x14e   : > { %v1396_v50 = vrot.slane %v650_v55, 7  ;;  %v1799_v16 = vrot.slane %v650_v55, 1 }
 0x150   : > { %v6170_v51 = vsel %vm1412_vm5, %v1395_v38, %v1396_v50  ;;  %v1831_v1 = vsel %vm1815_vm4, %v1798_v62, %v1799_v16 }
 0x151   : > { %v593_v5 = vpop.f32.mrf.mxu0  ;;  %v6179_v33 = vmul.f32 %v6089_v47, %v1831_v1  ;;  %v6184_v13 = vmul.f32 %v6176_v23, %v6170_v51  ;;  %v6188_v38 = vmul.f32 %v6099_v14, %v6170_v51  ;;  %v6191_v62 = vmul.f32 %v6166_v15, %v1831_v1 }
 0x152   : > { %v594_v40 = vadd.f32 %v5450_v35, %v593_v5  ;;  %v6198_v5 = vmul.f32 %v5940_v37, %v1831_v1  ;;  %v4801_v37 = vld [vmem:[#allocation8 + $0x178] sm:$0xff]  ;;  %v862_v1 = vand.u32 15, %v724_v45 }
 0x153   : > { %7853 = vst [vmem:[#allocation87_spill] sm:$0xff] %v6184_v13  ;;  %1585 = vmatmul.bf16.gmra.mxu1 %v1481_v18  ;;  %2791 = vmatpush.bf16.msrb.mxu2 %v4801_v37 }
 0x154   : > { %7854 = vst [vmem:[#allocation88_spill] sm:$0xff] %v6188_v38  ;;  %v651_v34 = vmax.f32 %v594_v40, 0.0  ;;  %v7861_v40 = vrot.slane %v5799_v39, 7  ;;  %vm1236_vm13 = vcmp.lt.s32.totalorder %v862_v1, 15 }
 0x155   : > { %7855 = vst [vmem:[#allocation89_spill] sm:$0xff] %v6191_v62  ;;  %v725_v62 = vadd.s32 144, %v5455_v41 }
 0x156   : > { %7856 = vst [vmem:[#allocation90_spill] sm:$0xff] %v6198_v5  ;;  %v1397_v29 = vrot.slane %v651_v34, 7  ;;  %v1800_v49 = vrot.slane %v651_v34, 1  ;;  %v6208_v63 = vpack.c.bf16 %v651_v34, %v650_v55  ;;  %v6220_v17 = vsel %vm1412_vm5, %v5647_v21, %v7861_v40  ;;  %v4792_v5 = vld [vmem:[#allocation8 + $0xf0] sm:$0xff] }
 0x157   : > { %7862 = vst [vmem:[#allocation95_spill] sm:$0xff] %v6220_v17  ;;  %v1847_v55 = vsel %vm1815_vm4, %v5789_v19, %v6203_v10  ;;  %v6240_v21 = vmul.f32 %v5920_v12, %v6058_v7  ;;  %v855_v19 = vand.u32 15, %v723_v43  ;;  %v4800_v7 = vld [vmem:[#allocation8 + $0x170] sm:$0xff]  ;;  %2494 = vmatpush.bf16.msrb.mxu1 %v4792_v5  ;;  %v4791_v10 = vld [vmem:[#allocation8 + $0xe8] sm:$0xff] }
 0x158   : > { %7858 = vst [vmem:[#allocation92_spill] sm:$0xff] %v6208_v63  ;;  %1742 = vmatmul.bf16.gmra.mxu2 %v6208_v63  ;;  %v6229_v34 = vsel %vm1412_vm5, %v1396_v50, %v1397_v29  ;;  %v6233_v45 = vsel %vm1815_vm4, %v1799_v16, %v1800_v49  ;;  %v6236_v18 = vmul.f32 %v6213_v26, %v1847_v55  ;;  %v6268_v55 = vpop.f32.mrf.mxu2  ;;  %v4795_v26 = vld [vmem:[#allocation8 + $0x148] sm:$0xff] }
 0x159   : > { %7863 = vst [vmem:[#allocation96_spill] sm:$0xff] %v6229_v34  ;;  %v596_v40 = vpop.f32.mrf.mxu0  ;;  %v6249_v16 = vmul.f32 %v6043_v9, %v6220_v17  ;;  %2792 = vmatpush.bf16.msrb.mxu2 %v4800_v7  ;;  %vm1139_vm14 = vcmp.gt.s32.totalorder %v855_v19, 0  ;;  %v6259_v17 = vsel %vm1236_vm13, 1.0, %v7789_v48 }
 0x15a   : > { %7864 = vst [vmem:[#allocation97_spill] sm:$0xff] %v6233_v45  ;;  %v597_v52 = vadd.f32 %v5450_v35, %v596_v40  ;;  %v1455_v40 = vmul.f32 %v5764_v44, %v5793_v32  ;;  %v6271_v32 = vsel %vm1139_vm14, 1.0, %v7789_v48 }
 0x15b   : > { %7865 = vst [vmem:[#allocation98_spill] sm:$0xff] %v6236_v18  ;;  %v869_v18 = vand.u32 15, %v725_v62  ;;  %v7874_v62 = vld [vmem:[#allocation62_spill] sm:$0xff]  ;;  %2495 = vmatpush.bf16.msrb.mxu1 %v4791_v10 }
 0x15c   : > { %7866 = vst [vmem:[#allocation99_spill] sm:$0xff] %v6240_v21  ;;  %v652_v43 = vmax.f32 %v597_v52, 0.0  ;;  %2223 = vmatmul.bf16.gmra.mxu0 %v5850_v30  ;;  %v1482_v7 = vpack.c.bf16 %v5857_v59, %v1455_v40  ;;  %v726_v30 = vadd.s32 152, %v5455_v41  ;;  %v4797_v40 = vld [vmem:[#allocation8 + $0x158] sm:$0xff] }
 0x15d   : > { %7867 = vst [vmem:[#allocation100_spill] sm:$0xff] %v6249_v16  ;;  %v4799_v16 = vld [vmem:[#allocation8 + $0x168] sm:$0xff]  ;;  %vm1141_vm0 = vcmp.gt.s32.totalorder %v869_v18, 0 }
 0x15e   : > { %v1398_v37 = vrot.slane %v652_v43, 7  ;;  %v1801_v50 = vrot.slane %v652_v43, 1  ;;  %2793 = vmatpush.bf16.msrb.mxu2 %v4799_v16  ;;  %v4798_v16 = vld [vmem:[#allocation8 + $0x160] sm:$0xff] }
 0x160   : > { %v6263_v12 = vsel %vm1412_vm5, %v1397_v29, %v1398_v37  ;;  %v1829_v52 = vsel %vm1815_vm4, %v1800_v49, %v1801_v50 }
 0x161   : > { %v598_v1 = vpop.f32.mrf.mxu0  ;;  %v6274_v44 = vmul.f32 %v6166_v15, %v1829_v52  ;;  %v6279_v29 = vmul.f32 %v6271_v32, %v6263_v12  ;;  %v6283_v49 = vmul.f32 %v6176_v23, %v6263_v12  ;;  %v6286_v19 = vmul.f32 %v6259_v17, %v1829_v52 }
 0x162   : > { %v599_v5 = vadd.f32 %v5450_v35, %v598_v1  ;;  %v6291_v21 = vmul.f32 %v6089_v47, %v1829_v52  ;;  %2794 = vmatpush.bf16.msrb.mxu2 %v4798_v16 }
 0x163   : > { %7868 = vst [vmem:[#allocation101_spill] sm:$0xff] %v6279_v29  ;;  %1590 = vmatmul.bf16.gmra.mxu1 %v1482_v7 }
 0x164   : > { %7869 = vst [vmem:[#allocation102_spill] sm:$0xff] %v6283_v49  ;;  %v653_v1 = vmax.f32 %v599_v5, 0.0  ;;  %v876_v5 = vand.u32 15, %v726_v30 }
 0x165   : > { %7870 = vst [vmem:[#allocation103_spill] sm:$0xff] %v6286_v19 }
 0x166   : > { %7871 = vst [vmem:[#allocation104_spill] sm:$0xff] %v6291_v21  ;;  %v1399_v7 = vrot.slane %v653_v1, 7  ;;  %v1802_v38 = vrot.slane %v653_v1, 1  ;;  %v6299_v42 = vpack.c.bf16 %v653_v1, %v652_v43  ;;  %2795 = vmatpush.bf16.msrb.mxu2 %v4797_v40  ;;  %vm1238_vm15 = vcmp.lt.s32.totalorder %v876_v5, 15 }
 0x167   : > { %v1457_v40 = vmul.f32 %v6099_v14, %v7874_v62  ;;  %v6321_v29 = vsel %vm1238_vm15, 1.0, %v7789_v48 }
 0x168   : > { %7872 = vst [vmem:[#allocation105_spill] sm:$0xff] %v6299_v42  ;;  %1747 = vmatmul.bf16.gmra.mxu2 %v6299_v42  ;;  %v6304_v47 = vsel %vm1412_vm5, %v1398_v37, %v1399_v7  ;;  %v6308_v52 = vsel %vm1815_vm4, %v1801_v50, %v1802_v38  ;;  %v4796_v37 = vld [vmem:[#allocation8 + $0x150] sm:$0xff] }
 0x169   : > { %7873 = vst [vmem:[#allocation106_spill] sm:$0xff] %v6308_v52  ;;  %v601_v16 = vpop.f32.mrf.mxu0 }
 0x16a   : > { %v602_v1 = vadd.f32 %v5450_v35, %v601_v16  ;;  %2796 = vmatpush.bf16.msrb.mxu2 %v4796_v37  ;;  %v6324_v35 = vsel %vm1141_vm0, 1.0, %v7789_v48 }
 0x16b   : > { %v6315_v21 = vpop.f32.mrf.mxu2 }
 0x16c   : > { %v654_v19 = vmax.f32 %v602_v1, 0.0  ;;  %2228 = vmatmul.bf16.gmra.mxu0 %v6013_v53  ;;  %v1483_v1 = vpack.c.bf16 %v6026_v54, %v1457_v40  ;;  %v4794_v53 = vld [vmem:[#allocation8 + $0x140] sm:$0xff] }
 0x16e   : > { %v1400_v30 = vrot.slane %v654_v19, 7  ;;  %v1803_v50 = vrot.slane %v654_v19, 1  ;;  %2797 = vmatpush.bf16.msrb.mxu2 %v4795_v26 }
 0x170   : > { %v6328_v16 = vsel %vm1412_vm5, %v1399_v7, %v1400_v30  ;;  %v1827_v5 = vsel %vm1815_vm4, %v1802_v38, %v1803_v50  ;;  %v6347_v7 = vld [vmem:[%s7601_s2] ss:$0 sm:$0xff] }
 0x171   : > { %v603_v18 = vpop.f32.mrf.mxu0  ;;  %v6334_v14 = vmul.f32 %v6259_v17, %v1827_v5  ;;  %v6338_v37 = vmul.f32 %v6324_v35, %v6328_v16  ;;  %v6342_v62 = vmul.f32 %v6271_v32, %v6328_v16  ;;  %v6351_v26 = vmul.f32 %v6321_v29, %v1827_v5 }
 0x172   : > { %v604_v38 = vadd.f32 %v6347_v7, %v603_v18  ;;  %v6354_v40 = vmul.f32 %v6166_v15, %v1827_v5  ;;  %2798 = vmatpush.bf16.msrb.mxu2 %v4794_v53  ;;  %v727_v15 = vadd.s32 160, %v5455_v41  ;;  %v890_v18 = vand.u32 15, %v728_v36 }
 0x173   : > { %7875 = vst [vmem:[#allocation62_spill] sm:$0xff] %v6334_v14  ;;  %1595 = vmatmul.bf16.gmra.mxu1 %v1483_v1  ;;  %v6356_v43 = vpop.f32.mrf.mxu2  ;;  %v1459_v36 = vmul.f32 %v6176_v23, %v6093_v20 }
 0x174   : > { %7876 = vst [vmem:[#allocation107_spill] sm:$0xff] %v6338_v37  ;;  %v655_v13 = vmax.f32 %v604_v38, 0.0  ;;  %v883_v49 = vand.u32 15, %v727_v15  ;;  %vm1240_vm1 = vcmp.lt.s32.totalorder %v890_v18, 15 }
 0x175   : > { %7877 = vst [vmem:[#allocation108_spill] sm:$0xff] %v6342_v62  ;;  %v6388_v15 = vsel %vm1240_vm1, 1.0, %v7789_v48 }
 0x176   : > { %7878 = vst [vmem:[#allocation109_spill] sm:$0xff] %v6351_v26  ;;  %v1401_v5 = vrot.slane %v655_v13, 7  ;;  %v1804_v1 = vrot.slane %v655_v13, 1  ;;  %v6366_v59 = vpack.c.bf16 %v655_v13, %v654_v19  ;;  %vm1143_vm2 = vcmp.gt.s32.totalorder %v883_v49, 0 }
 0x177   : > { %7879 = vst [vmem:[#allocation110_spill] sm:$0xff] %v6354_v40  ;;  %v6391_v40 = vsel %vm1143_vm2, 1.0, %v7789_v48  ;;  %v1484_v49 = vpack.c.bf16 %v6132_v22, %v1459_v36 }
 0x178   : > { %7880 = vst [vmem:[#allocation111_spill] sm:$0xff] %v6366_v59  ;;  %1752 = vmatmul.bf16.gmra.mxu2 %v6366_v59  ;;  %v6371_v38 = vsel %vm1412_vm5, %v1400_v30, %v1401_v5  ;;  %v6375_v54 = vsel %vm1815_vm4, %v1803_v50, %v1804_v1 }
 0x179   : > { %v606_v53 = vpop.f32.mrf.mxu0 }
 0x17a   : > { %v607_v19 = vadd.f32 %v6347_v7, %v606_v53 }
 0x17b   : > { %v6382_v10 = vpop.f32.mrf.mxu2 }
 0x17c   : > { %v656_v26 = vmax.f32 %v607_v19, 0.0  ;;  %2233 = vmatmul.bf16.gmra.mxu0 %v6126_v31 }
 0x17e   : > { %v1402_v30 = vrot.slane %v656_v26, 7  ;;  %v1805_v50 = vrot.slane %v656_v26, 1 }
 0x180   : > { %v6395_v53 = vsel %vm1412_vm5, %v1401_v5, %v1402_v30  ;;  %v1825_v19 = vsel %vm1815_vm4, %v1804_v1, %v1805_v50 }
 0x181   : > { %v608_v18 = vpop.f32.mrf.mxu0  ;;  %v6401_v13 = vmul.f32 %v6321_v29, %v1825_v19  ;;  %v6405_v20 = vmul.f32 %v6391_v40, %v6395_v53  ;;  %v6409_v23 = vmul.f32 %v6324_v35, %v6395_v53  ;;  %v6413_v31 = vmul.f32 %v6388_v15, %v1825_v19 }
 0x182   : > { %v609_v5 = vadd.f32 %v6347_v7, %v608_v18  ;;  %v6416_v1 = vmul.f32 %v6259_v17, %v1825_v19  ;;  %v729_v18 = vadd.s32 176, %v5455_v41 }
 0x183   : > { %7881 = vst [vmem:[#allocation112_spill] sm:$0xff] %v6405_v20  ;;  %1600 = vmatmul.bf16.gmra.mxu1 %v1484_v49  ;;  %v6420_v37 = vpop.f32.mrf.mxu2 }
 0x184   : > { %7882 = vst [vmem:[#allocation113_spill] sm:$0xff] %v6409_v23  ;;  %v657_v62 = vmax.f32 %v609_v5, 0.0  ;;  %v897_v5 = vand.u32 15, %v729_v18  ;;  %v1461_v18 = vmul.f32 %v6271_v32, %v6170_v51 }
 0x185   : > { %7883 = vst [vmem:[#allocation114_spill] sm:$0xff] %v6413_v31 }
 0x186   : > { %7884 = vst [vmem:[#allocation115_spill] sm:$0xff] %v6416_v1  ;;  %v1403_v14 = vrot.slane %v657_v62, 7  ;;  %v1806_v39 = vrot.slane %v657_v62, 1  ;;  %v6427_v45 = vpack.c.bf16 %v657_v62, %v656_v26  ;;  %vm1145_vm3 = vcmp.gt.s32.totalorder %v897_v5, 0 }
 0x188   : > { %7885 = vst [vmem:[#allocation116_spill] sm:$0xff] %v6427_v45  ;;  %1757 = vmatmul.bf16.gmra.mxu2 %v6427_v45  ;;  %v6432_v17 = vsel %vm1412_vm5, %v1402_v30, %v1403_v14  ;;  %v6436_v19 = vsel %vm1815_vm4, %v1805_v50, %v1806_v39  ;;  %v4790_v30 = vld [vmem:[#allocation8 + $0xe0] sm:$0xff] }
 0x189   : > { %7886 = vst [vmem:[#allocation117_spill] sm:$0xff] %v6436_v19  ;;  %v611_v49 = vpop.f32.mrf.mxu0  ;;  %2496 = vmatpush.bf16.msrb.mxu1 %v4790_v30 }
 0x18a   : > { %v612_v62 = vadd.f32 %v6347_v7, %v611_v49 }
 0x18b   : > { %v6448_v1 = vpop.f32.mrf.mxu2 }
 0x18c   : > { %v6443_v26 = vmax.f32 %v612_v62, 0.0  ;;  %2238 = vmatmul.bf16.gmra.mxu0 %v6208_v63  ;;  %v6457_v62 = vsel %vm1145_vm3, 1.0, %v7789_v48  ;;  %v1485_v63 = vpack.c.bf16 %v6229_v34, %v1461_v18 }
 0x18e   : > { %v1404_v36 = vrot.slane %v6443_v26, 7  ;;  %v1807_v50 = vrot.slane %v6443_v26, 1 }
 0x190   : > { %v6452_v52 = vpop.f32.mrf.mxu1  ;;  %v1420_v49 = vsel %vm1412_vm5, %v1403_v14, %v1404_v36  ;;  %v1823_v5 = vsel %vm1815_vm4, %v1806_v39, %v1807_v50  ;;  %v7892_v39 = vld [vmem:[#allocation22_spill] sm:$0xff] }
 0x191   : > { %7887 = vst [vmem:[#allocation118_spill] sm:$0xff] %v6452_v52  ;;  %v613_v22 = vpop.f32.mrf.mxu0  ;;  %v6463_v31 = vmul.f32 %v6388_v15, %v1823_v5  ;;  %v6466_v30 = vmul.f32 %v6457_v62, %v1420_v49  ;;  %v6470_v32 = vmul.f32 %v6391_v40, %v1420_v49  ;;  %v6473_v48 = vmul.f32 %v6002_v4, %v1823_v5 }
 0x192   : > { %v614_v51 = vadd.f32 %v6347_v7, %v613_v22  ;;  %v6476_v14 = vmul.f32 %v6321_v29, %v1823_v5  ;;  %v7891_v7 = vld [vmem:[#allocation34_spill] sm:$0xff]  ;;  %v1469_v29 = vmul.f32 %v5953_v57, %v1420_v49 }
 0x193   : > { %7888 = vst [vmem:[#allocation119_spill] sm:$0xff] %v6463_v31  ;;  %1605 = vmatmul.bf16.gmra.mxu1 %v1485_v63  ;;  %v1406_v52 = vrot.slane %v7891_v7, 7  ;;  %v6490_v63 = vpop.f32.mrf.mxu2 }
 0x194   : > { %7889 = vst [vmem:[#allocation120_spill] sm:$0xff] %v6473_v48  ;;  %v6480_v18 = vmax.f32 %v614_v51, 0.0  ;;  %v7893_v51 = vld [vmem:[#allocation23_spill] sm:$0xff] }
 0x195   : > { %7890 = vst [vmem:[#allocation121_spill] sm:$0xff] %v6476_v14  ;;  %v7894_v31 = vpack.c.bf16 %v7892_v39, %v7893_v51  ;;  %v7895_v14 = vrot.slane %v7891_v7, 1 }
 0x196   : > { %v1405_v20 = vrot.slane %v6480_v18, 7  ;;  %v1808_v34 = vrot.slane %v6480_v18, 1 }
 0x198   : > { %v1568_v5 = vpop.f32.mrf.mxu1  ;;  %2799 = vmatmul.bf16.vlgmr.msrb.gmra.mxu2 %v7894_v31  ;;  %v6497_v23 = vsel %vm1412_vm5, %v1404_v36, %v1405_v20  ;;  %v1418_v22 = vsel %vm1412_vm5, %v1405_v20, %v1406_v52  ;;  %v1821_v48 = vsel %vm1815_vm4, %v1808_v34, %v7895_v14  ;;  %v6507_v49 = vsel %vm1815_vm4, %v1807_v50, %v1808_v34  ;;  %v4789_v34 = vld [vmem:[#allocation8 + $0xd8] sm:$0xff] }
 0x199   : > { %v6510_v19 = vadd.f32 %v6268_v55, %v1568_v5  ;;  %v6512_v31 = vpop.f32.mrf.mxu0  ;;  %v1489_v36 = vpack.c.bf16 %v6497_v23, %v1469_v29  ;;  %v6516_v39 = vmul.f32 %v6002_v4, %v1821_v48  ;;  %v6521_v51 = vmul.f32 %v5953_v57, %v1418_v22  ;;  %v7897_v55 = vld [vmem:[#allocation41_spill] sm:$0xff]  ;;  %2497 = vmatpush.bf16.msrb.mxu1 %v4789_v34 }
 0x19a   : > { %7896 = vst [vmem:[#allocation34_spill] sm:$0xff] %v6512_v31  ;;  %v6526_v50 = vmul.f32 %v6457_v62, %v1418_v22  ;;  %v7898_v14 = vrot.slane %v7897_v55, 7  ;;  %v6537_v5 = vmul.f32 %v5864_v28, %v1821_v48  ;;  %v6540_v57 = vmul.f32 %v6388_v15, %v1821_v48 }
 0x19b   : > { %1625 = vmatmul.bf16.vlgmr.msrb.gmra.mxu3 %v1489_v36  ;;  %v1463_v28 = vmul.f32 %v6324_v35, %v6263_v12  ;;  %v1723_v4 = vpop.f32.mrf.mxu2  ;;  %v1471_v31 = vmul.f32 %v5869_v3, %v1418_v22  ;;  %v1465_v3 = vmul.f32 %v6391_v40, %v6328_v16  ;;  %v4786_v22 = vld [vmem:[#allocation8 + $0xc0] sm:$0xff] }
 0x19c   : > { %v6532_v29 = vsel %vm1412_vm5, %v1406_v52, %v7898_v14  ;;  %7899 = vst [vmem:[#allocation22_spill] sm:$0xff] %v6537_v5  ;;  %2243 = vmatmul.bf16.gmra.mxu0 %v6299_v42  ;;  %v4788_v52 = vld [vmem:[#allocation8 + $0xd0] sm:$0xff]  ;;  %v7902_v14 = vld [vmem:[#allocation28_spill] sm:$0xff] }
 0x19d   : > { %7900 = vst [vmem:[#allocation41_spill] sm:$0xff] %v6540_v57  ;;  %v1486_v36 = vpack.c.bf16 %v6304_v47, %v1463_v28  ;;  %v7903_v57 = vld [vmem:[#allocation27_spill] sm:$0xff]  ;;  %v1490_v35 = vpack.c.bf16 %v6532_v29, %v1471_v31  ;;  %2498 = vmatpush.bf16.msrb.mxu1 %v4788_v52  ;;  %v1473_v31 = vmul.f32 %v6043_v9, %v5899_v0  ;;  %v7907_v28 = vld [vmem:[#allocation36_spill] sm:$0xff] }
 0x19e   : > { %v7904_v5 = vpack.c.bf16 %v7902_v14, %v7903_v57  ;;  %v1467_v0 = vmul.f32 %v6457_v62, %v6395_v53 }
 0x1a0   : > { %v1571_v20 = vpop.f32.mrf.mxu1 }
 0x1a1   : > { %v6554_v15 = vadd.f32 %v6315_v21, %v1571_v20  ;;  %v6556_v48 = vpop.f32.mrf.mxu0  ;;  %v4787_v20 = vld [vmem:[#allocation8 + $0xc8] sm:$0xff] }
 0x1a2   : > { %7901 = vst [vmem:[#allocation122_spill] sm:$0xff] %v6556_v48  ;;  %2499 = vmatpush.bf16.msrb.mxu1 %v4787_v20  ;;  %v4777_v20 = vld [vmem:[#allocation8 + $0xb8] sm:$0xff] }
 0x1a3   : > { %1610 = vmatmul.bf16.gmra.mxu1 %v1486_v36  ;;  %v1725_v36 = vpop.f32.mrf.mxu2  ;;  %1961 = vmatpush.bf16.msrb.mxu3 %v4777_v20 }
 0x1a6   : > { %2500 = vmatpush.bf16.msrb.mxu1 %v4786_v22 }
 0x1a8   : > { %v1573_v42 = vpop.f32.mrf.mxu1  ;;  %2804 = vmatmul.bf16.gmra.mxu2 %v7904_v5 }
 0x1a9   : > { %v6564_v12 = vadd.f32 %v6356_v43, %v1573_v42  ;;  %v6566_v21 = vpop.f32.mrf.mxu0  ;;  %v1487_v43 = vpack.c.bf16 %v6371_v38, %v1465_v3 }
 0x1aa   : > { %7905 = vst [vmem:[#allocation28_spill] sm:$0xff] %v6566_v21 }
 0x1ab   : > { %1630 = vmatmul.bf16.gmra.mxu3 %v1490_v35  ;;  %v1728_v52 = vpop.f32.mrf.mxu2  ;;  %v7908_v35 = vpack.c.bf16 %v7907_v28, %v5630_v61 }
 0x1ac   : > { %2248 = vmatmul.bf16.gmra.mxu0 %v6366_v59  ;;  %v4808_v59 = vld [vmem:[#allocation8 + $0x1f0] sm:$0xff] }
 0x1b0   : > { %v1576_v34 = vpop.f32.mrf.mxu1 }
 0x1b1   : > { %v6573_v5 = vadd.f32 %v6382_v10, %v1576_v34  ;;  %v6575_v42 = vpop.f32.mrf.mxu0  ;;  %v1491_v10 = vpack.c.bf16 %v5961_v27, %v1473_v31 }
 0x1b2   : > { %7906 = vst [vmem:[#allocation27_spill] sm:$0xff] %v6575_v42 }
 0x1b3   : > { %1615 = vmatmul.bf16.gmra.mxu1 %v1487_v43  ;;  %v1730_v9 = vpop.f32.mrf.mxu2  ;;  %v4776_v43 = vld [vmem:[#allocation8 + $0xb0] sm:$0xff] }
 0x1b4   : > { %1962 = vmatpush.bf16.msrb.mxu3 %v4776_v43  ;;  %v7918_v43 = vld [vmem:[#allocation35_spill] sm:$0xff] }
 0x1b8   : > { %v1578_v14 = vpop.f32.mrf.mxu1  ;;  %2809 = vmatmul.bf16.gmra.mxu2 %v7908_v35 }
 0x1b9   : > { %v6584_v16 = vadd.f32 %v6420_v37, %v1578_v14  ;;  %v6586_v40 = vpop.f32.mrf.mxu0  ;;  %v1488_v37 = vpack.c.bf16 %v6432_v17, %v1467_v0  ;;  %v7911_v14 = vld [vmem:[#allocation49_spill] sm:$0xff] }
 0x1ba   : > { %7909 = vst [vmem:[#allocation36_spill] sm:$0xff] %v6586_v40  ;;  %v7912_v28 = vpack.c.bf16 %v7911_v14, %v5739_v46  ;;  %v4775_v0 = vld [vmem:[#allocation8 + $0xa8] sm:$0xff]  ;;  %v7953_v40 = vld [vmem:[#allocation50_spill] sm:$0xff] }
 0x1bb   : > { %1635 = vmatmul.bf16.gmra.mxu3 %v1491_v10  ;;  %v1733_v62 = vpop.f32.mrf.mxu2  ;;  %v7915_v10 = vld [vmem:[#allocation57_spill] sm:$0xff] }
 0x1bc   : > { %2253 = vmatmul.bf16.gmra.mxu0 %v6427_v45  ;;  %v7916_v20 = vpack.c.bf16 %v5904_v6, %v7915_v10  ;;  %1963 = vmatpush.bf16.msrb.mxu3 %v4775_v0  ;;  %v7921_v10 = vpack.c.bf16 %v5967_v11, %v5861_v24  ;;  %v4816_v11 = vld [vmem:[#allocation8 + $0x1b0] sm:$0xff] }
 0x1bd   : > { %v7956_v45 = vld [vmem:[#allocation62_spill] sm:$0xff] }
 0x1c0   : > { %v1581_v3 = vpop.f32.mrf.mxu1 }
 0x1c1   : > { %v6593_v22 = vadd.f32 %v6448_v1, %v1581_v3  ;;  %v6595_v34 = vpop.f32.mrf.mxu0  ;;  %v6608_v1 = vpack.c.bf16 %v6480_v18, %v6443_v26 }
 0x1c2   : > { %7910 = vst [vmem:[#allocation123_spill] sm:$0xff] %v6595_v34 }
 0x1c3   : > { %1620 = vmatmul.bf16.gmra.mxu1 %v1488_v37  ;;  %7914 = vst [vmem:[#allocation124_spill] sm:$0xff] %v6608_v1  ;;  %v1735_v26 = vpop.f32.mrf.mxu2 }
 0x1c8   : > { %v1583_v31 = vpop.f32.mrf.mxu1  ;;  %2814 = vmatmul.bf16.gmra.mxu2 %v7912_v28  ;;  %v4774_v28 = vld [vmem:[#allocation8 + $0xa0] sm:$0xff] }
 0x1c9   : > { %v6602_v35 = vadd.f32 %v6490_v63, %v1583_v31  ;;  %v6604_v53 = vpop.f32.mrf.mxu0  ;;  %v7919_v31 = vld [vmem:[#allocation47_spill] sm:$0xff]  ;;  %1964 = vmatpush.bf16.msrb.mxu3 %v4774_v28 }
 0x1ca   : > { %7913 = vst [vmem:[#allocation49_spill] sm:$0xff] %v6604_v53  ;;  %v7920_v14 = vpack.c.bf16 %v7918_v43, %v7919_v31  ;;  %v4817_v43 = vld [vmem:[#allocation8 + $0x1b8] sm:$0xff] }
 0x1cb   : > { %1640 = vmatmul.bf16.gmra.mxu3 %v7916_v20  ;;  %v1738_v31 = vpop.f32.mrf.mxu2  ;;  %3323 = vmatpush.bf16.msra.mxu0 %v4817_v43 }
 0x1cc   : > { %2258 = vmatmul.bf16.gmra.mxu0 %v6608_v1 }
 0x1cf   : > { %3324 = vmatpush.bf16.msra.mxu0 %v4816_v11  ;;  %v7930_v11 = vld [vmem:[#allocation42_spill] sm:$0xff] }
 0x1d0   : > { %v1586_v3 = vpop.f32.mrf.mxu1 }
 0x1d1   : > { %v6614_v37 = vadd.f32 %v1723_v4, %v1586_v3  ;;  %v6616_v63 = vpop.f32.mrf.mxu0  ;;  %v6630_v4 = vpack.c.bf16 %v7897_v55, %v7891_v7  ;;  %v4773_v3 = vld [vmem:[#allocation8 + $0x98] sm:$0xff]  ;;  %v4772_v55 = vld [vmem:[#allocation8 + $0x90] sm:$0xff] }
 0x1d2   : > { %7917 = vst [vmem:[#allocation57_spill] sm:$0xff] %v6616_v63  ;;  %1965 = vmatpush.bf16.msrb.mxu3 %v4773_v3  ;;  %v7928_v3 = vpack.c.bf16 %v6102_v25, %v6030_v60 }
 0x1d3   : > { %2501 = vmatmul.bf16.vlgmr.msrb.gmra.mxu1 %v7920_v14  ;;  %7923 = vst [vmem:[#allocation47_spill] sm:$0xff] %v6630_v4  ;;  %v1740_v63 = vpop.f32.mrf.mxu2 }
 0x1d6   : > { %1966 = vmatpush.bf16.msrb.mxu3 %v4772_v55  ;;  %v7933_v55 = vld [vmem:[#allocation30_spill] sm:$0xff] }
 0x1d8   : > { %v1588_v18 = vpop.f32.mrf.mxu1  ;;  %2819 = vmatmul.bf16.gmra.mxu2 %v7921_v10  ;;  %v7926_v10 = vld [vmem:[#allocation20_spill] sm:$0xff] }
 0x1d9   : > { %v6624_v20 = vadd.f32 %v1725_v36, %v1588_v18  ;;  %v6626_v0 = vpop.f32.mrf.mxu0  ;;  %v7925_v18 = vld [vmem:[#allocation26_spill] sm:$0xff] }
 0x1da   : > { %7922 = vst [vmem:[#allocation35_spill] sm:$0xff] %v6626_v0  ;;  %v7927_v7 = vpack.c.bf16 %v7925_v18, %v7926_v10  ;;  %v4815_v0 = vld [vmem:[#allocation8 + $0x1a8] sm:$0xff] }
 0x1db   : > { %1762 = vmatmul.bf16.vlgmr.msra.gmra.mxu3 %v6608_v1  ;;  %3325 = vmatpush.bf16.msra.mxu0 %v4815_v0  ;;  %v4771_v10 = vld [vmem:[#allocation8 + $0x88] sm:$0xff]  ;;  %v4813_v0 = vld [vmem:[#allocation8 + $0x198] sm:$0xff] }
 0x1dc   : > { %2263 = vmatmul.bf16.gmra.mxu0 %v6630_v4  ;;  %1967 = vmatpush.bf16.msrb.mxu3 %v4771_v10  ;;  %v7936_v10 = vpack.c.bf16 %v6179_v33, %v6136_v56  ;;  %v7952_v1 = vld [vmem:[#allocation55_spill] sm:$0xff] }
 0x1dd   : > { %v7954_v42 = vpack.c.bf16 %v7952_v1, %v7953_v40 }
 0x1e0   : > { %v1591_v14 = vpop.f32.mrf.mxu1 }
 0x1e1   : > { %v6634_v28 = vadd.f32 %v1728_v52, %v1591_v14  ;;  %v6636_v36 = vpop.f32.mrf.mxu0  ;;  %v4814_v52 = vld [vmem:[#allocation8 + $0x1a0] sm:$0xff] }
 0x1e2   : > { %7924 = vst [vmem:[#allocation125_spill] sm:$0xff] %v6636_v36  ;;  %v7931_v36 = vld [vmem:[#allocation44_spill] sm:$0xff]  ;;  %3326 = vmatpush.bf16.msra.mxu0 %v4814_v52 }
 0x1e3   : > { %2506 = vmatmul.bf16.gmra.mxu1 %v7927_v7  ;;  %v6650_v34 = vpack.c.bf16 %v7931_v36, %v7930_v11  ;;  %v4770_v36 = vld [vmem:[#allocation8 + $0x80] sm:$0xff]  ;;  %v4811_v11 = vld [vmem:[#allocation8 + $0x188] sm:$0xff] }
 0x1e4   : > { %1968 = vmatpush.bf16.msrb.mxu3 %v4770_v36 }
 0x1e5   : > { %7932 = vst [vmem:[#allocation20_spill] sm:$0xff] %v6650_v34 }
 0x1e6   : > { %3327 = vmatpush.bf16.msra.mxu0 %v4813_v0  ;;  %v4810_v0 = vld [vmem:[#allocation8 + $0x180] sm:$0xff] }
 0x1e8   : > { %v1593_v53 = vpop.f32.mrf.mxu1  ;;  %2824 = vmatmul.bf16.gmra.mxu2 %v7928_v3  ;;  %v7934_v3 = vpack.c.bf16 %v5626_v2, %v7933_v55 }
 0x1e9   : > { %v6644_v43 = vadd.f32 %v1730_v9, %v1593_v53  ;;  %v6646_v14 = vpop.f32.mrf.mxu0  ;;  %v4812_v9 = vld [vmem:[#allocation8 + $0x190] sm:$0xff]  ;;  %v1743_v53 = vpop.f32.mrf.mxu2 }
 0x1ea   : > { %7929 = vst [vmem:[#allocation26_spill] sm:$0xff] %v6646_v14  ;;  %3328 = vmatpush.bf16.msra.mxu0 %v4812_v9 }
 0x1eb   : > { %1767 = vmatmul.bf16.gmra.mxu3 %v6630_v4  ;;  %v7945_v4 = vld [vmem:[#allocation45_spill] sm:$0xff] }
 0x1ec   : > { %2268 = vmatmul.bf16.gmra.mxu0 %v6650_v34 }
 0x1ee   : > { %3329 = vmatpush.bf16.msra.mxu0 %v4811_v11  ;;  %v7939_v11 = vld [vmem:[#allocation37_spill] sm:$0xff] }
 0x1ef   : > { %v7940_v33 = vpack.c.bf16 %v5753_v8, %v7939_v11 }
 0x1f0   : > { %v1596_v25 = vpop.f32.mrf.mxu1 }
 0x1f1   : > { %v6654_v7 = vadd.f32 %v1733_v62, %v1596_v25  ;;  %v6659_v14 = vpop.f32.mrf.mxu0  ;;  %v4809_v25 = vld [vmem:[#allocation8 + $0x1f8] sm:$0xff]  ;;  %v1745_v55 = vpop.f32.mrf.mxu2 }
 0x1f2   : > { %7935 = vst [vmem:[#allocation42_spill] sm:$0xff] %v6659_v14  ;;  %3330 = vmatpush.bf16.msra.mxu0 %v4810_v0  ;;  %3025 = vmatpush.bf16.msra.mxu3 %v4809_v25  ;;  %v7942_v14 = vld [vmem:[#allocation97_spill] sm:$0xff]  ;;  %v7944_v25 = vld [vmem:[#allocation48_spill] sm:$0xff] }
 0x1f3   : > { %2511 = vmatmul.bf16.gmra.mxu1 %v7934_v3 }
 0x1f6   : > { %3026 = vmatpush.bf16.msra.mxu3 %v4808_v59 }
 0x1f8   : > { %v1598_v52 = vpop.f32.mrf.mxu1  ;;  %2829 = vmatmul.bf16.gmra.mxu2 %v7936_v10 }
 0x1f9   : > { %v6664_v62 = vadd.f32 %v1735_v26, %v1598_v52  ;;  %v6668_v9 = vpop.f32.mrf.mxu0  ;;  %v4825_v26 = vld [vmem:[#allocation8 + $0x238] sm:$0xff]  ;;  %v1748_v52 = vpop.f32.mrf.mxu2 }
 0x1fa   : > { %7937 = vst [vmem:[#allocation44_spill] sm:$0xff] %v6668_v9  ;;  %3621 = vmatpush.bf16.msra.mxu1 %v4825_v26  ;;  %v6682_v9 = vpack.c.bf16 %v7945_v4, %v7944_v25  ;;  %v7949_v26 = vld [vmem:[#allocation19_spill] sm:$0xff] }
 0x1fb   : > { %1772 = vmatmul.bf16.gmra.mxu3 %v6650_v34  ;;  %v7943_v34 = vpack.c.bf16 %v6274_v44, %v7942_v14 }
 0x1fc   : > { %2273 = vmatmul.bf16.gmra.mxu0 %v6017_v58  ;;  %7946 = vst [vmem:[#allocation97_spill] sm:$0xff] %v6682_v9 }
 0x200   : > { %v1601_v3 = vpop.f32.mrf.mxu1 }
 0x201   : > { %v6670_v36 = vadd.f32 %v1738_v31, %v1601_v3  ;;  %v6675_v10 = vpop.f32.mrf.mxu0  ;;  %v1750_v3 = vpop.f32.mrf.mxu2 }
 0x202   : > { %7941 = vst [vmem:[#allocation37_spill] sm:$0xff] %v6675_v10  ;;  %v7950_v10 = vld [vmem:[#allocation91_spill] sm:$0xff] }
 0x203   : > { %7938 = vst [vmem:[#allocation30_spill] sm:$0xff] %v6670_v36  ;;  %2516 = vmatmul.bf16.gmra.mxu1 %v7940_v33  ;;  %v1845_v44 = vsel %vm1815_vm4, %v7950_v10, %v7949_v26 }
 0x208   : > { %v1603_v0 = vpop.f32.mrf.mxu1  ;;  %2834 = vmatmul.bf16.gmra.mxu2 %v7943_v34 }
 0x209   : > { %v6684_v31 = vadd.f32 %v1740_v63, %v1603_v0  ;;  %v6694_v34 = vpop.f32.mrf.mxu0  ;;  %v7955_v63 = vld [vmem:[#allocation18_spill] sm:$0xff]  ;;  %v1753_v48 = vpop.f32.mrf.mxu2 }
 0x20a   : > { %7951 = vst [vmem:[#allocation19_spill] sm:$0xff] %v6694_v34  ;;  %v1849_v0 = vmul.f32 %v7955_v63, %v1845_v44  ;;  %v7961_v34 = vld [vmem:[#allocation21_spill] sm:$0xff] }
 0x20b   : > { %7947 = vst [vmem:[#allocation48_spill] sm:$0xff] %v6684_v31  ;;  %1777 = vmatmul.bf16.gmra.mxu3 %v6017_v58  ;;  %v7962_v40 = vpack.c.bf16 %v7925_v18, %v7961_v34  ;;  %v7968_v18 = vpack.c.bf16 %v6401_v13, %v6375_v54  ;;  %v7970_v34 = vld [vmem:[#allocation24_spill] sm:$0xff]  ;;  %v7977_v31 = vld [vmem:[#allocation83_spill] sm:$0xff]  ;;  %v7978_v13 = vld [vmem:[#allocation78_spill] sm:$0xff] }
 0x20c   : > { %2278 = vmatmul.bf16.gmra.mxu0 %v6682_v9  ;;  %v7957_v9 = vld [vmem:[#allocation106_spill] sm:$0xff] }
 0x20d   : > { %v7958_v21 = vpack.c.bf16 %v7956_v45, %v7957_v9  ;;  %v7964_v45 = vld [vmem:[#allocation71_spill] sm:$0xff] }
 0x210   : > { %v1606_v11 = vpop.f32.mrf.mxu1 }
 0x211   : > { %v6688_v33 = vadd.f32 %v1743_v53, %v1606_v11  ;;  %v1880_v11 = vpack.c.bf16 %v1849_v0, %v7950_v10  ;;  %v1755_v0 = vpop.f32.mrf.mxu2 }
 0x213   : > { %7948 = vst [vmem:[#allocation45_spill] sm:$0xff] %v6688_v33  ;;  %2521 = vmatmul.bf16.gmra.mxu1 %v7954_v42  ;;  %v6706_v33 = vpop.f32.mrf.mxu0 }
 0x214   : > { %7960 = vst [vmem:[#allocation50_spill] sm:$0xff] %v6706_v33 }
 0x218   : > { %v1608_v58 = vpop.f32.mrf.mxu1  ;;  %2839 = vmatmul.bf16.gmra.mxu2 %v7958_v21  ;;  %v7965_v21 = vld [vmem:[#allocation63_spill] sm:$0xff] }
 0x219   : > { %v6703_v53 = vadd.f32 %v1745_v55, %v1608_v58  ;;  %v7966_v58 = vpack.c.bf16 %v7964_v45, %v7965_v21  ;;  %v4824_v55 = vld [vmem:[#allocation8 + $0x230] sm:$0xff] }
 0x21a   : > { %3622 = vmatpush.bf16.msra.mxu1 %v4824_v55 }
 0x21b   : > { %7959 = vst [vmem:[#allocation55_spill] sm:$0xff] %v6703_v53  ;;  %1969 = vmatmul.bf16.vlgmr.msrb.gmra.mxu3 %v1880_v11  ;;  %v6716_v11 = vpop.f32.mrf.mxu0 }
 0x21c   : > { %3331 = vmatmul.bf16.vlgmr.msra.gmra.mxu0 %v7962_v40  ;;  %7967 = vst [vmem:[#allocation62_spill] sm:$0xff] %v6716_v11 }
 0x21e   : > { %v1626_v42 = vpop.f32.mrf.mxu3 }
 0x220   : > { %v1611_v44 = vpop.f32.mrf.mxu1 }
 0x221   : > { %v6711_v63 = vadd.f32 %v1748_v52, %v1611_v44  ;;  %v7971_v52 = vld [vmem:[#allocation23_spill] sm:$0xff] }
 0x222   : > { %v7972_v40 = vpack.c.bf16 %v7970_v34, %v7971_v52  ;;  %v7973_v44 = vld [vmem:[#allocation31_spill] sm:$0xff]  ;;  %v7981_v52 = vld [vmem:[#allocation117_spill] sm:$0xff] }
 0x223   : > { %7963 = vst [vmem:[#allocation18_spill] sm:$0xff] %v6711_v63  ;;  %2526 = vmatmul.bf16.gmra.mxu1 %v7966_v58  ;;  %v7974_v21 = vpack.c.bf16 %v5626_v2, %v7973_v44  ;;  %v1758_v58 = vpop.f32.mrf.mxu2  ;;  %v6729_v63 = vpop.f32.mrf.mxu0  ;;  %v7980_v34 = vld [vmem:[#allocation119_spill] sm:$0xff] }
 0x224   : > { %7975 = vst [vmem:[#allocation21_spill] sm:$0xff] %v6729_v63 }
 0x226   : > { %v1628_v10 = vpop.f32.mrf.mxu3 }
 0x228   : > { %v1613_v33 = vpop.f32.mrf.mxu1  ;;  %2844 = vmatmul.bf16.gmra.mxu2 %v7968_v18  ;;  %v7979_v18 = vpack.c.bf16 %v7977_v31, %v7978_v13 }
 0x229   : > { %v6721_v59 = vadd.f32 %v1750_v3, %v1613_v33 }
 0x22b   : > { %7969 = vst [vmem:[#allocation106_spill] sm:$0xff] %v6721_v59  ;;  %1974 = vmatmul.bf16.gmra.mxu3 %v7972_v40  ;;  %v1760_v33 = vpop.f32.mrf.mxu2  ;;  %v7982_v40 = vpack.c.bf16 %v7980_v34, %v7981_v52  ;;  %v6741_v44 = vpop.f32.mrf.mxu0 }
 0x22c   : > { %3336 = vmatmul.bf16.gmra.mxu0 %v7974_v21  ;;  %7984 = vst [vmem:[#allocation24_spill] sm:$0xff] %v6741_v44  ;;  %v7985_v21 = vld [vmem:[#allocation32_spill] sm:$0xff]  ;;  %v4823_v44 = vld [vmem:[#allocation8 + $0x228] sm:$0xff] }
 0x22d   : > { %v7986_v63 = vpack.c.bf16 %v7985_v21, %v7903_v57  ;;  %3623 = vmatpush.bf16.msra.mxu1 %v4823_v44 }
 0x22e   : > { %v1631_v55 = vpop.f32.mrf.mxu3 }
 0x230   : > { %v1616_v11 = vpop.f32.mrf.mxu1 }
 0x231   : > { %v6731_v53 = vadd.f32 %v1753_v48, %v1616_v11  ;;  %v4807_v48 = vld [vmem:[#allocation8 + $0x1e8] sm:$0xff]  ;;  %v7987_v11 = vld [vmem:[#allocation38_spill] sm:$0xff] }
 0x232   : > { %v7988_v13 = vpack.c.bf16 %v5753_v8, %v7987_v11  ;;  %3027 = vmatpush.bf16.msra.mxu3 %v4807_v48  ;;  %v7995_v8 = vpack.c.bf16 %v6516_v39, %v6507_v49  ;;  %v8004_v39 = vld [vmem:[#allocation101_spill] sm:$0xff] }
 0x233   : > { %7976 = vst [vmem:[#allocation71_spill] sm:$0xff] %v6731_v53  ;;  %2531 = vmatmul.bf16.gmra.mxu1 %v7979_v18  ;;  %v6751_v34 = vpop.f32.mrf.mxu2 }
 0x234   : > { %7990 = vst [vmem:[#allocation31_spill] sm:$0xff] %v6751_v34  ;;  %v4806_v34 = vld [vmem:[#allocation8 + $0x1e0] sm:$0xff] }
 0x236   : > { %v1633_v3 = vpop.f32.mrf.mxu3  ;;  %3028 = vmatpush.bf16.msra.mxu3 %v4806_v34  ;;  %v8021_v34 = vld [vmem:[#allocation60_spill] sm:$0xff] }
 0x238   : > { %v1618_v59 = vpop.f32.mrf.mxu1  ;;  %2849 = vmatmul.bf16.gmra.mxu2 %v7982_v40 }
 0x239   : > { %v6739_v2 = vadd.f32 %v1755_v0, %v1618_v59  ;;  %v7991_v0 = vld [vmem:[#allocation96_spill] sm:$0xff]  ;;  %v7992_v59 = vld [vmem:[#allocation87_spill] sm:$0xff] }
 0x23a   : > { %v7993_v40 = vpack.c.bf16 %v7991_v0, %v7992_v59 }
 0x23b   : > { %7983 = vst [vmem:[#allocation63_spill] sm:$0xff] %v6739_v2  ;;  %1979 = vmatmul.bf16.gmra.mxu3 %v7986_v63  ;;  %v6756_v2 = vpop.f32.mrf.mxu0  ;;  %v6768_v11 = vpop.f32.mrf.mxu2 }
 0x23c   : > { %3341 = vmatmul.bf16.gmra.mxu0 %v7988_v13  ;;  %7994 = vst [vmem:[#allocation83_spill] sm:$0xff] %v6756_v2  ;;  %v8000_v13 = vld [vmem:[#allocation51_spill] sm:$0xff] }
 0x23d   : > { %7999 = vst [vmem:[#allocation119_spill] sm:$0xff] %v6768_v11  ;;  %v8001_v59 = vpack.c.bf16 %v7952_v1, %v8000_v13  ;;  %v8009_v1 = vld [vmem:[#allocation58_spill] sm:$0xff]  ;;  %v8010_v13 = vld [vmem:[#allocation52_spill] sm:$0xff] }
 0x23e   : > { %v1636_v18 = vpop.f32.mrf.mxu3 }
 0x240   : > { %v1621_v53 = vpop.f32.mrf.mxu1 }
 0x241   : > { %v6749_v36 = vadd.f32 %v1758_v58, %v1621_v53  ;;  %v7997_v53 = vld [vmem:[#allocation39_spill] sm:$0xff] }
 0x242   : > { %v7998_v58 = vpack.c.bf16 %v7997_v53, %v5630_v61 }
 0x243   : > { %7989 = vst [vmem:[#allocation23_spill] sm:$0xff] %v6749_v36  ;;  %2536 = vmatmul.bf16.gmra.mxu1 %v7993_v40  ;;  %v6773_v44 = vpop.f32.mrf.mxu0 }
 0x244   : > { %8002 = vst [vmem:[#allocation117_spill] sm:$0xff] %v6773_v44  ;;  %v8012_v44 = vld [vmem:[#allocation53_spill] sm:$0xff] }
 0x245   : > { %v8013_v11 = vpack.c.bf16 %v8012_v44, %v5739_v46 }
 0x246   : > { %v6758_v63 = vpop.f32.mrf.mxu3 }
 0x248   : > { %v1623_v21 = vpop.f32.mrf.mxu1  ;;  %2854 = vmatmul.bf16.gmra.mxu2 %v7995_v8 }
 0x249   : > { %v6763_v48 = vadd.f32 %v1760_v33, %v1623_v21  ;;  %v8005_v33 = vpack.c.bf16 %v6304_v47, %v8004_v39  ;;  %v6782_v21 = vpop.f32.mrf.mxu2  ;;  %v8014_v39 = vld [vmem:[#allocation64_spill] sm:$0xff] }
 0x24a   : > { %8006 = vst [vmem:[#allocation38_spill] sm:$0xff] %v6782_v21 }
 0x24b   : > { %7996 = vst [vmem:[#allocation78_spill] sm:$0xff] %v6763_v48  ;;  %1984 = vmatmul.bf16.gmra.mxu3 %v7998_v58  ;;  %v6786_v53 = vpop.f32.mrf.mxu0 }
 0x24c   : > { %3346 = vmatmul.bf16.gmra.mxu0 %v8001_v59  ;;  %8007 = vst [vmem:[#allocation96_spill] sm:$0xff] %v6786_v53  ;;  %v8011_v59 = vpack.c.bf16 %v8009_v1, %v8010_v13  ;;  %v8018_v1 = vld [vmem:[#allocation107_spill] sm:$0xff] }
 0x24e   : > { %v6775_v40 = vpop.f32.mrf.mxu3 }
 0x250   : > { %v6777_v2 = vpop.f32.mrf.mxu1 }
 0x251   : > { %8003 = vst [vmem:[#allocation32_spill] sm:$0xff] %v6777_v2  ;;  %v6801_v53 = vpop.f32.mrf.mxu2 }
 0x252   : > { %8016 = vst [vmem:[#allocation39_spill] sm:$0xff] %v6801_v53 }
 0x253   : > { %2541 = vmatmul.bf16.gmra.mxu1 %v8005_v33  ;;  %v8015_v33 = vpack.c.bf16 %v7964_v45, %v8014_v39  ;;  %v6805_v48 = vpop.f32.mrf.mxu0 }
 0x254   : > { %8017 = vst [vmem:[#allocation51_spill] sm:$0xff] %v6805_v48 }
 0x256   : > { %v6784_v8 = vpop.f32.mrf.mxu3 }
 0x258   : > { %v6788_v58 = vpop.f32.mrf.mxu1  ;;  %2859 = vmatmul.bf16.gmra.mxu2 %v8011_v59  ;;  %v8019_v59 = vpack.c.bf16 %v6371_v38, %v8018_v1  ;;  %v8028_v1 = vld [vmem:[#allocation79_spill] sm:$0xff] }
 0x259   : > { %8008 = vst [vmem:[#allocation87_spill] sm:$0xff] %v6788_v58  ;;  %v6817_v39 = vpop.f32.mrf.mxu2 }
 0x25a   : > { %8024 = vst [vmem:[#allocation58_spill] sm:$0xff] %v6817_v39 }
 0x25b   : > { %1989 = vmatmul.bf16.gmra.mxu3 %v8013_v11  ;;  %v4822_v11 = vld [vmem:[#allocation8 + $0x220] sm:$0xff]  ;;  %v6822_v53 = vpop.f32.mrf.mxu0 }
 0x25c   : > { %3351 = vmatmul.bf16.gmra.mxu0 %v8015_v33  ;;  %3624 = vmatpush.bf16.msra.mxu1 %v4822_v11  ;;  %v8025_v33 = vld [vmem:[#allocation65_spill] sm:$0xff]  ;;  %8027 = vst [vmem:[#allocation52_spill] sm:$0xff] %v6822_v53 }
 0x25d   : > { %v8026_v48 = vpack.c.bf16 %v8025_v33, %v5861_v24 }
 0x25e   : > { %v1763_v21 = vpop.f32.mrf.mxu3 }
 0x25f   : > { %v6799_v2 = vadd.f32 %v1763_v21, %v1626_v42  ;;  %v8022_v42 = vld [vmem:[#allocation59_spill] sm:$0xff] }
 0x260   : > { %v6803_v58 = vpop.f32.mrf.mxu1  ;;  %v8023_v21 = vpack.c.bf16 %v8021_v34, %v8022_v42  ;;  %v8030_v34 = vld [vmem:[#allocation112_spill] sm:$0xff] }
 0x261   : > { %v6834_v39 = vpop.f32.mrf.mxu2 }
 0x262   : > { %8032 = vst [vmem:[#allocation53_spill] sm:$0xff] %v6834_v39  ;;  %v8040_v39 = vld [vmem:[#allocation88_spill] sm:$0xff] }
 0x263   : > { %2546 = vmatmul.bf16.gmra.mxu1 %v8019_v59  ;;  %v8029_v59 = vpack.c.bf16 %v7977_v31, %v8028_v1  ;;  %v8035_v31 = vld [vmem:[#allocation76_spill] sm:$0xff]  ;;  %v8036_v1 = vld [vmem:[#allocation77_spill] sm:$0xff] }
 0x266   : > { %v1765_v44 = vpop.f32.mrf.mxu3 }
 0x267   : > { %v6810_v36 = vadd.f32 %v1765_v44, %v1628_v10 }
 0x268   : > { %v6812_v45 = vpop.f32.mrf.mxu1  ;;  %2864 = vmatmul.bf16.gmra.mxu2 %v8023_v21  ;;  %v8031_v21 = vpack.c.bf16 %v6432_v17, %v8030_v34 }
 0x269   : > { %8020 = vst [vmem:[#allocation101_spill] sm:$0xff] %v6812_v45  ;;  %v6836_v45 = vpop.f32.mrf.mxu0 }
 0x26a   : > { %8033 = vst [vmem:[#allocation64_spill] sm:$0xff] %v6836_v45  ;;  %v8041_v45 = vpack.c.bf16 %v7991_v0, %v8040_v39  ;;  %v8046_v0 = vpack.c.bf16 %v6497_v23, %v6466_v30  ;;  %v4821_v39 = vld [vmem:[#allocation8 + $0x218] sm:$0xff] }
 0x26b   : > { %1994 = vmatmul.bf16.gmra.mxu3 %v8026_v48  ;;  %3625 = vmatpush.bf16.msra.mxu1 %v4821_v39 }
 0x26c   : > { %3356 = vmatmul.bf16.gmra.mxu0 %v8029_v59  ;;  %v8037_v59 = vpack.c.bf16 %v8035_v31, %v8036_v1 }
 0x26e   : > { %v1768_v10 = vpop.f32.mrf.mxu3 }
 0x26f   : > { %v6827_v11 = vadd.f32 %v1768_v10, %v1631_v55  ;;  %v6846_v55 = vrot.slane %v7945_v4, 1  ;;  %v8038_v10 = vld [vmem:[#allocation80_spill] sm:$0xff] }
 0x270   : > { %v6829_v44 = vpop.f32.mrf.mxu1  ;;  %v8039_v34 = vpack.c.bf16 %v8038_v10, %v6030_v60  ;;  %v8045_v10 = vld [vmem:[#allocation94_spill] sm:$0xff] }
 0x271   : > { %v2677_v4 = vsel %vm1815_vm4, %v6846_v55, %v7949_v26  ;;  %v6862_v31 = vpop.f32.mrf.mxu0 }
 0x272   : > { %8043 = vst [vmem:[#allocation59_spill] sm:$0xff] %v6862_v31 }
 0x273   : > { %2551 = vmatmul.bf16.gmra.mxu1 %v8031_v21  ;;  %v4805_v21 = vld [vmem:[#allocation8 + $0x1d8] sm:$0xff] }
 0x274   : > { %3029 = vmatpush.bf16.msra.mxu3 %v4805_v21 }
 0x276   : > { %v1770_v48 = vpop.f32.mrf.mxu3 }
 0x277   : > { %v6838_v33 = vadd.f32 %v1770_v48, %v1633_v3  ;;  %v6854_v3 = vpop.f32.mrf.mxu2 }
 0x278   : > { %v6840_v53 = vpop.f32.mrf.mxu1  ;;  %2869 = vmatmul.bf16.gmra.mxu2 %v8037_v59  ;;  %8042 = vst [vmem:[#allocation60_spill] sm:$0xff] %v6854_v3 }
 0x279   : > { %8034 = vst [vmem:[#allocation107_spill] sm:$0xff] %v6840_v53  ;;  %v6885_v30 = vpop.f32.mrf.mxu0 }
 0x27a   : > { %8050 = vst [vmem:[#allocation76_spill] sm:$0xff] %v6885_v30 }
 0x27b   : > { %1999 = vmatmul.bf16.gmra.mxu3 %v8039_v34  ;;  %v2709_v34 = vmul.f32 %v8045_v10, %v2677_v4 }
 0x27c   : > { %3361 = vmatmul.bf16.gmra.mxu0 %v8041_v45  ;;  %v8047_v45 = vrot.slane %v7944_v25, 1 }
 0x27e   : > { %v1773_v48 = vpop.f32.mrf.mxu3 }
 0x27f   : > { %v6856_v53 = vadd.f32 %v1773_v48, %v1636_v18  ;;  %v6875_v18 = vsel %vm1815_vm4, %v8047_v45, %v6846_v55  ;;  %v6881_v4 = vpop.f32.mrf.mxu2  ;;  %v8053_v45 = vld [vmem:[#allocation102_spill] sm:$0xff] }
 0x280   : > { %v6864_v59 = vpop.f32.mrf.mxu1  ;;  %v2725_v21 = vpack.c.bf16 %v2709_v34, %v6875_v18  ;;  %8048 = vst [vmem:[#allocation79_spill] sm:$0xff] %v6881_v4  ;;  %v8054_v39 = vpack.c.bf16 %v6304_v47, %v8053_v45  ;;  %v8059_v45 = vld [vmem:[#allocation103_spill] sm:$0xff] }
 0x281   : > { %8044 = vst [vmem:[#allocation65_spill] sm:$0xff] %v6864_v59  ;;  %v6901_v30 = vpop.f32.mrf.mxu0 }
 0x282   : > { %8057 = vst [vmem:[#allocation80_spill] sm:$0xff] %v6901_v30 }
 0x283   : > { %2556 = vmatmul.bf16.gmra.mxu1 %v8046_v0  ;;  %v8051_v0 = vld [vmem:[#allocation89_spill] sm:$0xff] }
 0x284   : > { %v8052_v3 = vpack.c.bf16 %v8051_v0, %v6136_v56 }
 0x286   : > { %v1775_v26 = vpop.f32.mrf.mxu3 }
 0x287   : > { %v6879_v48 = vadd.f32 %v1775_v26, %v6758_v63  ;;  %v8056_v26 = vpack.c.bf16 %v6532_v29, %v6521_v51  ;;  %v8063_v51 = vld [vmem:[#allocation118_spill] sm:$0xff] }
 0x288   : > { %v6883_v31 = vpop.f32.mrf.mxu1  ;;  %2874 = vmatmul.bf16.gmra.mxu2 %v2725_v21  ;;  %v4833_v21 = vld [vmem:[#allocation9 + $0x38] sm:$0xff] }
 0x289   : > { %8049 = vst [vmem:[#allocation112_spill] sm:$0xff] %v6883_v31  ;;  %3894 = vmatpush.bf16.msra.mxu2 %v4833_v21  ;;  %v6916_v21 = vpop.f32.mrf.mxu0 }
 0x28a   : > { %8065 = vst [vmem:[#allocation94_spill] sm:$0xff] %v6916_v21 }
 0x28b   : > { %2004 = vmatmul.bf16.gmra.mxu3 %v8052_v3 }
 0x28c   : > { %3366 = vmatmul.bf16.gmra.mxu0 %v8054_v39  ;;  %v8061_v39 = vld [vmem:[#allocation108_spill] sm:$0xff] }
 0x28e   : > { %v1778_v59 = vpop.f32.mrf.mxu3 }
 0x28f   : > { %v6894_v34 = vadd.f32 %v1778_v59, %v6775_v40  ;;  %v8060_v40 = vpack.c.bf16 %v8059_v45, %v7942_v14  ;;  %v4804_v59 = vld [vmem:[#allocation8 + $0x1d0] sm:$0xff] }
 0x290   : > { %v6896_v63 = vpop.f32.mrf.mxu1  ;;  %3030 = vmatpush.bf16.msra.mxu3 %v4804_v59 }
 0x291   : > { %8055 = vst [vmem:[#allocation77_spill] sm:$0xff] %v6896_v63  ;;  %v8062_v63 = vpack.c.bf16 %v6371_v38, %v8061_v39  ;;  %v8069_v39 = vld [vmem:[#allocation109_spill] sm:$0xff] }
 0x293   : > { %2561 = vmatmul.bf16.gmra.mxu1 %v8056_v26  ;;  %v8064_v26 = vld [vmem:[#allocation93_spill] sm:$0xff] }
 0x294   : > { %v1704_v4 = vadd.f32 %v8064_v26, %v8063_v51 }
 0x296   : > { %v1780_v0 = vpop.f32.mrf.mxu3 }
 0x297   : > { %v6904_v3 = vadd.f32 %v1780_v0, %v6784_v8 }
 0x298   : > { %v6906_v47 = vpop.f32.mrf.mxu1 }
 0x299   : > { %8058 = vst [vmem:[#allocation88_spill] sm:$0xff] %v6906_v47  ;;  %v8066_v47 = vld [vmem:[#allocation61_spill] sm:$0xff] }
 0x29a   : > { %v8067_v45 = vpack.c.bf16 %v5961_v27, %v8066_v47  ;;  %v4819_v47 = vld [vmem:[#allocation8 + $0x208] sm:$0xff] }
 0x29b   : > { %2009 = vmatmul.bf16.gmra.mxu3 %v8060_v40  ;;  %v4820_v40 = vld [vmem:[#allocation8 + $0x210] sm:$0xff] }
 0x29c   : > { %3371 = vmatmul.bf16.gmra.mxu0 %v8062_v63  ;;  %3626 = vmatpush.bf16.msra.mxu1 %v4820_v40  ;;  %v6928_v63 = vpop.f32.mrf.mxu0 }
 0x29d   : > { %8068 = vst [vmem:[#allocation89_spill] sm:$0xff] %v6928_v63  ;;  %v8074_v63 = vld [vmem:[#allocation75_spill] sm:$0xff] }
 0x29e   : > { %v1970_v30 = vpop.f32.mrf.mxu3  ;;  %v8075_v21 = vpack.c.bf16 %v5904_v6, %v8074_v63  ;;  %v8080_v63 = vpack.c.bf16 %v6497_v23, %v6470_v32 }
 0x29f   : > { %v6918_v8 = vadd.f32 %v1970_v30, %v1704_v4  ;;  %v8070_v4 = vpack.c.bf16 %v8069_v39, %v7957_v9  ;;  %v8071_v30 = vld [vmem:[#allocation113_spill] sm:$0xff]  ;;  %v4832_v39 = vld [vmem:[#allocation9 + $0x30] sm:$0xff] }
 0x2a0   : > { %v6920_v0 = vpop.f32.mrf.mxu1  ;;  %v8072_v51 = vpack.c.bf16 %v6432_v17, %v8071_v30  ;;  %3627 = vmatpush.bf16.msra.mxu1 %v4819_v47  ;;  %3895 = vmatpush.bf16.msra.mxu2 %v4832_v39  ;;  %v4803_v47 = vld [vmem:[#allocation8 + $0x1c8] sm:$0xff] }
 0x2a1   : > { %3031 = vmatpush.bf16.msra.mxu3 %v4803_v47 }
 0x2a3   : > { %2566 = vmatmul.bf16.gmra.mxu1 %v8067_v45 }
 0x2a4   : > { %v6943_v40 = vpop.f32.mrf.mxu0 }
 0x2a5   : > { %8073 = vst [vmem:[#allocation102_spill] sm:$0xff] %v6943_v40 }
 0x2a6   : > { %v1972_v31 = vpop.f32.mrf.mxu3 }
 0x2a7   : > { %v6926_v38 = vadd.f32 %v1972_v31, %v6510_v19  ;;  %v4818_v31 = vld [vmem:[#allocation8 + $0x200] sm:$0xff] }
 0x2a8   : > { %v6930_v59 = vpop.f32.mrf.mxu1  ;;  %3628 = vmatpush.bf16.msra.mxu1 %v4818_v31  ;;  %v8082_v31 = vld [vmem:[#allocation56_spill] sm:$0xff] }
 0x2ab   : > { %2014 = vmatmul.bf16.gmra.mxu3 %v8070_v4 }
 0x2ac   : > { %3376 = vmatmul.bf16.gmra.mxu0 %v8072_v51 }
 0x2ae   : > { %v1975_v26 = vpop.f32.mrf.mxu3 }
 0x2af   : > { %v6939_v45 = vadd.f32 %v1975_v26, %v6554_v15  ;;  %v8077_v15 = vld [vmem:[#allocation114_spill] sm:$0xff]  ;;  %v6956_v26 = vpop.f32.mrf.mxu0 }
 0x2b0   : > { %v6941_v19 = vpop.f32.mrf.mxu1  ;;  %v8078_v51 = vpack.c.bf16 %v8077_v15, %v6375_v54  ;;  %8079 = vst [vmem:[#allocation108_spill] sm:$0xff] %v6956_v26 }
 0x2b3   : > { %2571 = vmatmul.bf16.gmra.mxu1 %v8075_v21  ;;  %v8081_v21 = vld [vmem:[#allocation95_spill] sm:$0xff] }
 0x2b4   : > { %v2410_v39 = vmul.f32 %v8082_v31, %v8081_v21  ;;  %v8087_v21 = vld [vmem:[#allocation120_spill] sm:$0xff] }
 0x2b6   : > { %v1977_v17 = vpop.f32.mrf.mxu3 }
 0x2b7   : > { %v6949_v4 = vadd.f32 %v1977_v17, %v6564_v12  ;;  %v8083_v12 = vld [vmem:[#allocation46_spill] sm:$0xff]  ;;  %v8084_v17 = vrot.slane %v7944_v25, 7  ;;  %v6973_v23 = vpop.f32.mrf.mxu0  ;;  %v8088_v25 = vpack.c.bf16 %v8087_v21, %v7981_v52 }
 0x2b8   : > { %v6951_v30 = vpop.f32.mrf.mxu1 }
 0x2b9   : > { %8076 = vst [vmem:[#allocation103_spill] sm:$0xff] %v6951_v30  ;;  %v2348_v30 = vsel %vm1412_vm5, %v8084_v17, %v8083_v12 }
 0x2ba   : > { %v2427_v26 = vpack.c.bf16 %v2348_v30, %v2410_v39 }
 0x2bb   : > { %2019 = vmatmul.bf16.gmra.mxu3 %v8078_v51 }
 0x2bc   : > { %3381 = vmatmul.bf16.gmra.mxu0 %v8080_v63 }
 0x2be   : > { %v1980_v40 = vpop.f32.mrf.mxu3 }
 0x2bf   : > { %v6969_v15 = vadd.f32 %v1980_v40, %v6573_v5  ;;  %v8089_v5 = vpack.c.bf16 %v6532_v29, %v6526_v50 }
 0x2c0   : > { %v6971_v51 = vpop.f32.mrf.mxu1 }
 0x2c1   : > { %8085 = vst [vmem:[#allocation118_spill] sm:$0xff] %v6971_v51 }
 0x2c3   : > { %2576 = vmatmul.bf16.gmra.mxu1 %v2427_v26  ;;  %v6989_v26 = vpop.f32.mrf.mxu0 }
 0x2c6   : > { %v1982_v32 = vpop.f32.mrf.mxu3 }
 0x2c7   : > { %v6976_v63 = vadd.f32 %v1982_v32, %v6584_v16  ;;  %v8091_v16 = vld [vmem:[#allocation29_spill] sm:$0xff] }
 0x2c8   : > { %v6978_v47 = vpop.f32.mrf.mxu1  ;;  %v8092_v32 = vpack.c.bf16 %v8091_v16, %v7903_v57  ;;  %v8099_v16 = vld [vmem:[#allocation40_spill] sm:$0xff] }
 0x2c9   : > { %8086 = vst [vmem:[#allocation93_spill] sm:$0xff] %v6978_v47  ;;  %v4831_v47 = vld [vmem:[#allocation9 + $0x28] sm:$0xff] }
 0x2ca   : > { %3896 = vmatpush.bf16.msra.mxu2 %v4831_v47 }
 0x2cb   : > { %2024 = vmatmul.bf16.gmra.mxu3 %v8088_v25  ;;  %v7001_v29 = vpop.f32.mrf.mxu0 }
 0x2cc   : > { %3386 = vmatmul.bf16.gmra.mxu0 %v8089_v5 }
 0x2ce   : > { %v1985_v40 = vpop.f32.mrf.mxu3 }
 0x2cf   : > { %v6987_v39 = vadd.f32 %v1985_v40, %v6593_v22  ;;  %v8094_v22 = vld [vmem:[#allocation22_spill] sm:$0xff]  ;;  %v4802_v40 = vld [vmem:[#allocation8 + $0x1c0] sm:$0xff] }
 0x2d0   : > { %v6991_v17 = vpop.f32.mrf.mxu1  ;;  %v8095_v5 = vpack.c.bf16 %v8094_v22, %v6507_v49  ;;  %3032 = vmatpush.bf16.msra.mxu3 %v4802_v40 }
 0x2d1   : > { %8090 = vst [vmem:[#allocation61_spill] sm:$0xff] %v6991_v17  ;;  %v8096_v17 = vld [vmem:[#allocation66_spill] sm:$0xff] }
 0x2d2   : > { %v8097_v51 = vpack.c.bf16 %v5961_v27, %v8096_v17  ;;  %v8102_v27 = vld [vmem:[#allocation72_spill] sm:$0xff] }
 0x2d3   : > { %3629 = vmatmul.bf16.vlgmr.msra.gmra.mxu1 %v8092_v32  ;;  %v8100_v32 = vpack.c.bf16 %v8099_v16, %v5630_v61 }
 0x2d6   : > { %v1987_v21 = vpop.f32.mrf.mxu3 }
 0x2d7   : > { %v6997_v25 = vadd.f32 %v1987_v21, %v6602_v35  ;;  %v7017_v21 = vpop.f32.mrf.mxu0 }
 0x2d8   : > { %v6999_v50 = vpop.f32.mrf.mxu1 }
 0x2d9   : > { %8093 = vst [vmem:[#allocation109_spill] sm:$0xff] %v6999_v50 }
 0x2db   : > { %2029 = vmatmul.bf16.gmra.mxu3 %v8095_v5 }
 0x2dc   : > { %3391 = vmatmul.bf16.gmra.mxu0 %v8097_v51  ;;  %v8103_v51 = vpack.c.bf16 %v8102_v27, %v8010_v13 }
 0x2de   : > { %v1990_v57 = vpop.f32.mrf.mxu3 }
 0x2df   : > { %v7010_v47 = vadd.f32 %v1990_v57, %v6614_v37  ;;  %v8104_v37 = vld [vmem:[#allocation85_spill] sm:$0xff]  ;;  %v7030_v40 = vpop.f32.mrf.mxu0 }
 0x2e0   : > { %v7012_v35 = vpop.f32.mrf.mxu1  ;;  %v8105_v17 = vpack.c.bf16 %v5904_v6, %v8104_v37 }
 0x2e1   : > { %8098 = vst [vmem:[#allocation113_spill] sm:$0xff] %v7012_v35 }
 0x2e3   : > { %3634 = vmatmul.bf16.gmra.mxu1 %v8100_v32 }
 0x2e6   : > { %v1992_v22 = vpop.f32.mrf.mxu3 }
 0x2e7   : > { %v7020_v5 = vadd.f32 %v1992_v22, %v6624_v20  ;;  %v8107_v20 = vld [vmem:[#allocation67_spill] sm:$0xff]  ;;  %v4830_v22 = vld [vmem:[#allocation9 + $0x20] sm:$0xff]  ;;  %v7043_v6 = vpop.f32.mrf.mxu0 }
 0x2e8   : > { %v7022_v50 = vpop.f32.mrf.mxu1  ;;  %v8108_v32 = vpack.c.bf16 %v8107_v20, %v5739_v46  ;;  %3897 = vmatpush.bf16.msra.mxu2 %v4830_v22 }
 0x2e9   : > { %8101 = vst [vmem:[#allocation75_spill] sm:$0xff] %v7022_v50 }
 0x2eb   : > { %2034 = vmatmul.bf16.gmra.mxu3 %v8103_v51 }
 0x2ec   : > { %3396 = vmatmul.bf16.gmra.mxu0 %v8105_v17  ;;  %v8110_v17 = vld [vmem:[#allocation100_spill] sm:$0xff] }
 0x2ed   : > { %v3256_v50 = vpack.c.bf16 %v2348_v30, %v8110_v17 }
 0x2ee   : > { %v1995_v61 = vpop.f32.mrf.mxu3 }
 0x2ef   : > { %v7033_v57 = vadd.f32 %v1995_v61, %v6634_v28  ;;  %v8111_v28 = vld [vmem:[#allocation84_spill] sm:$0xff] }
 0x2f0   : > { %v7035_v16 = vpop.f32.mrf.mxu1  ;;  %v8112_v61 = vpack.c.bf16 %v8111_v28, %v8022_v42 }
 0x2f1   : > { %8106 = vst [vmem:[#allocation114_spill] sm:$0xff] %v7035_v16 }
 0x2f3   : > { %3639 = vmatmul.bf16.gmra.mxu1 %v8108_v32  ;;  %v7056_v32 = vpop.f32.mrf.mxu0 }
 0x2f6   : > { %v1997_v27 = vpop.f32.mrf.mxu3 }
 0x2f7   : > { %v7041_v51 = vadd.f32 %v1997_v27, %v6644_v43  ;;  %v8114_v43 = vld [vmem:[#allocation68_spill] sm:$0xff] }
 0x2f8   : > { %v7045_v37 = vpop.f32.mrf.mxu1  ;;  %v8115_v22 = vpack.c.bf16 %v8114_v43, %v5861_v24  ;;  %v8116_v27 = vld [vmem:[#allocation16_spill] sm:$0xff] }
 0x2f9   : > { %8109 = vst [vmem:[#allocation95_spill] sm:$0xff] %v7045_v37  ;;  %v3179_v30 = vsel %vm1412_vm5, %v8083_v12, %v8116_v27 }
 0x2fb   : > { %2039 = vmatmul.bf16.gmra.mxu3 %v8112_v61  ;;  %v8118_v61 = vld [vmem:[#allocation98_spill] sm:$0xff]  ;;  %v7075_v24 = vpop.f32.mrf.mxu0 }
 0x2fc   : > { %3401 = vmatmul.bf16.gmra.mxu0 %v3256_v50  ;;  %v3240_v50 = vmul.f32 %v8082_v31, %v3179_v30  ;;  %v8122_v31 = vld [vmem:[#allocation81_spill] sm:$0xff]  ;;  %v4829_v30 = vld [vmem:[#allocation9 + $0x18] sm:$0xff] }
 0x2fd   : > { %3898 = vmatpush.bf16.msra.mxu2 %v4829_v30 }
 0x2fe   : > { %v2000_v16 = vpop.f32.mrf.mxu3 }
 0x2ff   : > { %v7052_v46 = vadd.f32 %v2000_v16, %v6654_v7  ;;  %v3257_v16 = vpack.c.bf16 %v8116_v27, %v3240_v50 }
 0x300   : > { %v7054_v20 = vpop.f32.mrf.mxu1 }
 0x301   : > { %8113 = vst [vmem:[#allocation56_spill] sm:$0xff] %v7054_v20  ;;  %v8119_v20 = vpack.c.bf16 %v8118_v61, %v8036_v1 }
 0x303   : > { %3644 = vmatmul.bf16.gmra.mxu1 %v8115_v22  ;;  %v8120_v22 = vld [vmem:[#allocation30_spill] sm:$0xff] }
 0x306   : > { %v2002_v17 = vpop.f32.mrf.mxu3 }
 0x307   : > { %v7067_v28 = vadd.f32 %v2002_v17, %v6664_v62  ;;  %v8123_v62 = vpack.c.bf16 %v8122_v31, %v6030_v60  ;;  %v8124_v17 = vld [vmem:[#allocation48_spill] sm:$0xff] }
 0x308   : > { %v7069_v7 = vpop.f32.mrf.mxu1 }
 0x309   : > { %8117 = vst [vmem:[#allocation46_spill] sm:$0xff] %v7069_v7  ;;  %v8127_v7 = vld [vmem:[#allocation45_spill] sm:$0xff] }
 0x30b   : > { %2044 = vmatmul.bf16.gmra.mxu3 %v8119_v20  ;;  %v8125_v20 = vld [vmem:[#allocation25_spill] sm:$0xff] }
 0x30c   : > { %3406 = vmatmul.bf16.gmra.mxu0 %v3257_v16 }
 0x30e   : > { %v2005_v43 = vpop.f32.mrf.mxu3 }
 0x30f   : > { %v7078_v12 = vadd.f32 %v2005_v43, %v8120_v22  ;;  %v8129_v22 = vld [vmem:[#allocation90_spill] sm:$0xff] }
 0x310   : > { %v7080_v37 = vpop.f32.mrf.mxu1 }
 0x311   : > { %8121 = vst [vmem:[#allocation120_spill] sm:$0xff] %v7080_v37  ;;  %v8130_v37 = vpack.c.bf16 %v8129_v22, %v6136_v56  ;;  %v4828_v56 = vld [vmem:[#allocation9 + $0x10] sm:$0xff] }
 0x312   : > { %3899 = vmatpush.bf16.msra.mxu2 %v4828_v56  ;;  %v8140_v22 = vld [vmem:[#allocation106_spill] sm:$0xff] }
 0x313   : > { %3649 = vmatmul.bf16.gmra.mxu1 %v8123_v62  ;;  %v8132_v62 = vld [vmem:[#allocation55_spill] sm:$0xff] }
 0x316   : > { %v2007_v27 = vpop.f32.mrf.mxu3 }
 0x317   : > { %v7086_v50 = vadd.f32 %v2007_v27, %v8124_v17  ;;  %v8134_v27 = vld [vmem:[#allocation33_spill] sm:$0xff] }
 0x318   : > { %v7089_v61 = vpop.f32.mrf.mxu1 }
 0x319   : > { %8126 = vst [vmem:[#allocation29_spill] sm:$0xff] %v7089_v61 }
 0x31b   : > { %3033 = vmatmul.bf16.vlgmr.msra.gmra.mxu3 %v8125_v20  ;;  %v8135_v20 = vld [vmem:[#allocation18_spill] sm:$0xff] }
 0x31e   : > { %v2010_v16 = vpop.f32.mrf.mxu3 }
 0x31f   : > { %v7092_v43 = vadd.f32 %v2010_v16, %v8127_v7  ;;  %v8138_v7 = vld [vmem:[#allocation104_spill] sm:$0xff] }
 0x320   : > { %v7097_v31 = vpop.f32.mrf.mxu1  ;;  %v8139_v16 = vpack.c.bf16 %v8138_v7, %v7942_v14 }
 0x321   : > { %8128 = vst [vmem:[#allocation22_spill] sm:$0xff] %v7092_v43 }
 0x322   : > { %8131 = vst [vmem:[#allocation66_spill] sm:$0xff] %v7097_v31 }
 0x323   : > { %3654 = vmatmul.bf16.gmra.mxu1 %v8130_v37 }
 0x326   : > { %v2012_v60 = vpop.f32.mrf.mxu3 }
 0x327   : > { %v7100_v30 = vadd.f32 %v2012_v60, %v8132_v62  ;;  %v8143_v62 = vld [vmem:[#allocation43_spill] sm:$0xff] }
 0x328   : > { %v7106_v61 = vpop.f32.mrf.mxu1 }
 0x329   : > { %8133 = vst [vmem:[#allocation40_spill] sm:$0xff] %v7100_v30  ;;  %v8144_v30 = vld [vmem:[#allocation71_spill] sm:$0xff] }
 0x32a   : > { %8137 = vst [vmem:[#allocation85_spill] sm:$0xff] %v7106_v61 }
 0x32b   : > { %3038 = vmatmul.bf16.gmra.mxu3 %v8134_v27 }
 0x32e   : > { %v2015_v17 = vpop.f32.mrf.mxu3 }
 0x32f   : > { %v7104_v35 = vadd.f32 %v2015_v17, %v8135_v20  ;;  %v8146_v20 = vld [vmem:[#allocation110_spill] sm:$0xff] }
 0x330   : > { %v7114_v60 = vpop.f32.mrf.mxu1  ;;  %v8147_v61 = vpack.c.bf16 %v8146_v20, %v7957_v9  ;;  %v8155_v9 = vld [vmem:[#allocation115_spill] sm:$0xff]  ;;  %v4827_v20 = vld [vmem:[#allocation9 + $0x8] sm:$0xff] }
 0x331   : > { %8136 = vst [vmem:[#allocation72_spill] sm:$0xff] %v7104_v35  ;;  %3900 = vmatpush.bf16.msra.mxu2 %v4827_v20  ;;  %v8183_v35 = vld [vmem:[#allocation111_spill] sm:$0xff] }
 0x332   : > { %8142 = vst [vmem:[#allocation100_spill] sm:$0xff] %v7114_v60 }
 0x333   : > { %3659 = vmatmul.bf16.gmra.mxu1 %v8139_v16  ;;  %v8149_v16 = vld [vmem:[#allocation63_spill] sm:$0xff] }
 0x336   : > { %v2017_v37 = vpop.f32.mrf.mxu3 }
 0x337   : > { %v7112_v31 = vadd.f32 %v2017_v37, %v8140_v22  ;;  %v7128_v37 = vpop.f32.mrf.mxu2  ;;  %v8151_v22 = vld [vmem:[#allocation54_spill] sm:$0xff] }
 0x338   : > { %v7123_v14 = vpop.f32.mrf.mxu1 }
 0x339   : > { %8141 = vst [vmem:[#allocation67_spill] sm:$0xff] %v7112_v31  ;;  %v8153_v31 = vld [vmem:[#allocation23_spill] sm:$0xff] }
 0x33a   : > { %8148 = vst [vmem:[#allocation68_spill] sm:$0xff] %v7123_v14 }
 0x33b   : > { %3043 = vmatmul.bf16.gmra.mxu3 %v8143_v62 }
 0x33e   : > { %v2020_v27 = vpop.f32.mrf.mxu3 }
 0x33f   : > { %v7118_v17 = vadd.f32 %v2020_v27, %v8144_v30  ;;  %v7136_v27 = vpop.f32.mrf.mxu2 }
 0x340   : > { %v7131_v62 = vpop.f32.mrf.mxu1 }
 0x341   : > { %8145 = vst [vmem:[#allocation84_spill] sm:$0xff] %v7118_v17  ;;  %v8162_v17 = vld [vmem:[#allocation121_spill] sm:$0xff] }
 0x342   : > { %8152 = vst [vmem:[#allocation98_spill] sm:$0xff] %v7131_v62 }
 0x343   : > { %3664 = vmatmul.bf16.gmra.mxu1 %v8147_v61  ;;  %v8156_v61 = vpack.c.bf16 %v8155_v9, %v6375_v54  ;;  %v8163_v54 = vpack.c.bf16 %v8162_v17, %v7981_v52  ;;  %v4826_v52 = vld [vmem:[#allocation9] sm:$0xff] }
 0x344   : > { %3901 = vmatpush.bf16.msra.mxu2 %v4826_v52 }
 0x346   : > { %v2022_v7 = vpop.f32.mrf.mxu3 }
 0x347   : > { %v7126_v56 = vadd.f32 %v2022_v7, %v8149_v16  ;;  %v8157_v16 = vld [vmem:[#allocation78_spill] sm:$0xff]  ;;  %v7147_v62 = vpop.f32.mrf.mxu2 }
 0x349   : > { %8150 = vst [vmem:[#allocation16_spill] sm:$0xff] %v7126_v56  ;;  %v7144_v56 = vpop.f32.mrf.mxu1 }
 0x34a   : > { %8159 = vst [vmem:[#allocation48_spill] sm:$0xff] %v7144_v56 }
 0x34b   : > { %3048 = vmatmul.bf16.gmra.mxu3 %v8151_v22  ;;  %v8160_v22 = vld [vmem:[#allocation69_spill] sm:$0xff] }
 0x34e   : > { %v2025_v60 = vpop.f32.mrf.mxu3 }
 0x34f   : > { %v7134_v30 = vadd.f32 %v2025_v60, %v8153_v31  ;;  %v7155_v9 = vpop.f32.mrf.mxu2 }
 0x351   : > { %8154 = vst [vmem:[#allocation30_spill] sm:$0xff] %v7134_v30  ;;  %v3630_v30 = vpop.f32.mrf.mxu1 }
 0x353   : > { %3669 = vmatmul.bf16.gmra.mxu1 %v8156_v61 }
 0x356   : > { %v2027_v7 = vpop.f32.mrf.mxu3 }
 0x357   : > { %v7142_v14 = vadd.f32 %v2027_v7, %v8157_v16  ;;  %v8165_v7 = vld [vmem:[#allocation82_spill] sm:$0xff] }
 0x359   : > { %8158 = vst [vmem:[#allocation81_spill] sm:$0xff] %v7142_v14  ;;  %v3632_v16 = vpop.f32.mrf.mxu1 }
 0x35b   : > { %3053 = vmatmul.bf16.gmra.mxu3 %v8160_v22 }
 0x35e   : > { %v2030_v31 = vpop.f32.mrf.mxu3 }
 0x35f   : > { %v7150_v60 = vadd.f32 %v2030_v31, %v6799_v2  ;;  %v7164_v2 = vpop.f32.mrf.mxu2  ;;  %v8167_v31 = vld [vmem:[#allocation41_spill] sm:$0xff] }
 0x361   : > { %8161 = vst [vmem:[#allocation25_spill] sm:$0xff] %v7150_v60  ;;  %v8168_v60 = vpack.c.bf16 %v8167_v31, %v6507_v49  ;;  %v8172_v49 = vld [vmem:[#allocation73_spill] sm:$0xff] }
 0x363   : > { %3674 = vmatmul.bf16.gmra.mxu1 %v8163_v54  ;;  %v7169_v54 = vpop.f32.mrf.mxu1 }
 0x366   : > { %v2032_v61 = vpop.f32.mrf.mxu3 }
 0x367   : > { %v7158_v20 = vadd.f32 %v2032_v61, %v6810_v36  ;;  %v7174_v61 = vpop.f32.mrf.mxu2 }
 0x369   : > { %8164 = vst [vmem:[#allocation45_spill] sm:$0xff] %v7158_v20 }
 0x36b   : > { %3058 = vmatmul.bf16.gmra.mxu3 %v8165_v7  ;;  %v8170_v7 = vld [vmem:[#allocation92_spill] sm:$0xff] }
 0x36e   : > { %v2035_v22 = vpop.f32.mrf.mxu3 }
 0x36f   : > { %v7162_v56 = vadd.f32 %v2035_v22, %v6827_v11  ;;  %v7185_v31 = vpop.f32.mrf.mxu2 }
 0x371   : > { %8166 = vst [vmem:[#allocation90_spill] sm:$0xff] %v7162_v56  ;;  %v7180_v56 = vpop.f32.mrf.mxu1 }
 0x373   : > { %3679 = vmatmul.bf16.gmra.mxu1 %v8168_v60  ;;  %v8173_v60 = vpack.c.bf16 %v8172_v49, %v8010_v13  ;;  %v8180_v49 = vld [vmem:[#allocation34_spill] sm:$0xff] }
 0x376   : > { %v2037_v17 = vpop.f32.mrf.mxu3 }
 0x377   : > { %v7172_v36 = vadd.f32 %v2037_v17, %v6838_v33 }
 0x379   : > { %8169 = vst [vmem:[#allocation55_spill] sm:$0xff] %v7172_v36  ;;  %v7190_v17 = vpop.f32.mrf.mxu1  ;;  %v8175_v36 = vld [vmem:[#allocation105_spill] sm:$0xff] }
 0x37b   : > { %3063 = vmatmul.bf16.gmra.mxu3 %v8170_v7  ;;  %v7193_v7 = vpop.f32.mrf.mxu2 }
 0x37c   : > { %8176 = vst [vmem:[#allocation104_spill] sm:$0xff] %v7193_v7 }
 0x37e   : > { %v2040_v11 = vpop.f32.mrf.mxu3 }
 0x37f   : > { %v7178_v22 = vadd.f32 %v2040_v11, %v6856_v53 }
 0x381   : > { %8171 = vst [vmem:[#allocation33_spill] sm:$0xff] %v7178_v22  ;;  %v8178_v22 = vld [vmem:[#allocation86_spill] sm:$0xff]  ;;  %v7203_v20 = vpop.f32.mrf.mxu1 }
 0x382   : > { %v8179_v13 = vpack.c.bf16 %v8178_v22, %v8022_v42  ;;  %v8185_v42 = vld [vmem:[#allocation31_spill] sm:$0xff] }
 0x383   : > { %3684 = vmatmul.bf16.gmra.mxu1 %v8173_v60  ;;  %v2284_v60 = vadd.f32 %v8180_v49, %v6918_v8  ;;  %v8186_v49 = vld [vmem:[#allocation87_spill] sm:$0xff] }
 0x386   : > { %v2042_v52 = vpop.f32.mrf.mxu3 }
 0x387   : > { %v7188_v33 = vadd.f32 %v2042_v52, %v6879_v48 }
 0x389   : > { %8174 = vst [vmem:[#allocation18_spill] sm:$0xff] %v7188_v33  ;;  %v8182_v33 = vld [vmem:[#allocation32_spill] sm:$0xff] }
 0x38a   : > { %v2582_v14 = vadd.f32 %v8182_v33, %v2284_v60 }
 0x38b   : > { %3068 = vmatmul.bf16.gmra.mxu3 %v8175_v36  ;;  %v7208_v36 = vpop.f32.mrf.mxu2 }
 0x38c   : > { %v2880_v22 = vadd.f32 %v8185_v42, %v2582_v14 }
 0x38e   : > { %v2045_v53 = vpop.f32.mrf.mxu3 }
 0x38f   : > { %v7196_v11 = vadd.f32 %v2045_v53, %v6894_v34  ;;  %v8184_v34 = vld [vmem:[#allocation122_spill] sm:$0xff] }
 0x390   : > { %v2285_v53 = vadd.f32 %v8184_v34, %v6926_v38  ;;  %v8190_v38 = vld [vmem:[#allocation119_spill] sm:$0xff] }
 0x391   : > { %8177 = vst [vmem:[#allocation106_spill] sm:$0xff] %v7196_v11  ;;  %v7215_v11 = vpop.f32.mrf.mxu1 }
 0x392   : > { %v2583_v7 = vadd.f32 %v8186_v49, %v2285_v53  ;;  %v8192_v49 = vld [vmem:[#allocation116_spill] sm:$0xff] }
 0x393   : > { %3689 = vmatmul.bf16.gmra.mxu1 %v8179_v13  ;;  %v7218_v43 = vpop.f32.mrf.mxu2 }
 0x394   : > { %v2881_v34 = vadd.f32 %v8190_v38, %v2583_v7 }
 0x396   : > { %v2047_v48 = vpop.f32.mrf.mxu3 }
 0x397   : > { %v7206_v52 = vadd.f32 %v2047_v48, %v6904_v3  ;;  %v8187_v48 = vld [vmem:[#allocation99_spill] sm:$0xff] }
 0x398   : > { %v8188_v33 = vpack.c.bf16 %v8187_v48, %v8036_v1  ;;  %v8194_v48 = vld [vmem:[#allocation27_spill] sm:$0xff] }
 0x399   : > { %8181 = vst [vmem:[#allocation43_spill] sm:$0xff] %v7206_v52  ;;  %v7249_v52 = vpop.f32.mrf.mxu0 }
 0x39b   : > { %3073 = vmatmul.bf16.gmra.mxu3 %v8183_v35  ;;  %v8189_v35 = vld [vmem:[#allocation28_spill] sm:$0xff] }
 0x39c   : > { %v2286_v60 = vadd.f32 %v8189_v35, %v6939_v45 }
 0x39e   : > { %v3034_v13 = vpop.f32.mrf.mxu3  ;;  %v2584_v1 = vadd.f32 %v6803_v58, %v2286_v60  ;;  %v8196_v58 = vld [vmem:[#allocation74_spill] sm:$0xff] }
 0x39f   : > { %v3114_v8 = vadd.f32 %v3034_v13, %v2880_v22  ;;  %v7230_v22 = vld [vmem:[%s7603_s4] ss:$0 sm:$0xff]  ;;  %v7232_v13 = vpop.f32.mrf.mxu1 }
 0x3a1   : > { %v3412_v3 = vadd.f32 %v6973_v23, %v3114_v8  ;;  %v8191_v8 = vld [vmem:[#allocation91_spill] sm:$0xff] }
 0x3a2   : > { %v3477_v45 = vsel %vm1815_vm4, %v6846_v55, %v8191_v8 }
 0x3a3   : > { %3694 = vmatmul.bf16.gmra.mxu1 %v8188_v33  ;;  %v3710_v42 = vadd.f32 %v3630_v30, %v3412_v3  ;;  %v7242_v3 = vpop.f32.mrf.mxu2  ;;  %v2287_v33 = vadd.f32 %v8194_v48, %v6949_v4  ;;  %v3537_v60 = vmul.f32 %v8196_v58, %v3477_v45  ;;  %v8200_v58 = vld [vmem:[#allocation17_spill] sm:$0xff] }
 0x3a4   : > { %8193 = vst [vmem:[#allocation71_spill] sm:$0xff] %v7242_v3 }
 0x3a5   : > { %v3746_v7 = vadd.f32 %v7230_v22, %v3710_v42  ;;  %v3554_v42 = vpack.c.bf16 %v3537_v60, %v6875_v18  ;;  %v7268_v60 = vpop.f32.mrf.mxu0 }
 0x3a6   : > { %v3036_v14 = vpop.f32.mrf.mxu3 }
 0x3a7   : > { %v3115_v53 = vadd.f32 %v3036_v14, %v2881_v34  ;;  %v3778_v14 = vmax.f32 %v3746_v7, 0.0  ;;  %v7253_v3 = vpop.f32.mrf.mxu1 }
 0x3a9   : > { %v3413_v23 = vadd.f32 %v6989_v26, %v3115_v53  ;;  %v8195_v26 = vld [vmem:[#allocation38_spill] sm:$0xff] }
 0x3aa   : > { %v2882_v38 = vadd.f32 %v8195_v26, %v2584_v1  ;;  %v8198_v1 = vld [vmem:[#allocation36_spill] sm:$0xff] }
 0x3ab   : > { %v3711_v30 = vadd.f32 %v3632_v16, %v3413_v23  ;;  %3078 = vmatmul.bf16.gmra.mxu3 %v8192_v49  ;;  %v8197_v23 = vld [vmem:[#allocation101_spill] sm:$0xff]  ;;  %v2288_v45 = vadd.f32 %v8198_v1, %v6969_v15  ;;  %v7259_v48 = vpop.f32.mrf.mxu2 }
 0x3ac   : > { %v2585_v49 = vadd.f32 %v8197_v23, %v2287_v33 }
 0x3ad   : > { %v3747_v35 = vadd.f32 %v7230_v22, %v3711_v30  ;;  %v8199_v30 = vld [vmem:[#allocation39_spill] sm:$0xff]  ;;  %v2586_v33 = vadd.f32 %v6829_v44, %v2288_v45 }
 0x3ae   : > { %v3039_v34 = vpop.f32.mrf.mxu3  ;;  %v2883_v7 = vadd.f32 %v8199_v30, %v2585_v49  ;;  %v8204_v30 = vld [vmem:[#allocation107_spill] sm:$0xff] }
 0x3af   : > { %v3779_v53 = vmax.f32 %v3747_v35, 0.0  ;;  %v3116_v55 = vadd.f32 %v3039_v34, %v2882_v38  ;;  %v8201_v34 = vld [vmem:[#allocation124_spill] sm:$0xff] }
 0x3b1   : > { %v3810_v16 = vpack.c.bf16 %v3779_v53, %v3778_v14  ;;  %v3414_v4 = vadd.f32 %v7001_v29, %v3116_v55  ;;  %v3507_v29 = vsel %vm1815_vm4, %v8191_v8, %v8200_v58  ;;  %v7275_v55 = vpop.f32.mrf.mxu1 }
 0x3b3   : > { %3699 = vmatmul.bf16.gmra.mxu1 %v3554_v42  ;;  %3902 = vmatmul.bf16.vlgmr.msra.gmra.mxu2 %v3810_v16  ;;  %v3712_v26 = vadd.f32 %v7169_v54, %v3414_v4  ;;  %v8202_v54 = vld [vmem:[#allocation123_spill] sm:$0xff]  ;;  %v3539_v16 = vmul.f32 %v8045_v10, %v3507_v29 }
 0x3b4   : > { %v2289_v53 = vadd.f32 %v8202_v54, %v6976_v63 }
 0x3b5   : > { %v3748_v14 = vadd.f32 %v7230_v22, %v3712_v26  ;;  %v3555_v1 = vpack.c.bf16 %v3539_v16, %v8191_v8  ;;  %v7287_v26 = vpop.f32.mrf.mxu0  ;;  %v8210_v16 = vld [vmem:[#allocation60_spill] sm:$0xff] }
 0x3b6   : > { %v3041_v35 = vpop.f32.mrf.mxu3 }
 0x3b7   : > { %v3117_v38 = vadd.f32 %v3041_v35, %v2883_v7  ;;  %v3780_v49 = vmax.f32 %v3748_v14, 0.0  ;;  %v2587_v7 = vadd.f32 %v8204_v30, %v2289_v53  ;;  %v8205_v35 = vld [vmem:[#allocation49_spill] sm:$0xff]  ;;  %v8208_v53 = vld [vmem:[#allocation47_spill] sm:$0xff] }
 0x3b8   : > { %v2290_v10 = vadd.f32 %v8205_v35, %v6987_v39 }
 0x3b9   : > { %v3415_v18 = vadd.f32 %v7017_v21, %v3117_v38  ;;  %v8203_v21 = vld [vmem:[#allocation58_spill] sm:$0xff]  ;;  %v8206_v38 = vld [vmem:[#allocation53_spill] sm:$0xff]  ;;  %v7290_v58 = vpop.f32.mrf.mxu1 }
 0x3ba   : > { %v2884_v44 = vadd.f32 %v8203_v21, %v2586_v33  ;;  %v8209_v21 = vld [vmem:[#allocation57_spill] sm:$0xff] }
 0x3bb   : > { %v3713_v15 = vadd.f32 %v7180_v56, %v3415_v18  ;;  %3083 = vmatmul.bf16.gmra.mxu3 %v8201_v34  ;;  %v7280_v56 = vpop.f32.mrf.mxu2  ;;  %v2885_v18 = vadd.f32 %v8206_v38, %v2587_v7  ;;  %v8207_v34 = vld [vmem:[#allocation65_spill] sm:$0xff] }
 0x3bc   : > { %v2588_v14 = vadd.f32 %v8207_v34, %v2290_v10  ;;  %v8213_v10 = vld [vmem:[#allocation79_spill] sm:$0xff]  ;;  %v8214_v34 = vld [vmem:[#allocation77_spill] sm:$0xff] }
 0x3bd   : > { %v3749_v41 = vadd.f32 %v7230_v22, %v3713_v15 }
 0x3be   : > { %v3044_v42 = vpop.f32.mrf.mxu3 }
 0x3bf   : > { %v3118_v23 = vadd.f32 %v3044_v42, %v2884_v44  ;;  %v3781_v4 = vmax.f32 %v3749_v41, 0.0  ;;  %v2291_v44 = vadd.f32 %v8209_v21, %v6997_v25  ;;  %v2886_v41 = vadd.f32 %v8210_v16, %v2588_v14  ;;  %v8212_v25 = vld [vmem:[#allocation35_spill] sm:$0xff] }
 0x3c0   : > { %v2292_v35 = vadd.f32 %v8212_v25, %v7010_v47 }
 0x3c1   : > { %v3811_v45 = vpack.c.bf16 %v3781_v4, %v3780_v49  ;;  %v3416_v63 = vadd.f32 %v7030_v40, %v3118_v23  ;;  %v7304_v23 = vpop.f32.mrf.mxu0 }
 0x3c2   : > { %v2590_v14 = vadd.f32 %v8214_v34, %v2292_v35 }
 0x3c3   : > { %3704 = vmatmul.bf16.gmra.mxu1 %v3555_v1  ;;  %3907 = vmatmul.bf16.gmra.mxu2 %v3811_v45  ;;  %v3714_v29 = vadd.f32 %v7190_v17, %v3416_v63  ;;  %v7295_v40 = vpop.f32.mrf.mxu2  ;;  %v7306_v1 = vpop.f32.mrf.mxu1  ;;  %v8211_v45 = vld [vmem:[#allocation112_spill] sm:$0xff] }
 0x3c4   : > { %v2589_v30 = vadd.f32 %v8211_v45, %v2291_v44  ;;  %v8218_v45 = vld [vmem:[#allocation26_spill] sm:$0xff] }
 0x3c5   : > { %v3750_v39 = vadd.f32 %v7230_v22, %v3714_v29 }
 0x3c6   : > { %v3046_v33 = vpop.f32.mrf.mxu3  ;;  %v2887_v38 = vadd.f32 %v8213_v10, %v2589_v30 }
 0x3c7   : > { %v3119_v8 = vadd.f32 %v3046_v33, %v2885_v18  ;;  %v3782_v49 = vmax.f32 %v3750_v39, 0.0  ;;  %v8216_v39 = vld [vmem:[#allocation125_spill] sm:$0xff] }
 0x3c8   : > { %v2293_v21 = vadd.f32 %v8216_v39, %v7020_v5  ;;  %v2294_v5 = vadd.f32 %v8218_v45, %v7033_v57  ;;  %v8220_v57 = vld [vmem:[#allocation42_spill] sm:$0xff] }
 0x3c9   : > { %v3417_v15 = vadd.f32 %v7043_v6, %v3119_v8  ;;  %v7316_v8 = vpop.f32.mrf.mxu0 }
 0x3cb   : > { %v3715_v54 = vadd.f32 %v7203_v20, %v3417_v15  ;;  %3088 = vmatmul.bf16.gmra.mxu3 %v8208_v53  ;;  %v7310_v63 = vpop.f32.mrf.mxu2  ;;  %v8215_v53 = vld [vmem:[#allocation20_spill] sm:$0xff] }
 0x3cd   : > { %v3751_v17 = vadd.f32 %v7230_v22, %v3715_v54  ;;  %v7320_v54 = vpop.f32.mrf.mxu1 }
 0x3ce   : > { %v3049_v42 = vpop.f32.mrf.mxu3 }
 0x3cf   : > { %v3120_v6 = vadd.f32 %v3049_v42, %v2886_v41  ;;  %v3783_v4 = vmax.f32 %v3751_v17, 0.0 }
 0x3d1   : > { %v3812_v20 = vpack.c.bf16 %v3783_v4, %v3782_v49  ;;  %v3418_v7 = vadd.f32 %v7056_v32, %v3120_v6  ;;  %v8217_v49 = vld [vmem:[#allocation88_spill] sm:$0xff]  ;;  %v3364_v4 = vpop.f32.mrf.mxu0 }
 0x3d3   : > { %3912 = vmatmul.bf16.gmra.mxu2 %v3812_v20  ;;  %v3716_v33 = vadd.f32 %v7215_v11, %v3418_v7  ;;  %v2888_v11 = vadd.f32 %v7128_v37, %v2590_v14  ;;  %v7329_v16 = vpop.f32.mrf.mxu2 }
 0x3d5   : > { %v3752_v47 = vadd.f32 %v7230_v22, %v3716_v33  ;;  %v3662_v30 = vpop.f32.mrf.mxu1 }
 0x3d6   : > { %v3051_v18 = vpop.f32.mrf.mxu3 }
 0x3d7   : > { %v3121_v29 = vadd.f32 %v3051_v18, %v2887_v38  ;;  %v3784_v17 = vmax.f32 %v3752_v47, 0.0  ;;  %v2592_v18 = vadd.f32 %v6920_v0, %v2294_v5 }
 0x3d9   : > { %v3419_v15 = vadd.f32 %v7075_v24, %v3121_v29  ;;  %v2890_v34 = vadd.f32 %v7147_v62, %v2592_v18 }
 0x3db   : > { %v3717_v32 = vadd.f32 %v7232_v13, %v3419_v15  ;;  %3093 = vmatmul.bf16.gmra.mxu3 %v8215_v53  ;;  %v2591_v13 = vadd.f32 %v8217_v49, %v2293_v21  ;;  %v7337_v10 = vpop.f32.mrf.mxu2  ;;  %v2295_v15 = vadd.f32 %v8220_v57, %v7041_v51  ;;  %v8221_v51 = vld [vmem:[#allocation44_spill] sm:$0xff] }
 0x3dd   : > { %v3753_v44 = vadd.f32 %v7230_v22, %v3717_v32  ;;  %v2889_v37 = vadd.f32 %v7136_v27, %v2591_v13  ;;  %v3367_v27 = vpop.f32.mrf.mxu0  ;;  %v7348_v32 = vpop.f32.mrf.mxu1  ;;  %v8222_v13 = vld [vmem:[#allocation97_spill] sm:$0xff] }
 0x3de   : > { %v3054_v24 = vpop.f32.mrf.mxu3 }
 0x3df   : > { %v3122_v41 = vadd.f32 %v3054_v24, %v2888_v11  ;;  %v3785_v42 = vmax.f32 %v3753_v44, 0.0  ;;  %v2296_v11 = vadd.f32 %v8221_v51, %v7052_v46  ;;  %v8223_v46 = vld [vmem:[#allocation37_spill] sm:$0xff] }
 0x3e1   : > { %v3813_v6 = vpack.c.bf16 %v3785_v42, %v3784_v17  ;;  %v3420_v20 = vadd.f32 %v7249_v52, %v3122_v41  ;;  %v8219_v52 = vld [vmem:[#allocation70_spill] sm:$0xff] }
 0x3e3   : > { %3917 = vmatmul.bf16.gmra.mxu2 %v3813_v6  ;;  %v3718_v25 = vadd.f32 %v7253_v3, %v3420_v20  ;;  %v7351_v39 = vpop.f32.mrf.mxu2 }
 0x3e5   : > { %v3754_v29 = vadd.f32 %v7230_v22, %v3718_v25  ;;  %v3369_v24 = vpop.f32.mrf.mxu0  ;;  %v3667_v42 = vpop.f32.mrf.mxu1 }
 0x3e6   : > { %v3056_v7 = vpop.f32.mrf.mxu3 }
 0x3e7   : > { %v3123_v35 = vadd.f32 %v3056_v7, %v2889_v37  ;;  %v3786_v53 = vmax.f32 %v3754_v29, 0.0 }
 0x3e9   : > { %v3421_v38 = vadd.f32 %v7268_v60, %v3123_v35 }
 0x3eb   : > { %v3719_v33 = vadd.f32 %v7275_v55, %v3421_v38  ;;  %3098 = vmatmul.bf16.gmra.mxu3 %v8219_v52  ;;  %v2593_v55 = vadd.f32 %v6930_v59, %v2295_v15  ;;  %v2594_v59 = vadd.f32 %v6941_v19, %v2296_v11  ;;  %v7363_v20 = vpop.f32.mrf.mxu2 }
 0x3ed   : > { %v3755_v3 = vadd.f32 %v7230_v22, %v3719_v33  ;;  %v2891_v62 = vadd.f32 %v7155_v9, %v2593_v55  ;;  %v2297_v9 = vadd.f32 %v8223_v46, %v7067_v28  ;;  %v2892_v45 = vadd.f32 %v7164_v2, %v2594_v59  ;;  %v3372_v19 = vpop.f32.mrf.mxu0  ;;  %v3670_v38 = vpop.f32.mrf.mxu1  ;;  %v8225_v33 = vld [vmem:[#allocation19_spill] sm:$0xff]  ;;  %v8231_v59 = vld [vmem:[#allocation62_spill] sm:$0xff] }
 0x3ee   : > { %v3059_v14 = vpop.f32.mrf.mxu3  ;;  %v2298_v52 = vadd.f32 %v8225_v33, %v7078_v12 }
 0x3ef   : > { %v3124_v60 = vadd.f32 %v3059_v14, %v2890_v34  ;;  %v3787_v0 = vmax.f32 %v3755_v3, 0.0  ;;  %v8226_v3 = vld [vmem:[#allocation118_spill] sm:$0xff] }
 0x3f0   : > { %v2596_v14 = vadd.f32 %v8226_v3, %v2298_v52 }
 0x3f1   : > { %v3814_v47 = vpack.c.bf16 %v3787_v0, %v3786_v53  ;;  %v3422_v21 = vadd.f32 %v7287_v26, %v3124_v60  ;;  %v8227_v0 = vmov 0.0|0.0  }
 0x3f3   : > { %3922 = vmatmul.bf16.gmra.mxu2 %v3814_v47  ;;  %v3720_v41 = vadd.f32 %v7290_v58, %v3422_v21  ;;  %v7374_v2 = vpop.f32.mrf.mxu2  ;;  %v8228_v47 = vld [vmem:[#allocation50_spill] sm:$0xff] }
 0x3f4   : > { %v2299_v12 = vadd.f32 %v8228_v47, %v7086_v50 }
 0x3f5   : > { %v3756_v26 = vadd.f32 %v7230_v22, %v3720_v41  ;;  %v3374_v60 = vpop.f32.mrf.mxu0  ;;  %v3672_v55 = vpop.f32.mrf.mxu1 }
 0x3f6   : > { %v3061_v44 = vpop.f32.mrf.mxu3 }
 0x3f7   : > { %v3125_v17 = vadd.f32 %v3061_v44, %v2891_v62 }
 0x3f9   : > { %v3423_v6 = vadd.f32 %v7304_v23, %v3125_v17  ;;  %v3788_v23 = vmax.f32 %v3756_v26, 0.0 }
 0x3fb   : > { %v3721_v49 = vadd.f32 %v7306_v1, %v3423_v6  ;;  %3103 = vmatmul.bf16.gmra.mxu3 %v8222_v13  ;;  %v8224_v1 = vld [vmem:[#allocation103_spill] sm:$0xff]  ;;  %v7384_v62 = vpop.f32.mrf.mxu2  ;;  %v8230_v6 = vld [vmem:[#allocation22_spill] sm:$0xff]  ;;  %v8232_v13 = vld [vmem:[#allocation104_spill] sm:$0xff] }
 0x3fc   : > { %v2595_v35 = vadd.f32 %v8224_v1, %v2297_v9  ;;  %v8235_v1 = vld [vmem:[#allocation21_spill] sm:$0xff] }
 0x3fd   : > { %v3757_v58 = vadd.f32 %v7230_v22, %v3721_v49  ;;  %v2300_v49 = vadd.f32 %v8231_v59, %v8230_v6  ;;  %v3377_v50 = vpop.f32.mrf.mxu0  ;;  %v3675_v46 = vpop.f32.mrf.mxu1  ;;  %v8242_v6 = vld [vmem:[#allocation71_spill] sm:$0xff] }
 0x3fe   : > { %v3064_v5 = vpop.f32.mrf.mxu3  ;;  %v2893_v28 = vadd.f32 %v7174_v61, %v2595_v35  ;;  %v2894_v61 = vadd.f32 %v7185_v31, %v2596_v14 }
 0x3ff   : > { %v3126_v37 = vadd.f32 %v3064_v5, %v2892_v45  ;;  %v3789_v7 = vmax.f32 %v3757_v58, 0.0  ;;  %v8233_v5 = vld [vmem:[#allocation61_spill] sm:$0xff] }
 0x401   : > { %v3815_v25 = vpack.c.bf16 %v3789_v7, %v3788_v23  ;;  %v3424_v18 = vadd.f32 %v7316_v8, %v3126_v37  ;;  %v2598_v37 = vadd.f32 %v8233_v5, %v2300_v49 }
 0x403   : > { %3927 = vmatmul.bf16.gmra.mxu2 %v3815_v25  ;;  %v3722_v57 = vadd.f32 %v7320_v54, %v3424_v18  ;;  %v7392_v23 = vpop.f32.mrf.mxu2  ;;  %v8234_v25 = vld [vmem:[#allocation40_spill] sm:$0xff]  ;;  %v2896_v18 = vadd.f32 %v7208_v36, %v2598_v37 }
 0x404   : > { %v2301_v35 = vadd.f32 %v8235_v1, %v8234_v25  ;;  %v7418_v37 = vld [vmem:[%s7605_s6] ss:$0 sm:$0xff] }
 0x405   : > { %v3758_v8 = vadd.f32 %v7230_v22, %v3722_v57 }
 0x406   : > { %v3066_v29 = vpop.f32.mrf.mxu3 }
 0x407   : > { %v3127_v15 = vadd.f32 %v3066_v29, %v2893_v28  ;;  %v3790_v11 = vmax.f32 %v3758_v8, 0.0  ;;  %v3379_v28 = vpop.f32.mrf.mxu0 }
 0x409   : > { %v3425_v34 = vadd.f32 %v3364_v4, %v3127_v15 }
 0x40b   : > { %v3723_v53 = vadd.f32 %v3662_v30, %v3425_v34  ;;  %3108 = vmatmul.bf16.gmra.mxu3 %v8227_v0  ;;  %v8229_v30 = vld [vmem:[#allocation93_spill] sm:$0xff]  ;;  %v8238_v0 = vld [vmem:[#allocation24_spill] sm:$0xff] }
 0x40c   : > { %v2597_v41 = vadd.f32 %v8229_v30, %v2299_v12  ;;  %v8236_v34 = vld [vmem:[#allocation109_spill] sm:$0xff]  ;;  %v8240_v30 = vld [vmem:[#allocation67_spill] sm:$0xff] }
 0x40d   : > { %v3759_v21 = vadd.f32 %v7230_v22, %v3723_v53  ;;  %v2599_v3 = vadd.f32 %v8236_v34, %v2301_v35  ;;  %v8237_v53 = vld [vmem:[#allocation72_spill] sm:$0xff]  ;;  %v8246_v34 = vld [vmem:[#allocation114_spill] sm:$0xff] }
 0x40e   : > { %v3069_v51 = vpop.f32.mrf.mxu3  ;;  %v2895_v26 = vadd.f32 %v8232_v13, %v2597_v41  ;;  %v2302_v8 = vadd.f32 %v8238_v0, %v8237_v53  ;;  %v8241_v41 = vld [vmem:[#allocation83_spill] sm:$0xff] }
 0x40f   : > { %v3128_v54 = vadd.f32 %v3069_v51, %v2894_v61  ;;  %v3791_v4 = vmax.f32 %v3759_v21, 0.0  ;;  %v2897_v36 = vadd.f32 %v7218_v43, %v2599_v3  ;;  %v3382_v21 = vpop.f32.mrf.mxu0 }
 0x411   : > { %v3816_v44 = vpack.c.bf16 %v3791_v4, %v3790_v11  ;;  %v3426_v17 = vadd.f32 %v3367_v27, %v3128_v54  ;;  %v8239_v54 = vld [vmem:[#allocation113_spill] sm:$0xff] }
 0x412   : > { %v2600_v11 = vadd.f32 %v8239_v54, %v2302_v8  ;;  %v8247_v8 = vld [vmem:[#allocation16_spill] sm:$0xff] }
 0x413   : > { %3932 = vmatmul.bf16.gmra.mxu2 %v3816_v44  ;;  %v3724_v9 = vadd.f32 %v7348_v32, %v3426_v17  ;;  %v2303_v17 = vadd.f32 %v8241_v41, %v8240_v30 }
 0x414   : > { %v2898_v59 = vadd.f32 %v8242_v6, %v2600_v11 }
 0x415   : > { %v3760_v27 = vadd.f32 %v7230_v22, %v3724_v9  ;;  %v8243_v9 = vld [vmem:[#allocation75_spill] sm:$0xff] }
 0x416   : > { %v3071_v31 = vpop.f32.mrf.mxu3 }
 0x417   : > { %v3129_v45 = vadd.f32 %v3071_v31, %v2895_v26  ;;  %v3792_v32 = vmax.f32 %v3760_v27, 0.0  ;;  %v8245_v27 = vld [vmem:[#allocation117_spill] sm:$0xff] }
 0x419   : > { %v3427_v58 = vadd.f32 %v3369_v24, %v3129_v45  ;;  %v3677_v24 = vpop.f32.mrf.mxu1  ;;  %v2601_v45 = vadd.f32 %v8243_v9, %v2303_v17  ;;  %v8249_v17 = vld [vmem:[#allocation95_spill] sm:$0xff] }
 0x41b   : > { %v3725_v7 = vadd.f32 %v3667_v42, %v3427_v58  ;;  %v7400_v42 = vpop.f32.mrf.mxu2  ;;  %v3384_v58 = vpop.f32.mrf.mxu0  ;;  %v2899_v35 = vadd.f32 %v7259_v48, %v2601_v45 }
 0x41d   : > { %v3761_v33 = vadd.f32 %v7230_v22, %v3725_v7  ;;  %v8244_v7 = vld [vmem:[#allocation84_spill] sm:$0xff] }
 0x41e   : > { %v3074_v52 = vpop.f32.mrf.mxu3  ;;  %v2304_v25 = vadd.f32 %v8245_v27, %v8244_v7 }
 0x41f   : > { %v3130_v29 = vadd.f32 %v3074_v52, %v2896_v18  ;;  %v3793_v57 = vmax.f32 %v3761_v33, 0.0 }
 0x420   : > { %v2602_v3 = vadd.f32 %v8246_v34, %v2304_v25 }
 0x421   : > { %v3817_v15 = vpack.c.bf16 %v3793_v57, %v3792_v32  ;;  %v3428_v14 = vadd.f32 %v3372_v19, %v3130_v29  ;;  %v3680_v4 = vpop.f32.mrf.mxu1 }
 0x423   : > { %3937 = vmatmul.bf16.gmra.mxu2 %v3817_v15  ;;  %v3726_v12 = vadd.f32 %v3670_v38, %v3428_v14  ;;  %v7411_v43 = vpop.f32.mrf.mxu2  ;;  %v3387_v48 = vpop.f32.mrf.mxu0 }
 0x425   : > { %v3762_v19 = vadd.f32 %v7230_v22, %v3726_v12 }
 0x426   : > { %v3076_v47 = vpop.f32.mrf.mxu3 }
 0x427   : > { %v3131_v61 = vadd.f32 %v3076_v47, %v2897_v36  ;;  %v3794_v26 = vmax.f32 %v3762_v19, 0.0  ;;  %v8248_v36 = vld [vmem:[#allocation96_spill] sm:$0xff] }
 0x428   : > { %v2305_v47 = vadd.f32 %v8248_v36, %v8247_v8 }
 0x429   : > { %v3429_v51 = vadd.f32 %v3374_v60, %v3131_v61  ;;  %v3682_v1 = vpop.f32.mrf.mxu1 }
 0x42a   : > { %v2603_v6 = vadd.f32 %v8249_v17, %v2305_v47 }
 0x42b   : > { %v3727_v44 = vadd.f32 %v3672_v55, %v3429_v51  ;;  %v4836_v55 = vld [vmem:[%s5395_s23] sm:$0xff]  }
 0x42c   : > { %v4837_v18 = vunpack.c.l.bf16 %v4836_v55  ;;  %v4838_v12 = vunpack.c.h.bf16 %v4836_v55  ;;  %v3389_v55 = vpop.f32.mrf.mxu0 }
 0x42d   : > { %v3763_v49 = vadd.f32 %v7230_v22, %v3727_v44 }
 0x42e   : > { %v3079_v38 = vpop.f32.mrf.mxu3 }
 0x42f   : > { %v3132_v13 = vadd.f32 %v3079_v38, %v2898_v59  ;;  %v3795_v31 = vmax.f32 %v3763_v49, 0.0  ;;  %v4899_v59 = vld [vmem:[%s5395_s23 + $0x8] sm:$0xff]  }
 0x431   : > { %v3818_v60 = vpack.c.bf16 %v3795_v31, %v3794_v26  ;;  %v3430_v5 = vadd.f32 %v3377_v50, %v3132_v13  ;;  %v3685_v51 = vpop.f32.mrf.mxu1  ;;  %v8251_v13 = vld [vmem:[#allocation51_spill] sm:$0xff]  ;;  %v2901_v31 = vadd.f32 %v7295_v40, %v2603_v6  ;;  %v8254_v40 = vld [vmem:[#allocation52_spill] sm:$0xff] }
 0x433   : > { %3942 = vmatmul.bf16.gmra.mxu2 %v3818_v60  ;;  %v3728_v29 = vadd.f32 %v3675_v46, %v3430_v5  ;;  %v2900_v46 = vadd.f32 %v7280_v56, %v2602_v3  ;;  %v8250_v56 = vld [vmem:[#allocation30_spill] sm:$0xff]  ;;  %v4841_v60 = vunpack.c.l.bf16 %v4899_v59 }
 0x434   : > { %v2306_v26 = vadd.f32 %v8251_v13, %v8250_v56  ;;  %v3392_v8 = vpop.f32.mrf.mxu0  ;;  %v8258_v13 = vld [vmem:[#allocation120_spill] sm:$0xff] }
 0x435   : > { %v3764_v0 = vadd.f32 %v7230_v22, %v3728_v29 }
 0x436   : > { %v3081_v33 = vpop.f32.mrf.mxu3  ;;  %v3903_v52 = vpop.f32.mrf.mxu2 }
 0x437   : > { %v3133_v32 = vadd.f32 %v3081_v33, %v2899_v35  ;;  %v3904_v50 = vadd.f32 %v7418_v37, %v3903_v52  ;;  %v3796_v44 = vmax.f32 %v3764_v0, 0.0 }
 0x439   : > { %v3431_v57 = vadd.f32 %v3379_v28, %v3133_v32  ;;  %v4047_v15 = vadd.f32 %v4837_v18, %v3904_v50  ;;  %v3687_v25 = vpop.f32.mrf.mxu1  ;;  %v8252_v18 = vld [vmem:[#allocation56_spill] sm:$0xff]  ;;  %v8253_v50 = vld [vmem:[#allocation81_spill] sm:$0xff] }
 0x43a   : > { %v2604_v33 = vadd.f32 %v8252_v18, %v2306_v26 }
 0x43b   : > { %v3729_v14 = vadd.f32 %v3677_v24, %v3431_v57  ;;  %v4079_v53 = vmax.f32 %v4047_v15, 0.0  ;;  %v2307_v57 = vadd.f32 %v8254_v40, %v8253_v50  ;;  %v8261_v50 = vld [vmem:[#allocation29_spill] sm:$0xff] }
 0x43c   : > { %v2902_v15 = vadd.f32 %v7310_v63, %v2604_v33  ;;  %v3394_v26 = vpop.f32.mrf.mxu0 }
 0x43d   : > { %4111 = vst [vmem:[%s7429_s21] sm:$0xff] %v4079_v53  ;;  %v3765_v28 = vadd.f32 %v7230_v22, %v3729_v14 }
 0x43e   : > { %v3084_v61 = vpop.f32.mrf.mxu3  ;;  %v3905_v24 = vpop.f32.mrf.mxu2 }
 0x43f   : > { %v3134_v54 = vadd.f32 %v3084_v61, %v2900_v46  ;;  %v3906_v11 = vadd.f32 %v7418_v37, %v3905_v24  ;;  %v3797_v19 = vmax.f32 %v3765_v28, 0.0  ;;  %v8255_v46 = vld [vmem:[#allocation46_spill] sm:$0xff] }
 0x440   : > { %v4900_v28 = vld [vmem:[%s5395_s23 + $0x10] sm:$0xff]  }
 0x441   : > { %v4048_v30 = vadd.f32 %v4838_v12, %v3906_v11  ;;  %v3819_v41 = vpack.c.bf16 %v3797_v19, %v3796_v44  ;;  %v3432_v49 = vadd.f32 %v3382_v21, %v3134_v54  ;;  %v2605_v12 = vadd.f32 %v8255_v46, %v2307_v57  ;;  %v3690_v61 = vpop.f32.mrf.mxu1  ;;  %v8256_v54 = vld [vmem:[#allocation25_spill] sm:$0xff]  ;;  %v8257_v11 = vld [vmem:[#allocation64_spill] sm:$0xff]  ;;  %v4901_v57 = vld [vmem:[%s5395_s23 + $0x18] sm:$0xff]  }
 0x442   : > { %v2308_v44 = vadd.f32 %v8257_v11, %v8256_v54 }
 0x443   : > { %v4080_v38 = vmax.f32 %v4048_v30, 0.0  ;;  %3947 = vmatmul.bf16.gmra.mxu2 %v3819_v41  ;;  %v3730_v5 = vadd.f32 %v3680_v4, %v3432_v49  ;;  %v4842_v4 = vunpack.c.h.bf16 %v4899_v59  ;;  %v2903_v19 = vadd.f32 %v7329_v16, %v2605_v12 }
 0x444   : > { %v4845_v30 = vunpack.c.l.bf16 %v4900_v28 }
 0x445   : > { %4112 = vst [vmem:[%s7429_s21 + $0x8] sm:$0xff] %v4080_v38  ;;  %v3766_v32 = vadd.f32 %v7230_v22, %v3730_v5  ;;  %v8260_v5 = vld [vmem:[#allocation59_spill] sm:$0xff] }
 0x446   : > { %v3086_v9 = vpop.f32.mrf.mxu3  ;;  %v3908_v45 = vpop.f32.mrf.mxu2 }
 0x447   : > { %v3135_v7 = vadd.f32 %v3086_v9, %v2901_v31  ;;  %v3909_v27 = vadd.f32 %v7418_v37, %v3908_v45  ;;  %v8259_v45 = vld [vmem:[#allocation45_spill] sm:$0xff] }
 0x448   : > { %v2309_v16 = vadd.f32 %v8260_v5, %v8259_v45  ;;  %v4902_v5 = vld [vmem:[%s5395_s23 + $0x20] sm:$0xff]  }
 0x449   : > { %v3433_v35 = vadd.f32 %v3384_v58, %v3135_v7  ;;  %v4049_v21 = vadd.f32 %v4841_v60, %v3909_v27  ;;  %v3692_v7 = vpop.f32.mrf.mxu1  ;;  %v4846_v27 = vunpack.c.h.bf16 %v4900_v28 }
 0x44a   : > { %v2607_v40 = vadd.f32 %v8261_v50, %v2309_v16 }
 0x44b   : > { %v3731_v52 = vadd.f32 %v3682_v1, %v3433_v35  ;;  %v4081_v29 = vmax.f32 %v4049_v21, 0.0  ;;  %v3798_v1 = vmax.f32 %v3766_v32, 0.0 }
 0x44d   : > { %4113 = vst [vmem:[%s7429_s21 + $0x10] sm:$0xff] %v4081_v29  ;;  %v3767_v34 = vadd.f32 %v7230_v22, %v3731_v52 }
 0x44e   : > { %v3089_v3 = vpop.f32.mrf.mxu3  ;;  %v3910_v58 = vpop.f32.mrf.mxu2 }
 0x44f   : > { %v3136_v14 = vadd.f32 %v3089_v3, %v2902_v15  ;;  %v3911_v53 = vadd.f32 %v7418_v37, %v3910_v58  ;;  %v3799_v0 = vmax.f32 %v3767_v34, 0.0  ;;  %v8262_v34 = vld [vmem:[#allocation90_spill] sm:$0xff]  ;;  %v8263_v3 = vld [vmem:[#allocation76_spill] sm:$0xff] }
 0x450   : > { %v2310_v58 = vadd.f32 %v8263_v3, %v8262_v34  ;;  %v8272_v3 = vld [vmem:[#allocation89_spill] sm:$0xff] }
 0x451   : > { %v4050_v36 = vadd.f32 %v4842_v4, %v3911_v53  ;;  %v3820_v47 = vpack.c.bf16 %v3799_v0, %v3798_v1  ;;  %v3434_v24 = vadd.f32 %v3387_v48, %v3136_v14  ;;  %v2606_v48 = vadd.f32 %v8258_v13, %v2308_v44 }
 0x452   : > { %v2905_v14 = vadd.f32 %v7351_v39, %v2607_v40  ;;  %v4849_v53 = vunpack.c.l.bf16 %v4901_v57  ;;  %v8270_v40 = vld [vmem:[#allocation100_spill] sm:$0xff] }
 0x453   : > { %v4082_v63 = vmax.f32 %v4050_v36, 0.0  ;;  %3952 = vmatmul.bf16.gmra.mxu2 %v3820_v47  ;;  %v3732_v6 = vadd.f32 %v3685_v51, %v3434_v24  ;;  %v2904_v51 = vadd.f32 %v7337_v10, %v2606_v48  ;;  %v3397_v10 = vpop.f32.mrf.mxu0  ;;  %v3695_v36 = vpop.f32.mrf.mxu1  ;;  %v8264_v24 = vld [vmem:[#allocation66_spill] sm:$0xff] }
 0x455   : > { %4114 = vst [vmem:[%s7429_s21 + $0x18] sm:$0xff] %v4082_v63  ;;  %v3768_v9 = vadd.f32 %v7230_v22, %v3732_v6  ;;  %v2608_v63 = vadd.f32 %v8264_v24, %v2310_v58 }
 0x456   : > { %v3091_v41 = vpop.f32.mrf.mxu3  ;;  %v3913_v17 = vpop.f32.mrf.mxu2 }
 0x457   : > { %v3137_v59 = vadd.f32 %v3091_v41, %v2903_v19  ;;  %v3914_v49 = vadd.f32 %v7418_v37, %v3913_v17  ;;  %v3800_v33 = vmax.f32 %v3768_v9, 0.0  ;;  %v8265_v19 = vld [vmem:[#allocation55_spill] sm:$0xff]  ;;  %v2906_v39 = vadd.f32 %v7363_v20, %v2608_v63  ;;  %v8267_v9 = vld [vmem:[#allocation85_spill] sm:$0xff]  ;;  %v8273_v63 = vld [vmem:[#allocation68_spill] sm:$0xff] }
 0x458   : > { %v4850_v17 = vunpack.c.h.bf16 %v4901_v57 }
 0x459   : > { %v3435_v38 = vadd.f32 %v3389_v55, %v3137_v59  ;;  %v4051_v56 = vadd.f32 %v4845_v30, %v3914_v49  ;;  %v8266_v30 = vld [vmem:[#allocation80_spill] sm:$0xff] }
 0x45a   : > { %v2311_v41 = vadd.f32 %v8266_v30, %v8265_v19 }
 0x45b   : > { %v3733_v31 = vadd.f32 %v3687_v25, %v3435_v38  ;;  %v4083_v60 = vmax.f32 %v4051_v56, 0.0  ;;  %v3399_v49 = vpop.f32.mrf.mxu0 }
 0x45c   : > { %v2609_v45 = vadd.f32 %v8267_v9, %v2311_v41  ;;  %v8275_v41 = vld [vmem:[#allocation102_spill] sm:$0xff] }
 0x45d   : > { %4115 = vst [vmem:[%s7429_s21 + $0x20] sm:$0xff] %v4083_v60  ;;  %v3769_v35 = vadd.f32 %v7230_v22, %v3733_v31 }
 0x45e   : > { %v3094_v55 = vpop.f32.mrf.mxu3  ;;  %v3915_v21 = vpop.f32.mrf.mxu2 }
 0x45f   : > { %v3138_v18 = vadd.f32 %v3094_v55, %v2904_v51  ;;  %v3916_v25 = vadd.f32 %v7418_v37, %v3915_v21  ;;  %v3801_v52 = vmax.f32 %v3769_v35, 0.0  ;;  %v8269_v51 = vld [vmem:[#allocation94_spill] sm:$0xff]  ;;  %v2907_v35 = vadd.f32 %v7374_v2, %v2609_v45 }
 0x460   : > { %v4853_v55 = vunpack.c.l.bf16 %v4902_v5  ;;  %v8271_v2 = vld [vmem:[#allocation18_spill] sm:$0xff] }
 0x461   : > { %v4052_v29 = vadd.f32 %v4846_v27, %v3916_v25  ;;  %v3821_v32 = vpack.c.bf16 %v3801_v52, %v3800_v33  ;;  %v3436_v15 = vadd.f32 %v3392_v8, %v3138_v18  ;;  %v2313_v58 = vadd.f32 %v8272_v3, %v8271_v2 }
 0x463   : > { %v4084_v4 = vmax.f32 %v4052_v29, 0.0  ;;  %3957 = vmatmul.bf16.gmra.mxu2 %v3821_v32  ;;  %v3734_v47 = vadd.f32 %v3690_v61, %v3436_v15  ;;  %v3402_v29 = vpop.f32.mrf.mxu0 }
 0x465   : > { %4116 = vst [vmem:[%s7429_s21 + $0x28] sm:$0xff] %v4084_v4  ;;  %v3770_v44 = vadd.f32 %v7230_v22, %v3734_v47 }
 0x466   : > { %v3096_v1 = vpop.f32.mrf.mxu3  ;;  %v3918_v0 = vpop.f32.mrf.mxu2 }
 0x467   : > { %v3139_v46 = vadd.f32 %v3096_v1, %v2905_v14  ;;  %v3919_v12 = vadd.f32 %v7418_v37, %v3918_v0  ;;  %v3802_v13 = vmax.f32 %v3770_v44, 0.0 }
 0x469   : > { %v3437_v28 = vadd.f32 %v3394_v26, %v3139_v46  ;;  %v4053_v8 = vadd.f32 %v4849_v53, %v3919_v12  ;;  %v3697_v26 = vpop.f32.mrf.mxu1  ;;  %v4854_v53 = vunpack.c.h.bf16 %v4902_v5 }
 0x46b   : > { %v3735_v54 = vadd.f32 %v3692_v7, %v3437_v28  ;;  %v4085_v11 = vmax.f32 %v4053_v8, 0.0  ;;  %v8268_v7 = vld [vmem:[#allocation33_spill] sm:$0xff]  ;;  %v3404_v44 = vpop.f32.mrf.mxu0 }
 0x46c   : > { %v2312_v27 = vadd.f32 %v8269_v51, %v8268_v7  ;;  %v8278_v7 = vld [vmem:[#allocation108_spill] sm:$0xff] }
 0x46d   : > { %4117 = vst [vmem:[%s7429_s21 + $0x30] sm:$0xff] %v4085_v11  ;;  %v3771_v61 = vadd.f32 %v7230_v22, %v3735_v54  ;;  %v2611_v54 = vadd.f32 %v8273_v63, %v2313_v58  ;;  %v4903_v11 = vld [vmem:[%s5395_s23 + $0x28] sm:$0xff]  }
 0x46e   : > { %v3099_v6 = vpop.f32.mrf.mxu3  ;;  %v3920_v59 = vpop.f32.mrf.mxu2  ;;  %v2610_v57 = vadd.f32 %v8270_v40, %v2312_v27  ;;  %v4858_v27 = vunpack.c.h.bf16 %v4903_v11  ;;  %v8279_v40 = vld [vmem:[#allocation48_spill] sm:$0xff] }
 0x46f   : > { %v3140_v38 = vadd.f32 %v3099_v6, %v2906_v39  ;;  %v3921_v56 = vadd.f32 %v7418_v37, %v3920_v59  ;;  %v3803_v48 = vmax.f32 %v3771_v61, 0.0  ;;  %v2909_v61 = vadd.f32 %v7392_v23, %v2611_v54 }
 0x470   : > { %v2908_v14 = vadd.f32 %v7384_v62, %v2610_v57  ;;  %v8274_v62 = vld [vmem:[#allocation106_spill] sm:$0xff]  ;;  %v4857_v6 = vunpack.c.l.bf16 %v4903_v11 }
 0x471   : > { %v4054_v31 = vadd.f32 %v4850_v17, %v3921_v56  ;;  %v3822_v60 = vpack.c.bf16 %v3803_v48, %v3802_v13  ;;  %v3438_v16 = vadd.f32 %v3397_v10, %v3140_v38  ;;  %v3700_v15 = vpop.f32.mrf.mxu1  ;;  %v2314_v39 = vadd.f32 %v8275_v41, %v8274_v62 }
 0x473   : > { %v4086_v20 = vmax.f32 %v4054_v31, 0.0  ;;  %3962 = vmatmul.bf16.gmra.mxu2 %v3822_v60  ;;  %v3736_v25 = vadd.f32 %v3695_v36, %v3438_v16  ;;  %v8276_v31 = vld [vmem:[#allocation98_spill] sm:$0xff]  ;;  %v3407_v16 = vpop.f32.mrf.mxu0 }
 0x474   : > { %v2612_v60 = vadd.f32 %v8276_v31, %v2314_v39 }
 0x475   : > { %4118 = vst [vmem:[%s7429_s21 + $0x38] sm:$0xff] %v4086_v20  ;;  %v3772_v34 = vadd.f32 %v7230_v22, %v3736_v25  ;;  %v8277_v20 = vld [vmem:[#allocation43_spill] sm:$0xff] }
 0x476   : > { %v3101_v21 = vpop.f32.mrf.mxu3  ;;  %v3923_v18 = vpop.f32.mrf.mxu2  ;;  %v2315_v23 = vadd.f32 %v8278_v7, %v8277_v20  ;;  %v2910_v51 = vadd.f32 %v7400_v42, %v2612_v60  ;;  %v4907_v7 = vld [vmem:[%s5395_s23 + $0x48] sm:$0xff]  }
 0x477   : > { %v3141_v33 = vadd.f32 %v3101_v21, %v2907_v35  ;;  %v3924_v52 = vadd.f32 %v7418_v37, %v3923_v18  ;;  %v3804_v12 = vmax.f32 %v3772_v34, 0.0 }
 0x478   : > { %v2613_v57 = vadd.f32 %v8279_v40, %v2315_v23 }
 0x479   : > { %v3439_v32 = vadd.f32 %v3399_v49, %v3141_v33  ;;  %v4055_v50 = vadd.f32 %v4853_v55, %v3924_v52  ;;  %v3702_v17 = vpop.f32.mrf.mxu1 }
 0x47a   : > { %v2911_v42 = vadd.f32 %v7411_v43, %v2613_v57 }
 0x47b   : > { %v3737_v4 = vadd.f32 %v3697_v26, %v3439_v32  ;;  %v4087_v10 = vmax.f32 %v4055_v50, 0.0 }
 0x47d   : > { %4119 = vst [vmem:[%s7429_s21 + $0x40] sm:$0xff] %v4087_v10  ;;  %v3773_v1 = vadd.f32 %v7230_v22, %v3737_v4 }
 0x47e   : > { %v3104_v0 = vpop.f32.mrf.mxu3  ;;  %v3925_v36 = vpop.f32.mrf.mxu2 }
 0x47f   : > { %v3142_v47 = vadd.f32 %v3104_v0, %v2908_v14  ;;  %v3926_v46 = vadd.f32 %v7418_v37, %v3925_v36  ;;  %v3805_v28 = vmax.f32 %v3773_v1, 0.0  ;;  %v3409_v1 = vpop.f32.mrf.mxu0 }
 0x481   : > { %v4056_v8 = vadd.f32 %v4854_v53, %v3926_v46  ;;  %v3823_v24 = vpack.c.bf16 %v3805_v28, %v3804_v12  ;;  %v3440_v19 = vadd.f32 %v3402_v29, %v3142_v47  ;;  %v3705_v29 = vpop.f32.mrf.mxu1 }
 0x483   : > { %v4088_v30 = vmax.f32 %v4056_v8, 0.0  ;;  %3967 = vmatmul.bf16.gmra.mxu2 %v3823_v24  ;;  %v3738_v38 = vadd.f32 %v3700_v15, %v3440_v19  ;;  %v4904_v15 = vld [vmem:[%s5395_s23 + $0x30] sm:$0xff]  }
 0x484   : > { %v4861_v34 = vunpack.c.l.bf16 %v4904_v15  ;;  %v4862_v8 = vunpack.c.h.bf16 %v4904_v15 }
 0x485   : > { %4120 = vst [vmem:[%s7429_s21 + $0x48] sm:$0xff] %v4088_v30  ;;  %v3774_v5 = vadd.f32 %v7230_v22, %v3738_v38  ;;  %v4905_v30 = vld [vmem:[%s5395_s23 + $0x38] sm:$0xff]  }
 0x486   : > { %v3106_v59 = vpop.f32.mrf.mxu3  ;;  %v3928_v49 = vpop.f32.mrf.mxu2  ;;  %v4865_v41 = vunpack.c.l.bf16 %v4905_v30 }
 0x487   : > { %v3143_v56 = vadd.f32 %v3106_v59, %v2909_v61  ;;  %v3929_v13 = vadd.f32 %v7418_v37, %v3928_v49  ;;  %v3806_v33 = vmax.f32 %v3774_v5, 0.0 }
 0x489   : > { %v3441_v48 = vadd.f32 %v3404_v44, %v3143_v56  ;;  %v4057_v26 = vadd.f32 %v4857_v6, %v3929_v13  ;;  %v3707_v47 = vpop.f32.mrf.mxu1  ;;  %v4866_v6 = vunpack.c.h.bf16 %v4905_v30  ;;  %v4906_v56 = vld [vmem:[%s5395_s23 + $0x40] sm:$0xff]  }
 0x48b   : > { %v3739_v9 = vadd.f32 %v3702_v17, %v3441_v48  ;;  %v4089_v45 = vmax.f32 %v4057_v26, 0.0  ;;  %v4869_v48 = vunpack.c.l.bf16 %v4906_v56 }
 0x48d   : > { %4121 = vst [vmem:[%s7429_s21 + $0x50] sm:$0xff] %v4089_v45  ;;  %v3775_v35 = vadd.f32 %v7230_v22, %v3739_v9  ;;  %v4870_v45 = vunpack.c.h.bf16 %v4906_v56 }
 0x48e   : > { %v3109_v55 = vpop.f32.mrf.mxu3  ;;  %v3930_v21 = vpop.f32.mrf.mxu2 }
 0x48f   : > { %v3144_v18 = vadd.f32 %v3109_v55, %v2910_v51  ;;  %v3931_v25 = vadd.f32 %v7418_v37, %v3930_v21  ;;  %v3807_v52 = vmax.f32 %v3775_v35, 0.0  ;;  %v4873_v51 = vunpack.c.l.bf16 %v4907_v7 }
 0x491   : > { %v4058_v32 = vadd.f32 %v4858_v27, %v3931_v25  ;;  %v3824_v50 = vpack.c.bf16 %v3807_v52, %v3806_v33  ;;  %v3442_v4 = vadd.f32 %v3407_v16, %v3144_v18  ;;  %v4874_v18 = vunpack.c.h.bf16 %v4907_v7 }
 0x493   : > { %v4090_v10 = vmax.f32 %v4058_v32, 0.0  ;;  %3972 = vmatmul.bf16.gmra.mxu2 %v3824_v50  ;;  %v3740_v58 = vadd.f32 %v3705_v29, %v3442_v4  ;;  %v4908_v29 = vld [vmem:[%s5395_s23 + $0x50] sm:$0xff]  }
 0x494   : > { %v4877_v50 = vunpack.c.l.bf16 %v4908_v29 }
 0x495   : > { %4122 = vst [vmem:[%s7429_s21 + $0x58] sm:$0xff] %v4090_v10  ;;  %v3776_v28 = vadd.f32 %v7230_v22, %v3740_v58  ;;  %v4878_v10 = vunpack.c.h.bf16 %v4908_v29 }
 0x496   : > { %v3111_v2 = vpop.f32.mrf.mxu3  ;;  %v3933_v3 = vpop.f32.mrf.mxu2 }
 0x497   : > { %v3145_v14 = vadd.f32 %v3111_v2, %v2911_v42  ;;  %v3934_v53 = vadd.f32 %v7418_v37, %v3933_v3  ;;  %v3808_v54 = vmax.f32 %v3776_v28, 0.0  ;;  %v4909_v3 = vld [vmem:[%s5395_s23 + $0x58] sm:$0xff]  }
 0x499   : > { %v3443_v0 = vadd.f32 %v3409_v1, %v3145_v14  ;;  %v4059_v36 = vadd.f32 %v4861_v34, %v3934_v53  ;;  %v4881_v14 = vunpack.c.l.bf16 %v4909_v3 }
 0x49b   : > { %v3741_v46 = vadd.f32 %v3707_v47, %v3443_v0  ;;  %v4091_v12 = vmax.f32 %v4059_v36, 0.0  ;;  %v4882_v47 = vunpack.c.h.bf16 %v4909_v3 }
 0x49d   : > { %4123 = vst [vmem:[%s7429_s21 + $0x60] sm:$0xff] %v4091_v12  ;;  %v3777_v43 = vadd.f32 %v7230_v22, %v3741_v46 }
 0x49e   : > { %v3935_v24 = vpop.f32.mrf.mxu2 }
 0x49f   : > { %v3936_v63 = vadd.f32 %v7418_v37, %v3935_v24  ;;  %v3809_v11 = vmax.f32 %v3777_v43, 0.0 }
 0x4a1   : > { %v4060_v44 = vadd.f32 %v4862_v8, %v3936_v63  ;;  %v3825_v19 = vpack.c.bf16 %v3809_v11, %v3808_v54  ;;  %v4910_v8 = vld [vmem:[%s5395_s23 + $0x60] sm:$0xff]  }
 0x4a2   : > { %v4885_v24 = vunpack.c.l.bf16 %v4910_v8 }
 0x4a3   : > { %v4092_v62 = vmax.f32 %v4060_v44, 0.0  ;;  %3977 = vmatmul.bf16.gmra.mxu2 %v3825_v19  ;;  %v4886_v19 = vunpack.c.h.bf16 %v4910_v8 }
 0x4a5   : > { %4124 = vst [vmem:[%s7429_s21 + $0x68] sm:$0xff] %v4092_v62 }
 0x4a6   : > { %v3938_v39 = vpop.f32.mrf.mxu2 }
 0x4a7   : > { %v3939_v17 = vadd.f32 %v7418_v37, %v3938_v39  ;;  %v4911_v39 = vld [vmem:[%s5395_s23 + $0x68] sm:$0xff]  }
 0x4a9   : > { %v4061_v22 = vadd.f32 %v4865_v41, %v3939_v17 }
 0x4ab   : > { %v4093_v61 = vmax.f32 %v4061_v22, 0.0  ;;  %v4889_v22 = vunpack.c.l.bf16 %v4911_v39 }
 0x4ad   : > { %4125 = vst [vmem:[%s7429_s21 + $0x70] sm:$0xff] %v4093_v61 }
 0x4ae   : > { %v3940_v59 = vpop.f32.mrf.mxu2 }
 0x4af   : > { %v3941_v49 = vadd.f32 %v7418_v37, %v3940_v59 }
 0x4b1   : > { %v4062_v38 = vadd.f32 %v4866_v6, %v3941_v49 }
 0x4b3   : > { %v4094_v13 = vmax.f32 %v4062_v38, 0.0  ;;  %v4890_v38 = vunpack.c.h.bf16 %v4911_v39 }
 0x4b5   : > { %4126 = vst [vmem:[%s7429_s21 + $0x78] sm:$0xff] %v4094_v13 }
 0x4b6   : > { %v3943_v26 = vpop.f32.mrf.mxu2 }
 0x4b7   : > { %v3944_v31 = vadd.f32 %v7418_v37, %v3943_v26  ;;  %v4912_v26 = vld [vmem:[%s5395_s23 + $0x70] sm:$0xff]  }
 0x4b9   : > { %v4063_v60 = vadd.f32 %v4869_v48, %v3944_v31 }
 0x4bb   : > { %v4095_v9 = vmax.f32 %v4063_v60, 0.0  ;;  %v4893_v60 = vunpack.c.l.bf16 %v4912_v26 }
 0x4bd   : > { %4127 = vst [vmem:[%s7429_s21 + $0x80] sm:$0xff] %v4095_v9 }
 0x4be   : > { %v3945_v5 = vpop.f32.mrf.mxu2 }
 0x4bf   : > { %v3946_v16 = vadd.f32 %v7418_v37, %v3945_v5 }
 0x4c1   : > { %v4064_v20 = vadd.f32 %v4870_v45, %v3946_v16 }
 0x4c3   : > { %v4096_v23 = vmax.f32 %v4064_v20, 0.0  ;;  %v4894_v20 = vunpack.c.h.bf16 %v4912_v26 }
 0x4c5   : > { %4128 = vst [vmem:[%s7429_s21 + $0x88] sm:$0xff] %v4096_v23 }
 0x4c6   : > { %v3948_v27 = vpop.f32.mrf.mxu2 }
 0x4c7   : > { %v3949_v35 = vadd.f32 %v7418_v37, %v3948_v27  ;;  %v4913_v27 = vld [vmem:[%s5395_s23 + $0x78] sm:$0xff]   ;;  %s4156_s23 = sshll.u32 %s7429_s21, 4  ;;  %s4157_s23 = int_to_ptr.vmem [resolvable:$true] %s4156_s23 }
 0x4c9   : > { %v4065_v55 = vadd.f32 %v4873_v51, %v3949_v35 }
 0x4cb   : > { %v4097_v21 = vmax.f32 %v4065_v55, 0.0  ;;  %v4897_v55 = vunpack.c.l.bf16 %v4913_v27 }
 0x4cd   : > { %4129 = vst [vmem:[%s7429_s21 + $0x90] sm:$0xff] %v4097_v21 }
 0x4ce   : > { %v3950_v25 = vpop.f32.mrf.mxu2 }
 0x4cf   : > { %v3951_v33 = vadd.f32 %v7418_v37, %v3950_v25 }
 0x4d1   : > { %v4066_v52 = vadd.f32 %v4874_v18, %v3951_v33 }
 0x4d3   : > { %v4098_v32 = vmax.f32 %v4066_v52, 0.0  ;;  %v4898_v52 = vunpack.c.h.bf16 %v4913_v27 }
 0x4d5   : > { %4130 = vst [vmem:[%s7429_s21 + $0x98] sm:$0xff] %v4098_v32 }
 0x4d6   : > { %v3953_v40 = vpop.f32.mrf.mxu2 }
 0x4d7   : > { %v3954_v57 = vadd.f32 %v7418_v37, %v3953_v40 }
 0x4d9   : > { %v4067_v15 = vadd.f32 %v4877_v50, %v3954_v57 }
 0x4db   : > { %v4099_v4 = vmax.f32 %v4067_v15, 0.0 }
 0x4dd   : > { %4131 = vst [vmem:[%s7429_s21 + $0xa0] sm:$0xff] %v4099_v4 }
 0x4de   : > { %v3955_v42 = vpop.f32.mrf.mxu2 }
 0x4df   : > { %v3956_v34 = vadd.f32 %v7418_v37, %v3955_v42 }
 0x4e1   : > { %v4068_v2 = vadd.f32 %v4878_v10, %v3956_v34 }
 0x4e3   : > { %v4100_v58 = vmax.f32 %v4068_v2, 0.0 }
 0x4e5   : > { %4132 = vst [vmem:[%s7429_s21 + $0xa8] sm:$0xff] %v4100_v58 }
 0x4e6   : > { %v3958_v53 = vpop.f32.mrf.mxu2 }
 0x4e7   : > { %v3959_v1 = vadd.f32 %v7418_v37, %v3958_v53 }
 0x4e9   : > { %v4069_v0 = vadd.f32 %v4881_v14, %v3959_v1 }
 0x4eb   : > { %v4101_v36 = vmax.f32 %v4069_v0, 0.0 }
 0x4ed   : > { %4133 = vst [vmem:[%s7429_s21 + $0xb0] sm:$0xff] %v4101_v36 }
 0x4ee   : > { %v3960_v46 = vpop.f32.mrf.mxu2 }
 0x4ef   : > { %v3961_v12 = vadd.f32 %v7418_v37, %v3960_v46 }
 0x4f1   : > { %v4070_v28 = vadd.f32 %v4882_v47, %v3961_v12 }
 0x4f3   : > { %v4102_v43 = vmax.f32 %v4070_v28, 0.0 }
 0x4f5   : > { %4134 = vst [vmem:[%s7429_s21 + $0xb8] sm:$0xff] %v4102_v43 }
 0x4f6   : > { %v3963_v63 = vpop.f32.mrf.mxu2 }
 0x4f7   : > { %v3964_v54 = vadd.f32 %v7418_v37, %v3963_v63 }
 0x4f9   : > { %v4071_v11 = vadd.f32 %v4885_v24, %v3964_v54 }
 0x4fb   : > { %v4103_v44 = vmax.f32 %v4071_v11, 0.0 }
 0x4fd   : > { %4135 = vst [vmem:[%s7429_s21 + $0xc0] sm:$0xff] %v4103_v44 }
 0x4fe   : > { %v3965_v30 = vpop.f32.mrf.mxu2 }
 0x4ff   : > { %v3966_v62 = vadd.f32 %v7418_v37, %v3965_v30 }
 0x501   : > { %v4072_v41 = vadd.f32 %v4886_v19, %v3966_v62 }
 0x503   : > { %v4104_v17 = vmax.f32 %v4072_v41, 0.0 }
 0x505   : > { %4136 = vst [vmem:[%s7429_s21 + $0xc8] sm:$0xff] %v4104_v17 }
 0x506   : > { %v3968_v61 = vpop.f32.mrf.mxu2 }
 0x507   : > { %v3969_v6 = vadd.f32 %v7418_v37, %v3968_v61 }
 0x509   : > { %v4073_v59 = vadd.f32 %v4889_v22, %v3969_v6 }
 0x50b   : > { %v4105_v49 = vmax.f32 %v4073_v59, 0.0 }
 0x50d   : > { %4137 = vst [vmem:[%s7429_s21 + $0xd0] sm:$0xff] %v4105_v49 }
 0x50e   : > { %v3970_v56 = vpop.f32.mrf.mxu2 }
 0x50f   : > { %v3971_v13 = vadd.f32 %v7418_v37, %v3970_v56 }
 0x511   : > { %v4074_v48 = vadd.f32 %v4890_v38, %v3971_v13 }
 0x513   : > { %v4106_v31 = vmax.f32 %v4074_v48, 0.0 }
 0x515   : > { %4138 = vst [vmem:[%s7429_s21 + $0xd8] sm:$0xff] %v4106_v31 }
 0x516   : > { %v3973_v9 = vpop.f32.mrf.mxu2 }
 0x517   : > { %v3974_v45 = vadd.f32 %v7418_v37, %v3973_v9 }
 0x519   : > { %v4075_v5 = vadd.f32 %v4893_v60, %v3974_v45 }
 0x51b   : > { %v4107_v16 = vmax.f32 %v4075_v5, 0.0 }
 0x51d   : > { %4139 = vst [vmem:[%s7429_s21 + $0xe0] sm:$0xff] %v4107_v16 }
 0x51e   : > { %v3975_v7 = vpop.f32.mrf.mxu2 }
 0x51f   : > { %v3976_v23 = vadd.f32 %v7418_v37, %v3975_v7 }
 0x521   : > { %v4076_v51 = vadd.f32 %v4894_v20, %v3976_v23 }
 0x523   : > { %v4108_v35 = vmax.f32 %v4076_v51, 0.0 }
 0x525   : > { %4140 = vst [vmem:[%s7429_s21 + $0xe8] sm:$0xff] %v4108_v35 }
 0x526   : > { %v3978_v21 = vpop.f32.mrf.mxu2 }
 0x527   : > { %v3979_v18 = vadd.f32 %v7418_v37, %v3978_v21 }
 0x529   : > { %v4077_v25 = vadd.f32 %v4897_v55, %v3979_v18 }
 0x52b   : > { %v4109_v33 = vmax.f32 %v4077_v25, 0.0 }
 0x52d   : > { %4141 = vst [vmem:[%s7429_s21 + $0xf0] sm:$0xff] %v4109_v33 }
 0x52e   : > { %v3980_v29 = vpop.f32.mrf.mxu2 }
 0x52f   : > { %v3981_v32 = vadd.f32 %v7418_v37, %v3980_v29 }
 0x531   : > { %v4078_v50 = vadd.f32 %v4898_v52, %v3981_v32 }
 0x533   : > { %v4110_v40 = vmax.f32 %v4078_v50, 0.0 }
 0x535   : > { %4142 = vst [vmem:[%s7429_s21 + $0xf8] sm:$0xff] %v4110_v40 }
 0x536   : > { %5172 = shalt.err (!%p5169_p10)
}
 0x537   : > { %s5228_s15 = smov 128   ;;  %s5229_s21 = smov 8  }
 0x538   : > { %4952 = dma.vmem_to_hbm [thread:$0]  (%p5361_p3), %s4157_s23, 4096, %s4159_s12, %s4144_s19, %s5228_s15, %s5228_s15, %s5229_s21  }
 0x539 PF: > { %s4173_s11 = sand.u32 1, %s5207_s24   ;;  %p8280_p12 = scmp.ge.s32.totalorder %s5219_s27, 2 }
 0x53a   : > { %s4174_s20 = scalar_lea.sflag [#allocation5], %s4173_s11 }
 0x53b   : > { %p4969_p13 = pnand %p8280_p12, %p5305_p6 }
 0x53d   : > { %p4970_p0 = pneg %p4969_p13 }
 0x53f   : > { %5202 = dma.done.wait (%p4970_p0), %s4174_s20, 4096  }
 0x540   : > { %5204 = vsyncadd (%p4970_p0), %s4174_s20, 4294963200  ;;  %p22_p5 = scmp.ge.s32.totalorder %s5343_s13, 4   ;;  %s8281_s24 = smov %s5211_s25 }
 0x541   : > { %s8282_s25 = smov %s5215_s26  ;;  %s8283_s26 = smov %s5357_s17 }
 0x542   : > { %s8284_s27 = smov %s5343_s13  ;;  %24 = sbr.rel (!%p22_p5) target bundleno = 9 (0x9), region = 113 }
 0x547   :  { %4180 = vsyncpa [#allocation4], 1 }
 0x548   :  { %4182 = vsyncpa [#allocation4 + $0x1], 1 }
 0x549   :  { %4183 = vsyncpa [#allocation7], 1 }
 0x54a   :  { %4184 = vsyncpa [#allocation10], 1 }
 0x54b   :  { %4185 = vsyncpa [#allocation5], 1 }
 0x54c   :  { %4187 = vsyncpa [#allocation5 + $0x1], 1 }

// kernel: tpu_custom_call.1
= control target key start
LH: loop header
LB: loop body
LE: loop exit
PB: predicated region body
PF: predicated region fallthrough
CT: control target
= control target key end

     0   :  { %s7599_s0 = inlined_call_operand.hbm [shape: bf16[512,128], index: 0, kind: input, shape index: {}]   ;;  %s7600_s1 = inlined_call_operand.hbm [shape: bf16[128,128], index: 1, kind: input, shape index: {}]   ;;  %s7601_s2 = inlined_call_operand.vmem [shape: f32[1,128], index: 2, kind: input, shape index: {}]   ;;  %s7602_s3 = inlined_call_operand.hbm [shape: bf16[9,128,128], index: 3, kind: input, shape index: {}]   ;;  %s7603_s4 = inlined_call_operand.vmem [shape: f32[1,128], index: 4, kind: input, shape index: {}]   ;;  %s7604_s5 = inlined_call_operand.hbm [shape: bf16[128,128], index: 5, kind: input, shape index: {}]   ;;  %s7605_s6 = inlined_call_operand.vmem [shape: f32[1,128], index: 6, kind: input, shape index: {}]   ;;  %s7606_s7 = inlined_call_operand.hbm [shape: f32[512,128], index: 7, kind: output, shape index: {}]  }
   0x1   :  { %7746 = sst [smem:[#allocation126_spill]] %s7600_s1 }
   0x2   :  { %12 = vsyncpa [#allocation4], 0 }
   0x3   :  { %14 = vsyncpa [#allocation4 + $0x1], 0 }
   0x4   :  { %15 = vsyncpa [#allocation7], 0 }
   0x5   :  { %16 = vsyncpa [#allocation10], 0 }
   0x6   :  { %17 = vsyncpa [#allocation5], 0 }
   0x7   :  { %19 = vsyncpa [#allocation5 + $0x1], 0  ;;  %s5270_s24 = smov 0   ;;  %s5272_s25 = smov 0  }
   0x8   :  { %s5274_s26 = smov 0   ;;  %s5276_s27 = smov 0  }
   0x9 LB: > { %s5291_s28 = sadd.s32 4294967295, %s5219_s27   ;;  %s4261_s29 = sadd.s32 4294967294, %s5219_s27   ;;  %s5219_s27 = sphi %s5276_s27, %s8284_s27   ;;  %s5215_s26 = sphi %s5274_s26, %s8283_s26   ;;  %s5211_s25 = sphi %s5272_s25, %s8282_s25   ;;  %s5207_s24 = sphi %s5270_s24, %s8281_s24  }
   0xa   : > { %p45_p0 = scmp.ne.s32.totalorder %s5211_s25, %s5207_s24  ;;  %p46_p1 = scmp.eq.s32.totalorder %s5291_s28, 0 }
   0xb   : > { %p195_p2 = scmp.eq.s32.totalorder %s5291_s28, 1  ;;  %p201_p3 = scmp.eq.s32.totalorder %s4261_s29, 1 }
   0xc   : > { %p5300_p4 = por %p46_p1, %p45_p0  ;;  %p4262_p5 = scmp.ge.s32.totalorder %s5219_s27, 1 }
   0xd   : > { %p5305_p6 = por %p201_p3, %p45_p0  ;;  %p208_p7 = scmp.lt.s32.totalorder %s5219_s27, 3 }
   0xe   : > { %s7749_s1 = sld [smem:[#allocation126_spill]]  ;;  %s5221_s13 = smov [#allocation6]  }
   0xf   : > { %p5313_p8 = pnand %p4262_p5, %p208_p7  ;;  %s221_s14 = sshll.u32 %s5221_s13, 4  ;;  %s222_s14 = int_to_ptr.vmem [resolvable:$true] %s221_s14 }
  0x10   : > { %s236_s18 = sshll.u32 %s7602_s3, 4  ;;  %s7607_s19 = smov 64   ;;  %s237_s18 = int_to_ptr.hbm [resolvable:$true] %s236_s18 }
  0x11   : > { %p4954_p9 = pneg %p5313_p8  ;;  %s7608_s20 = smov 4  }
  0x12   : > { %s5224_s21 = smov [#allocation8]   ;;  %s253_s9 = sshll.u32 %s7604_s5, 4  ;;  %s254_s9 = int_to_ptr.hbm [resolvable:$true] %s253_s9 }
  0x13   : > { %p5321_p10 = pnand %p4954_p9, %p46_p1  ;;  %s238_s22 = sshll.u32 %s5224_s21, 4  ;;  %s239_s22 = int_to_ptr.vmem [resolvable:$true] %s238_s22 }
  0x14   : > { %s219_s11 = sshll.u32 %s7749_s1, 4  ;;  %s5225_s10 = smov [#allocation9]   ;;  %s220_s11 = int_to_ptr.hbm [resolvable:$true] %s219_s11 }
  0x15   : > { %4957 = dma.hbm_to_vmem [thread:$0]  (!%p5321_p10), %s220_s11, 1024, %s222_s14, [#allocation7], %s7607_s19, %s7607_s19, %s7608_s20  }
  0x16   : > { %4960 = dma.hbm_to_vmem [thread:$0]  (!%p5321_p10), %s237_s18, 9216, %s239_s22, [#allocation7], %s7607_s19, %s7607_s19, %s7608_s20  }
  0x17   : > { %s255_s11 = sshll.u32 %s5225_s10, 4  ;;  %s5343_s13 = sadd.s32 1, %s5219_s27   ;;  %s256_s11 = int_to_ptr.vmem [resolvable:$true] %s255_s11 }
  0x18   : > { %4963 = dma.hbm_to_vmem [thread:$0]  (!%p5321_p10), %s254_s9, 1024, %s256_s11, [#allocation10], %s7607_s19, %s7607_s19, %s7608_s20  }
  0x19   : > { %s29_s14 = ssub.s32 %s5219_s27, %s5343_s13  ;;  %s32_s16 = sadd.s32 1, %s5215_s26 }
  0x1a   : > { %p30_p12 = scmp.eq.s32.totalorder %s29_s14, 0  ;;  %p39_p13 = scmp.ne.s32.totalorder %s5215_s26, %s5211_s25 }
  0x1b   : > { %p40_p0 = scmp.eq.s32.totalorder %s5219_s27, 0  ;;  %p4975_p5 = scmp.lt.s32.totalorder %s5219_s27, 2 }
  0x1c   : > { %s5357_s17 = scalar_select %p30_p12, %s5215_s26, %s32_s16  }
  0x1d   : > { %p5361_p3 = por %p195_p2, %p39_p13  ;;  %s272_s21 = sand.u32 1, %s5215_s26  }
  0x1e   : > { %s4729_s15 = sshll.u32 %s5219_s27, 7  ;;  %p41_p7 = por %p40_p0, %p39_p13 }
  0x1f   : > { %s4267_s22 = sshll.u32 %s272_s21, 7  ;;  %s281_s9 = scalar_lea.hbm %s7599_s0, %s4729_s15 }
  0x20   : > { %s282_s10 = sshll.u32 %s281_s9, 4  ;;  %s276_s11 = scalar_lea.vmem [#allocation3], %s4267_s22  ;;  %s283_s10 = int_to_ptr.hbm [resolvable:$true] %s282_s10 }
  0x21   : > { %s284_s14 = sshll.u32 %s276_s11, 4  ;;  %p5371_p9 = pnand %p4975_p5, %p41_p7  ;;  %s285_s14 = int_to_ptr.vmem [resolvable:$true] %s284_s14 }
  0x22   : > { %s273_s19 = scalar_lea.sflag [#allocation4], %s272_s21  ;;  %s5115_s20 = sshra.s32 %s283_s10, 4  ;;  %s5116_s20 = int_to_ptr.hbm [resolvable:$true] %s5115_s20 }
  0x23   : > { %s5117_s1 = scalar_lea.hbm %s5116_s20, 128  ;;  %p5119_p10 = pneg %p5371_p9 }
  0x24   : > { %p5118_p2 = scmp.ne.s32.totalorder %s5116_s20, %s5117_s1  ;;  %s5122_s22 = scalar_lea.hbm %s7599_s0, 256 }
  0x25   : > { %p5123_p0 = scmp.lt.s32.totalorder %s5116_s20, %s7599_s0  ;;  %p5124_p5 = scmp.lt.s32.totalorder %s5122_s22, %s5117_s1 }
  0x26   : > { %p5120_p12 = pnand %p5119_p10, %p5118_p2 }
  0x27   : > { %p5125_p7 = por %p5124_p5, %p5123_p0 }
  0x28   : > { %p5121_p13 = pneg %p5120_p12 }
  0x2a   : > { %p5126_p11 = pnand %p5125_p7, %p5121_p13 }
  0x2c   : > { %5129 = shalt.err (!%p5126_p11)
}
  0x2d   : > { %s7754_s21 = smov 4   ;;  %s7755_s11 = smov 64  }
  0x2e   : > { %4967 = dma.hbm_to_vmem [thread:$0]  (!%p5371_p9), %s283_s10, 2048, %s285_s14, %s273_s19, %s7755_s11, %s7755_s11, %s7754_s21  }
  0x2f   : > { %296 = sbr.rel (%p5313_p8) target bundleno = 1337 (0x539), region = 48 }
  0x34   : > { %s5391_s15 = sand.u32 1, %s5211_s25  }
  0x35   : > { %s4271_s20 = sshll.u32 %s5391_s15, 7  ;;  %s299_s1 = scalar_lea.sflag [#allocation4], %s5391_s15 }
  0x36   : > { %s5395_s23 = scalar_lea.vmem [#allocation3], %s4271_s20 }
  0x37   : > { %5190 = dma.done.wait (%p5300_p4), %s299_s1, 2048  }
  0x38   : > { %5192 = vsyncadd (%p5300_p4), %s299_s1, 4294965248 }
  0x39   : > { %5194 = dma.done.wait (%p46_p1), [#allocation7], 10240  }
  0x3a   : > { %5196 = vsyncadd (%p46_p1), [#allocation7], 4294957056 }
  0x3b   : > { %5198 = dma.done.wait (%p46_p1), [#allocation10], 1024  }
  0x3c   : > { %5200 = vsyncadd (%p46_p1), [#allocation10], 4294966272  ;;  %v4753_v0 = vld [vmem:[#allocation6 + $0x38] sm:$0xff]  ;;  %v4752_v1 = vld [vmem:[#allocation6 + $0x30] sm:$0xff]  ;;  %v7609_v27 = vmov 0.0|0.0   ;;  %v706_v36 = vlaneseq  ;;  %s4275_s9 = sshll.u32 %s5391_s15, 8 }
  0x3d   : > { %547 = vmatpush.bf16.msra.mxu0 %v4753_v0  ;;  %4914 = vmatpush.bf16.msra.mxu3 %v4753_v0  ;;  %v4751_v2 = vld [vmem:[#allocation6 + $0x28] sm:$0xff]  ;;  %v4750_v3 = vld [vmem:[#allocation6 + $0x20] sm:$0xff]  ;;  %v4749_v4 = vld [vmem:[#allocation6 + $0x18] sm:$0xff]  ;;  %s7429_s21 = scalar_lea.vmem [#allocation11], %s4275_s9  ;;  %s4834_s11 = sshll.u32 %s5291_s28, 8 }
  0x3e   : > { %v4748_v5 = vld [vmem:[#allocation6 + $0x10] sm:$0xff]  ;;  %v4747_v6 = vld [vmem:[#allocation6 + $0x8] sm:$0xff]  ;;  %v4746_v7 = vld [vmem:[#allocation6] sm:$0xff]  ;;  %v5455_v41 = vshrl.u32 %v706_v36, 7  ;;  %s4155_s30 = scalar_lea.hbm %s7606_s7, %s4834_s11  ;;  %s4144_s19 = scalar_lea.sflag [#allocation5], %s5391_s15 }
  0x3f   : > { %v4730_v8 = vld [vmem:[%s5395_s23] sm:$0xff]  ;;  %v4731_v10 = vld [vmem:[%s5395_s23 + $0x8] sm:$0xff]  ;;  %v4732_v12 = vld [vmem:[%s5395_s23 + $0x10] sm:$0xff]  ;;  %s4158_s12 = sshll.u32 %s4155_s30, 4  ;;  %s5165_s22 = scalar_lea.hbm %s7606_s7, 512  ;;  %s4159_s12 = int_to_ptr.hbm [resolvable:$true] %s4158_s12 }
  0x40   : > { %v4742_v9 = vld [vmem:[%s5395_s23 + $0x60] sm:$0xff]  ;;  %v4743_v11 = vld [vmem:[%s5395_s23 + $0x68] sm:$0xff]  ;;  %v4744_v13 = vld [vmem:[%s5395_s23 + $0x70] sm:$0xff]  ;;  %v709_v48 = vadd.s32 16, %v5455_v41  ;;  %v708_v49 = vadd.s32 8, %v5455_v41  ;;  %v710_v50 = vadd.s32 24, %v5455_v41 }
  0x41   : > { %548 = vmatpush.bf16.msra.mxu0 %v4752_v1  ;;  %4915 = vmatpush.bf16.msra.mxu3 %v4752_v1  ;;  %v4733_v14 = vld [vmem:[%s5395_s23 + $0x18] sm:$0xff]  ;;  %v4734_v17 = vld [vmem:[%s5395_s23 + $0x20] sm:$0xff]  ;;  %v5421_v18 = vld [vmem:[#allocation8 + $0x70] sm:$0xff]  ;;  %v743_v53 = vand.u32 15, %v5455_v41  ;;  %vm1815_vm4 = vcmp.lt.s32.totalorder %v5455_v41, 7  ;;  %vm1412_vm5 = vcmp.lt.s32.totalorder %v5455_v41, 1 }
  0x42   : > { %v4745_v15 = vld [vmem:[%s5395_s23 + $0x78] sm:$0xff]  ;;  %v5424_v19 = vld [vmem:[#allocation8 + $0x68] sm:$0xff]  ;;  %v5427_v20 = vld [vmem:[#allocation8 + $0x60] sm:$0xff]  ;;  %v757_v57 = vand.u32 15, %v709_v48  ;;  %v750_v58 = vand.u32 15, %v708_v49  ;;  %v764_v60 = vand.u32 15, %v710_v50 }
  0x43   : > { %v5417_v16 = vld [vmem:[#allocation8 + $0x78] sm:$0xff]  ;;  %v4735_v22 = vld [vmem:[%s5395_s23 + $0x28] sm:$0xff]  ;;  %v5434_v23 = vld [vmem:[#allocation8 + $0x50] sm:$0xff]  ;;  %vm1123_vm0 = vcmp.gt.s32.totalorder %v743_v53, 0  ;;  %v711_v48 = vadd.s32 32, %v5455_v41  ;;  %s5159_s28 = sshra.s32 %s4159_s12, 4  ;;  %s5160_s28 = int_to_ptr.hbm [resolvable:$true] %s5159_s28 }
  0x44   : > { %1694 = vmatpush.bf16.msra.mxu2 %v5417_v16  ;;  %v5430_v21 = vld [vmem:[#allocation8 + $0x58] sm:$0xff]  ;;  %v5437_v24 = vld [vmem:[#allocation8 + $0x48] sm:$0xff]  ;;  %v5440_v25 = vld [vmem:[#allocation8 + $0x40] sm:$0xff]  ;;  %vm5475_vm1 = vcmp.gt.s32.totalorder %v757_v57, 0  ;;  %vm5479_vm2 = vcmp.lt.s32.totalorder %v750_v58, 15  ;;  %vm1222_vm3 = vcmp.lt.s32.totalorder %v764_v60, 15  ;;  %p5166_p11 = scmp.lt.s32.totalorder %s5160_s28, %s7606_s7 }
  0x45   : > { %549 = vmatpush.bf16.msra.mxu0 %v4751_v2  ;;  %4916 = vmatpush.bf16.msra.mxu3 %v4751_v2  ;;  %v4736_v26 = vld [vmem:[%s5395_s23 + $0x30] sm:$0xff]  ;;  %v4737_v28 = vld [vmem:[%s5395_s23 + $0x38] sm:$0xff]  ;;  %v4738_v31 = vld [vmem:[%s5395_s23 + $0x40] sm:$0xff]  ;;  %v771_v60 = vand.u32 15, %v711_v48  ;;  %s5161_s10 = scalar_lea.hbm %s5160_s28, 256 }
  0x46   : > { %v4769_v29 = vld [vmem:[#allocation8 + $0x38] sm:$0xff]  ;;  %v4768_v30 = vld [vmem:[#allocation8 + $0x30] sm:$0xff]  ;;  %v4767_v33 = vld [vmem:[#allocation8 + $0x28] sm:$0xff]  ;;  %p5162_p1 = scmp.ne.s32.totalorder %s5160_s28, %s5161_s10  ;;  %p5167_p9 = scmp.lt.s32.totalorder %s5165_s22, %s5161_s10 }
  0x47   : > { %1557 = vmatpush.bf16.msra.mxu1 %v4769_v29  ;;  %v4785_v34 = vld [vmem:[#allocation8 + $0x138] sm:$0xff]  ;;  %v5450_v35 = vld [vmem:[%s7601_s2] ss:$0 sm:$0xff]  ;;  %v4784_v39 = vld [vmem:[#allocation8 + $0x130] sm:$0xff]  ;;  %vm1127_vm7 = vcmp.gt.s32.totalorder %v771_v60, 0 }
  0x48   : > { %1695 = vmatpush.bf16.msra.mxu2 %v5421_v18  ;;  %v4766_v37 = vld [vmem:[#allocation8 + $0x20] sm:$0xff]  ;;  %v4765_v44 = vld [vmem:[#allocation8 + $0x18] sm:$0xff]  ;;  %v4783_v45 = vld [vmem:[#allocation8 + $0x128] sm:$0xff]  ;;  %p5163_p4 = pnand %p5162_p1, %p5361_p3  ;;  %p5168_p2 = por %p5167_p9, %p5166_p11 }
  0x49   : > { %550 = vmatpush.bf16.msra.mxu0 %v4750_v3  ;;  %4917 = vmatpush.bf16.msra.mxu3 %v4750_v3  ;;  %v4764_v52 = vld [vmem:[#allocation8 + $0x10] sm:$0xff]  ;;  %v4782_v55 = vld [vmem:[#allocation8 + $0x120] sm:$0xff]  ;;  %v4739_v56 = vld [vmem:[%s5395_s23 + $0x48] sm:$0xff]  ;;  %v7610_v3 = vmov 0.0  }
  0x4a   : > { %v4763_v62 = vld [vmem:[#allocation8 + $0x8] sm:$0xff]  ;;  %v4781_v63 = vld [vmem:[#allocation8 + $0x118] sm:$0xff]  ;;  %v4778_v50 = vld [vmem:[#allocation8 + $0x100] sm:$0xff]  ;;  %p5164_p8 = pneg %p5163_p4 }
  0x4b   : > { %1558 = vmatpush.bf16.msra.mxu1 %v4768_v30  ;;  %v4741_v60 = vld [vmem:[%s5395_s23 + $0x58] sm:$0xff] }
  0x4c   : > { %1696 = vmatpush.bf16.msra.mxu2 %v5424_v19  ;;  %p5169_p10 = pnand %p5168_p2, %p5164_p8 }
  0x4d   : > { %551 = vmatpush.bf16.msra.mxu0 %v4749_v4  ;;  %4918 = vmatpush.bf16.msra.mxu3 %v4749_v4  ;;  %v5484_v4 = vsel %vm1123_vm0, 1.0, %v7610_v3 }
  0x4f   : > { %1559 = vmatpush.bf16.msra.mxu1 %v4767_v33 }
  0x50   : > { %1697 = vmatpush.bf16.msra.mxu2 %v5427_v20 }
  0x51   : > { %552 = vmatpush.bf16.msra.mxu0 %v4748_v5  ;;  %4919 = vmatpush.bf16.msra.mxu3 %v4748_v5  ;;  %v5487_v5 = vrot.slane %v7610_v3, 7 }
  0x53   : > { %1560 = vmatpush.bf16.msra.mxu1 %v4766_v37  ;;  %7760 = vst [vmem:[#allocation16_spill] sm:$0xff] %v5487_v5 }
  0x54   : > { %1698 = vmatpush.bf16.msra.mxu2 %v5430_v21 }
  0x55   : > { %553 = vmatpush.bf16.msra.mxu0 %v4747_v6  ;;  %4920 = vmatpush.bf16.msra.mxu3 %v4747_v6 }
  0x57   : > { %1561 = vmatpush.bf16.msra.mxu1 %v4765_v44 }
  0x58   : > { %1699 = vmatpush.bf16.msra.mxu2 %v5434_v23 }
  0x59   : > { %554 = vmatpush.bf16.msra.mxu0 %v4746_v7  ;;  %4921 = vmatpush.bf16.msra.mxu3 %v4746_v7 }
  0x5b   : > { %1562 = vmatpush.bf16.msra.mxu1 %v4764_v52 }
  0x5c   : > { %555 = vmatmul.bf16.vlgmr.msra.gmra.mxu0 %v4730_v8  ;;  %615 = vmatmul.bf16.vlgmr.msra.gmra.mxu3 %v4742_v9 }
  0x5d   : > { %1700 = vmatpush.bf16.msra.mxu2 %v5437_v24  ;;  %4922 = vmatpush.bf16.msrb.mxu3 %v4769_v29 }
  0x5e   : > { %2195 = vmatpush.bf16.msrb.mxu0 %v4785_v34  ;;  %v4779_v34 = vld [vmem:[#allocation8 + $0x108] sm:$0xff] }
  0x5f   : > { %1563 = vmatpush.bf16.msra.mxu1 %v4763_v62 }
  0x61   : > { %1701 = vmatpush.bf16.msra.mxu2 %v5440_v25  ;;  %4923 = vmatpush.bf16.msrb.mxu3 %v4768_v30 }
  0x62   : > { %2196 = vmatpush.bf16.msrb.mxu0 %v4784_v39 }
  0x64   : > { %1702 = vmatmul.bf16.vlgmr.msra.gmra.mxu2 %v7609_v27 }
  0x65   : > { %4924 = vmatpush.bf16.msrb.mxu3 %v4767_v33 }
  0x66   : > { %2197 = vmatpush.bf16.msrb.mxu0 %v4783_v45 }
  0x69   : > { %4925 = vmatpush.bf16.msrb.mxu3 %v4766_v37 }
  0x6a   : > { %2198 = vmatpush.bf16.msrb.mxu0 %v4782_v55 }
  0x6c   : > { %560 = vmatmul.bf16.gmra.mxu0 %v4731_v10  ;;  %620 = vmatmul.bf16.gmra.mxu3 %v4743_v11  ;;  %v4762_v10 = vld [vmem:[#allocation8] sm:$0xff] }
  0x6d   : > { %4926 = vmatpush.bf16.msrb.mxu3 %v4765_v44  ;;  %1564 = vmatpush.bf16.msra.mxu1 %v4762_v10 }
  0x6e   : > { %2199 = vmatpush.bf16.msrb.mxu0 %v4781_v63 }
  0x71   : > { %4927 = vmatpush.bf16.msrb.mxu3 %v4764_v52  ;;  %v4740_v52 = vld [vmem:[%s5395_s23 + $0x50] sm:$0xff] }
  0x75   : > { %4928 = vmatpush.bf16.msrb.mxu3 %v4763_v62 }
  0x79   : > { %4929 = vmatpush.bf16.msrb.mxu3 %v4762_v10 }
  0x7c   : > { %565 = vmatmul.bf16.gmra.mxu0 %v4732_v12  ;;  %625 = vmatmul.bf16.gmra.mxu3 %v4744_v13  ;;  %v4780_v12 = vld [vmem:[#allocation8 + $0x110] sm:$0xff]  ;;  %v5500_v13 = vsel %vm5475_vm1, 1.0, %v7610_v3 }
  0x7d   : > { %2200 = vmatpush.bf16.msrb.mxu0 %v4780_v12  ;;  %4930 = vmatpush.bf16.msra.mxu3 %v5417_v16 }
  0x81   : > { %2201 = vmatpush.bf16.msrb.mxu0 %v4779_v34  ;;  %4931 = vmatpush.bf16.msra.mxu3 %v5421_v18 }
  0x85   : > { %2202 = vmatpush.bf16.msrb.mxu0 %v4778_v50  ;;  %4932 = vmatpush.bf16.msra.mxu3 %v5424_v19 }
  0x89   : > { %4933 = vmatpush.bf16.msra.mxu3 %v5427_v20 }
  0x8c   : > { %570 = vmatmul.bf16.gmra.mxu0 %v4733_v14  ;;  %630 = vmatmul.bf16.gmra.mxu3 %v4745_v15 }
  0x8d   : > { %4934 = vmatpush.bf16.msra.mxu3 %v5430_v21  ;;  %v714_v21 = vadd.s32 56, %v5455_v41 }
  0x91   : > { %4935 = vmatpush.bf16.msra.mxu3 %v5434_v23 }
  0x95   : > { %4936 = vmatpush.bf16.msra.mxu3 %v5437_v24 }
  0x99   : > { %4937 = vmatpush.bf16.msra.mxu3 %v5440_v25 }
  0x9c   : > { %575 = vmatmul.bf16.gmra.mxu0 %v4734_v17 }
  0xac   : > { %580 = vmatmul.bf16.gmra.mxu0 %v4735_v22  ;;  %v5515_v22 = vsel %vm1222_vm3, 1.0, %v7610_v3 }
  0xbc   : > { %585 = vmatmul.bf16.gmra.mxu0 %v4736_v26  ;;  %v5520_v26 = vsel %vm5479_vm2, 1.0, %v7610_v3 }
  0xbd   : > { %7762 = vst [vmem:[#allocation18_spill] sm:$0xff] %v5520_v26 }
  0xcc   : > { %590 = vmatmul.bf16.gmra.mxu0 %v4737_v28 }
  0xd9   : > { %v556_v32 = vpop.f32.mrf.mxu0 }
  0xda   : > { %v557_v40 = vadd.f32 %v5450_v35, %v556_v32 }
  0xdc   : > { %595 = vmatmul.bf16.gmra.mxu0 %v4738_v31  ;;  %v5458_v46 = vmax.f32 %v557_v40, 0.0 }
  0xde   : > { %v5523_v28 = vrot.slane %v5458_v46, 1 }
  0xdf   : > { %v5452_v38 = vpop.f32.mrf.mxu3 }
  0xe0   : > { %7763 = vst [vmem:[#allocation19_spill] sm:$0xff] %v5523_v28 }
  0xe1   : > { %v558_v42 = vpop.f32.mrf.mxu0 }
  0xe2   : > { %v559_v43 = vadd.f32 %v5450_v35, %v558_v42  ;;  %v712_v42 = vadd.s32 40, %v5455_v41 }
  0xe4   : > { %v5460_v47 = vmax.f32 %v559_v43, 0.0  ;;  %v778_v57 = vand.u32 15, %v712_v42 }
  0xe6   : > { %v5467_v51 = vpack.c.bf16 %v5460_v47, %v5458_v46  ;;  %v1383_v6 = vrot.slane %v5460_v47, 7  ;;  %v1786_v7 = vrot.slane %v5460_v47, 1  ;;  %vm1224_vm6 = vcmp.lt.s32.totalorder %v778_v57, 15 }
  0xe7   : > { %v5470_v54 = vpop.f32.mrf.mxu3 }
  0xe8   : > { %1707 = vmatmul.bf16.gmra.mxu2 %v5467_v51  ;;  %v5540_v36 = vsel %vm1815_vm4, %v5523_v28, %v1786_v7 }
  0xe9   : > { %v561_v59 = vpop.f32.mrf.mxu0  ;;  %7767 = vst [vmem:[#allocation23_spill] sm:$0xff] %v5540_v36 }
  0xea   : > { %v562_v61 = vadd.f32 %v5450_v35, %v561_v59 }
  0xec   : > { %v638_v0 = vmax.f32 %v562_v61, 0.0  ;;  %600 = vmatmul.bf16.gmra.mxu0 %v4739_v56 }
  0xee   : > { %v1384_v8 = vrot.slane %v638_v0, 7  ;;  %v5491_v9 = vrot.slane %v638_v0, 1 }
  0xef   : > { %v5494_v11 = vpop.f32.mrf.mxu3 }
  0xf0   : > { %7761 = vst [vmem:[#allocation17_spill] sm:$0xff] %v5491_v9  ;;  %v1843_v14 = vsel %vm1815_vm4, %v1786_v7, %v5491_v9  ;;  %v5509_v15 = vsel %vm1412_vm5, %v1383_v6, %v1384_v8  ;;  %v3209_v17 = vsel %vm1412_vm5, %v5487_v5, %v1384_v8  ;;  %v5583_v7 = vsel %vm1224_vm6, 1.0, %v7610_v3 }
  0xf1   : > { %v563_v29 = vpop.f32.mrf.mxu0  ;;  %v5527_v30 = vmul.f32 %v5500_v13, %v5509_v15  ;;  %v5530_v31 = vmul.f32 %v5484_v4, %v3209_v17  ;;  %v5534_v33 = vmul.f32 %v5520_v26, %v1843_v14  ;;  %v5543_v37 = vmul.f32 %v5515_v22, %v1843_v14 }
  0xf2   : > { %v564_v32 = vadd.f32 %v5450_v35, %v563_v29  ;;  %v713_v14 = vadd.s32 48, %v5455_v41 }
  0xf3   : > { %7764 = vst [vmem:[#allocation20_spill] sm:$0xff] %v5527_v30 }
  0xf4   : > { %7765 = vst [vmem:[#allocation21_spill] sm:$0xff] %v5530_v31  ;;  %v639_v39 = vmax.f32 %v564_v32, 0.0 }
  0xf5   : > { %7766 = vst [vmem:[#allocation22_spill] sm:$0xff] %v5534_v33  ;;  %v720_v33 = vadd.s32 104, %v5455_v41 }
  0xf6   : > { %7768 = vst [vmem:[#allocation24_spill] sm:$0xff] %v5543_v37  ;;  %v1385_v43 = vrot.slane %v639_v39, 7  ;;  %v1788_v44 = vrot.slane %v639_v39, 1  ;;  %v5550_v45 = vpack.c.bf16 %v639_v39, %v638_v0 }
  0xf7   : > { %v5554_v49 = vpop.f32.mrf.mxu3 }
  0xf8   : > { %7769 = vst [vmem:[#allocation25_spill] sm:$0xff] %v5550_v45  ;;  %1712 = vmatmul.bf16.gmra.mxu2 %v5550_v45  ;;  %v5560_v53 = vsel %vm1412_vm5, %v1384_v8, %v1385_v43  ;;  %v5565_v55 = vsel %vm1815_vm4, %v5491_v9, %v1788_v44  ;;  %v5586_v8 = vsel %vm1127_vm7, 1.0, %v7610_v3 }
  0xf9   : > { %7770 = vst [vmem:[#allocation26_spill] sm:$0xff] %v5560_v53  ;;  %v566_v56 = vpop.f32.mrf.mxu0 }
  0xfa   : > { %7771 = vst [vmem:[#allocation27_spill] sm:$0xff] %v5565_v55  ;;  %v567_v59 = vadd.f32 %v5450_v35, %v566_v56  ;;  %v5619_v56 = vrot.slane %v5458_v46, 7 }
  0xfc   : > { %v640_v61 = vmax.f32 %v567_v59, 0.0  ;;  %605 = vmatmul.bf16.gmra.mxu0 %v4740_v52  ;;  %v785_v52 = vand.u32 15, %v713_v14 }
  0xfe   : > { %v1386_v62 = vrot.slane %v640_v61, 7  ;;  %v1789_v63 = vrot.slane %v640_v61, 1  ;;  %vm1129_vm8 = vcmp.gt.s32.totalorder %v785_v52, 0 }
  0xff   : > { %v5574_v0 = vpop.f32.mrf.mxu3  ;;  %v5653_v52 = vsel %vm1129_vm8, 1.0, %v7610_v3 }
 0x100   : > { %v5578_v1 = vsel %vm1412_vm5, %v1385_v43, %v1386_v62  ;;  %v1841_v2 = vsel %vm1815_vm4, %v1788_v44, %v1789_v63  ;;  %v5675_v43 = vsel %vm1412_vm5, %v5619_v56, %v1383_v6  ;;  %v717_v6 = vadd.s32 80, %v5455_v41 }
 0x101   : > { %v568_v19 = vpop.f32.mrf.mxu0  ;;  %v5589_v10 = vmul.f32 %v5515_v22, %v1841_v2  ;;  %v5592_v20 = vmul.f32 %v5520_v26, %v1841_v2  ;;  %v5599_v17 = vmul.f32 %v5586_v8, %v5578_v1  ;;  %v5607_v34 = vmul.f32 %v5500_v13, %v5578_v1  ;;  %7779 = vst [vmem:[#allocation35_spill] sm:$0xff] %v5675_v43 }
 0x102   : > { %v569_v12 = vadd.f32 %v5450_v35, %v568_v19  ;;  %v5610_v39 = vmul.f32 %v5583_v7, %v1841_v2 }
 0x103   : > { %7772 = vst [vmem:[#allocation28_spill] sm:$0xff] %v5589_v10 }
 0x104   : > { %7773 = vst [vmem:[#allocation29_spill] sm:$0xff] %v5592_v20  ;;  %v641_v42 = vmax.f32 %v569_v12, 0.0  ;;  %v792_v12 = vand.u32 15, %v714_v21 }
 0x105   : > { %7774 = vst [vmem:[#allocation30_spill] sm:$0xff] %v5599_v17 }
 0x106   : > { %7775 = vst [vmem:[#allocation31_spill] sm:$0xff] %v5607_v34  ;;  %v1387_v44 = vrot.slane %v641_v42, 7  ;;  %v1790_v48 = vrot.slane %v641_v42, 1  ;;  %v5615_v50 = vpack.c.bf16 %v641_v42, %v640_v61  ;;  %vm1226_vm9 = vcmp.lt.s32.totalorder %v792_v12, 15 }
 0x107   : > { %7776 = vst [vmem:[#allocation32_spill] sm:$0xff] %v5610_v39  ;;  %v628_v57 = vpop.f32.mrf.mxu3 }
 0x108   : > { %7777 = vst [vmem:[#allocation33_spill] sm:$0xff] %v5615_v50  ;;  %v629_v59 = vadd.f32 %v5450_v35, %v628_v57  ;;  %1717 = vmatmul.bf16.gmra.mxu2 %v5615_v50  ;;  %v5626_v2 = vsel %vm1412_vm5, %v1386_v62, %v1387_v44  ;;  %v5630_v61 = vsel %vm1815_vm4, %v1789_v63, %v1790_v48 }
 0x109   : > { %v571_v19 = vpop.f32.mrf.mxu0  ;;  %v617_v62 = vadd.f32 %v5450_v35, %v5452_v38  ;;  %v1442_v63 = vsel %vm1412_vm5, %v5487_v5, %v5619_v56 }
 0x10a   : > { %v5636_v14 = vmax.f32 %v629_v59, 0.0  ;;  %v572_v42 = vadd.f32 %v5450_v35, %v571_v19  ;;  %v715_v59 = vadd.s32 64, %v5455_v41  ;;  %v5662_v27 = vmul.f32 %v5500_v13, %v1442_v63 }
 0x10c   : > { %v5647_v21 = vrot.slane %v5636_v14, 7  ;;  %v5649_v57 = vmax.f32 %v572_v42, 0.0  ;;  %610 = vmatmul.bf16.gmra.mxu0 %v4741_v60  ;;  %v5665_v60 = vmax.f32 %v617_v62, 0.0  ;;  %v619_v42 = vadd.f32 %v5450_v35, %v5470_v54 }
 0x10d   : > { %v799_v46 = vand.u32 15, %v715_v59  ;;  %v5684_v54 = vsel %vm1226_vm9, 1.0, %v7610_v3  ;;  %v622_v62 = vadd.f32 %v5450_v35, %v5494_v11  ;;  %v813_v11 = vand.u32 15, %v717_v6 }
 0x10e   : > { %v1388_v24 = vrot.slane %v5649_v57, 7  ;;  %v1791_v38 = vrot.slane %v5649_v57, 1  ;;  %v1444_v19 = vsel %vm1412_vm5, %v5647_v21, %v5487_v5  ;;  %7778 = vst [vmem:[#allocation34_spill] sm:$0xff] %v5665_v60  ;;  %v5714_v23 = vmax.f32 %v619_v42, 0.0 }
 0x10f   : > { %v631_v12 = vpop.f32.mrf.mxu3  ;;  %v1445_v32 = vmul.f32 %v5484_v4, %v1444_v19  ;;  %v5716_v29 = vmax.f32 %v622_v62, 0.0  ;;  %vm1131_vm10 = vcmp.gt.s32.totalorder %v799_v46, 0  ;;  %vm1133_vm11 = vcmp.gt.s32.totalorder %v813_v11, 0 }
 0x110   : > { %v5679_v13 = vsel %vm1412_vm5, %v1387_v44, %v1388_v24  ;;  %v1839_v25 = vsel %vm1815_vm4, %v1790_v48, %v1791_v38  ;;  %v624_v44 = vadd.f32 %v5450_v35, %v5554_v49  ;;  %v716_v48 = vadd.s32 72, %v5455_v41  ;;  %7785 = vst [vmem:[#allocation41_spill] sm:$0xff] %v5714_v23 }
 0x111   : > { %v573_v47 = vpop.f32.mrf.mxu0  ;;  %v1477_v63 = vpack.c.bf16 %v5487_v5, %v1445_v32  ;;  %v5691_v59 = vmul.f32 %v5583_v7, %v1839_v25  ;;  %v5699_v16 = vmul.f32 %v5653_v52, %v5679_v13  ;;  %v5705_v32 = vmul.f32 %v5586_v8, %v5679_v13  ;;  %7786 = vst [vmem:[#allocation42_spill] sm:$0xff] %v5716_v29 }
 0x112   : > { %v574_v19 = vadd.f32 %v5450_v35, %v573_v47  ;;  %v5708_v18 = vmul.f32 %v5684_v54, %v1839_v25  ;;  %v5711_v49 = vmul.f32 %v5515_v22, %v1839_v25  ;;  %v5726_v42 = vmax.f32 %v624_v44, 0.0 }
 0x113   : > { %7780 = vst [vmem:[#allocation36_spill] sm:$0xff] %v5691_v59  ;;  %1565 = vmatmul.bf16.vlgmr.msra.gmra.mxu1 %v1477_v63  ;;  %v1478_v63 = vpack.c.bf16 %v5675_v43, %v5662_v27  ;;  %v627_v25 = vadd.f32 %v5450_v35, %v5574_v0  ;;  %v1810_v27 = vrot.slane %v5714_v23, 1  ;;  %v7798_v31 = vrot.slane %v5665_v60, 1 }
 0x114   : > { %7781 = vst [vmem:[#allocation37_spill] sm:$0xff] %v5699_v16  ;;  %v643_v58 = vmax.f32 %v574_v19, 0.0  ;;  %v806_v19 = vand.u32 15, %v716_v48  ;;  %v7789_v48 = vmov 0.0   ;;  %v7816_v10 = vrot.slane %v5716_v29, 1 }
 0x115   : > { %7782 = vst [vmem:[#allocation38_spill] sm:$0xff] %v5705_v32  ;;  %v5744_v40 = vsel %vm1131_vm10, 1.0, %v7789_v48  ;;  %v5757_v47 = vmax.f32 %v627_v25, 0.0  ;;  %v5786_v25 = vadd.s32 96, %v5455_v41  ;;  %v5830_v26 = vsel %vm1815_vm4, %v7798_v31, %v1810_v27 }
 0x116   : > { %7783 = vst [vmem:[#allocation39_spill] sm:$0xff] %v5708_v18  ;;  %v1389_v3 = vrot.slane %v643_v58, 7  ;;  %v1792_v9 = vrot.slane %v643_v58, 1  ;;  %v5723_v5 = vpack.c.bf16 %v643_v58, %v5649_v57  ;;  %v5735_v58 = vmul.f32 %v5586_v8, %v5509_v15 }
 0x117   : > { %7784 = vst [vmem:[#allocation40_spill] sm:$0xff] %v5711_v49  ;;  %v633_v62 = vpop.f32.mrf.mxu3  ;;  %vm1228_vm12 = vcmp.lt.s32.totalorder %v806_v19, 15  ;;  %v718_v15 = vadd.s32 88, %v5455_v41  ;;  %v5789_v19 = vrot.slane %v5636_v14, 1  ;;  %v5847_v31 = vadd.s32 224, %v5455_v41 }
 0x118   : > { %7787 = vst [vmem:[#allocation43_spill] sm:$0xff] %v5723_v5  ;;  %v634_v6 = vadd.f32 %v5450_v35, %v633_v62  ;;  %1722 = vmatmul.bf16.gmra.mxu2 %v5723_v5  ;;  %v5739_v46 = vsel %vm1815_vm4, %v1791_v38, %v1792_v9  ;;  %v5753_v8 = vsel %vm1412_vm5, %v1388_v24, %v1389_v3  ;;  %v733_v38 = vadd.s32 208, %v5455_v41 }
 0x119   : > { %7788 = vst [vmem:[#allocation44_spill] sm:$0xff] %v5726_v42  ;;  %v576_v44 = vpop.f32.mrf.mxu0  ;;  %v632_v24 = vadd.f32 %v5450_v35, %v631_v12  ;;  %v1410_v12 = vrot.slane %v5757_v47, 7  ;;  %v7813_v16 = vrot.slane %v5757_v47, 1 }
 0x11a   : > { %v5746_v62 = vmax.f32 %v634_v6, 0.0  ;;  %v577_v22 = vadd.f32 %v5450_v35, %v576_v44  ;;  %v5764_v44 = vsel %vm1133_vm11, 1.0, %v7789_v48  ;;  %7799 = vst [vmem:[#allocation52_spill] sm:$0xff] %v5830_v26  ;;  %v721_v26 = vadd.s32 112, %v5455_v41 }
 0x11b   : > { %v5799_v39 = vmax.f32 %v632_v24, 0.0  ;;  %v732_v24 = vadd.s32 200, %v5455_v41 }
 0x11c   : > { %7790 = vst [vmem:[#allocation45_spill] sm:$0xff] %v5746_v62  ;;  %v5760_v11 = vrot.slane %v5746_v62, 7  ;;  %v644_v6 = vmax.f32 %v577_v22, 0.0  ;;  %2203 = vmatmul.bf16.vlgmr.msrb.gmra.mxu0 %v5467_v51  ;;  %v5778_v22 = vsel %vm1228_vm12, 1.0, %v7789_v48  ;;  %v7822_v62 = vrot.slane %v5716_v29, 7 }
 0x11d   : > { %7793 = vst [vmem:[#allocation48_spill] sm:$0xff] %v5799_v39 }
 0x11e   : > { %7791 = vst [vmem:[#allocation46_spill] sm:$0xff] %v5760_v11  ;;  %v1390_v57 = vrot.slane %v644_v6, 7  ;;  %v1793_v0 = vrot.slane %v644_v6, 1  ;;  %v2379_v51 = vsel %vm1412_vm5, %v5760_v11, %v5619_v56  ;;  %v820_v11 = vand.u32 15, %v718_v15 }
 0x11f   : > { %v5783_v18 = vmul.f32 %v5484_v4, %v2379_v51  ;;  %v925_v51 = vand.u32 15, %v733_v38  ;;  %v7797_v4 = vrot.slane %v5716_v29, 1 }
 0x120   : > { %v5793_v32 = vsel %vm1412_vm5, %v1389_v3, %v1390_v57  ;;  %v5797_v56 = vsel %vm1815_vm4, %v1792_v9, %v1793_v0  ;;  %v731_v3 = vadd.s32 192, %v5455_v41  ;;  %vm5833_vm13 = vcmp.lt.s32.totalorder %v820_v11, 15 }
 0x121   : > { %7792 = vst [vmem:[#allocation47_spill] sm:$0xff] %v5783_v18  ;;  %v578_v20 = vpop.f32.mrf.mxu0  ;;  %v5805_v34 = vmul.f32 %v5684_v54, %v5797_v56  ;;  %v5811_v9 = vmul.f32 %v5744_v40, %v5793_v32  ;;  %v5815_v15 = vmul.f32 %v5653_v52, %v5793_v32  ;;  %v5839_v38 = vmul.f32 %v5778_v22, %v5797_v56 }
 0x122   : > { %v579_v37 = vadd.f32 %v5450_v35, %v578_v20  ;;  %v5824_v20 = vsel %vm1815_vm4, %v1810_v27, %v7797_v4  ;;  %v734_v4 = vadd.s32 216, %v5455_v41  ;;  %vm5842_vm14 = vcmp.gt.s32.totalorder %v925_v51, 0 }
 0x123   : > { %7794 = vst [vmem:[#allocation49_spill] sm:$0xff] %v5805_v34  ;;  %1570 = vmatmul.bf16.gmra.mxu1 %v1478_v63  ;;  %v737_v63 = vadd.s32 240, %v5455_v41  ;;  %v918_v27 = vand.u32 15, %v732_v24  ;;  %v911_v43 = vand.u32 15, %v731_v3  ;;  %v5869_v3 = vsel %vm5842_vm14, 1.0, %v7789_v48 }
 0x124   : > { %7795 = vst [vmem:[#allocation50_spill] sm:$0xff] %v5811_v9  ;;  %v645_v28 = vmax.f32 %v579_v37, 0.0  ;;  %v730_v37 = vadd.s32 184, %v5455_v41  ;;  %v932_v51 = vand.u32 15, %v734_v4 }
 0x125   : > { %7796 = vst [vmem:[#allocation51_spill] sm:$0xff] %v5815_v15  ;;  %v953_v18 = vand.u32 15, %v737_v63  ;;  %vm1244_vm15 = vcmp.lt.s32.totalorder %v918_v27, 15  ;;  %vm1147_vm2 = vcmp.gt.s32.totalorder %v911_v43, 0  ;;  %v939_v43 = vand.u32 15, %v5847_v31 }
 0x126   : > { %7802 = vst [vmem:[#allocation53_spill] sm:$0xff] %v5839_v38  ;;  %v1391_v11 = vrot.slane %v645_v28, 7  ;;  %v1794_v17 = vrot.slane %v645_v28, 1  ;;  %v5850_v30 = vpack.c.bf16 %v645_v28, %v644_v6  ;;  %v5864_v28 = vsel %vm1244_vm15, 1.0, %v7789_v48 }
 0x127   : > { %vm1153_vm0 = vcmp.gt.s32.totalorder %v953_v18, 0  ;;  %v5891_v34 = vmul.f32 %v5864_v28, %v5824_v20  ;;  %v7811_v38 = vrot.slane %v5716_v29, 7  ;;  %vm1246_vm1 = vcmp.lt.s32.totalorder %v932_v51, 15 }
 0x128   : > { %7805 = vst [vmem:[#allocation54_spill] sm:$0xff] %v5850_v30  ;;  %1727 = vmatmul.bf16.gmra.mxu2 %v5850_v30  ;;  %v5857_v59 = vsel %vm1412_vm5, %v1390_v57, %v1391_v11  ;;  %v5861_v24 = vsel %vm1815_vm4, %v1793_v0, %v1794_v17  ;;  %v5872_v63 = vsel %vm1153_vm0, 1.0, %v7789_v48  ;;  %v7808_v57 = vrot.slane %v5726_v42, 7 }
 0x129   : > { %7806 = vst [vmem:[#allocation55_spill] sm:$0xff] %v5857_v59  ;;  %v581_v6 = vpop.f32.mrf.mxu0  ;;  %v904_v51 = vand.u32 15, %v730_v37  ;;  %v5940_v37 = vsel %vm5833_vm13, 1.0, %v7789_v48  ;;  %v7821_v31 = vrot.slane %v5726_v42, 7  ;;  %vm5993_vm6 = vcmp.gt.s32.totalorder %v939_v43, 0 }
 0x12a   : > { %7807 = vst [vmem:[#allocation56_spill] sm:$0xff] %v5872_v63  ;;  %v5878_v18 = vsel %vm1412_vm5, %v7808_v57, %v1410_v12  ;;  %v582_v4 = vadd.f32 %v5450_v35, %v581_v6  ;;  %v7812_v57 = vrot.slane %v5714_v23, 7  ;;  %v5904_v6 = vsel %vm1412_vm5, %v1410_v12, %v5647_v21 }
 0x12b   : > { %v5885_v27 = vmul.f32 %v5872_v63, %v5878_v18  ;;  %7810 = vst [vmem:[#allocation58_spill] sm:$0xff] %v5891_v34  ;;  %v7814_v63 = vrot.slane %v5726_v42, 1  ;;  %v5920_v12 = vsel %vm1246_vm1, 1.0, %v7789_v48  ;;  %vm1242_vm3 = vcmp.lt.s32.totalorder %v904_v51, 15 }
 0x12c   : > { %v5899_v0 = vsel %vm1412_vm5, %v7812_v57, %v7811_v38  ;;  %v646_v9 = vmax.f32 %v582_v4, 0.0  ;;  %2208 = vmatmul.bf16.gmra.mxu0 %v5550_v45  ;;  %v736_v45 = vadd.s32 232, %v5455_v41  ;;  %v5953_v57 = vsel %vm1147_vm2, 1.0, %v7789_v48 }
 0x12d   : > { %7809 = vst [vmem:[#allocation57_spill] sm:$0xff] %v5885_v27  ;;  %v5912_v15 = vsel %vm1815_vm4, %v7814_v63, %v7813_v16  ;;  %v7815_v55 = vmov %v7814_v63  ;;  %v5961_v27 = vsel %vm1412_vm5, %v7822_v62, %v7821_v31  ;;  %v5991_v51 = vmul.f32 %v5953_v57, %v5899_v0 }
 0x12e   : > { %v5928_v63 = vsel %vm1815_vm4, %v7816_v10, %v7815_v55  ;;  %v5932_v4 = vmul.f32 %v5920_v12, %v5912_v15  ;;  %v1392_v16 = vrot.slane %v646_v9, 7  ;;  %v1795_v38 = vrot.slane %v646_v9, 1 }
 0x12f   : > { %7817 = vst [vmem:[#allocation59_spill] sm:$0xff] %v5928_v63  ;;  %v5946_v10 = vmul.f32 %v5869_v3, %v5899_v0  ;;  %v6008_v29 = vmul.f32 %v5583_v7, %v5797_v56 }
 0x130   : > { %7818 = vst [vmem:[#allocation60_spill] sm:$0xff] %v5932_v4  ;;  %v5950_v34 = vsel %vm1412_vm5, %v1391_v11, %v1392_v16  ;;  %v1835_v55 = vsel %vm1815_vm4, %v1794_v17, %v1795_v38  ;;  %v946_v17 = vand.u32 15, %v736_v45  ;;  %v7826_v4 = vpack.c.bf16 %v5560_v53, %v5735_v58 }
 0x131   : > { %7819 = vst [vmem:[#allocation61_spill] sm:$0xff] %v5946_v10  ;;  %v583_v23 = vpop.f32.mrf.mxu0  ;;  %v5967_v11 = vmul.f32 %v5778_v22, %v1835_v55  ;;  %v5971_v36 = vmul.f32 %v5764_v44, %v5950_v34  ;;  %v5976_v31 = vmul.f32 %v5744_v40, %v5950_v34  ;;  %v5979_v62 = vmul.f32 %v5940_v37, %v1835_v55 }
 0x132   : > { %7820 = vst [vmem:[#allocation62_spill] sm:$0xff] %v5950_v34  ;;  %v584_v42 = vadd.f32 %v5450_v35, %v583_v23  ;;  %vm1248_vm7 = vcmp.lt.s32.totalorder %v946_v17, 15  ;;  %v834_v45 = vand.u32 15, %v720_v33  ;;  %v6017_v58 = vpack.c.bf16 %v5636_v14, %v5757_v47 }
 0x133   : > { %7823 = vst [vmem:[#allocation63_spill] sm:$0xff] %v5971_v36  ;;  %1575 = vmatmul.bf16.gmra.mxu1 %v7826_v4  ;;  %v6002_v4 = vsel %vm1242_vm3, 1.0, %v7789_v48  ;;  %v6034_v33 = vmul.f32 %v5920_v12, %v5824_v20  ;;  %v728_v36 = vadd.s32 168, %v5455_v41 }
 0x134   : > { %7824 = vst [vmem:[#allocation64_spill] sm:$0xff] %v5976_v31  ;;  %v647_v60 = vmax.f32 %v584_v42, 0.0  ;;  %v6011_v42 = vmul.f32 %v5684_v54, %v1835_v55  ;;  %v6038_v14 = vmul.f32 %v6002_v4, %v5824_v20  ;;  %v6050_v55 = vsel %vm1248_vm7, 1.0, %v7789_v48 }
 0x135   : > { %7825 = vst [vmem:[#allocation65_spill] sm:$0xff] %v5979_v62  ;;  %v7838_v20 = vrot.slane %v5799_v39, 1  ;;  %vm1232_vm8 = vcmp.lt.s32.totalorder %v834_v45, 15  ;;  %v1451_v45 = vmul.f32 %v5653_v52, %v5578_v1 }
 0x136   : > { %7827 = vst [vmem:[#allocation66_spill] sm:$0xff] %v5991_v51  ;;  %v1393_v43 = vrot.slane %v647_v60, 7  ;;  %v1796_v10 = vrot.slane %v647_v60, 1  ;;  %v6013_v53 = vpack.c.bf16 %v647_v60, %v646_v9  ;;  %v6043_v9 = vsel %vm5993_vm6, 1.0, %v7789_v48 }
 0x137   : > { %7830 = vst [vmem:[#allocation67_spill] sm:$0xff] %v6008_v29  ;;  %v6058_v7 = vsel %vm1815_vm4, %v5789_v19, %v7838_v20  ;;  %v6062_v34 = vmul.f32 %v6043_v9, %v5878_v18  ;;  %v7841_v20 = vrot.slane %v5757_v47, 1  ;;  %v6089_v47 = vsel %vm1232_vm8, 1.0, %v7789_v48 }
 0x138   : > { %7831 = vst [vmem:[#allocation68_spill] sm:$0xff] %v6011_v42  ;;  %1732 = vmatmul.bf16.gmra.mxu2 %v6013_v53  ;;  %v6026_v54 = vsel %vm1412_vm5, %v1392_v16, %v1393_v43  ;;  %v6030_v60 = vsel %vm1815_vm4, %v1795_v38, %v1796_v10  ;;  %v6068_v38 = vmul.f32 %v6050_v55, %v6058_v7 }
 0x139   : > { %7832 = vst [vmem:[#allocation69_spill] sm:$0xff] %v6013_v53  ;;  %v586_v56 = vpop.f32.mrf.mxu0  ;;  %v6078_v42 = vsel %vm1815_vm4, %v7841_v20, %v5789_v19  ;;  %v1480_v29 = vpack.c.bf16 %v5626_v2, %v1451_v45 }
 0x13a   : > { %7833 = vst [vmem:[#allocation70_spill] sm:$0xff] %v6017_v58  ;;  %v587_v17 = vadd.f32 %v5450_v35, %v586_v56 }
 0x13b   : > { %7834 = vst [vmem:[#allocation71_spill] sm:$0xff] %v6026_v54 }
 0x13c   : > { %7835 = vst [vmem:[#allocation72_spill] sm:$0xff] %v6034_v33  ;;  %v648_v16 = vmax.f32 %v587_v17, 0.0  ;;  %2213 = vmatmul.bf16.gmra.mxu0 %v5615_v50  ;;  %v7843_v17 = vand.u32 15, %v5786_v25 }
 0x13d   : > { %7836 = vst [vmem:[#allocation73_spill] sm:$0xff] %v6038_v14 }
 0x13e   : > { %7837 = vst [vmem:[#allocation74_spill] sm:$0xff] %v6050_v55  ;;  %v1394_v33 = vrot.slane %v648_v16, 7  ;;  %v1797_v49 = vrot.slane %v648_v16, 1  ;;  %vm1135_vm9 = vcmp.gt.s32.totalorder %v7843_v17, 0  ;;  %v6149_v17 = vmul.f32 %v5869_v3, %v5878_v18 }
 0x13f   : > { %7839 = vst [vmem:[#allocation75_spill] sm:$0xff] %v6062_v34  ;;  %v6099_v14 = vsel %vm1135_vm9, 1.0, %v7789_v48  ;;  %v6140_v34 = vmul.f32 %v6050_v55, %v5912_v15 }
 0x140   : > { %7840 = vst [vmem:[#allocation76_spill] sm:$0xff] %v6068_v38  ;;  %v6093_v20 = vsel %vm1412_vm5, %v1393_v43, %v1394_v33  ;;  %v1833_v56 = vsel %vm1815_vm4, %v1796_v10, %v1797_v49 }
 0x141   : > { %7842 = vst [vmem:[#allocation77_spill] sm:$0xff] %v6078_v42  ;;  %v588_v23 = vpop.f32.mrf.mxu0  ;;  %v6102_v25 = vmul.f32 %v5940_v37, %v1833_v56  ;;  %v6107_v52 = vmul.f32 %v6099_v14, %v6093_v20  ;;  %v6111_v43 = vmul.f32 %v5764_v44, %v6093_v20  ;;  %v6114_v10 = vmul.f32 %v6089_v47, %v1833_v56 }
 0x142   : > { %v589_v1 = vadd.f32 %v5450_v35, %v588_v23  ;;  %v6119_v45 = vmul.f32 %v5778_v22, %v1833_v56  ;;  %v722_v23 = vadd.s32 120, %v5455_v41  ;;  %7850 = vst [vmem:[#allocation84_spill] sm:$0xff] %v6140_v34 }
 0x143   : > { %7844 = vst [vmem:[#allocation78_spill] sm:$0xff] %v6107_v52  ;;  %1580 = vmatmul.bf16.gmra.mxu1 %v1480_v29  ;;  %v4793_v29 = vld [vmem:[#allocation8 + $0xf8] sm:$0xff]  ;;  %v6210_v52 = vpop.f32.mrf.mxu2 }
 0x144   : > { %7845 = vst [vmem:[#allocation79_spill] sm:$0xff] %v6111_v43  ;;  %v649_v50 = vmax.f32 %v589_v1, 0.0  ;;  %2493 = vmatpush.bf16.msrb.mxu1 %v4793_v29  ;;  %v848_v1 = vand.u32 15, %v722_v23  ;;  %v6155_v23 = vmul.f32 %v5864_v28, %v5912_v15  ;;  %v738_v29 = vadd.s32 248, %v5455_v41 }
 0x145   : > { %7846 = vst [vmem:[#allocation80_spill] sm:$0xff] %v6114_v10  ;;  %v6203_v10 = vrot.slane %v7789_v48, 1  ;;  %v723_v43 = vadd.s32 128, %v5455_v41 }
 0x146   : > { %7847 = vst [vmem:[#allocation81_spill] sm:$0xff] %v6119_v45  ;;  %v1395_v38 = vrot.slane %v649_v50, 7  ;;  %v1798_v62 = vrot.slane %v649_v50, 1  ;;  %v6126_v31 = vpack.c.bf16 %v649_v50, %v648_v16  ;;  %vm1234_vm10 = vcmp.lt.s32.totalorder %v848_v1, 15 }
 0x147   : > { %7851 = vst [vmem:[#allocation85_spill] sm:$0xff] %v6149_v17  ;;  %v6166_v15 = vsel %vm1234_vm10, 1.0, %v7789_v48  ;;  %v724_v45 = vadd.s32 136, %v5455_v41 }
 0x148   : > { %7848 = vst [vmem:[#allocation82_spill] sm:$0xff] %v6126_v31  ;;  %1737 = vmatmul.bf16.gmra.mxu2 %v6126_v31  ;;  %v6132_v22 = vsel %vm1412_vm5, %v1394_v33, %v1395_v38  ;;  %v6136_v56 = vsel %vm1815_vm4, %v1797_v49, %v1798_v62  ;;  %v841_v33 = vand.u32 15, %v721_v26  ;;  %v1453_v49 = vmul.f32 %v5744_v40, %v5679_v13 }
 0x149   : > { %7849 = vst [vmem:[#allocation83_spill] sm:$0xff] %v6132_v22  ;;  %v591_v50 = vpop.f32.mrf.mxu0  ;;  %v960_v26 = vand.u32 15, %v738_v29 }
 0x14a   : > { %v592_v51 = vadd.f32 %v5450_v35, %v591_v50  ;;  %7852 = vst [vmem:[#allocation86_spill] sm:$0xff] %v6155_v23  ;;  %vm1137_vm11 = vcmp.gt.s32.totalorder %v841_v33, 0  ;;  %v1481_v18 = vpack.c.bf16 %v5753_v8, %v1453_v49 }
 0x14b   : > { %v6176_v23 = vsel %vm1137_vm11, 1.0, %v7789_v48  ;;  %vm1250_vm12 = vcmp.lt.s32.totalorder %v960_v26, 15  ;;  %7857 = vst [vmem:[#allocation91_spill] sm:$0xff] %v6203_v10 }
 0x14c   : > { %v650_v55 = vmax.f32 %v592_v51, 0.0  ;;  %2218 = vmatmul.bf16.gmra.mxu0 %v5723_v5  ;;  %7859 = vst [vmem:[#allocation93_spill] sm:$0xff] %v6210_v52  ;;  %v6213_v26 = vsel %vm1250_vm12, 1.0, %v7789_v48 }
 0x14d   : > { %7860 = vst [vmem:[#allocation94_spill] sm:$0xff] %v6213_v26 }
 0x14e   : > { %v1396_v50 = vrot.slane %v650_v55, 7  ;;  %v1799_v16 = vrot.slane %v650_v55, 1 }
 0x150   : > { %v6170_v51 = vsel %vm1412_vm5, %v1395_v38, %v1396_v50  ;;  %v1831_v1 = vsel %vm1815_vm4, %v1798_v62, %v1799_v16 }
 0x151   : > { %v593_v5 = vpop.f32.mrf.mxu0  ;;  %v6179_v33 = vmul.f32 %v6089_v47, %v1831_v1  ;;  %v6184_v13 = vmul.f32 %v6176_v23, %v6170_v51  ;;  %v6188_v38 = vmul.f32 %v6099_v14, %v6170_v51  ;;  %v6191_v62 = vmul.f32 %v6166_v15, %v1831_v1 }
 0x152   : > { %v594_v40 = vadd.f32 %v5450_v35, %v593_v5  ;;  %v6198_v5 = vmul.f32 %v5940_v37, %v1831_v1  ;;  %v4801_v37 = vld [vmem:[#allocation8 + $0x178] sm:$0xff]  ;;  %v862_v1 = vand.u32 15, %v724_v45 }
 0x153   : > { %7853 = vst [vmem:[#allocation87_spill] sm:$0xff] %v6184_v13  ;;  %1585 = vmatmul.bf16.gmra.mxu1 %v1481_v18  ;;  %2791 = vmatpush.bf16.msrb.mxu2 %v4801_v37 }
 0x154   : > { %7854 = vst [vmem:[#allocation88_spill] sm:$0xff] %v6188_v38  ;;  %v651_v34 = vmax.f32 %v594_v40, 0.0  ;;  %v7861_v40 = vrot.slane %v5799_v39, 7  ;;  %vm1236_vm13 = vcmp.lt.s32.totalorder %v862_v1, 15 }
 0x155   : > { %7855 = vst [vmem:[#allocation89_spill] sm:$0xff] %v6191_v62  ;;  %v725_v62 = vadd.s32 144, %v5455_v41 }
 0x156   : > { %7856 = vst [vmem:[#allocation90_spill] sm:$0xff] %v6198_v5  ;;  %v1397_v29 = vrot.slane %v651_v34, 7  ;;  %v1800_v49 = vrot.slane %v651_v34, 1  ;;  %v6208_v63 = vpack.c.bf16 %v651_v34, %v650_v55  ;;  %v6220_v17 = vsel %vm1412_vm5, %v5647_v21, %v7861_v40  ;;  %v4792_v5 = vld [vmem:[#allocation8 + $0xf0] sm:$0xff] }
 0x157   : > { %7862 = vst [vmem:[#allocation95_spill] sm:$0xff] %v6220_v17  ;;  %v1847_v55 = vsel %vm1815_vm4, %v5789_v19, %v6203_v10  ;;  %v6240_v21 = vmul.f32 %v5920_v12, %v6058_v7  ;;  %v855_v19 = vand.u32 15, %v723_v43  ;;  %v4800_v7 = vld [vmem:[#allocation8 + $0x170] sm:$0xff]  ;;  %2494 = vmatpush.bf16.msrb.mxu1 %v4792_v5  ;;  %v4791_v10 = vld [vmem:[#allocation8 + $0xe8] sm:$0xff] }
 0x158   : > { %7858 = vst [vmem:[#allocation92_spill] sm:$0xff] %v6208_v63  ;;  %1742 = vmatmul.bf16.gmra.mxu2 %v6208_v63  ;;  %v6229_v34 = vsel %vm1412_vm5, %v1396_v50, %v1397_v29  ;;  %v6233_v45 = vsel %vm1815_vm4, %v1799_v16, %v1800_v49  ;;  %v6236_v18 = vmul.f32 %v6213_v26, %v1847_v55  ;;  %v6268_v55 = vpop.f32.mrf.mxu2  ;;  %v4795_v26 = vld [vmem:[#allocation8 + $0x148] sm:$0xff] }
 0x159   : > { %7863 = vst [vmem:[#allocation96_spill] sm:$0xff] %v6229_v34  ;;  %v596_v40 = vpop.f32.mrf.mxu0  ;;  %v6249_v16 = vmul.f32 %v6043_v9, %v6220_v17  ;;  %2792 = vmatpush.bf16.msrb.mxu2 %v4800_v7  ;;  %vm1139_vm14 = vcmp.gt.s32.totalorder %v855_v19, 0  ;;  %v6259_v17 = vsel %vm1236_vm13, 1.0, %v7789_v48 }
 0x15a   : > { %7864 = vst [vmem:[#allocation97_spill] sm:$0xff] %v6233_v45  ;;  %v597_v52 = vadd.f32 %v5450_v35, %v596_v40  ;;  %v1455_v40 = vmul.f32 %v5764_v44, %v5793_v32  ;;  %v6271_v32 = vsel %vm1139_vm14, 1.0, %v7789_v48 }
 0x15b   : > { %7865 = vst [vmem:[#allocation98_spill] sm:$0xff] %v6236_v18  ;;  %v869_v18 = vand.u32 15, %v725_v62  ;;  %v7874_v62 = vld [vmem:[#allocation62_spill] sm:$0xff]  ;;  %2495 = vmatpush.bf16.msrb.mxu1 %v4791_v10 }
 0x15c   : > { %7866 = vst [vmem:[#allocation99_spill] sm:$0xff] %v6240_v21  ;;  %v652_v43 = vmax.f32 %v597_v52, 0.0  ;;  %2223 = vmatmul.bf16.gmra.mxu0 %v5850_v30  ;;  %v1482_v7 = vpack.c.bf16 %v5857_v59, %v1455_v40  ;;  %v726_v30 = vadd.s32 152, %v5455_v41  ;;  %v4797_v40 = vld [vmem:[#allocation8 + $0x158] sm:$0xff] }
 0x15d   : > { %7867 = vst [vmem:[#allocation100_spill] sm:$0xff] %v6249_v16  ;;  %v4799_v16 = vld [vmem:[#allocation8 + $0x168] sm:$0xff]  ;;  %vm1141_vm0 = vcmp.gt.s32.totalorder %v869_v18, 0 }
 0x15e   : > { %v1398_v37 = vrot.slane %v652_v43, 7  ;;  %v1801_v50 = vrot.slane %v652_v43, 1  ;;  %2793 = vmatpush.bf16.msrb.mxu2 %v4799_v16  ;;  %v4798_v16 = vld [vmem:[#allocation8 + $0x160] sm:$0xff] }
 0x160   : > { %v6263_v12 = vsel %vm1412_vm5, %v1397_v29, %v1398_v37  ;;  %v1829_v52 = vsel %vm1815_vm4, %v1800_v49, %v1801_v50 }
 0x161   : > { %v598_v1 = vpop.f32.mrf.mxu0  ;;  %v6274_v44 = vmul.f32 %v6166_v15, %v1829_v52  ;;  %v6279_v29 = vmul.f32 %v6271_v32, %v6263_v12  ;;  %v6283_v49 = vmul.f32 %v6176_v23, %v6263_v12  ;;  %v6286_v19 = vmul.f32 %v6259_v17, %v1829_v52 }
 0x162   : > { %v599_v5 = vadd.f32 %v5450_v35, %v598_v1  ;;  %v6291_v21 = vmul.f32 %v6089_v47, %v1829_v52  ;;  %2794 = vmatpush.bf16.msrb.mxu2 %v4798_v16 }
 0x163   : > { %7868 = vst [vmem:[#allocation101_spill] sm:$0xff] %v6279_v29  ;;  %1590 = vmatmul.bf16.gmra.mxu1 %v1482_v7 }
 0x164   : > { %7869 = vst [vmem:[#allocation102_spill] sm:$0xff] %v6283_v49  ;;  %v653_v1 = vmax.f32 %v599_v5, 0.0  ;;  %v876_v5 = vand.u32 15, %v726_v30 }
 0x165   : > { %7870 = vst [vmem:[#allocation103_spill] sm:$0xff] %v6286_v19 }
 0x166   : > { %7871 = vst [vmem:[#allocation104_spill] sm:$0xff] %v6291_v21  ;;  %v1399_v7 = vrot.slane %v653_v1, 7  ;;  %v1802_v38 = vrot.slane %v653_v1, 1  ;;  %v6299_v42 = vpack.c.bf16 %v653_v1, %v652_v43  ;;  %2795 = vmatpush.bf16.msrb.mxu2 %v4797_v40  ;;  %vm1238_vm15 = vcmp.lt.s32.totalorder %v876_v5, 15 }
 0x167   : > { %v1457_v40 = vmul.f32 %v6099_v14, %v7874_v62  ;;  %v6321_v29 = vsel %vm1238_vm15, 1.0, %v7789_v48 }
 0x168   : > { %7872 = vst [vmem:[#allocation105_spill] sm:$0xff] %v6299_v42  ;;  %1747 = vmatmul.bf16.gmra.mxu2 %v6299_v42  ;;  %v6304_v47 = vsel %vm1412_vm5, %v1398_v37, %v1399_v7  ;;  %v6308_v52 = vsel %vm1815_vm4, %v1801_v50, %v1802_v38  ;;  %v4796_v37 = vld [vmem:[#allocation8 + $0x150] sm:$0xff] }
 0x169   : > { %7873 = vst [vmem:[#allocation106_spill] sm:$0xff] %v6308_v52  ;;  %v601_v16 = vpop.f32.mrf.mxu0 }
 0x16a   : > { %v602_v1 = vadd.f32 %v5450_v35, %v601_v16  ;;  %2796 = vmatpush.bf16.msrb.mxu2 %v4796_v37  ;;  %v6324_v35 = vsel %vm1141_vm0, 1.0, %v7789_v48 }
 0x16b   : > { %v6315_v21 = vpop.f32.mrf.mxu2 }
 0x16c   : > { %v654_v19 = vmax.f32 %v602_v1, 0.0  ;;  %2228 = vmatmul.bf16.gmra.mxu0 %v6013_v53  ;;  %v1483_v1 = vpack.c.bf16 %v6026_v54, %v1457_v40  ;;  %v4794_v53 = vld [vmem:[#allocation8 + $0x140] sm:$0xff] }
 0x16e   : > { %v1400_v30 = vrot.slane %v654_v19, 7  ;;  %v1803_v50 = vrot.slane %v654_v19, 1  ;;  %2797 = vmatpush.bf16.msrb.mxu2 %v4795_v26 }
 0x170   : > { %v6328_v16 = vsel %vm1412_vm5, %v1399_v7, %v1400_v30  ;;  %v1827_v5 = vsel %vm1815_vm4, %v1802_v38, %v1803_v50  ;;  %v6347_v7 = vld [vmem:[%s7601_s2] ss:$0 sm:$0xff] }
 0x171   : > { %v603_v18 = vpop.f32.mrf.mxu0  ;;  %v6334_v14 = vmul.f32 %v6259_v17, %v1827_v5  ;;  %v6338_v37 = vmul.f32 %v6324_v35, %v6328_v16  ;;  %v6342_v62 = vmul.f32 %v6271_v32, %v6328_v16  ;;  %v6351_v26 = vmul.f32 %v6321_v29, %v1827_v5 }
 0x172   : > { %v604_v38 = vadd.f32 %v6347_v7, %v603_v18  ;;  %v6354_v40 = vmul.f32 %v6166_v15, %v1827_v5  ;;  %2798 = vmatpush.bf16.msrb.mxu2 %v4794_v53  ;;  %v727_v15 = vadd.s32 160, %v5455_v41  ;;  %v890_v18 = vand.u32 15, %v728_v36 }
 0x173   : > { %7875 = vst [vmem:[#allocation62_spill] sm:$0xff] %v6334_v14  ;;  %1595 = vmatmul.bf16.gmra.mxu1 %v1483_v1  ;;  %v6356_v43 = vpop.f32.mrf.mxu2  ;;  %v1459_v36 = vmul.f32 %v6176_v23, %v6093_v20 }
 0x174   : > { %7876 = vst [vmem:[#allocation107_spill] sm:$0xff] %v6338_v37  ;;  %v655_v13 = vmax.f32 %v604_v38, 0.0  ;;  %v883_v49 = vand.u32 15, %v727_v15  ;;  %vm1240_vm1 = vcmp.lt.s32.totalorder %v890_v18, 15 }
 0x175   : > { %7877 = vst [vmem:[#allocation108_spill] sm:$0xff] %v6342_v62  ;;  %v6388_v15 = vsel %vm1240_vm1, 1.0, %v7789_v48 }
 0x176   : > { %7878 = vst [vmem:[#allocation109_spill] sm:$0xff] %v6351_v26  ;;  %v1401_v5 = vrot.slane %v655_v13, 7  ;;  %v1804_v1 = vrot.slane %v655_v13, 1  ;;  %v6366_v59 = vpack.c.bf16 %v655_v13, %v654_v19  ;;  %vm1143_vm2 = vcmp.gt.s32.totalorder %v883_v49, 0 }
 0x177   : > { %7879 = vst [vmem:[#allocation110_spill] sm:$0xff] %v6354_v40  ;;  %v6391_v40 = vsel %vm1143_vm2, 1.0, %v7789_v48  ;;  %v1484_v49 = vpack.c.bf16 %v6132_v22, %v1459_v36 }
 0x178   : > { %7880 = vst [vmem:[#allocation111_spill] sm:$0xff] %v6366_v59  ;;  %1752 = vmatmul.bf16.gmra.mxu2 %v6366_v59  ;;  %v6371_v38 = vsel %vm1412_vm5, %v1400_v30, %v1401_v5  ;;  %v6375_v54 = vsel %vm1815_vm4, %v1803_v50, %v1804_v1 }
 0x179   : > { %v606_v53 = vpop.f32.mrf.mxu0 }
 0x17a   : > { %v607_v19 = vadd.f32 %v6347_v7, %v606_v53 }
 0x17b   : > { %v6382_v10 = vpop.f32.mrf.mxu2 }
 0x17c   : > { %v656_v26 = vmax.f32 %v607_v19, 0.0  ;;  %2233 = vmatmul.bf16.gmra.mxu0 %v6126_v31 }
 0x17e   : > { %v1402_v30 = vrot.slane %v656_v26, 7  ;;  %v1805_v50 = vrot.slane %v656_v26, 1 }
 0x180   : > { %v6395_v53 = vsel %vm1412_vm5, %v1401_v5, %v1402_v30  ;;  %v1825_v19 = vsel %vm1815_vm4, %v1804_v1, %v1805_v50 }
 0x181   : > { %v608_v18 = vpop.f32.mrf.mxu0  ;;  %v6401_v13 = vmul.f32 %v6321_v29, %v1825_v19  ;;  %v6405_v20 = vmul.f32 %v6391_v40, %v6395_v53  ;;  %v6409_v23 = vmul.f32 %v6324_v35, %v6395_v53  ;;  %v6413_v31 = vmul.f32 %v6388_v15, %v1825_v19 }
 0x182   : > { %v609_v5 = vadd.f32 %v6347_v7, %v608_v18  ;;  %v6416_v1 = vmul.f32 %v6259_v17, %v1825_v19  ;;  %v729_v18 = vadd.s32 176, %v5455_v41 }
 0x183   : > { %7881 = vst [vmem:[#allocation112_spill] sm:$0xff] %v6405_v20  ;;  %1600 = vmatmul.bf16.gmra.mxu1 %v1484_v49  ;;  %v6420_v37 = vpop.f32.mrf.mxu2 }
 0x184   : > { %7882 = vst [vmem:[#allocation113_spill] sm:$0xff] %v6409_v23  ;;  %v657_v62 = vmax.f32 %v609_v5, 0.0  ;;  %v897_v5 = vand.u32 15, %v729_v18  ;;  %v1461_v18 = vmul.f32 %v6271_v32, %v6170_v51 }
 0x185   : > { %7883 = vst [vmem:[#allocation114_spill] sm:$0xff] %v6413_v31 }
 0x186   : > { %7884 = vst [vmem:[#allocation115_spill] sm:$0xff] %v6416_v1  ;;  %v1403_v14 = vrot.slane %v657_v62, 7  ;;  %v1806_v39 = vrot.slane %v657_v62, 1  ;;  %v6427_v45 = vpack.c.bf16 %v657_v62, %v656_v26  ;;  %vm1145_vm3 = vcmp.gt.s32.totalorder %v897_v5, 0 }
 0x188   : > { %7885 = vst [vmem:[#allocation116_spill] sm:$0xff] %v6427_v45  ;;  %1757 = vmatmul.bf16.gmra.mxu2 %v6427_v45  ;;  %v6432_v17 = vsel %vm1412_vm5, %v1402_v30, %v1403_v14  ;;  %v6436_v19 = vsel %vm1815_vm4, %v1805_v50, %v1806_v39  ;;  %v4790_v30 = vld [vmem:[#allocation8 + $0xe0] sm:$0xff] }
 0x189   : > { %7886 = vst [vmem:[#allocation117_spill] sm:$0xff] %v6436_v19  ;;  %v611_v49 = vpop.f32.mrf.mxu0  ;;  %2496 = vmatpush.bf16.msrb.mxu1 %v4790_v30 }
 0x18a   : > { %v612_v62 = vadd.f32 %v6347_v7, %v611_v49 }
 0x18b   : > { %v6448_v1 = vpop.f32.mrf.mxu2 }
 0x18c   : > { %v6443_v26 = vmax.f32 %v612_v62, 0.0  ;;  %2238 = vmatmul.bf16.gmra.mxu0 %v6208_v63  ;;  %v6457_v62 = vsel %vm1145_vm3, 1.0, %v7789_v48  ;;  %v1485_v63 = vpack.c.bf16 %v6229_v34, %v1461_v18 }
 0x18e   : > { %v1404_v36 = vrot.slane %v6443_v26, 7  ;;  %v1807_v50 = vrot.slane %v6443_v26, 1 }
 0x190   : > { %v6452_v52 = vpop.f32.mrf.mxu1  ;;  %v1420_v49 = vsel %vm1412_vm5, %v1403_v14, %v1404_v36  ;;  %v1823_v5 = vsel %vm1815_vm4, %v1806_v39, %v1807_v50  ;;  %v7892_v39 = vld [vmem:[#allocation22_spill] sm:$0xff] }
 0x191   : > { %7887 = vst [vmem:[#allocation118_spill] sm:$0xff] %v6452_v52  ;;  %v613_v22 = vpop.f32.mrf.mxu0  ;;  %v6463_v31 = vmul.f32 %v6388_v15, %v1823_v5  ;;  %v6466_v30 = vmul.f32 %v6457_v62, %v1420_v49  ;;  %v6470_v32 = vmul.f32 %v6391_v40, %v1420_v49  ;;  %v6473_v48 = vmul.f32 %v6002_v4, %v1823_v5 }
 0x192   : > { %v614_v51 = vadd.f32 %v6347_v7, %v613_v22  ;;  %v6476_v14 = vmul.f32 %v6321_v29, %v1823_v5  ;;  %v7891_v7 = vld [vmem:[#allocation34_spill] sm:$0xff]  ;;  %v1469_v29 = vmul.f32 %v5953_v57, %v1420_v49 }
 0x193   : > { %7888 = vst [vmem:[#allocation119_spill] sm:$0xff] %v6463_v31  ;;  %1605 = vmatmul.bf16.gmra.mxu1 %v1485_v63  ;;  %v1406_v52 = vrot.slane %v7891_v7, 7  ;;  %v6490_v63 = vpop.f32.mrf.mxu2 }
 0x194   : > { %7889 = vst [vmem:[#allocation120_spill] sm:$0xff] %v6473_v48  ;;  %v6480_v18 = vmax.f32 %v614_v51, 0.0  ;;  %v7893_v51 = vld [vmem:[#allocation23_spill] sm:$0xff] }
 0x195   : > { %7890 = vst [vmem:[#allocation121_spill] sm:$0xff] %v6476_v14  ;;  %v7894_v31 = vpack.c.bf16 %v7892_v39, %v7893_v51  ;;  %v7895_v14 = vrot.slane %v7891_v7, 1 }
 0x196   : > { %v1405_v20 = vrot.slane %v6480_v18, 7  ;;  %v1808_v34 = vrot.slane %v6480_v18, 1 }
 0x198   : > { %v1568_v5 = vpop.f32.mrf.mxu1  ;;  %2799 = vmatmul.bf16.vlgmr.msrb.gmra.mxu2 %v7894_v31  ;;  %v6497_v23 = vsel %vm1412_vm5, %v1404_v36, %v1405_v20  ;;  %v1418_v22 = vsel %vm1412_vm5, %v1405_v20, %v1406_v52  ;;  %v1821_v48 = vsel %vm1815_vm4, %v1808_v34, %v7895_v14  ;;  %v6507_v49 = vsel %vm1815_vm4, %v1807_v50, %v1808_v34  ;;  %v4789_v34 = vld [vmem:[#allocation8 + $0xd8] sm:$0xff] }
 0x199   : > { %v6510_v19 = vadd.f32 %v6268_v55, %v1568_v5  ;;  %v6512_v31 = vpop.f32.mrf.mxu0  ;;  %v1489_v36 = vpack.c.bf16 %v6497_v23, %v1469_v29  ;;  %v6516_v39 = vmul.f32 %v6002_v4, %v1821_v48  ;;  %v6521_v51 = vmul.f32 %v5953_v57, %v1418_v22  ;;  %v7897_v55 = vld [vmem:[#allocation41_spill] sm:$0xff]  ;;  %2497 = vmatpush.bf16.msrb.mxu1 %v4789_v34 }
 0x19a   : > { %7896 = vst [vmem:[#allocation34_spill] sm:$0xff] %v6512_v31  ;;  %v6526_v50 = vmul.f32 %v6457_v62, %v1418_v22  ;;  %v7898_v14 = vrot.slane %v7897_v55, 7  ;;  %v6537_v5 = vmul.f32 %v5864_v28, %v1821_v48  ;;  %v6540_v57 = vmul.f32 %v6388_v15, %v1821_v48 }
 0x19b   : > { %1625 = vmatmul.bf16.vlgmr.msrb.gmra.mxu3 %v1489_v36  ;;  %v1463_v28 = vmul.f32 %v6324_v35, %v6263_v12  ;;  %v1723_v4 = vpop.f32.mrf.mxu2  ;;  %v1471_v31 = vmul.f32 %v5869_v3, %v1418_v22  ;;  %v1465_v3 = vmul.f32 %v6391_v40, %v6328_v16  ;;  %v4786_v22 = vld [vmem:[#allocation8 + $0xc0] sm:$0xff] }
 0x19c   : > { %v6532_v29 = vsel %vm1412_vm5, %v1406_v52, %v7898_v14  ;;  %7899 = vst [vmem:[#allocation22_spill] sm:$0xff] %v6537_v5  ;;  %2243 = vmatmul.bf16.gmra.mxu0 %v6299_v42  ;;  %v4788_v52 = vld [vmem:[#allocation8 + $0xd0] sm:$0xff]  ;;  %v7902_v14 = vld [vmem:[#allocation28_spill] sm:$0xff] }
 0x19d   : > { %7900 = vst [vmem:[#allocation41_spill] sm:$0xff] %v6540_v57  ;;  %v1486_v36 = vpack.c.bf16 %v6304_v47, %v1463_v28  ;;  %v7903_v57 = vld [vmem:[#allocation27_spill] sm:$0xff]  ;;  %v1490_v35 = vpack.c.bf16 %v6532_v29, %v1471_v31  ;;  %2498 = vmatpush.bf16.msrb.mxu1 %v4788_v52  ;;  %v1473_v31 = vmul.f32 %v6043_v9, %v5899_v0  ;;  %v7907_v28 = vld [vmem:[#allocation36_spill] sm:$0xff] }
 0x19e   : > { %v7904_v5 = vpack.c.bf16 %v7902_v14, %v7903_v57  ;;  %v1467_v0 = vmul.f32 %v6457_v62, %v6395_v53 }
 0x1a0   : > { %v1571_v20 = vpop.f32.mrf.mxu1 }
 0x1a1   : > { %v6554_v15 = vadd.f32 %v6315_v21, %v1571_v20  ;;  %v6556_v48 = vpop.f32.mrf.mxu0  ;;  %v4787_v20 = vld [vmem:[#allocation8 + $0xc8] sm:$0xff] }
 0x1a2   : > { %7901 = vst [vmem:[#allocation122_spill] sm:$0xff] %v6556_v48  ;;  %2499 = vmatpush.bf16.msrb.mxu1 %v4787_v20  ;;  %v4777_v20 = vld [vmem:[#allocation8 + $0xb8] sm:$0xff] }
 0x1a3   : > { %1610 = vmatmul.bf16.gmra.mxu1 %v1486_v36  ;;  %v1725_v36 = vpop.f32.mrf.mxu2  ;;  %1961 = vmatpush.bf16.msrb.mxu3 %v4777_v20 }
 0x1a6   : > { %2500 = vmatpush.bf16.msrb.mxu1 %v4786_v22 }
 0x1a8   : > { %v1573_v42 = vpop.f32.mrf.mxu1  ;;  %2804 = vmatmul.bf16.gmra.mxu2 %v7904_v5 }
 0x1a9   : > { %v6564_v12 = vadd.f32 %v6356_v43, %v1573_v42  ;;  %v6566_v21 = vpop.f32.mrf.mxu0  ;;  %v1487_v43 = vpack.c.bf16 %v6371_v38, %v1465_v3 }
 0x1aa   : > { %7905 = vst [vmem:[#allocation28_spill] sm:$0xff] %v6566_v21 }
 0x1ab   : > { %1630 = vmatmul.bf16.gmra.mxu3 %v1490_v35  ;;  %v1728_v52 = vpop.f32.mrf.mxu2  ;;  %v7908_v35 = vpack.c.bf16 %v7907_v28, %v5630_v61 }
 0x1ac   : > { %2248 = vmatmul.bf16.gmra.mxu0 %v6366_v59  ;;  %v4808_v59 = vld [vmem:[#allocation8 + $0x1f0] sm:$0xff] }
 0x1b0   : > { %v1576_v34 = vpop.f32.mrf.mxu1 }
 0x1b1   : > { %v6573_v5 = vadd.f32 %v6382_v10, %v1576_v34  ;;  %v6575_v42 = vpop.f32.mrf.mxu0  ;;  %v1491_v10 = vpack.c.bf16 %v5961_v27, %v1473_v31 }
 0x1b2   : > { %7906 = vst [vmem:[#allocation27_spill] sm:$0xff] %v6575_v42 }
 0x1b3   : > { %1615 = vmatmul.bf16.gmra.mxu1 %v1487_v43  ;;  %v1730_v9 = vpop.f32.mrf.mxu2  ;;  %v4776_v43 = vld [vmem:[#allocation8 + $0xb0] sm:$0xff] }
 0x1b4   : > { %1962 = vmatpush.bf16.msrb.mxu3 %v4776_v43  ;;  %v7918_v43 = vld [vmem:[#allocation35_spill] sm:$0xff] }
 0x1b8   : > { %v1578_v14 = vpop.f32.mrf.mxu1  ;;  %2809 = vmatmul.bf16.gmra.mxu2 %v7908_v35 }
 0x1b9   : > { %v6584_v16 = vadd.f32 %v6420_v37, %v1578_v14  ;;  %v6586_v40 = vpop.f32.mrf.mxu0  ;;  %v1488_v37 = vpack.c.bf16 %v6432_v17, %v1467_v0  ;;  %v7911_v14 = vld [vmem:[#allocation49_spill] sm:$0xff] }
 0x1ba   : > { %7909 = vst [vmem:[#allocation36_spill] sm:$0xff] %v6586_v40  ;;  %v7912_v28 = vpack.c.bf16 %v7911_v14, %v5739_v46  ;;  %v4775_v0 = vld [vmem:[#allocation8 + $0xa8] sm:$0xff]  ;;  %v7953_v40 = vld [vmem:[#allocation50_spill] sm:$0xff] }
 0x1bb   : > { %1635 = vmatmul.bf16.gmra.mxu3 %v1491_v10  ;;  %v1733_v62 = vpop.f32.mrf.mxu2  ;;  %v7915_v10 = vld [vmem:[#allocation57_spill] sm:$0xff] }
 0x1bc   : > { %2253 = vmatmul.bf16.gmra.mxu0 %v6427_v45  ;;  %v7916_v20 = vpack.c.bf16 %v5904_v6, %v7915_v10  ;;  %1963 = vmatpush.bf16.msrb.mxu3 %v4775_v0  ;;  %v7921_v10 = vpack.c.bf16 %v5967_v11, %v5861_v24  ;;  %v4816_v11 = vld [vmem:[#allocation8 + $0x1b0] sm:$0xff] }
 0x1bd   : > { %v7956_v45 = vld [vmem:[#allocation62_spill] sm:$0xff] }
 0x1c0   : > { %v1581_v3 = vpop.f32.mrf.mxu1 }
 0x1c1   : > { %v6593_v22 = vadd.f32 %v6448_v1, %v1581_v3  ;;  %v6595_v34 = vpop.f32.mrf.mxu0  ;;  %v6608_v1 = vpack.c.bf16 %v6480_v18, %v6443_v26 }
 0x1c2   : > { %7910 = vst [vmem:[#allocation123_spill] sm:$0xff] %v6595_v34 }
 0x1c3   : > { %1620 = vmatmul.bf16.gmra.mxu1 %v1488_v37  ;;  %7914 = vst [vmem:[#allocation124_spill] sm:$0xff] %v6608_v1  ;;  %v1735_v26 = vpop.f32.mrf.mxu2 }
 0x1c8   : > { %v1583_v31 = vpop.f32.mrf.mxu1  ;;  %2814 = vmatmul.bf16.gmra.mxu2 %v7912_v28  ;;  %v4774_v28 = vld [vmem:[#allocation8 + $0xa0] sm:$0xff] }
 0x1c9   : > { %v6602_v35 = vadd.f32 %v6490_v63, %v1583_v31  ;;  %v6604_v53 = vpop.f32.mrf.mxu0  ;;  %v7919_v31 = vld [vmem:[#allocation47_spill] sm:$0xff]  ;;  %1964 = vmatpush.bf16.msrb.mxu3 %v4774_v28 }
 0x1ca   : > { %7913 = vst [vmem:[#allocation49_spill] sm:$0xff] %v6604_v53  ;;  %v7920_v14 = vpack.c.bf16 %v7918_v43, %v7919_v31  ;;  %v4817_v43 = vld [vmem:[#allocation8 + $0x1b8] sm:$0xff] }
 0x1cb   : > { %1640 = vmatmul.bf16.gmra.mxu3 %v7916_v20  ;;  %v1738_v31 = vpop.f32.mrf.mxu2  ;;  %3323 = vmatpush.bf16.msra.mxu0 %v4817_v43 }
 0x1cc   : > { %2258 = vmatmul.bf16.gmra.mxu0 %v6608_v1 }
 0x1cf   : > { %3324 = vmatpush.bf16.msra.mxu0 %v4816_v11  ;;  %v7930_v11 = vld [vmem:[#allocation42_spill] sm:$0xff] }
 0x1d0   : > { %v1586_v3 = vpop.f32.mrf.mxu1 }
 0x1d1   : > { %v6614_v37 = vadd.f32 %v1723_v4, %v1586_v3  ;;  %v6616_v63 = vpop.f32.mrf.mxu0  ;;  %v6630_v4 = vpack.c.bf16 %v7897_v55, %v7891_v7  ;;  %v4773_v3 = vld [vmem:[#allocation8 + $0x98] sm:$0xff]  ;;  %v4772_v55 = vld [vmem:[#allocation8 + $0x90] sm:$0xff] }
 0x1d2   : > { %7917 = vst [vmem:[#allocation57_spill] sm:$0xff] %v6616_v63  ;;  %1965 = vmatpush.bf16.msrb.mxu3 %v4773_v3  ;;  %v7928_v3 = vpack.c.bf16 %v6102_v25, %v6030_v60 }
 0x1d3   : > { %2501 = vmatmul.bf16.vlgmr.msrb.gmra.mxu1 %v7920_v14  ;;  %7923 = vst [vmem:[#allocation47_spill] sm:$0xff] %v6630_v4  ;;  %v1740_v63 = vpop.f32.mrf.mxu2 }
 0x1d6   : > { %1966 = vmatpush.bf16.msrb.mxu3 %v4772_v55  ;;  %v7933_v55 = vld [vmem:[#allocation30_spill] sm:$0xff] }
 0x1d8   : > { %v1588_v18 = vpop.f32.mrf.mxu1  ;;  %2819 = vmatmul.bf16.gmra.mxu2 %v7921_v10  ;;  %v7926_v10 = vld [vmem:[#allocation20_spill] sm:$0xff] }
 0x1d9   : > { %v6624_v20 = vadd.f32 %v1725_v36, %v1588_v18  ;;  %v6626_v0 = vpop.f32.mrf.mxu0  ;;  %v7925_v18 = vld [vmem:[#allocation26_spill] sm:$0xff] }
 0x1da   : > { %7922 = vst [vmem:[#allocation35_spill] sm:$0xff] %v6626_v0  ;;  %v7927_v7 = vpack.c.bf16 %v7925_v18, %v7926_v10  ;;  %v4815_v0 = vld [vmem:[#allocation8 + $0x1a8] sm:$0xff] }
 0x1db   : > { %1762 = vmatmul.bf16.vlgmr.msra.gmra.mxu3 %v6608_v1  ;;  %3325 = vmatpush.bf16.msra.mxu0 %v4815_v0  ;;  %v4771_v10 = vld [vmem:[#allocation8 + $0x88] sm:$0xff]  ;;  %v4813_v0 = vld [vmem:[#allocation8 + $0x198] sm:$0xff] }
 0x1dc   : > { %2263 = vmatmul.bf16.gmra.mxu0 %v6630_v4  ;;  %1967 = vmatpush.bf16.msrb.mxu3 %v4771_v10  ;;  %v7936_v10 = vpack.c.bf16 %v6179_v33, %v6136_v56  ;;  %v7952_v1 = vld [vmem:[#allocation55_spill] sm:$0xff] }
 0x1dd   : > { %v7954_v42 = vpack.c.bf16 %v7952_v1, %v7953_v40 }
 0x1e0   : > { %v1591_v14 = vpop.f32.mrf.mxu1 }
 0x1e1   : > { %v6634_v28 = vadd.f32 %v1728_v52, %v1591_v14  ;;  %v6636_v36 = vpop.f32.mrf.mxu0  ;;  %v4814_v52 = vld [vmem:[#allocation8 + $0x1a0] sm:$0xff] }
 0x1e2   : > { %7924 = vst [vmem:[#allocation125_spill] sm:$0xff] %v6636_v36  ;;  %v7931_v36 = vld [vmem:[#allocation44_spill] sm:$0xff]  ;;  %3326 = vmatpush.bf16.msra.mxu0 %v4814_v52 }
 0x1e3   : > { %2506 = vmatmul.bf16.gmra.mxu1 %v7927_v7  ;;  %v6650_v34 = vpack.c.bf16 %v7931_v36, %v7930_v11  ;;  %v4770_v36 = vld [vmem:[#allocation8 + $0x80] sm:$0xff]  ;;  %v4811_v11 = vld [vmem:[#allocation8 + $0x188] sm:$0xff] }
 0x1e4   : > { %1968 = vmatpush.bf16.msrb.mxu3 %v4770_v36 }
 0x1e5   : > { %7932 = vst [vmem:[#allocation20_spill] sm:$0xff] %v6650_v34 }
 0x1e6   : > { %3327 = vmatpush.bf16.msra.mxu0 %v4813_v0  ;;  %v4810_v0 = vld [vmem:[#allocation8 + $0x180] sm:$0xff] }
 0x1e8   : > { %v1593_v53 = vpop.f32.mrf.mxu1  ;;  %2824 = vmatmul.bf16.gmra.mxu2 %v7928_v3  ;;  %v7934_v3 = vpack.c.bf16 %v5626_v2, %v7933_v55 }
 0x1e9   : > { %v6644_v43 = vadd.f32 %v1730_v9, %v1593_v53  ;;  %v6646_v14 = vpop.f32.mrf.mxu0  ;;  %v4812_v9 = vld [vmem:[#allocation8 + $0x190] sm:$0xff]  ;;  %v1743_v53 = vpop.f32.mrf.mxu2 }
 0x1ea   : > { %7929 = vst [vmem:[#allocation26_spill] sm:$0xff] %v6646_v14  ;;  %3328 = vmatpush.bf16.msra.mxu0 %v4812_v9 }
 0x1eb   : > { %1767 = vmatmul.bf16.gmra.mxu3 %v6630_v4  ;;  %v7945_v4 = vld [vmem:[#allocation45_spill] sm:$0xff] }
 0x1ec   : > { %2268 = vmatmul.bf16.gmra.mxu0 %v6650_v34 }
 0x1ee   : > { %3329 = vmatpush.bf16.msra.mxu0 %v4811_v11  ;;  %v7939_v11 = vld [vmem:[#allocation37_spill] sm:$0xff] }
 0x1ef   : > { %v7940_v33 = vpack.c.bf16 %v5753_v8, %v7939_v11 }
 0x1f0   : > { %v1596_v25 = vpop.f32.mrf.mxu1 }
 0x1f1   : > { %v6654_v7 = vadd.f32 %v1733_v62, %v1596_v25  ;;  %v6659_v14 = vpop.f32.mrf.mxu0  ;;  %v4809_v25 = vld [vmem:[#allocation8 + $0x1f8] sm:$0xff]  ;;  %v1745_v55 = vpop.f32.mrf.mxu2 }
 0x1f2   : > { %7935 = vst [vmem:[#allocation42_spill] sm:$0xff] %v6659_v14  ;;  %3330 = vmatpush.bf16.msra.mxu0 %v4810_v0  ;;  %3025 = vmatpush.bf16.msra.mxu3 %v4809_v25  ;;  %v7942_v14 = vld [vmem:[#allocation97_spill] sm:$0xff]  ;;  %v7944_v25 = vld [vmem:[#allocation48_spill] sm:$0xff] }
 0x1f3   : > { %2511 = vmatmul.bf16.gmra.mxu1 %v7934_v3 }
 0x1f6   : > { %3026 = vmatpush.bf16.msra.mxu3 %v4808_v59 }
 0x1f8   : > { %v1598_v52 = vpop.f32.mrf.mxu1  ;;  %2829 = vmatmul.bf16.gmra.mxu2 %v7936_v10 }
 0x1f9   : > { %v6664_v62 = vadd.f32 %v1735_v26, %v1598_v52  ;;  %v6668_v9 = vpop.f32.mrf.mxu0  ;;  %v4825_v26 = vld [vmem:[#allocation8 + $0x238] sm:$0xff]  ;;  %v1748_v52 = vpop.f32.mrf.mxu2 }
 0x1fa   : > { %7937 = vst [vmem:[#allocation44_spill] sm:$0xff] %v6668_v9  ;;  %3621 = vmatpush.bf16.msra.mxu1 %v4825_v26  ;;  %v6682_v9 = vpack.c.bf16 %v7945_v4, %v7944_v25  ;;  %v7949_v26 = vld [vmem:[#allocation19_spill] sm:$0xff] }
 0x1fb   : > { %1772 = vmatmul.bf16.gmra.mxu3 %v6650_v34  ;;  %v7943_v34 = vpack.c.bf16 %v6274_v44, %v7942_v14 }
 0x1fc   : > { %2273 = vmatmul.bf16.gmra.mxu0 %v6017_v58  ;;  %7946 = vst [vmem:[#allocation97_spill] sm:$0xff] %v6682_v9 }
 0x200   : > { %v1601_v3 = vpop.f32.mrf.mxu1 }
 0x201   : > { %v6670_v36 = vadd.f32 %v1738_v31, %v1601_v3  ;;  %v6675_v10 = vpop.f32.mrf.mxu0  ;;  %v1750_v3 = vpop.f32.mrf.mxu2 }
 0x202   : > { %7941 = vst [vmem:[#allocation37_spill] sm:$0xff] %v6675_v10  ;;  %v7950_v10 = vld [vmem:[#allocation91_spill] sm:$0xff] }
 0x203   : > { %7938 = vst [vmem:[#allocation30_spill] sm:$0xff] %v6670_v36  ;;  %2516 = vmatmul.bf16.gmra.mxu1 %v7940_v33  ;;  %v1845_v44 = vsel %vm1815_vm4, %v7950_v10, %v7949_v26 }
 0x208   : > { %v1603_v0 = vpop.f32.mrf.mxu1  ;;  %2834 = vmatmul.bf16.gmra.mxu2 %v7943_v34 }
 0x209   : > { %v6684_v31 = vadd.f32 %v1740_v63, %v1603_v0  ;;  %v6694_v34 = vpop.f32.mrf.mxu0  ;;  %v7955_v63 = vld [vmem:[#allocation18_spill] sm:$0xff]  ;;  %v1753_v48 = vpop.f32.mrf.mxu2 }
 0x20a   : > { %7951 = vst [vmem:[#allocation19_spill] sm:$0xff] %v6694_v34  ;;  %v1849_v0 = vmul.f32 %v7955_v63, %v1845_v44  ;;  %v7961_v34 = vld [vmem:[#allocation21_spill] sm:$0xff] }
 0x20b   : > { %7947 = vst [vmem:[#allocation48_spill] sm:$0xff] %v6684_v31  ;;  %1777 = vmatmul.bf16.gmra.mxu3 %v6017_v58  ;;  %v7962_v40 = vpack.c.bf16 %v7925_v18, %v7961_v34  ;;  %v7968_v18 = vpack.c.bf16 %v6401_v13, %v6375_v54  ;;  %v7970_v34 = vld [vmem:[#allocation24_spill] sm:$0xff]  ;;  %v7977_v31 = vld [vmem:[#allocation83_spill] sm:$0xff]  ;;  %v7978_v13 = vld [vmem:[#allocation78_spill] sm:$0xff] }
 0x20c   : > { %2278 = vmatmul.bf16.gmra.mxu0 %v6682_v9  ;;  %v7957_v9 = vld [vmem:[#allocation106_spill] sm:$0xff] }
 0x20d   : > { %v7958_v21 = vpack.c.bf16 %v7956_v45, %v7957_v9  ;;  %v7964_v45 = vld [vmem:[#allocation71_spill] sm:$0xff] }
 0x210   : > { %v1606_v11 = vpop.f32.mrf.mxu1 }
 0x211   : > { %v6688_v33 = vadd.f32 %v1743_v53, %v1606_v11  ;;  %v1880_v11 = vpack.c.bf16 %v1849_v0, %v7950_v10  ;;  %v1755_v0 = vpop.f32.mrf.mxu2 }
 0x213   : > { %7948 = vst [vmem:[#allocation45_spill] sm:$0xff] %v6688_v33  ;;  %2521 = vmatmul.bf16.gmra.mxu1 %v7954_v42  ;;  %v6706_v33 = vpop.f32.mrf.mxu0 }
 0x214   : > { %7960 = vst [vmem:[#allocation50_spill] sm:$0xff] %v6706_v33 }
 0x218   : > { %v1608_v58 = vpop.f32.mrf.mxu1  ;;  %2839 = vmatmul.bf16.gmra.mxu2 %v7958_v21  ;;  %v7965_v21 = vld [vmem:[#allocation63_spill] sm:$0xff] }
 0x219   : > { %v6703_v53 = vadd.f32 %v1745_v55, %v1608_v58  ;;  %v7966_v58 = vpack.c.bf16 %v7964_v45, %v7965_v21  ;;  %v4824_v55 = vld [vmem:[#allocation8 + $0x230] sm:$0xff] }
 0x21a   : > { %3622 = vmatpush.bf16.msra.mxu1 %v4824_v55 }
 0x21b   : > { %7959 = vst [vmem:[#allocation55_spill] sm:$0xff] %v6703_v53  ;;  %1969 = vmatmul.bf16.vlgmr.msrb.gmra.mxu3 %v1880_v11  ;;  %v6716_v11 = vpop.f32.mrf.mxu0 }
 0x21c   : > { %3331 = vmatmul.bf16.vlgmr.msra.gmra.mxu0 %v7962_v40  ;;  %7967 = vst [vmem:[#allocation62_spill] sm:$0xff] %v6716_v11 }
 0x21e   : > { %v1626_v42 = vpop.f32.mrf.mxu3 }
 0x220   : > { %v1611_v44 = vpop.f32.mrf.mxu1 }
 0x221   : > { %v6711_v63 = vadd.f32 %v1748_v52, %v1611_v44  ;;  %v7971_v52 = vld [vmem:[#allocation23_spill] sm:$0xff] }
 0x222   : > { %v7972_v40 = vpack.c.bf16 %v7970_v34, %v7971_v52  ;;  %v7973_v44 = vld [vmem:[#allocation31_spill] sm:$0xff]  ;;  %v7981_v52 = vld [vmem:[#allocation117_spill] sm:$0xff] }
 0x223   : > { %7963 = vst [vmem:[#allocation18_spill] sm:$0xff] %v6711_v63  ;;  %2526 = vmatmul.bf16.gmra.mxu1 %v7966_v58  ;;  %v7974_v21 = vpack.c.bf16 %v5626_v2, %v7973_v44  ;;  %v1758_v58 = vpop.f32.mrf.mxu2  ;;  %v6729_v63 = vpop.f32.mrf.mxu0  ;;  %v7980_v34 = vld [vmem:[#allocation119_spill] sm:$0xff] }
 0x224   : > { %7975 = vst [vmem:[#allocation21_spill] sm:$0xff] %v6729_v63 }
 0x226   : > { %v1628_v10 = vpop.f32.mrf.mxu3 }
 0x228   : > { %v1613_v33 = vpop.f32.mrf.mxu1  ;;  %2844 = vmatmul.bf16.gmra.mxu2 %v7968_v18  ;;  %v7979_v18 = vpack.c.bf16 %v7977_v31, %v7978_v13 }
 0x229   : > { %v6721_v59 = vadd.f32 %v1750_v3, %v1613_v33 }
 0x22b   : > { %7969 = vst [vmem:[#allocation106_spill] sm:$0xff] %v6721_v59  ;;  %1974 = vmatmul.bf16.gmra.mxu3 %v7972_v40  ;;  %v1760_v33 = vpop.f32.mrf.mxu2  ;;  %v7982_v40 = vpack.c.bf16 %v7980_v34, %v7981_v52  ;;  %v6741_v44 = vpop.f32.mrf.mxu0 }
 0x22c   : > { %3336 = vmatmul.bf16.gmra.mxu0 %v7974_v21  ;;  %7984 = vst [vmem:[#allocation24_spill] sm:$0xff] %v6741_v44  ;;  %v7985_v21 = vld [vmem:[#allocation32_spill] sm:$0xff]  ;;  %v4823_v44 = vld [vmem:[#allocation8 + $0x228] sm:$0xff] }
 0x22d   : > { %v7986_v63 = vpack.c.bf16 %v7985_v21, %v7903_v57  ;;  %3623 = vmatpush.bf16.msra.mxu1 %v4823_v44 }
 0x22e   : > { %v1631_v55 = vpop.f32.mrf.mxu3 }
 0x230   : > { %v1616_v11 = vpop.f32.mrf.mxu1 }
 0x231   : > { %v6731_v53 = vadd.f32 %v1753_v48, %v1616_v11  ;;  %v4807_v48 = vld [vmem:[#allocation8 + $0x1e8] sm:$0xff]  ;;  %v7987_v11 = vld [vmem:[#allocation38_spill] sm:$0xff] }
 0x232   : > { %v7988_v13 = vpack.c.bf16 %v5753_v8, %v7987_v11  ;;  %3027 = vmatpush.bf16.msra.mxu3 %v4807_v48  ;;  %v7995_v8 = vpack.c.bf16 %v6516_v39, %v6507_v49  ;;  %v8004_v39 = vld [vmem:[#allocation101_spill] sm:$0xff] }
 0x233   : > { %7976 = vst [vmem:[#allocation71_spill] sm:$0xff] %v6731_v53  ;;  %2531 = vmatmul.bf16.gmra.mxu1 %v7979_v18  ;;  %v6751_v34 = vpop.f32.mrf.mxu2 }
 0x234   : > { %7990 = vst [vmem:[#allocation31_spill] sm:$0xff] %v6751_v34  ;;  %v4806_v34 = vld [vmem:[#allocation8 + $0x1e0] sm:$0xff] }
 0x236   : > { %v1633_v3 = vpop.f32.mrf.mxu3  ;;  %3028 = vmatpush.bf16.msra.mxu3 %v4806_v34  ;;  %v8021_v34 = vld [vmem:[#allocation60_spill] sm:$0xff] }
 0x238   : > { %v1618_v59 = vpop.f32.mrf.mxu1  ;;  %2849 = vmatmul.bf16.gmra.mxu2 %v7982_v40 }
 0x239   : > { %v6739_v2 = vadd.f32 %v1755_v0, %v1618_v59  ;;  %v7991_v0 = vld [vmem:[#allocation96_spill] sm:$0xff]  ;;  %v7992_v59 = vld [vmem:[#allocation87_spill] sm:$0xff] }
 0x23a   : > { %v7993_v40 = vpack.c.bf16 %v7991_v0, %v7992_v59 }
 0x23b   : > { %7983 = vst [vmem:[#allocation63_spill] sm:$0xff] %v6739_v2  ;;  %1979 = vmatmul.bf16.gmra.mxu3 %v7986_v63  ;;  %v6756_v2 = vpop.f32.mrf.mxu0  ;;  %v6768_v11 = vpop.f32.mrf.mxu2 }
 0x23c   : > { %3341 = vmatmul.bf16.gmra.mxu0 %v7988_v13  ;;  %7994 = vst [vmem:[#allocation83_spill] sm:$0xff] %v6756_v2  ;;  %v8000_v13 = vld [vmem:[#allocation51_spill] sm:$0xff] }
 0x23d   : > { %7999 = vst [vmem:[#allocation119_spill] sm:$0xff] %v6768_v11  ;;  %v8001_v59 = vpack.c.bf16 %v7952_v1, %v8000_v13  ;;  %v8009_v1 = vld [vmem:[#allocation58_spill] sm:$0xff]  ;;  %v8010_v13 = vld [vmem:[#allocation52_spill] sm:$0xff] }
 0x23e   : > { %v1636_v18 = vpop.f32.mrf.mxu3 }
 0x240   : > { %v1621_v53 = vpop.f32.mrf.mxu1 }
 0x241   : > { %v6749_v36 = vadd.f32 %v1758_v58, %v1621_v53  ;;  %v7997_v53 = vld [vmem:[#allocation39_spill] sm:$0xff] }
 0x242   : > { %v7998_v58 = vpack.c.bf16 %v7997_v53, %v5630_v61 }
 0x243   : > { %7989 = vst [vmem:[#allocation23_spill] sm:$0xff] %v6749_v36  ;;  %2536 = vmatmul.bf16.gmra.mxu1 %v7993_v40  ;;  %v6773_v44 = vpop.f32.mrf.mxu0 }
 0x244   : > { %8002 = vst [vmem:[#allocation117_spill] sm:$0xff] %v6773_v44  ;;  %v8012_v44 = vld [vmem:[#allocation53_spill] sm:$0xff] }
 0x245   : > { %v8013_v11 = vpack.c.bf16 %v8012_v44, %v5739_v46 }
 0x246   : > { %v6758_v63 = vpop.f32.mrf.mxu3 }
 0x248   : > { %v1623_v21 = vpop.f32.mrf.mxu1  ;;  %2854 = vmatmul.bf16.gmra.mxu2 %v7995_v8 }
 0x249   : > { %v6763_v48 = vadd.f32 %v1760_v33, %v1623_v21  ;;  %v8005_v33 = vpack.c.bf16 %v6304_v47, %v8004_v39  ;;  %v6782_v21 = vpop.f32.mrf.mxu2  ;;  %v8014_v39 = vld [vmem:[#allocation64_spill] sm:$0xff] }
 0x24a   : > { %8006 = vst [vmem:[#allocation38_spill] sm:$0xff] %v6782_v21 }
 0x24b   : > { %7996 = vst [vmem:[#allocation78_spill] sm:$0xff] %v6763_v48  ;;  %1984 = vmatmul.bf16.gmra.mxu3 %v7998_v58  ;;  %v6786_v53 = vpop.f32.mrf.mxu0 }
 0x24c   : > { %3346 = vmatmul.bf16.gmra.mxu0 %v8001_v59  ;;  %8007 = vst [vmem:[#allocation96_spill] sm:$0xff] %v6786_v53  ;;  %v8011_v59 = vpack.c.bf16 %v8009_v1, %v8010_v13  ;;  %v8018_v1 = vld [vmem:[#allocation107_spill] sm:$0xff] }
 0x24e   : > { %v6775_v40 = vpop.f32.mrf.mxu3 }
 0x250   : > { %v6777_v2 = vpop.f32.mrf.mxu1 }
 0x251   : > { %8003 = vst [vmem:[#allocation32_spill] sm:$0xff] %v6777_v2  ;;  %v6801_v53 = vpop.f32.mrf.mxu2 }
 0x252   : > { %8016 = vst [vmem:[#allocation39_spill] sm:$0xff] %v6801_v53 }
 0x253   : > { %2541 = vmatmul.bf16.gmra.mxu1 %v8005_v33  ;;  %v8015_v33 = vpack.c.bf16 %v7964_v45, %v8014_v39  ;;  %v6805_v48 = vpop.f32.mrf.mxu0 }
 0x254   : > { %8017 = vst [vmem:[#allocation51_spill] sm:$0xff] %v6805_v48 }
 0x256   : > { %v6784_v8 = vpop.f32.mrf.mxu3 }
 0x258   : > { %v6788_v58 = vpop.f32.mrf.mxu1  ;;  %2859 = vmatmul.bf16.gmra.mxu2 %v8011_v59  ;;  %v8019_v59 = vpack.c.bf16 %v6371_v38, %v8018_v1  ;;  %v8028_v1 = vld [vmem:[#allocation79_spill] sm:$0xff] }
 0x259   : > { %8008 = vst [vmem:[#allocation87_spill] sm:$0xff] %v6788_v58  ;;  %v6817_v39 = vpop.f32.mrf.mxu2 }
 0x25a   : > { %8024 = vst [vmem:[#allocation58_spill] sm:$0xff] %v6817_v39 }
 0x25b   : > { %1989 = vmatmul.bf16.gmra.mxu3 %v8013_v11  ;;  %v4822_v11 = vld [vmem:[#allocation8 + $0x220] sm:$0xff]  ;;  %v6822_v53 = vpop.f32.mrf.mxu0 }
 0x25c   : > { %3351 = vmatmul.bf16.gmra.mxu0 %v8015_v33  ;;  %3624 = vmatpush.bf16.msra.mxu1 %v4822_v11  ;;  %v8025_v33 = vld [vmem:[#allocation65_spill] sm:$0xff]  ;;  %8027 = vst [vmem:[#allocation52_spill] sm:$0xff] %v6822_v53 }
 0x25d   : > { %v8026_v48 = vpack.c.bf16 %v8025_v33, %v5861_v24 }
 0x25e   : > { %v1763_v21 = vpop.f32.mrf.mxu3 }
 0x25f   : > { %v6799_v2 = vadd.f32 %v1763_v21, %v1626_v42  ;;  %v8022_v42 = vld [vmem:[#allocation59_spill] sm:$0xff] }
 0x260   : > { %v6803_v58 = vpop.f32.mrf.mxu1  ;;  %v8023_v21 = vpack.c.bf16 %v8021_v34, %v8022_v42  ;;  %v8030_v34 = vld [vmem:[#allocation112_spill] sm:$0xff] }
 0x261   : > { %v6834_v39 = vpop.f32.mrf.mxu2 }
 0x262   : > { %8032 = vst [vmem:[#allocation53_spill] sm:$0xff] %v6834_v39  ;;  %v8040_v39 = vld [vmem:[#allocation88_spill] sm:$0xff] }
 0x263   : > { %2546 = vmatmul.bf16.gmra.mxu1 %v8019_v59  ;;  %v8029_v59 = vpack.c.bf16 %v7977_v31, %v8028_v1  ;;  %v8035_v31 = vld [vmem:[#allocation76_spill] sm:$0xff]  ;;  %v8036_v1 = vld [vmem:[#allocation77_spill] sm:$0xff] }
 0x266   : > { %v1765_v44 = vpop.f32.mrf.mxu3 }
 0x267   : > { %v6810_v36 = vadd.f32 %v1765_v44, %v1628_v10 }
 0x268   : > { %v6812_v45 = vpop.f32.mrf.mxu1  ;;  %2864 = vmatmul.bf16.gmra.mxu2 %v8023_v21  ;;  %v8031_v21 = vpack.c.bf16 %v6432_v17, %v8030_v34 }
 0x269   : > { %8020 = vst [vmem:[#allocation101_spill] sm:$0xff] %v6812_v45  ;;  %v6836_v45 = vpop.f32.mrf.mxu0 }
 0x26a   : > { %8033 = vst [vmem:[#allocation64_spill] sm:$0xff] %v6836_v45  ;;  %v8041_v45 = vpack.c.bf16 %v7991_v0, %v8040_v39  ;;  %v8046_v0 = vpack.c.bf16 %v6497_v23, %v6466_v30  ;;  %v4821_v39 = vld [vmem:[#allocation8 + $0x218] sm:$0xff] }
 0x26b   : > { %1994 = vmatmul.bf16.gmra.mxu3 %v8026_v48  ;;  %3625 = vmatpush.bf16.msra.mxu1 %v4821_v39 }
 0x26c   : > { %3356 = vmatmul.bf16.gmra.mxu0 %v8029_v59  ;;  %v8037_v59 = vpack.c.bf16 %v8035_v31, %v8036_v1 }
 0x26e   : > { %v1768_v10 = vpop.f32.mrf.mxu3 }
 0x26f   : > { %v6827_v11 = vadd.f32 %v1768_v10, %v1631_v55  ;;  %v6846_v55 = vrot.slane %v7945_v4, 1  ;;  %v8038_v10 = vld [vmem:[#allocation80_spill] sm:$0xff] }
 0x270   : > { %v6829_v44 = vpop.f32.mrf.mxu1  ;;  %v8039_v34 = vpack.c.bf16 %v8038_v10, %v6030_v60  ;;  %v8045_v10 = vld [vmem:[#allocation94_spill] sm:$0xff] }
 0x271   : > { %v2677_v4 = vsel %vm1815_vm4, %v6846_v55, %v7949_v26  ;;  %v6862_v31 = vpop.f32.mrf.mxu0 }
 0x272   : > { %8043 = vst [vmem:[#allocation59_spill] sm:$0xff] %v6862_v31 }
 0x273   : > { %2551 = vmatmul.bf16.gmra.mxu1 %v8031_v21  ;;  %v4805_v21 = vld [vmem:[#allocation8 + $0x1d8] sm:$0xff] }
 0x274   : > { %3029 = vmatpush.bf16.msra.mxu3 %v4805_v21 }
 0x276   : > { %v1770_v48 = vpop.f32.mrf.mxu3 }
 0x277   : > { %v6838_v33 = vadd.f32 %v1770_v48, %v1633_v3  ;;  %v6854_v3 = vpop.f32.mrf.mxu2 }
 0x278   : > { %v6840_v53 = vpop.f32.mrf.mxu1  ;;  %2869 = vmatmul.bf16.gmra.mxu2 %v8037_v59  ;;  %8042 = vst [vmem:[#allocation60_spill] sm:$0xff] %v6854_v3 }
 0x279   : > { %8034 = vst [vmem:[#allocation107_spill] sm:$0xff] %v6840_v53  ;;  %v6885_v30 = vpop.f32.mrf.mxu0 }
 0x27a   : > { %8050 = vst [vmem:[#allocation76_spill] sm:$0xff] %v6885_v30 }
 0x27b   : > { %1999 = vmatmul.bf16.gmra.mxu3 %v8039_v34  ;;  %v2709_v34 = vmul.f32 %v8045_v10, %v2677_v4 }
 0x27c   : > { %3361 = vmatmul.bf16.gmra.mxu0 %v8041_v45  ;;  %v8047_v45 = vrot.slane %v7944_v25, 1 }
 0x27e   : > { %v1773_v48 = vpop.f32.mrf.mxu3 }
 0x27f   : > { %v6856_v53 = vadd.f32 %v1773_v48, %v1636_v18  ;;  %v6875_v18 = vsel %vm1815_vm4, %v8047_v45, %v6846_v55  ;;  %v6881_v4 = vpop.f32.mrf.mxu2  ;;  %v8053_v45 = vld [vmem:[#allocation102_spill] sm:$0xff] }
 0x280   : > { %v6864_v59 = vpop.f32.mrf.mxu1  ;;  %v2725_v21 = vpack.c.bf16 %v2709_v34, %v6875_v18  ;;  %8048 = vst [vmem:[#allocation79_spill] sm:$0xff] %v6881_v4  ;;  %v8054_v39 = vpack.c.bf16 %v6304_v47, %v8053_v45  ;;  %v8059_v45 = vld [vmem:[#allocation103_spill] sm:$0xff] }
 0x281   : > { %8044 = vst [vmem:[#allocation65_spill] sm:$0xff] %v6864_v59  ;;  %v6901_v30 = vpop.f32.mrf.mxu0 }
 0x282   : > { %8057 = vst [vmem:[#allocation80_spill] sm:$0xff] %v6901_v30 }
 0x283   : > { %2556 = vmatmul.bf16.gmra.mxu1 %v8046_v0  ;;  %v8051_v0 = vld [vmem:[#allocation89_spill] sm:$0xff] }
 0x284   : > { %v8052_v3 = vpack.c.bf16 %v8051_v0, %v6136_v56 }
 0x286   : > { %v1775_v26 = vpop.f32.mrf.mxu3 }
 0x287   : > { %v6879_v48 = vadd.f32 %v1775_v26, %v6758_v63  ;;  %v8056_v26 = vpack.c.bf16 %v6532_v29, %v6521_v51  ;;  %v8063_v51 = vld [vmem:[#allocation118_spill] sm:$0xff] }
 0x288   : > { %v6883_v31 = vpop.f32.mrf.mxu1  ;;  %2874 = vmatmul.bf16.gmra.mxu2 %v2725_v21  ;;  %v4833_v21 = vld [vmem:[#allocation9 + $0x38] sm:$0xff] }
 0x289   : > { %8049 = vst [vmem:[#allocation112_spill] sm:$0xff] %v6883_v31  ;;  %3894 = vmatpush.bf16.msra.mxu2 %v4833_v21  ;;  %v6916_v21 = vpop.f32.mrf.mxu0 }
 0x28a   : > { %8065 = vst [vmem:[#allocation94_spill] sm:$0xff] %v6916_v21 }
 0x28b   : > { %2004 = vmatmul.bf16.gmra.mxu3 %v8052_v3 }
 0x28c   : > { %3366 = vmatmul.bf16.gmra.mxu0 %v8054_v39  ;;  %v8061_v39 = vld [vmem:[#allocation108_spill] sm:$0xff] }
 0x28e   : > { %v1778_v59 = vpop.f32.mrf.mxu3 }
 0x28f   : > { %v6894_v34 = vadd.f32 %v1778_v59, %v6775_v40  ;;  %v8060_v40 = vpack.c.bf16 %v8059_v45, %v7942_v14  ;;  %v4804_v59 = vld [vmem:[#allocation8 + $0x1d0] sm:$0xff] }
 0x290   : > { %v6896_v63 = vpop.f32.mrf.mxu1  ;;  %3030 = vmatpush.bf16.msra.mxu3 %v4804_v59 }
 0x291   : > { %8055 = vst [vmem:[#allocation77_spill] sm:$0xff] %v6896_v63  ;;  %v8062_v63 = vpack.c.bf16 %v6371_v38, %v8061_v39  ;;  %v8069_v39 = vld [vmem:[#allocation109_spill] sm:$0xff] }
 0x293   : > { %2561 = vmatmul.bf16.gmra.mxu1 %v8056_v26  ;;  %v8064_v26 = vld [vmem:[#allocation93_spill] sm:$0xff] }
 0x294   : > { %v1704_v4 = vadd.f32 %v8064_v26, %v8063_v51 }
 0x296   : > { %v1780_v0 = vpop.f32.mrf.mxu3 }
 0x297   : > { %v6904_v3 = vadd.f32 %v1780_v0, %v6784_v8 }
 0x298   : > { %v6906_v47 = vpop.f32.mrf.mxu1 }
 0x299   : > { %8058 = vst [vmem:[#allocation88_spill] sm:$0xff] %v6906_v47  ;;  %v8066_v47 = vld [vmem:[#allocation61_spill] sm:$0xff] }
 0x29a   : > { %v8067_v45 = vpack.c.bf16 %v5961_v27, %v8066_v47  ;;  %v4819_v47 = vld [vmem:[#allocation8 + $0x208] sm:$0xff] }
 0x29b   : > { %2009 = vmatmul.bf16.gmra.mxu3 %v8060_v40  ;;  %v4820_v40 = vld [vmem:[#allocation8 + $0x210] sm:$0xff] }
 0x29c   : > { %3371 = vmatmul.bf16.gmra.mxu0 %v8062_v63  ;;  %3626 = vmatpush.bf16.msra.mxu1 %v4820_v40  ;;  %v6928_v63 = vpop.f32.mrf.mxu0 }
 0x29d   : > { %8068 = vst [vmem:[#allocation89_spill] sm:$0xff] %v6928_v63  ;;  %v8074_v63 = vld [vmem:[#allocation75_spill] sm:$0xff] }
 0x29e   : > { %v1970_v30 = vpop.f32.mrf.mxu3  ;;  %v8075_v21 = vpack.c.bf16 %v5904_v6, %v8074_v63  ;;  %v8080_v63 = vpack.c.bf16 %v6497_v23, %v6470_v32 }
 0x29f   : > { %v6918_v8 = vadd.f32 %v1970_v30, %v1704_v4  ;;  %v8070_v4 = vpack.c.bf16 %v8069_v39, %v7957_v9  ;;  %v8071_v30 = vld [vmem:[#allocation113_spill] sm:$0xff]  ;;  %v4832_v39 = vld [vmem:[#allocation9 + $0x30] sm:$0xff] }
 0x2a0   : > { %v6920_v0 = vpop.f32.mrf.mxu1  ;;  %v8072_v51 = vpack.c.bf16 %v6432_v17, %v8071_v30  ;;  %3627 = vmatpush.bf16.msra.mxu1 %v4819_v47  ;;  %3895 = vmatpush.bf16.msra.mxu2 %v4832_v39  ;;  %v4803_v47 = vld [vmem:[#allocation8 + $0x1c8] sm:$0xff] }
 0x2a1   : > { %3031 = vmatpush.bf16.msra.mxu3 %v4803_v47 }
 0x2a3   : > { %2566 = vmatmul.bf16.gmra.mxu1 %v8067_v45 }
 0x2a4   : > { %v6943_v40 = vpop.f32.mrf.mxu0 }
 0x2a5   : > { %8073 = vst [vmem:[#allocation102_spill] sm:$0xff] %v6943_v40 }
 0x2a6   : > { %v1972_v31 = vpop.f32.mrf.mxu3 }
 0x2a7   : > { %v6926_v38 = vadd.f32 %v1972_v31, %v6510_v19  ;;  %v4818_v31 = vld [vmem:[#allocation8 + $0x200] sm:$0xff] }
 0x2a8   : > { %v6930_v59 = vpop.f32.mrf.mxu1  ;;  %3628 = vmatpush.bf16.msra.mxu1 %v4818_v31  ;;  %v8082_v31 = vld [vmem:[#allocation56_spill] sm:$0xff] }
 0x2ab   : > { %2014 = vmatmul.bf16.gmra.mxu3 %v8070_v4 }
 0x2ac   : > { %3376 = vmatmul.bf16.gmra.mxu0 %v8072_v51 }
 0x2ae   : > { %v1975_v26 = vpop.f32.mrf.mxu3 }
 0x2af   : > { %v6939_v45 = vadd.f32 %v1975_v26, %v6554_v15  ;;  %v8077_v15 = vld [vmem:[#allocation114_spill] sm:$0xff]  ;;  %v6956_v26 = vpop.f32.mrf.mxu0 }
 0x2b0   : > { %v6941_v19 = vpop.f32.mrf.mxu1  ;;  %v8078_v51 = vpack.c.bf16 %v8077_v15, %v6375_v54  ;;  %8079 = vst [vmem:[#allocation108_spill] sm:$0xff] %v6956_v26 }
 0x2b3   : > { %2571 = vmatmul.bf16.gmra.mxu1 %v8075_v21  ;;  %v8081_v21 = vld [vmem:[#allocation95_spill] sm:$0xff] }
 0x2b4   : > { %v2410_v39 = vmul.f32 %v8082_v31, %v8081_v21  ;;  %v8087_v21 = vld [vmem:[#allocation120_spill] sm:$0xff] }
 0x2b6   : > { %v1977_v17 = vpop.f32.mrf.mxu3 }
 0x2b7   : > { %v6949_v4 = vadd.f32 %v1977_v17, %v6564_v12  ;;  %v8083_v12 = vld [vmem:[#allocation46_spill] sm:$0xff]  ;;  %v8084_v17 = vrot.slane %v7944_v25, 7  ;;  %v6973_v23 = vpop.f32.mrf.mxu0  ;;  %v8088_v25 = vpack.c.bf16 %v8087_v21, %v7981_v52 }
 0x2b8   : > { %v6951_v30 = vpop.f32.mrf.mxu1 }
 0x2b9   : > { %8076 = vst [vmem:[#allocation103_spill] sm:$0xff] %v6951_v30  ;;  %v2348_v30 = vsel %vm1412_vm5, %v8084_v17, %v8083_v12 }
 0x2ba   : > { %v2427_v26 = vpack.c.bf16 %v2348_v30, %v2410_v39 }
 0x2bb   : > { %2019 = vmatmul.bf16.gmra.mxu3 %v8078_v51 }
 0x2bc   : > { %3381 = vmatmul.bf16.gmra.mxu0 %v8080_v63 }
 0x2be   : > { %v1980_v40 = vpop.f32.mrf.mxu3 }
 0x2bf   : > { %v6969_v15 = vadd.f32 %v1980_v40, %v6573_v5  ;;  %v8089_v5 = vpack.c.bf16 %v6532_v29, %v6526_v50 }
 0x2c0   : > { %v6971_v51 = vpop.f32.mrf.mxu1 }
 0x2c1   : > { %8085 = vst [vmem:[#allocation118_spill] sm:$0xff] %v6971_v51 }
 0x2c3   : > { %2576 = vmatmul.bf16.gmra.mxu1 %v2427_v26  ;;  %v6989_v26 = vpop.f32.mrf.mxu0 }
 0x2c6   : > { %v1982_v32 = vpop.f32.mrf.mxu3 }
 0x2c7   : > { %v6976_v63 = vadd.f32 %v1982_v32, %v6584_v16  ;;  %v8091_v16 = vld [vmem:[#allocation29_spill] sm:$0xff] }
 0x2c8   : > { %v6978_v47 = vpop.f32.mrf.mxu1  ;;  %v8092_v32 = vpack.c.bf16 %v8091_v16, %v7903_v57  ;;  %v8099_v16 = vld [vmem:[#allocation40_spill] sm:$0xff] }
 0x2c9   : > { %8086 = vst [vmem:[#allocation93_spill] sm:$0xff] %v6978_v47  ;;  %v4831_v47 = vld [vmem:[#allocation9 + $0x28] sm:$0xff] }
 0x2ca   : > { %3896 = vmatpush.bf16.msra.mxu2 %v4831_v47 }
 0x2cb   : > { %2024 = vmatmul.bf16.gmra.mxu3 %v8088_v25  ;;  %v7001_v29 = vpop.f32.mrf.mxu0 }
 0x2cc   : > { %3386 = vmatmul.bf16.gmra.mxu0 %v8089_v5 }
 0x2ce   : > { %v1985_v40 = vpop.f32.mrf.mxu3 }
 0x2cf   : > { %v6987_v39 = vadd.f32 %v1985_v40, %v6593_v22  ;;  %v8094_v22 = vld [vmem:[#allocation22_spill] sm:$0xff]  ;;  %v4802_v40 = vld [vmem:[#allocation8 + $0x1c0] sm:$0xff] }
 0x2d0   : > { %v6991_v17 = vpop.f32.mrf.mxu1  ;;  %v8095_v5 = vpack.c.bf16 %v8094_v22, %v6507_v49  ;;  %3032 = vmatpush.bf16.msra.mxu3 %v4802_v40 }
 0x2d1   : > { %8090 = vst [vmem:[#allocation61_spill] sm:$0xff] %v6991_v17  ;;  %v8096_v17 = vld [vmem:[#allocation66_spill] sm:$0xff] }
 0x2d2   : > { %v8097_v51 = vpack.c.bf16 %v5961_v27, %v8096_v17  ;;  %v8102_v27 = vld [vmem:[#allocation72_spill] sm:$0xff] }
 0x2d3   : > { %3629 = vmatmul.bf16.vlgmr.msra.gmra.mxu1 %v8092_v32  ;;  %v8100_v32 = vpack.c.bf16 %v8099_v16, %v5630_v61 }
 0x2d6   : > { %v1987_v21 = vpop.f32.mrf.mxu3 }
 0x2d7   : > { %v6997_v25 = vadd.f32 %v1987_v21, %v6602_v35  ;;  %v7017_v21 = vpop.f32.mrf.mxu0 }
 0x2d8   : > { %v6999_v50 = vpop.f32.mrf.mxu1 }
 0x2d9   : > { %8093 = vst [vmem:[#allocation109_spill] sm:$0xff] %v6999_v50 }
 0x2db   : > { %2029 = vmatmul.bf16.gmra.mxu3 %v8095_v5 }
 0x2dc   : > { %3391 = vmatmul.bf16.gmra.mxu0 %v8097_v51  ;;  %v8103_v51 = vpack.c.bf16 %v8102_v27, %v8010_v13 }
 0x2de   : > { %v1990_v57 = vpop.f32.mrf.mxu3 }
 0x2df   : > { %v7010_v47 = vadd.f32 %v1990_v57, %v6614_v37  ;;  %v8104_v37 = vld [vmem:[#allocation85_spill] sm:$0xff]  ;;  %v7030_v40 = vpop.f32.mrf.mxu0 }
 0x2e0   : > { %v7012_v35 = vpop.f32.mrf.mxu1  ;;  %v8105_v17 = vpack.c.bf16 %v5904_v6, %v8104_v37 }
 0x2e1   : > { %8098 = vst [vmem:[#allocation113_spill] sm:$0xff] %v7012_v35 }
 0x2e3   : > { %3634 = vmatmul.bf16.gmra.mxu1 %v8100_v32 }
 0x2e6   : > { %v1992_v22 = vpop.f32.mrf.mxu3 }
 0x2e7   : > { %v7020_v5 = vadd.f32 %v1992_v22, %v6624_v20  ;;  %v8107_v20 = vld [vmem:[#allocation67_spill] sm:$0xff]  ;;  %v4830_v22 = vld [vmem:[#allocation9 + $0x20] sm:$0xff]  ;;  %v7043_v6 = vpop.f32.mrf.mxu0 }
 0x2e8   : > { %v7022_v50 = vpop.f32.mrf.mxu1  ;;  %v8108_v32 = vpack.c.bf16 %v8107_v20, %v5739_v46  ;;  %3897 = vmatpush.bf16.msra.mxu2 %v4830_v22 }
 0x2e9   : > { %8101 = vst [vmem:[#allocation75_spill] sm:$0xff] %v7022_v50 }
 0x2eb   : > { %2034 = vmatmul.bf16.gmra.mxu3 %v8103_v51 }
 0x2ec   : > { %3396 = vmatmul.bf16.gmra.mxu0 %v8105_v17  ;;  %v8110_v17 = vld [vmem:[#allocation100_spill] sm:$0xff] }
 0x2ed   : > { %v3256_v50 = vpack.c.bf16 %v2348_v30, %v8110_v17 }
 0x2ee   : > { %v1995_v61 = vpop.f32.mrf.mxu3 }
 0x2ef   : > { %v7033_v57 = vadd.f32 %v1995_v61, %v6634_v28  ;;  %v8111_v28 = vld [vmem:[#allocation84_spill] sm:$0xff] }
 0x2f0   : > { %v7035_v16 = vpop.f32.mrf.mxu1  ;;  %v8112_v61 = vpack.c.bf16 %v8111_v28, %v8022_v42 }
 0x2f1   : > { %8106 = vst [vmem:[#allocation114_spill] sm:$0xff] %v7035_v16 }
 0x2f3   : > { %3639 = vmatmul.bf16.gmra.mxu1 %v8108_v32  ;;  %v7056_v32 = vpop.f32.mrf.mxu0 }
 0x2f6   : > { %v1997_v27 = vpop.f32.mrf.mxu3 }
 0x2f7   : > { %v7041_v51 = vadd.f32 %v1997_v27, %v6644_v43  ;;  %v8114_v43 = vld [vmem:[#allocation68_spill] sm:$0xff] }
 0x2f8   : > { %v7045_v37 = vpop.f32.mrf.mxu1  ;;  %v8115_v22 = vpack.c.bf16 %v8114_v43, %v5861_v24  ;;  %v8116_v27 = vld [vmem:[#allocation16_spill] sm:$0xff] }
 0x2f9   : > { %8109 = vst [vmem:[#allocation95_spill] sm:$0xff] %v7045_v37  ;;  %v3179_v30 = vsel %vm1412_vm5, %v8083_v12, %v8116_v27 }
 0x2fb   : > { %2039 = vmatmul.bf16.gmra.mxu3 %v8112_v61  ;;  %v8118_v61 = vld [vmem:[#allocation98_spill] sm:$0xff]  ;;  %v7075_v24 = vpop.f32.mrf.mxu0 }
 0x2fc   : > { %3401 = vmatmul.bf16.gmra.mxu0 %v3256_v50  ;;  %v3240_v50 = vmul.f32 %v8082_v31, %v3179_v30  ;;  %v8122_v31 = vld [vmem:[#allocation81_spill] sm:$0xff]  ;;  %v4829_v30 = vld [vmem:[#allocation9 + $0x18] sm:$0xff] }
 0x2fd   : > { %3898 = vmatpush.bf16.msra.mxu2 %v4829_v30 }
 0x2fe   : > { %v2000_v16 = vpop.f32.mrf.mxu3 }
 0x2ff   : > { %v7052_v46 = vadd.f32 %v2000_v16, %v6654_v7  ;;  %v3257_v16 = vpack.c.bf16 %v8116_v27, %v3240_v50 }
 0x300   : > { %v7054_v20 = vpop.f32.mrf.mxu1 }
 0x301   : > { %8113 = vst [vmem:[#allocation56_spill] sm:$0xff] %v7054_v20  ;;  %v8119_v20 = vpack.c.bf16 %v8118_v61, %v8036_v1 }
 0x303   : > { %3644 = vmatmul.bf16.gmra.mxu1 %v8115_v22  ;;  %v8120_v22 = vld [vmem:[#allocation30_spill] sm:$0xff] }
 0x306   : > { %v2002_v17 = vpop.f32.mrf.mxu3 }
 0x307   : > { %v7067_v28 = vadd.f32 %v2002_v17, %v6664_v62  ;;  %v8123_v62 = vpack.c.bf16 %v8122_v31, %v6030_v60  ;;  %v8124_v17 = vld [vmem:[#allocation48_spill] sm:$0xff] }
 0x308   : > { %v7069_v7 = vpop.f32.mrf.mxu1 }
 0x309   : > { %8117 = vst [vmem:[#allocation46_spill] sm:$0xff] %v7069_v7  ;;  %v8127_v7 = vld [vmem:[#allocation45_spill] sm:$0xff] }
 0x30b   : > { %2044 = vmatmul.bf16.gmra.mxu3 %v8119_v20  ;;  %v8125_v20 = vld [vmem:[#allocation25_spill] sm:$0xff] }
 0x30c   : > { %3406 = vmatmul.bf16.gmra.mxu0 %v3257_v16 }
 0x30e   : > { %v2005_v43 = vpop.f32.mrf.mxu3 }
 0x30f   : > { %v7078_v12 = vadd.f32 %v2005_v43, %v8120_v22  ;;  %v8129_v22 = vld [vmem:[#allocation90_spill] sm:$0xff] }
 0x310   : > { %v7080_v37 = vpop.f32.mrf.mxu1 }
 0x311   : > { %8121 = vst [vmem:[#allocation120_spill] sm:$0xff] %v7080_v37  ;;  %v8130_v37 = vpack.c.bf16 %v8129_v22, %v6136_v56  ;;  %v4828_v56 = vld [vmem:[#allocation9 + $0x10] sm:$0xff] }
 0x312   : > { %3899 = vmatpush.bf16.msra.mxu2 %v4828_v56  ;;  %v8140_v22 = vld [vmem:[#allocation106_spill] sm:$0xff] }
 0x313   : > { %3649 = vmatmul.bf16.gmra.mxu1 %v8123_v62  ;;  %v8132_v62 = vld [vmem:[#allocation55_spill] sm:$0xff] }
 0x316   : > { %v2007_v27 = vpop.f32.mrf.mxu3 }
 0x317   : > { %v7086_v50 = vadd.f32 %v2007_v27, %v8124_v17  ;;  %v8134_v27 = vld [vmem:[#allocation33_spill] sm:$0xff] }
 0x318   : > { %v7089_v61 = vpop.f32.mrf.mxu1 }
 0x319   : > { %8126 = vst [vmem:[#allocation29_spill] sm:$0xff] %v7089_v61 }
 0x31b   : > { %3033 = vmatmul.bf16.vlgmr.msra.gmra.mxu3 %v8125_v20  ;;  %v8135_v20 = vld [vmem:[#allocation18_spill] sm:$0xff] }
 0x31e   : > { %v2010_v16 = vpop.f32.mrf.mxu3 }
 0x31f   : > { %v7092_v43 = vadd.f32 %v2010_v16, %v8127_v7  ;;  %v8138_v7 = vld [vmem:[#allocation104_spill] sm:$0xff] }
 0x320   : > { %v7097_v31 = vpop.f32.mrf.mxu1  ;;  %v8139_v16 = vpack.c.bf16 %v8138_v7, %v7942_v14 }
 0x321   : > { %8128 = vst [vmem:[#allocation22_spill] sm:$0xff] %v7092_v43 }
 0x322   : > { %8131 = vst [vmem:[#allocation66_spill] sm:$0xff] %v7097_v31 }
 0x323   : > { %3654 = vmatmul.bf16.gmra.mxu1 %v8130_v37 }
 0x326   : > { %v2012_v60 = vpop.f32.mrf.mxu3 }
 0x327   : > { %v7100_v30 = vadd.f32 %v2012_v60, %v8132_v62  ;;  %v8143_v62 = vld [vmem:[#allocation43_spill] sm:$0xff] }
 0x328   : > { %v7106_v61 = vpop.f32.mrf.mxu1 }
 0x329   : > { %8133 = vst [vmem:[#allocation40_spill] sm:$0xff] %v7100_v30  ;;  %v8144_v30 = vld [vmem:[#allocation71_spill] sm:$0xff] }
 0x32a   : > { %8137 = vst [vmem:[#allocation85_spill] sm:$0xff] %v7106_v61 }
 0x32b   : > { %3038 = vmatmul.bf16.gmra.mxu3 %v8134_v27 }
 0x32e   : > { %v2015_v17 = vpop.f32.mrf.mxu3 }
 0x32f   : > { %v7104_v35 = vadd.f32 %v2015_v17, %v8135_v20  ;;  %v8146_v20 = vld [vmem:[#allocation110_spill] sm:$0xff] }
 0x330   : > { %v7114_v60 = vpop.f32.mrf.mxu1  ;;  %v8147_v61 = vpack.c.bf16 %v8146_v20, %v7957_v9  ;;  %v8155_v9 = vld [vmem:[#allocation115_spill] sm:$0xff]  ;;  %v4827_v20 = vld [vmem:[#allocation9 + $0x8] sm:$0xff] }
 0x331   : > { %8136 = vst [vmem:[#allocation72_spill] sm:$0xff] %v7104_v35  ;;  %3900 = vmatpush.bf16.msra.mxu2 %v4827_v20  ;;  %v8183_v35 = vld [vmem:[#allocation111_spill] sm:$0xff] }
 0x332   : > { %8142 = vst [vmem:[#allocation100_spill] sm:$0xff] %v7114_v60 }
 0x333   : > { %3659 = vmatmul.bf16.gmra.mxu1 %v8139_v16  ;;  %v8149_v16 = vld [vmem:[#allocation63_spill] sm:$0xff] }
 0x336   : > { %v2017_v37 = vpop.f32.mrf.mxu3 }
 0x337   : > { %v7112_v31 = vadd.f32 %v2017_v37, %v8140_v22  ;;  %v7128_v37 = vpop.f32.mrf.mxu2  ;;  %v8151_v22 = vld [vmem:[#allocation54_spill] sm:$0xff] }
 0x338   : > { %v7123_v14 = vpop.f32.mrf.mxu1 }
 0x339   : > { %8141 = vst [vmem:[#allocation67_spill] sm:$0xff] %v7112_v31  ;;  %v8153_v31 = vld [vmem:[#allocation23_spill] sm:$0xff] }
 0x33a   : > { %8148 = vst [vmem:[#allocation68_spill] sm:$0xff] %v7123_v14 }
 0x33b   : > { %3043 = vmatmul.bf16.gmra.mxu3 %v8143_v62 }
 0x33e   : > { %v2020_v27 = vpop.f32.mrf.mxu3 }
 0x33f   : > { %v7118_v17 = vadd.f32 %v2020_v27, %v8144_v30  ;;  %v7136_v27 = vpop.f32.mrf.mxu2 }
 0x340   : > { %v7131_v62 = vpop.f32.mrf.mxu1 }
 0x341   : > { %8145 = vst [vmem:[#allocation84_spill] sm:$0xff] %v7118_v17  ;;  %v8162_v17 = vld [vmem:[#allocation121_spill] sm:$0xff] }
 0x342   : > { %8152 = vst [vmem:[#allocation98_spill] sm:$0xff] %v7131_v62 }
 0x343   : > { %3664 = vmatmul.bf16.gmra.mxu1 %v8147_v61  ;;  %v8156_v61 = vpack.c.bf16 %v8155_v9, %v6375_v54  ;;  %v8163_v54 = vpack.c.bf16 %v8162_v17, %v7981_v52  ;;  %v4826_v52 = vld [vmem:[#allocation9] sm:$0xff] }
 0x344   : > { %3901 = vmatpush.bf16.msra.mxu2 %v4826_v52 }
 0x346   : > { %v2022_v7 = vpop.f32.mrf.mxu3 }
 0x347   : > { %v7126_v56 = vadd.f32 %v2022_v7, %v8149_v16  ;;  %v8157_v16 = vld [vmem:[#allocation78_spill] sm:$0xff]  ;;  %v7147_v62 = vpop.f32.mrf.mxu2 }
 0x349   : > { %8150 = vst [vmem:[#allocation16_spill] sm:$0xff] %v7126_v56  ;;  %v7144_v56 = vpop.f32.mrf.mxu1 }
 0x34a   : > { %8159 = vst [vmem:[#allocation48_spill] sm:$0xff] %v7144_v56 }
 0x34b   : > { %3048 = vmatmul.bf16.gmra.mxu3 %v8151_v22  ;;  %v8160_v22 = vld [vmem:[#allocation69_spill] sm:$0xff] }
 0x34e   : > { %v2025_v60 = vpop.f32.mrf.mxu3 }
 0x34f   : > { %v7134_v30 = vadd.f32 %v2025_v60, %v8153_v31  ;;  %v7155_v9 = vpop.f32.mrf.mxu2 }
 0x351   : > { %8154 = vst [vmem:[#allocation30_spill] sm:$0xff] %v7134_v30  ;;  %v3630_v30 = vpop.f32.mrf.mxu1 }
 0x353   : > { %3669 = vmatmul.bf16.gmra.mxu1 %v8156_v61 }
 0x356   : > { %v2027_v7 = vpop.f32.mrf.mxu3 }
 0x357   : > { %v7142_v14 = vadd.f32 %v2027_v7, %v8157_v16  ;;  %v8165_v7 = vld [vmem:[#allocation82_spill] sm:$0xff] }
 0x359   : > { %8158 = vst [vmem:[#allocation81_spill] sm:$0xff] %v7142_v14  ;;  %v3632_v16 = vpop.f32.mrf.mxu1 }
 0x35b   : > { %3053 = vmatmul.bf16.gmra.mxu3 %v8160_v22 }
 0x35e   : > { %v2030_v31 = vpop.f32.mrf.mxu3 }
 0x35f   : > { %v7150_v60 = vadd.f32 %v2030_v31, %v6799_v2  ;;  %v7164_v2 = vpop.f32.mrf.mxu2  ;;  %v8167_v31 = vld [vmem:[#allocation41_spill] sm:$0xff] }
 0x361   : > { %8161 = vst [vmem:[#allocation25_spill] sm:$0xff] %v7150_v60  ;;  %v8168_v60 = vpack.c.bf16 %v8167_v31, %v6507_v49  ;;  %v8172_v49 = vld [vmem:[#allocation73_spill] sm:$0xff] }
 0x363   : > { %3674 = vmatmul.bf16.gmra.mxu1 %v8163_v54  ;;  %v7169_v54 = vpop.f32.mrf.mxu1 }
 0x366   : > { %v2032_v61 = vpop.f32.mrf.mxu3 }
 0x367   : > { %v7158_v20 = vadd.f32 %v2032_v61, %v6810_v36  ;;  %v7174_v61 = vpop.f32.mrf.mxu2 }
 0x369   : > { %8164 = vst [vmem:[#allocation45_spill] sm:$0xff] %v7158_v20 }
 0x36b   : > { %3058 = vmatmul.bf16.gmra.mxu3 %v8165_v7  ;;  %v8170_v7 = vld [vmem:[#allocation92_spill] sm:$0xff] }
 0x36e   : > { %v2035_v22 = vpop.f32.mrf.mxu3 }
 0x36f   : > { %v7162_v56 = vadd.f32 %v2035_v22, %v6827_v11  ;;  %v7185_v31 = vpop.f32.mrf.mxu2 }
 0x371   : > { %8166 = vst [vmem:[#allocation90_spill] sm:$0xff] %v7162_v56  ;;  %v7180_v56 = vpop.f32.mrf.mxu1 }
 0x373   : > { %3679 = vmatmul.bf16.gmra.mxu1 %v8168_v60  ;;  %v8173_v60 = vpack.c.bf16 %v8172_v49, %v8010_v13  ;;  %v8180_v49 = vld [vmem:[#allocation34_spill] sm:$0xff] }
 0x376   : > { %v2037_v17 = vpop.f32.mrf.mxu3 }
 0x377   : > { %v7172_v36 = vadd.f32 %v2037_v17, %v6838_v33 }
 0x379   : > { %8169 = vst [vmem:[#allocation55_spill] sm:$0xff] %v7172_v36  ;;  %v7190_v17 = vpop.f32.mrf.mxu1  ;;  %v8175_v36 = vld [vmem:[#allocation105_spill] sm:$0xff] }
 0x37b   : > { %3063 = vmatmul.bf16.gmra.mxu3 %v8170_v7  ;;  %v7193_v7 = vpop.f32.mrf.mxu2 }
 0x37c   : > { %8176 = vst [vmem:[#allocation104_spill] sm:$0xff] %v7193_v7 }
 0x37e   : > { %v2040_v11 = vpop.f32.mrf.mxu3 }
 0x37f   : > { %v7178_v22 = vadd.f32 %v2040_v11, %v6856_v53 }
 0x381   : > { %8171 = vst [vmem:[#allocation33_spill] sm:$0xff] %v7178_v22  ;;  %v8178_v22 = vld [vmem:[#allocation86_spill] sm:$0xff]  ;;  %v7203_v20 = vpop.f32.mrf.mxu1 }
 0x382   : > { %v8179_v13 = vpack.c.bf16 %v8178_v22, %v8022_v42  ;;  %v8185_v42 = vld [vmem:[#allocation31_spill] sm:$0xff] }
 0x383   : > { %3684 = vmatmul.bf16.gmra.mxu1 %v8173_v60  ;;  %v2284_v60 = vadd.f32 %v8180_v49, %v6918_v8  ;;  %v8186_v49 = vld [vmem:[#allocation87_spill] sm:$0xff] }
 0x386   : > { %v2042_v52 = vpop.f32.mrf.mxu3 }
 0x387   : > { %v7188_v33 = vadd.f32 %v2042_v52, %v6879_v48 }
 0x389   : > { %8174 = vst [vmem:[#allocation18_spill] sm:$0xff] %v7188_v33  ;;  %v8182_v33 = vld [vmem:[#allocation32_spill] sm:$0xff] }
 0x38a   : > { %v2582_v14 = vadd.f32 %v8182_v33, %v2284_v60 }
 0x38b   : > { %3068 = vmatmul.bf16.gmra.mxu3 %v8175_v36  ;;  %v7208_v36 = vpop.f32.mrf.mxu2 }
 0x38c   : > { %v2880_v22 = vadd.f32 %v8185_v42, %v2582_v14 }
 0x38e   : > { %v2045_v53 = vpop.f32.mrf.mxu3 }
 0x38f   : > { %v7196_v11 = vadd.f32 %v2045_v53, %v6894_v34  ;;  %v8184_v34 = vld [vmem:[#allocation122_spill] sm:$0xff] }
 0x390   : > { %v2285_v53 = vadd.f32 %v8184_v34, %v6926_v38  ;;  %v8190_v38 = vld [vmem:[#allocation119_spill] sm:$0xff] }
 0x391   : > { %8177 = vst [vmem:[#allocation106_spill] sm:$0xff] %v7196_v11  ;;  %v7215_v11 = vpop.f32.mrf.mxu1 }
 0x392   : > { %v2583_v7 = vadd.f32 %v8186_v49, %v2285_v53  ;;  %v8192_v49 = vld [vmem:[#allocation116_spill] sm:$0xff] }
 0x393   : > { %3689 = vmatmul.bf16.gmra.mxu1 %v8179_v13  ;;  %v7218_v43 = vpop.f32.mrf.mxu2 }
 0x394   : > { %v2881_v34 = vadd.f32 %v8190_v38, %v2583_v7 }
 0x396   : > { %v2047_v48 = vpop.f32.mrf.mxu3 }
 0x397   : > { %v7206_v52 = vadd.f32 %v2047_v48, %v6904_v3  ;;  %v8187_v48 = vld [vmem:[#allocation99_spill] sm:$0xff] }
 0x398   : > { %v8188_v33 = vpack.c.bf16 %v8187_v48, %v8036_v1  ;;  %v8194_v48 = vld [vmem:[#allocation27_spill] sm:$0xff] }
 0x399   : > { %8181 = vst [vmem:[#allocation43_spill] sm:$0xff] %v7206_v52  ;;  %v7249_v52 = vpop.f32.mrf.mxu0 }
 0x39b   : > { %3073 = vmatmul.bf16.gmra.mxu3 %v8183_v35  ;;  %v8189_v35 = vld [vmem:[#allocation28_spill] sm:$0xff] }
 0x39c   : > { %v2286_v60 = vadd.f32 %v8189_v35, %v6939_v45 }
 0x39e   : > { %v3034_v13 = vpop.f32.mrf.mxu3  ;;  %v2584_v1 = vadd.f32 %v6803_v58, %v2286_v60  ;;  %v8196_v58 = vld [vmem:[#allocation74_spill] sm:$0xff] }
 0x39f   : > { %v3114_v8 = vadd.f32 %v3034_v13, %v2880_v22  ;;  %v7230_v22 = vld [vmem:[%s7603_s4] ss:$0 sm:$0xff]  ;;  %v7232_v13 = vpop.f32.mrf.mxu1 }
 0x3a1   : > { %v3412_v3 = vadd.f32 %v6973_v23, %v3114_v8  ;;  %v8191_v8 = vld [vmem:[#allocation91_spill] sm:$0xff] }
 0x3a2   : > { %v3477_v45 = vsel %vm1815_vm4, %v6846_v55, %v8191_v8 }
 0x3a3   : > { %3694 = vmatmul.bf16.gmra.mxu1 %v8188_v33  ;;  %v3710_v42 = vadd.f32 %v3630_v30, %v3412_v3  ;;  %v7242_v3 = vpop.f32.mrf.mxu2  ;;  %v2287_v33 = vadd.f32 %v8194_v48, %v6949_v4  ;;  %v3537_v60 = vmul.f32 %v8196_v58, %v3477_v45  ;;  %v8200_v58 = vld [vmem:[#allocation17_spill] sm:$0xff] }
 0x3a4   : > { %8193 = vst [vmem:[#allocation71_spill] sm:$0xff] %v7242_v3 }
 0x3a5   : > { %v3746_v7 = vadd.f32 %v7230_v22, %v3710_v42  ;;  %v3554_v42 = vpack.c.bf16 %v3537_v60, %v6875_v18  ;;  %v7268_v60 = vpop.f32.mrf.mxu0 }
 0x3a6   : > { %v3036_v14 = vpop.f32.mrf.mxu3 }
 0x3a7   : > { %v3115_v53 = vadd.f32 %v3036_v14, %v2881_v34  ;;  %v3778_v14 = vmax.f32 %v3746_v7, 0.0  ;;  %v7253_v3 = vpop.f32.mrf.mxu1 }
 0x3a9   : > { %v3413_v23 = vadd.f32 %v6989_v26, %v3115_v53  ;;  %v8195_v26 = vld [vmem:[#allocation38_spill] sm:$0xff] }
 0x3aa   : > { %v2882_v38 = vadd.f32 %v8195_v26, %v2584_v1  ;;  %v8198_v1 = vld [vmem:[#allocation36_spill] sm:$0xff] }
 0x3ab   : > { %v3711_v30 = vadd.f32 %v3632_v16, %v3413_v23  ;;  %3078 = vmatmul.bf16.gmra.mxu3 %v8192_v49  ;;  %v8197_v23 = vld [vmem:[#allocation101_spill] sm:$0xff]  ;;  %v2288_v45 = vadd.f32 %v8198_v1, %v6969_v15  ;;  %v7259_v48 = vpop.f32.mrf.mxu2 }
 0x3ac   : > { %v2585_v49 = vadd.f32 %v8197_v23, %v2287_v33 }
 0x3ad   : > { %v3747_v35 = vadd.f32 %v7230_v22, %v3711_v30  ;;  %v8199_v30 = vld [vmem:[#allocation39_spill] sm:$0xff]  ;;  %v2586_v33 = vadd.f32 %v6829_v44, %v2288_v45 }
 0x3ae   : > { %v3039_v34 = vpop.f32.mrf.mxu3  ;;  %v2883_v7 = vadd.f32 %v8199_v30, %v2585_v49  ;;  %v8204_v30 = vld [vmem:[#allocation107_spill] sm:$0xff] }
 0x3af   : > { %v3779_v53 = vmax.f32 %v3747_v35, 0.0  ;;  %v3116_v55 = vadd.f32 %v3039_v34, %v2882_v38  ;;  %v8201_v34 = vld [vmem:[#allocation124_spill] sm:$0xff] }
 0x3b1   : > { %v3810_v16 = vpack.c.bf16 %v3779_v53, %v3778_v14  ;;  %v3414_v4 = vadd.f32 %v7001_v29, %v3116_v55  ;;  %v3507_v29 = vsel %vm1815_vm4, %v8191_v8, %v8200_v58  ;;  %v7275_v55 = vpop.f32.mrf.mxu1 }
 0x3b3   : > { %3699 = vmatmul.bf16.gmra.mxu1 %v3554_v42  ;;  %3902 = vmatmul.bf16.vlgmr.msra.gmra.mxu2 %v3810_v16  ;;  %v3712_v26 = vadd.f32 %v7169_v54, %v3414_v4  ;;  %v8202_v54 = vld [vmem:[#allocation123_spill] sm:$0xff]  ;;  %v3539_v16 = vmul.f32 %v8045_v10, %v3507_v29 }
 0x3b4   : > { %v2289_v53 = vadd.f32 %v8202_v54, %v6976_v63 }
 0x3b5   : > { %v3748_v14 = vadd.f32 %v7230_v22, %v3712_v26  ;;  %v3555_v1 = vpack.c.bf16 %v3539_v16, %v8191_v8  ;;  %v7287_v26 = vpop.f32.mrf.mxu0  ;;  %v8210_v16 = vld [vmem:[#allocation60_spill] sm:$0xff] }
 0x3b6   : > { %v3041_v35 = vpop.f32.mrf.mxu3 }
 0x3b7   : > { %v3117_v38 = vadd.f32 %v3041_v35, %v2883_v7  ;;  %v3780_v49 = vmax.f32 %v3748_v14, 0.0  ;;  %v2587_v7 = vadd.f32 %v8204_v30, %v2289_v53  ;;  %v8205_v35 = vld [vmem:[#allocation49_spill] sm:$0xff]  ;;  %v8208_v53 = vld [vmem:[#allocation47_spill] sm:$0xff] }
 0x3b8   : > { %v2290_v10 = vadd.f32 %v8205_v35, %v6987_v39 }
 0x3b9   : > { %v3415_v18 = vadd.f32 %v7017_v21, %v3117_v38  ;;  %v8203_v21 = vld [vmem:[#allocation58_spill] sm:$0xff]  ;;  %v8206_v38 = vld [vmem:[#allocation53_spill] sm:$0xff]  ;;  %v7290_v58 = vpop.f32.mrf.mxu1 }
 0x3ba   : > { %v2884_v44 = vadd.f32 %v8203_v21, %v2586_v33  ;;  %v8209_v21 = vld [vmem:[#allocation57_spill] sm:$0xff] }
 0x3bb   : > { %v3713_v15 = vadd.f32 %v7180_v56, %v3415_v18  ;;  %3083 = vmatmul.bf16.gmra.mxu3 %v8201_v34  ;;  %v7280_v56 = vpop.f32.mrf.mxu2  ;;  %v2885_v18 = vadd.f32 %v8206_v38, %v2587_v7  ;;  %v8207_v34 = vld [vmem:[#allocation65_spill] sm:$0xff] }
 0x3bc   : > { %v2588_v14 = vadd.f32 %v8207_v34, %v2290_v10  ;;  %v8213_v10 = vld [vmem:[#allocation79_spill] sm:$0xff]  ;;  %v8214_v34 = vld [vmem:[#allocation77_spill] sm:$0xff] }
 0x3bd   : > { %v3749_v41 = vadd.f32 %v7230_v22, %v3713_v15 }
 0x3be   : > { %v3044_v42 = vpop.f32.mrf.mxu3 }
 0x3bf   : > { %v3118_v23 = vadd.f32 %v3044_v42, %v2884_v44  ;;  %v3781_v4 = vmax.f32 %v3749_v41, 0.0  ;;  %v2291_v44 = vadd.f32 %v8209_v21, %v6997_v25  ;;  %v2886_v41 = vadd.f32 %v8210_v16, %v2588_v14  ;;  %v8212_v25 = vld [vmem:[#allocation35_spill] sm:$0xff] }
 0x3c0   : > { %v2292_v35 = vadd.f32 %v8212_v25, %v7010_v47 }
 0x3c1   : > { %v3811_v45 = vpack.c.bf16 %v3781_v4, %v3780_v49  ;;  %v3416_v63 = vadd.f32 %v7030_v40, %v3118_v23  ;;  %v7304_v23 = vpop.f32.mrf.mxu0 }
 0x3c2   : > { %v2590_v14 = vadd.f32 %v8214_v34, %v2292_v35 }
 0x3c3   : > { %3704 = vmatmul.bf16.gmra.mxu1 %v3555_v1  ;;  %3907 = vmatmul.bf16.gmra.mxu2 %v3811_v45  ;;  %v3714_v29 = vadd.f32 %v7190_v17, %v3416_v63  ;;  %v7295_v40 = vpop.f32.mrf.mxu2  ;;  %v7306_v1 = vpop.f32.mrf.mxu1  ;;  %v8211_v45 = vld [vmem:[#allocation112_spill] sm:$0xff] }
 0x3c4   : > { %v2589_v30 = vadd.f32 %v8211_v45, %v2291_v44  ;;  %v8218_v45 = vld [vmem:[#allocation26_spill] sm:$0xff] }
 0x3c5   : > { %v3750_v39 = vadd.f32 %v7230_v22, %v3714_v29 }
 0x3c6   : > { %v3046_v33 = vpop.f32.mrf.mxu3  ;;  %v2887_v38 = vadd.f32 %v8213_v10, %v2589_v30 }
 0x3c7   : > { %v3119_v8 = vadd.f32 %v3046_v33, %v2885_v18  ;;  %v3782_v49 = vmax.f32 %v3750_v39, 0.0  ;;  %v8216_v39 = vld [vmem:[#allocation125_spill] sm:$0xff] }
 0x3c8   : > { %v2293_v21 = vadd.f32 %v8216_v39, %v7020_v5  ;;  %v2294_v5 = vadd.f32 %v8218_v45, %v7033_v57  ;;  %v8220_v57 = vld [vmem:[#allocation42_spill] sm:$0xff] }
 0x3c9   : > { %v3417_v15 = vadd.f32 %v7043_v6, %v3119_v8  ;;  %v7316_v8 = vpop.f32.mrf.mxu0 }
 0x3cb   : > { %v3715_v54 = vadd.f32 %v7203_v20, %v3417_v15  ;;  %3088 = vmatmul.bf16.gmra.mxu3 %v8208_v53  ;;  %v7310_v63 = vpop.f32.mrf.mxu2  ;;  %v8215_v53 = vld [vmem:[#allocation20_spill] sm:$0xff] }
 0x3cd   : > { %v3751_v17 = vadd.f32 %v7230_v22, %v3715_v54  ;;  %v7320_v54 = vpop.f32.mrf.mxu1 }
 0x3ce   : > { %v3049_v42 = vpop.f32.mrf.mxu3 }
 0x3cf   : > { %v3120_v6 = vadd.f32 %v3049_v42, %v2886_v41  ;;  %v3783_v4 = vmax.f32 %v3751_v17, 0.0 }
 0x3d1   : > { %v3812_v20 = vpack.c.bf16 %v3783_v4, %v3782_v49  ;;  %v3418_v7 = vadd.f32 %v7056_v32, %v3120_v6  ;;  %v8217_v49 = vld [vmem:[#allocation88_spill] sm:$0xff]  ;;  %v3364_v4 = vpop.f32.mrf.mxu0 }
 0x3d3   : > { %3912 = vmatmul.bf16.gmra.mxu2 %v3812_v20  ;;  %v3716_v33 = vadd.f32 %v7215_v11, %v3418_v7  ;;  %v2888_v11 = vadd.f32 %v7128_v37, %v2590_v14  ;;  %v7329_v16 = vpop.f32.mrf.mxu2 }
 0x3d5   : > { %v3752_v47 = vadd.f32 %v7230_v22, %v3716_v33  ;;  %v3662_v30 = vpop.f32.mrf.mxu1 }
 0x3d6   : > { %v3051_v18 = vpop.f32.mrf.mxu3 }
 0x3d7   : > { %v3121_v29 = vadd.f32 %v3051_v18, %v2887_v38  ;;  %v3784_v17 = vmax.f32 %v3752_v47, 0.0  ;;  %v2592_v18 = vadd.f32 %v6920_v0, %v2294_v5 }
 0x3d9   : > { %v3419_v15 = vadd.f32 %v7075_v24, %v3121_v29  ;;  %v2890_v34 = vadd.f32 %v7147_v62, %v2592_v18 }
 0x3db   : > { %v3717_v32 = vadd.f32 %v7232_v13, %v3419_v15  ;;  %3093 = vmatmul.bf16.gmra.mxu3 %v8215_v53  ;;  %v2591_v13 = vadd.f32 %v8217_v49, %v2293_v21  ;;  %v7337_v10 = vpop.f32.mrf.mxu2  ;;  %v2295_v15 = vadd.f32 %v8220_v57, %v7041_v51  ;;  %v8221_v51 = vld [vmem:[#allocation44_spill] sm:$0xff] }
 0x3dd   : > { %v3753_v44 = vadd.f32 %v7230_v22, %v3717_v32  ;;  %v2889_v37 = vadd.f32 %v7136_v27, %v2591_v13  ;;  %v3367_v27 = vpop.f32.mrf.mxu0  ;;  %v7348_v32 = vpop.f32.mrf.mxu1  ;;  %v8222_v13 = vld [vmem:[#allocation97_spill] sm:$0xff] }
 0x3de   : > { %v3054_v24 = vpop.f32.mrf.mxu3 }
 0x3df   : > { %v3122_v41 = vadd.f32 %v3054_v24, %v2888_v11  ;;  %v3785_v42 = vmax.f32 %v3753_v44, 0.0  ;;  %v2296_v11 = vadd.f32 %v8221_v51, %v7052_v46  ;;  %v8223_v46 = vld [vmem:[#allocation37_spill] sm:$0xff] }
 0x3e1   : > { %v3813_v6 = vpack.c.bf16 %v3785_v42, %v3784_v17  ;;  %v3420_v20 = vadd.f32 %v7249_v52, %v3122_v41  ;;  %v8219_v52 = vld [vmem:[#allocation70_spill] sm:$0xff] }
 0x3e3   : > { %3917 = vmatmul.bf16.gmra.mxu2 %v3813_v6  ;;  %v3718_v25 = vadd.f32 %v7253_v3, %v3420_v20  ;;  %v7351_v39 = vpop.f32.mrf.mxu2 }
 0x3e5   : > { %v3754_v29 = vadd.f32 %v7230_v22, %v3718_v25  ;;  %v3369_v24 = vpop.f32.mrf.mxu0  ;;  %v3667_v42 = vpop.f32.mrf.mxu1 }
 0x3e6   : > { %v3056_v7 = vpop.f32.mrf.mxu3 }
 0x3e7   : > { %v3123_v35 = vadd.f32 %v3056_v7, %v2889_v37  ;;  %v3786_v53 = vmax.f32 %v3754_v29, 0.0 }
 0x3e9   : > { %v3421_v38 = vadd.f32 %v7268_v60, %v3123_v35 }
 0x3eb   : > { %v3719_v33 = vadd.f32 %v7275_v55, %v3421_v38  ;;  %3098 = vmatmul.bf16.gmra.mxu3 %v8219_v52  ;;  %v2593_v55 = vadd.f32 %v6930_v59, %v2295_v15  ;;  %v2594_v59 = vadd.f32 %v6941_v19, %v2296_v11  ;;  %v7363_v20 = vpop.f32.mrf.mxu2 }
 0x3ed   : > { %v3755_v3 = vadd.f32 %v7230_v22, %v3719_v33  ;;  %v2891_v62 = vadd.f32 %v7155_v9, %v2593_v55  ;;  %v2297_v9 = vadd.f32 %v8223_v46, %v7067_v28  ;;  %v2892_v45 = vadd.f32 %v7164_v2, %v2594_v59  ;;  %v3372_v19 = vpop.f32.mrf.mxu0  ;;  %v3670_v38 = vpop.f32.mrf.mxu1  ;;  %v8225_v33 = vld [vmem:[#allocation19_spill] sm:$0xff]  ;;  %v8231_v59 = vld [vmem:[#allocation62_spill] sm:$0xff] }
 0x3ee   : > { %v3059_v14 = vpop.f32.mrf.mxu3  ;;  %v2298_v52 = vadd.f32 %v8225_v33, %v7078_v12 }
 0x3ef   : > { %v3124_v60 = vadd.f32 %v3059_v14, %v2890_v34  ;;  %v3787_v0 = vmax.f32 %v3755_v3, 0.0  ;;  %v8226_v3 = vld [vmem:[#allocation118_spill] sm:$0xff] }
 0x3f0   : > { %v2596_v14 = vadd.f32 %v8226_v3, %v2298_v52 }
 0x3f1   : > { %v3814_v47 = vpack.c.bf16 %v3787_v0, %v3786_v53  ;;  %v3422_v21 = vadd.f32 %v7287_v26, %v3124_v60  ;;  %v8227_v0 = vmov 0.0|0.0  }
 0x3f3   : > { %3922 = vmatmul.bf16.gmra.mxu2 %v3814_v47  ;;  %v3720_v41 = vadd.f32 %v7290_v58, %v3422_v21  ;;  %v7374_v2 = vpop.f32.mrf.mxu2  ;;  %v8228_v47 = vld [vmem:[#allocation50_spill] sm:$0xff] }
 0x3f4   : > { %v2299_v12 = vadd.f32 %v8228_v47, %v7086_v50 }
 0x3f5   : > { %v3756_v26 = vadd.f32 %v7230_v22, %v3720_v41  ;;  %v3374_v60 = vpop.f32.mrf.mxu0  ;;  %v3672_v55 = vpop.f32.mrf.mxu1 }
 0x3f6   : > { %v3061_v44 = vpop.f32.mrf.mxu3 }
 0x3f7   : > { %v3125_v17 = vadd.f32 %v3061_v44, %v2891_v62 }
 0x3f9   : > { %v3423_v6 = vadd.f32 %v7304_v23, %v3125_v17  ;;  %v3788_v23 = vmax.f32 %v3756_v26, 0.0 }
 0x3fb   : > { %v3721_v49 = vadd.f32 %v7306_v1, %v3423_v6  ;;  %3103 = vmatmul.bf16.gmra.mxu3 %v8222_v13  ;;  %v8224_v1 = vld [vmem:[#allocation103_spill] sm:$0xff]  ;;  %v7384_v62 = vpop.f32.mrf.mxu2  ;;  %v8230_v6 = vld [vmem:[#allocation22_spill] sm:$0xff]  ;;  %v8232_v13 = vld [vmem:[#allocation104_spill] sm:$0xff] }
 0x3fc   : > { %v2595_v35 = vadd.f32 %v8224_v1, %v2297_v9  ;;  %v8235_v1 = vld [vmem:[#allocation21_spill] sm:$0xff] }
 0x3fd   : > { %v3757_v58 = vadd.f32 %v7230_v22, %v3721_v49  ;;  %v2300_v49 = vadd.f32 %v8231_v59, %v8230_v6  ;;  %v3377_v50 = vpop.f32.mrf.mxu0  ;;  %v3675_v46 = vpop.f32.mrf.mxu1  ;;  %v8242_v6 = vld [vmem:[#allocation71_spill] sm:$0xff] }
 0x3fe   : > { %v3064_v5 = vpop.f32.mrf.mxu3  ;;  %v2893_v28 = vadd.f32 %v7174_v61, %v2595_v35  ;;  %v2894_v61 = vadd.f32 %v7185_v31, %v2596_v14 }
 0x3ff   : > { %v3126_v37 = vadd.f32 %v3064_v5, %v2892_v45  ;;  %v3789_v7 = vmax.f32 %v3757_v58, 0.0  ;;  %v8233_v5 = vld [vmem:[#allocation61_spill] sm:$0xff] }
 0x401   : > { %v3815_v25 = vpack.c.bf16 %v3789_v7, %v3788_v23  ;;  %v3424_v18 = vadd.f32 %v7316_v8, %v3126_v37  ;;  %v2598_v37 = vadd.f32 %v8233_v5, %v2300_v49 }
 0x403   : > { %3927 = vmatmul.bf16.gmra.mxu2 %v3815_v25  ;;  %v3722_v57 = vadd.f32 %v7320_v54, %v3424_v18  ;;  %v7392_v23 = vpop.f32.mrf.mxu2  ;;  %v8234_v25 = vld [vmem:[#allocation40_spill] sm:$0xff]  ;;  %v2896_v18 = vadd.f32 %v7208_v36, %v2598_v37 }
 0x404   : > { %v2301_v35 = vadd.f32 %v8235_v1, %v8234_v25  ;;  %v7418_v37 = vld [vmem:[%s7605_s6] ss:$0 sm:$0xff] }
 0x405   : > { %v3758_v8 = vadd.f32 %v7230_v22, %v3722_v57 }
 0x406   : > { %v3066_v29 = vpop.f32.mrf.mxu3 }
 0x407   : > { %v3127_v15 = vadd.f32 %v3066_v29, %v2893_v28  ;;  %v3790_v11 = vmax.f32 %v3758_v8, 0.0  ;;  %v3379_v28 = vpop.f32.mrf.mxu0 }
 0x409   : > { %v3425_v34 = vadd.f32 %v3364_v4, %v3127_v15 }
 0x40b   : > { %v3723_v53 = vadd.f32 %v3662_v30, %v3425_v34  ;;  %3108 = vmatmul.bf16.gmra.mxu3 %v8227_v0  ;;  %v8229_v30 = vld [vmem:[#allocation93_spill] sm:$0xff]  ;;  %v8238_v0 = vld [vmem:[#allocation24_spill] sm:$0xff] }
 0x40c   : > { %v2597_v41 = vadd.f32 %v8229_v30, %v2299_v12  ;;  %v8236_v34 = vld [vmem:[#allocation109_spill] sm:$0xff]  ;;  %v8240_v30 = vld [vmem:[#allocation67_spill] sm:$0xff] }
 0x40d   : > { %v3759_v21 = vadd.f32 %v7230_v22, %v3723_v53  ;;  %v2599_v3 = vadd.f32 %v8236_v34, %v2301_v35  ;;  %v8237_v53 = vld [vmem:[#allocation72_spill] sm:$0xff]  ;;  %v8246_v34 = vld [vmem:[#allocation114_spill] sm:$0xff] }
 0x40e   : > { %v3069_v51 = vpop.f32.mrf.mxu3  ;;  %v2895_v26 = vadd.f32 %v8232_v13, %v2597_v41  ;;  %v2302_v8 = vadd.f32 %v8238_v0, %v8237_v53  ;;  %v8241_v41 = vld [vmem:[#allocation83_spill] sm:$0xff] }
 0x40f   : > { %v3128_v54 = vadd.f32 %v3069_v51, %v2894_v61  ;;  %v3791_v4 = vmax.f32 %v3759_v21, 0.0  ;;  %v2897_v36 = vadd.f32 %v7218_v43, %v2599_v3  ;;  %v3382_v21 = vpop.f32.mrf.mxu0 }
 0x411   : > { %v3816_v44 = vpack.c.bf16 %v3791_v4, %v3790_v11  ;;  %v3426_v17 = vadd.f32 %v3367_v27, %v3128_v54  ;;  %v8239_v54 = vld [vmem:[#allocation113_spill] sm:$0xff] }
 0x412   : > { %v2600_v11 = vadd.f32 %v8239_v54, %v2302_v8  ;;  %v8247_v8 = vld [vmem:[#allocation16_spill] sm:$0xff] }
 0x413   : > { %3932 = vmatmul.bf16.gmra.mxu2 %v3816_v44  ;;  %v3724_v9 = vadd.f32 %v7348_v32, %v3426_v17  ;;  %v2303_v17 = vadd.f32 %v8241_v41, %v8240_v30 }
 0x414   : > { %v2898_v59 = vadd.f32 %v8242_v6, %v2600_v11 }
 0x415   : > { %v3760_v27 = vadd.f32 %v7230_v22, %v3724_v9  ;;  %v8243_v9 = vld [vmem:[#allocation75_spill] sm:$0xff] }
 0x416   : > { %v3071_v31 = vpop.f32.mrf.mxu3 }
 0x417   : > { %v3129_v45 = vadd.f32 %v3071_v31, %v2895_v26  ;;  %v3792_v32 = vmax.f32 %v3760_v27, 0.0  ;;  %v8245_v27 = vld [vmem:[#allocation117_spill] sm:$0xff] }
 0x419   : > { %v3427_v58 = vadd.f32 %v3369_v24, %v3129_v45  ;;  %v3677_v24 = vpop.f32.mrf.mxu1  ;;  %v2601_v45 = vadd.f32 %v8243_v9, %v2303_v17  ;;  %v8249_v17 = vld [vmem:[#allocation95_spill] sm:$0xff] }
 0x41b   : > { %v3725_v7 = vadd.f32 %v3667_v42, %v3427_v58  ;;  %v7400_v42 = vpop.f32.mrf.mxu2  ;;  %v3384_v58 = vpop.f32.mrf.mxu0  ;;  %v2899_v35 = vadd.f32 %v7259_v48, %v2601_v45 }
 0x41d   : > { %v3761_v33 = vadd.f32 %v7230_v22, %v3725_v7  ;;  %v8244_v7 = vld [vmem:[#allocation84_spill] sm:$0xff] }
 0x41e   : > { %v3074_v52 = vpop.f32.mrf.mxu3  ;;  %v2304_v25 = vadd.f32 %v8245_v27, %v8244_v7 }
 0x41f   : > { %v3130_v29 = vadd.f32 %v3074_v52, %v2896_v18  ;;  %v3793_v57 = vmax.f32 %v3761_v33, 0.0 }
 0x420   : > { %v2602_v3 = vadd.f32 %v8246_v34, %v2304_v25 }
 0x421   : > { %v3817_v15 = vpack.c.bf16 %v3793_v57, %v3792_v32  ;;  %v3428_v14 = vadd.f32 %v3372_v19, %v3130_v29  ;;  %v3680_v4 = vpop.f32.mrf.mxu1 }
 0x423   : > { %3937 = vmatmul.bf16.gmra.mxu2 %v3817_v15  ;;  %v3726_v12 = vadd.f32 %v3670_v38, %v3428_v14  ;;  %v7411_v43 = vpop.f32.mrf.mxu2  ;;  %v3387_v48 = vpop.f32.mrf.mxu0 }
 0x425   : > { %v3762_v19 = vadd.f32 %v7230_v22, %v3726_v12 }
 0x426   : > { %v3076_v47 = vpop.f32.mrf.mxu3 }
 0x427   : > { %v3131_v61 = vadd.f32 %v3076_v47, %v2897_v36  ;;  %v3794_v26 = vmax.f32 %v3762_v19, 0.0  ;;  %v8248_v36 = vld [vmem:[#allocation96_spill] sm:$0xff] }
 0x428   : > { %v2305_v47 = vadd.f32 %v8248_v36, %v8247_v8 }
 0x429   : > { %v3429_v51 = vadd.f32 %v3374_v60, %v3131_v61  ;;  %v3682_v1 = vpop.f32.mrf.mxu1 }
 0x42a   : > { %v2603_v6 = vadd.f32 %v8249_v17, %v2305_v47 }
 0x42b   : > { %v3727_v44 = vadd.f32 %v3672_v55, %v3429_v51  ;;  %v4836_v55 = vld [vmem:[%s5395_s23] sm:$0xff]  }
 0x42c   : > { %v4837_v18 = vunpack.c.l.bf16 %v4836_v55  ;;  %v4838_v12 = vunpack.c.h.bf16 %v4836_v55  ;;  %v3389_v55 = vpop.f32.mrf.mxu0 }
 0x42d   : > { %v3763_v49 = vadd.f32 %v7230_v22, %v3727_v44 }
 0x42e   : > { %v3079_v38 = vpop.f32.mrf.mxu3 }
 0x42f   : > { %v3132_v13 = vadd.f32 %v3079_v38, %v2898_v59  ;;  %v3795_v31 = vmax.f32 %v3763_v49, 0.0  ;;  %v4899_v59 = vld [vmem:[%s5395_s23 + $0x8] sm:$0xff]  }
 0x431   : > { %v3818_v60 = vpack.c.bf16 %v3795_v31, %v3794_v26  ;;  %v3430_v5 = vadd.f32 %v3377_v50, %v3132_v13  ;;  %v3685_v51 = vpop.f32.mrf.mxu1  ;;  %v8251_v13 = vld [vmem:[#allocation51_spill] sm:$0xff]  ;;  %v2901_v31 = vadd.f32 %v7295_v40, %v2603_v6  ;;  %v8254_v40 = vld [vmem:[#allocation52_spill] sm:$0xff] }
 0x433   : > { %3942 = vmatmul.bf16.gmra.mxu2 %v3818_v60  ;;  %v3728_v29 = vadd.f32 %v3675_v46, %v3430_v5  ;;  %v2900_v46 = vadd.f32 %v7280_v56, %v2602_v3  ;;  %v8250_v56 = vld [vmem:[#allocation30_spill] sm:$0xff]  ;;  %v4841_v60 = vunpack.c.l.bf16 %v4899_v59 }
 0x434   : > { %v2306_v26 = vadd.f32 %v8251_v13, %v8250_v56  ;;  %v3392_v8 = vpop.f32.mrf.mxu0  ;;  %v8258_v13 = vld [vmem:[#allocation120_spill] sm:$0xff] }
 0x435   : > { %v3764_v0 = vadd.f32 %v7230_v22, %v3728_v29 }
 0x436   : > { %v3081_v33 = vpop.f32.mrf.mxu3  ;;  %v3903_v52 = vpop.f32.mrf.mxu2 }
 0x437   : > { %v3133_v32 = vadd.f32 %v3081_v33, %v2899_v35  ;;  %v3904_v50 = vadd.f32 %v7418_v37, %v3903_v52  ;;  %v3796_v44 = vmax.f32 %v3764_v0, 0.0 }
 0x439   : > { %v3431_v57 = vadd.f32 %v3379_v28, %v3133_v32  ;;  %v4047_v15 = vadd.f32 %v4837_v18, %v3904_v50  ;;  %v3687_v25 = vpop.f32.mrf.mxu1  ;;  %v8252_v18 = vld [vmem:[#allocation56_spill] sm:$0xff]  ;;  %v8253_v50 = vld [vmem:[#allocation81_spill] sm:$0xff] }
 0x43a   : > { %v2604_v33 = vadd.f32 %v8252_v18, %v2306_v26 }
 0x43b   : > { %v3729_v14 = vadd.f32 %v3677_v24, %v3431_v57  ;;  %v4079_v53 = vmax.f32 %v4047_v15, 0.0  ;;  %v2307_v57 = vadd.f32 %v8254_v40, %v8253_v50  ;;  %v8261_v50 = vld [vmem:[#allocation29_spill] sm:$0xff] }
 0x43c   : > { %v2902_v15 = vadd.f32 %v7310_v63, %v2604_v33  ;;  %v3394_v26 = vpop.f32.mrf.mxu0 }
 0x43d   : > { %4111 = vst [vmem:[%s7429_s21] sm:$0xff] %v4079_v53  ;;  %v3765_v28 = vadd.f32 %v7230_v22, %v3729_v14 }
 0x43e   : > { %v3084_v61 = vpop.f32.mrf.mxu3  ;;  %v3905_v24 = vpop.f32.mrf.mxu2 }
 0x43f   : > { %v3134_v54 = vadd.f32 %v3084_v61, %v2900_v46  ;;  %v3906_v11 = vadd.f32 %v7418_v37, %v3905_v24  ;;  %v3797_v19 = vmax.f32 %v3765_v28, 0.0  ;;  %v8255_v46 = vld [vmem:[#allocation46_spill] sm:$0xff] }
 0x440   : > { %v4900_v28 = vld [vmem:[%s5395_s23 + $0x10] sm:$0xff]  }
 0x441   : > { %v4048_v30 = vadd.f32 %v4838_v12, %v3906_v11  ;;  %v3819_v41 = vpack.c.bf16 %v3797_v19, %v3796_v44  ;;  %v3432_v49 = vadd.f32 %v3382_v21, %v3134_v54  ;;  %v2605_v12 = vadd.f32 %v8255_v46, %v2307_v57  ;;  %v3690_v61 = vpop.f32.mrf.mxu1  ;;  %v8256_v54 = vld [vmem:[#allocation25_spill] sm:$0xff]  ;;  %v8257_v11 = vld [vmem:[#allocation64_spill] sm:$0xff]  ;;  %v4901_v57 = vld [vmem:[%s5395_s23 + $0x18] sm:$0xff]  }
 0x442   : > { %v2308_v44 = vadd.f32 %v8257_v11, %v8256_v54 }
 0x443   : > { %v4080_v38 = vmax.f32 %v4048_v30, 0.0  ;;  %3947 = vmatmul.bf16.gmra.mxu2 %v3819_v41  ;;  %v3730_v5 = vadd.f32 %v3680_v4, %v3432_v49  ;;  %v4842_v4 = vunpack.c.h.bf16 %v4899_v59  ;;  %v2903_v19 = vadd.f32 %v7329_v16, %v2605_v12 }
 0x444   : > { %v4845_v30 = vunpack.c.l.bf16 %v4900_v28 }
 0x445   : > { %4112 = vst [vmem:[%s7429_s21 + $0x8] sm:$0xff] %v4080_v38  ;;  %v3766_v32 = vadd.f32 %v7230_v22, %v3730_v5  ;;  %v8260_v5 = vld [vmem:[#allocation59_spill] sm:$0xff] }
 0x446   : > { %v3086_v9 = vpop.f32.mrf.mxu3  ;;  %v3908_v45 = vpop.f32.mrf.mxu2 }
 0x447   : > { %v3135_v7 = vadd.f32 %v3086_v9, %v2901_v31  ;;  %v3909_v27 = vadd.f32 %v7418_v37, %v3908_v45  ;;  %v8259_v45 = vld [vmem:[#allocation45_spill] sm:$0xff] }
 0x448   : > { %v2309_v16 = vadd.f32 %v8260_v5, %v8259_v45  ;;  %v4902_v5 = vld [vmem:[%s5395_s23 + $0x20] sm:$0xff]  }
 0x449   : > { %v3433_v35 = vadd.f32 %v3384_v58, %v3135_v7  ;;  %v4049_v21 = vadd.f32 %v4841_v60, %v3909_v27  ;;  %v3692_v7 = vpop.f32.mrf.mxu1  ;;  %v4846_v27 = vunpack.c.h.bf16 %v4900_v28 }
 0x44a   : > { %v2607_v40 = vadd.f32 %v8261_v50, %v2309_v16 }
 0x44b   : > { %v3731_v52 = vadd.f32 %v3682_v1, %v3433_v35  ;;  %v4081_v29 = vmax.f32 %v4049_v21, 0.0  ;;  %v3798_v1 = vmax.f32 %v3766_v32, 0.0 }
 0x44d   : > { %4113 = vst [vmem:[%s7429_s21 + $0x10] sm:$0xff] %v4081_v29  ;;  %v3767_v34 = vadd.f32 %v7230_v22, %v3731_v52 }
 0x44e   : > { %v3089_v3 = vpop.f32.mrf.mxu3  ;;  %v3910_v58 = vpop.f32.mrf.mxu2 }
 0x44f   : > { %v3136_v14 = vadd.f32 %v3089_v3, %v2902_v15  ;;  %v3911_v53 = vadd.f32 %v7418_v37, %v3910_v58  ;;  %v3799_v0 = vmax.f32 %v3767_v34, 0.0  ;;  %v8262_v34 = vld [vmem:[#allocation90_spill] sm:$0xff]  ;;  %v8263_v3 = vld [vmem:[#allocation76_spill] sm:$0xff] }
 0x450   : > { %v2310_v58 = vadd.f32 %v8263_v3, %v8262_v34  ;;  %v8272_v3 = vld [vmem:[#allocation89_spill] sm:$0xff] }
 0x451   : > { %v4050_v36 = vadd.f32 %v4842_v4, %v3911_v53  ;;  %v3820_v47 = vpack.c.bf16 %v3799_v0, %v3798_v1  ;;  %v3434_v24 = vadd.f32 %v3387_v48, %v3136_v14  ;;  %v2606_v48 = vadd.f32 %v8258_v13, %v2308_v44 }
 0x452   : > { %v2905_v14 = vadd.f32 %v7351_v39, %v2607_v40  ;;  %v4849_v53 = vunpack.c.l.bf16 %v4901_v57  ;;  %v8270_v40 = vld [vmem:[#allocation100_spill] sm:$0xff] }
 0x453   : > { %v4082_v63 = vmax.f32 %v4050_v36, 0.0  ;;  %3952 = vmatmul.bf16.gmra.mxu2 %v3820_v47  ;;  %v3732_v6 = vadd.f32 %v3685_v51, %v3434_v24  ;;  %v2904_v51 = vadd.f32 %v7337_v10, %v2606_v48  ;;  %v3397_v10 = vpop.f32.mrf.mxu0  ;;  %v3695_v36 = vpop.f32.mrf.mxu1  ;;  %v8264_v24 = vld [vmem:[#allocation66_spill] sm:$0xff] }
 0x455   : > { %4114 = vst [vmem:[%s7429_s21 + $0x18] sm:$0xff] %v4082_v63  ;;  %v3768_v9 = vadd.f32 %v7230_v22, %v3732_v6  ;;  %v2608_v63 = vadd.f32 %v8264_v24, %v2310_v58 }
 0x456   : > { %v3091_v41 = vpop.f32.mrf.mxu3  ;;  %v3913_v17 = vpop.f32.mrf.mxu2 }
 0x457   : > { %v3137_v59 = vadd.f32 %v3091_v41, %v2903_v19  ;;  %v3914_v49 = vadd.f32 %v7418_v37, %v3913_v17  ;;  %v3800_v33 = vmax.f32 %v3768_v9, 0.0  ;;  %v8265_v19 = vld [vmem:[#allocation55_spill] sm:$0xff]  ;;  %v2906_v39 = vadd.f32 %v7363_v20, %v2608_v63  ;;  %v8267_v9 = vld [vmem:[#allocation85_spill] sm:$0xff]  ;;  %v8273_v63 = vld [vmem:[#allocation68_spill] sm:$0xff] }
 0x458   : > { %v4850_v17 = vunpack.c.h.bf16 %v4901_v57 }
 0x459   : > { %v3435_v38 = vadd.f32 %v3389_v55, %v3137_v59  ;;  %v4051_v56 = vadd.f32 %v4845_v30, %v3914_v49  ;;  %v8266_v30 = vld [vmem:[#allocation80_spill] sm:$0xff] }
 0x45a   : > { %v2311_v41 = vadd.f32 %v8266_v30, %v8265_v19 }
 0x45b   : > { %v3733_v31 = vadd.f32 %v3687_v25, %v3435_v38  ;;  %v4083_v60 = vmax.f32 %v4051_v56, 0.0  ;;  %v3399_v49 = vpop.f32.mrf.mxu0 }
 0x45c   : > { %v2609_v45 = vadd.f32 %v8267_v9, %v2311_v41  ;;  %v8275_v41 = vld [vmem:[#allocation102_spill] sm:$0xff] }
 0x45d   : > { %4115 = vst [vmem:[%s7429_s21 + $0x20] sm:$0xff] %v4083_v60  ;;  %v3769_v35 = vadd.f32 %v7230_v22, %v3733_v31 }
 0x45e   : > { %v3094_v55 = vpop.f32.mrf.mxu3  ;;  %v3915_v21 = vpop.f32.mrf.mxu2 }
 0x45f   : > { %v3138_v18 = vadd.f32 %v3094_v55, %v2904_v51  ;;  %v3916_v25 = vadd.f32 %v7418_v37, %v3915_v21  ;;  %v3801_v52 = vmax.f32 %v3769_v35, 0.0  ;;  %v8269_v51 = vld [vmem:[#allocation94_spill] sm:$0xff]  ;;  %v2907_v35 = vadd.f32 %v7374_v2, %v2609_v45 }
 0x460   : > { %v4853_v55 = vunpack.c.l.bf16 %v4902_v5  ;;  %v8271_v2 = vld [vmem:[#allocation18_spill] sm:$0xff] }
 0x461   : > { %v4052_v29 = vadd.f32 %v4846_v27, %v3916_v25  ;;  %v3821_v32 = vpack.c.bf16 %v3801_v52, %v3800_v33  ;;  %v3436_v15 = vadd.f32 %v3392_v8, %v3138_v18  ;;  %v2313_v58 = vadd.f32 %v8272_v3, %v8271_v2 }
 0x463   : > { %v4084_v4 = vmax.f32 %v4052_v29, 0.0  ;;  %3957 = vmatmul.bf16.gmra.mxu2 %v3821_v32  ;;  %v3734_v47 = vadd.f32 %v3690_v61, %v3436_v15  ;;  %v3402_v29 = vpop.f32.mrf.mxu0 }
 0x465   : > { %4116 = vst [vmem:[%s7429_s21 + $0x28] sm:$0xff] %v4084_v4  ;;  %v3770_v44 = vadd.f32 %v7230_v22, %v3734_v47 }
 0x466   : > { %v3096_v1 = vpop.f32.mrf.mxu3  ;;  %v3918_v0 = vpop.f32.mrf.mxu2 }
 0x467   : > { %v3139_v46 = vadd.f32 %v3096_v1, %v2905_v14  ;;  %v3919_v12 = vadd.f32 %v7418_v37, %v3918_v0  ;;  %v3802_v13 = vmax.f32 %v3770_v44, 0.0 }
 0x469   : > { %v3437_v28 = vadd.f32 %v3394_v26, %v3139_v46  ;;  %v4053_v8 = vadd.f32 %v4849_v53, %v3919_v12  ;;  %v3697_v26 = vpop.f32.mrf.mxu1  ;;  %v4854_v53 = vunpack.c.h.bf16 %v4902_v5 }
 0x46b   : > { %v3735_v54 = vadd.f32 %v3692_v7, %v3437_v28  ;;  %v4085_v11 = vmax.f32 %v4053_v8, 0.0  ;;  %v8268_v7 = vld [vmem:[#allocation33_spill] sm:$0xff]  ;;  %v3404_v44 = vpop.f32.mrf.mxu0 }
 0x46c   : > { %v2312_v27 = vadd.f32 %v8269_v51, %v8268_v7  ;;  %v8278_v7 = vld [vmem:[#allocation108_spill] sm:$0xff] }
 0x46d   : > { %4117 = vst [vmem:[%s7429_s21 + $0x30] sm:$0xff] %v4085_v11  ;;  %v3771_v61 = vadd.f32 %v7230_v22, %v3735_v54  ;;  %v2611_v54 = vadd.f32 %v8273_v63, %v2313_v58  ;;  %v4903_v11 = vld [vmem:[%s5395_s23 + $0x28] sm:$0xff]  }
 0x46e   : > { %v3099_v6 = vpop.f32.mrf.mxu3  ;;  %v3920_v59 = vpop.f32.mrf.mxu2  ;;  %v2610_v57 = vadd.f32 %v8270_v40, %v2312_v27  ;;  %v4858_v27 = vunpack.c.h.bf16 %v4903_v11  ;;  %v8279_v40 = vld [vmem:[#allocation48_spill] sm:$0xff] }
 0x46f   : > { %v3140_v38 = vadd.f32 %v3099_v6, %v2906_v39  ;;  %v3921_v56 = vadd.f32 %v7418_v37, %v3920_v59  ;;  %v3803_v48 = vmax.f32 %v3771_v61, 0.0  ;;  %v2909_v61 = vadd.f32 %v7392_v23, %v2611_v54 }
 0x470   : > { %v2908_v14 = vadd.f32 %v7384_v62, %v2610_v57  ;;  %v8274_v62 = vld [vmem:[#allocation106_spill] sm:$0xff]  ;;  %v4857_v6 = vunpack.c.l.bf16 %v4903_v11 }
 0x471   : > { %v4054_v31 = vadd.f32 %v4850_v17, %v3921_v56  ;;  %v3822_v60 = vpack.c.bf16 %v3803_v48, %v3802_v13  ;;  %v3438_v16 = vadd.f32 %v3397_v10, %v3140_v38  ;;  %v3700_v15 = vpop.f32.mrf.mxu1  ;;  %v2314_v39 = vadd.f32 %v8275_v41, %v8274_v62 }
 0x473   : > { %v4086_v20 = vmax.f32 %v4054_v31, 0.0  ;;  %3962 = vmatmul.bf16.gmra.mxu2 %v3822_v60  ;;  %v3736_v25 = vadd.f32 %v3695_v36, %v3438_v16  ;;  %v8276_v31 = vld [vmem:[#allocation98_spill] sm:$0xff]  ;;  %v3407_v16 = vpop.f32.mrf.mxu0 }
 0x474   : > { %v2612_v60 = vadd.f32 %v8276_v31, %v2314_v39 }
 0x475   : > { %4118 = vst [vmem:[%s7429_s21 + $0x38] sm:$0xff] %v4086_v20  ;;  %v3772_v34 = vadd.f32 %v7230_v22, %v3736_v25  ;;  %v8277_v20 = vld [vmem:[#allocation43_spill] sm:$0xff] }
 0x476   : > { %v3101_v21 = vpop.f32.mrf.mxu3  ;;  %v3923_v18 = vpop.f32.mrf.mxu2  ;;  %v2315_v23 = vadd.f32 %v8278_v7, %v8277_v20  ;;  %v2910_v51 = vadd.f32 %v7400_v42, %v2612_v60  ;;  %v4907_v7 = vld [vmem:[%s5395_s23 + $0x48] sm:$0xff]  }
 0x477   : > { %v3141_v33 = vadd.f32 %v3101_v21, %v2907_v35  ;;  %v3924_v52 = vadd.f32 %v7418_v37, %v3923_v18  ;;  %v3804_v12 = vmax.f32 %v3772_v34, 0.0 }
 0x478   : > { %v2613_v57 = vadd.f32 %v8279_v40, %v2315_v23 }
 0x479   : > { %v3439_v32 = vadd.f32 %v3399_v49, %v3141_v33  ;;  %v4055_v50 = vadd.f32 %v4853_v55, %v3924_v52  ;;  %v3702_v17 = vpop.f32.mrf.mxu1 }
 0x47a   : > { %v2911_v42 = vadd.f32 %v7411_v43, %v2613_v57 }
 0x47b   : > { %v3737_v4 = vadd.f32 %v3697_v26, %v3439_v32  ;;  %v4087_v10 = vmax.f32 %v4055_v50, 0.0 }
 0x47d   : > { %4119 = vst [vmem:[%s7429_s21 + $0x40] sm:$0xff] %v4087_v10  ;;  %v3773_v1 = vadd.f32 %v7230_v22, %v3737_v4 }
 0x47e   : > { %v3104_v0 = vpop.f32.mrf.mxu3  ;;  %v3925_v36 = vpop.f32.mrf.mxu2 }
 0x47f   : > { %v3142_v47 = vadd.f32 %v3104_v0, %v2908_v14  ;;  %v3926_v46 = vadd.f32 %v7418_v37, %v3925_v36  ;;  %v3805_v28 = vmax.f32 %v3773_v1, 0.0  ;;  %v3409_v1 = vpop.f32.mrf.mxu0 }
 0x481   : > { %v4056_v8 = vadd.f32 %v4854_v53, %v3926_v46  ;;  %v3823_v24 = vpack.c.bf16 %v3805_v28, %v3804_v12  ;;  %v3440_v19 = vadd.f32 %v3402_v29, %v3142_v47  ;;  %v3705_v29 = vpop.f32.mrf.mxu1 }
 0x483   : > { %v4088_v30 = vmax.f32 %v4056_v8, 0.0  ;;  %3967 = vmatmul.bf16.gmra.mxu2 %v3823_v24  ;;  %v3738_v38 = vadd.f32 %v3700_v15, %v3440_v19  ;;  %v4904_v15 = vld [vmem:[%s5395_s23 + $0x30] sm:$0xff]  }
 0x484   : > { %v4861_v34 = vunpack.c.l.bf16 %v4904_v15  ;;  %v4862_v8 = vunpack.c.h.bf16 %v4904_v15 }
 0x485   : > { %4120 = vst [vmem:[%s7429_s21 + $0x48] sm:$0xff] %v4088_v30  ;;  %v3774_v5 = vadd.f32 %v7230_v22, %v3738_v38  ;;  %v4905_v30 = vld [vmem:[%s5395_s23 + $0x38] sm:$0xff]  }
 0x486   : > { %v3106_v59 = vpop.f32.mrf.mxu3  ;;  %v3928_v49 = vpop.f32.mrf.mxu2  ;;  %v4865_v41 = vunpack.c.l.bf16 %v4905_v30 }
 0x487   : > { %v3143_v56 = vadd.f32 %v3106_v59, %v2909_v61  ;;  %v3929_v13 = vadd.f32 %v7418_v37, %v3928_v49  ;;  %v3806_v33 = vmax.f32 %v3774_v5, 0.0 }
 0x489   : > { %v3441_v48 = vadd.f32 %v3404_v44, %v3143_v56  ;;  %v4057_v26 = vadd.f32 %v4857_v6, %v3929_v13  ;;  %v3707_v47 = vpop.f32.mrf.mxu1  ;;  %v4866_v6 = vunpack.c.h.bf16 %v4905_v30  ;;  %v4906_v56 = vld [vmem:[%s5395_s23 + $0x40] sm:$0xff]  }
 0x48b   : > { %v3739_v9 = vadd.f32 %v3702_v17, %v3441_v48  ;;  %v4089_v45 = vmax.f32 %v4057_v26, 0.0  ;;  %v4869_v48 = vunpack.c.l.bf16 %v4906_v56 }
 0x48d   : > { %4121 = vst [vmem:[%s7429_s21 + $0x50] sm:$0xff] %v4089_v45  ;;  %v3775_v35 = vadd.f32 %v7230_v22, %v3739_v9  ;;  %v4870_v45 = vunpack.c.h.bf16 %v4906_v56 }
 0x48e   : > { %v3109_v55 = vpop.f32.mrf.mxu3  ;;  %v3930_v21 = vpop.f32.mrf.mxu2 }
 0x48f   : > { %v3144_v18 = vadd.f32 %v3109_v55, %v2910_v51  ;;  %v3931_v25 = vadd.f32 %v7418_v37, %v3930_v21  ;;  %v3807_v52 = vmax.f32 %v3775_v35, 0.0  ;;  %v4873_v51 = vunpack.c.l.bf16 %v4907_v7 }
 0x491   : > { %v4058_v32 = vadd.f32 %v4858_v27, %v3931_v25  ;;  %v3824_v50 = vpack.c.bf16 %v3807_v52, %v3806_v33  ;;  %v3442_v4 = vadd.f32 %v3407_v16, %v3144_v18  ;;  %v4874_v18 = vunpack.c.h.bf16 %v4907_v7 }
 0x493   : > { %v4090_v10 = vmax.f32 %v4058_v32, 0.0  ;;  %3972 = vmatmul.bf16.gmra.mxu2 %v3824_v50  ;;  %v3740_v58 = vadd.f32 %v3705_v29, %v3442_v4  ;;  %v4908_v29 = vld [vmem:[%s5395_s23 + $0x50] sm:$0xff]  }
 0x494   : > { %v4877_v50 = vunpack.c.l.bf16 %v4908_v29 }
 0x495   : > { %4122 = vst [vmem:[%s7429_s21 + $0x58] sm:$0xff] %v4090_v10  ;;  %v3776_v28 = vadd.f32 %v7230_v22, %v3740_v58  ;;  %v4878_v10 = vunpack.c.h.bf16 %v4908_v29 }
 0x496   : > { %v3111_v2 = vpop.f32.mrf.mxu3  ;;  %v3933_v3 = vpop.f32.mrf.mxu2 }
 0x497   : > { %v3145_v14 = vadd.f32 %v3111_v2, %v2911_v42  ;;  %v3934_v53 = vadd.f32 %v7418_v37, %v3933_v3  ;;  %v3808_v54 = vmax.f32 %v3776_v28, 0.0  ;;  %v4909_v3 = vld [vmem:[%s5395_s23 + $0x58] sm:$0xff]  }
 0x499   : > { %v3443_v0 = vadd.f32 %v3409_v1, %v3145_v14  ;;  %v4059_v36 = vadd.f32 %v4861_v34, %v3934_v53  ;;  %v4881_v14 = vunpack.c.l.bf16 %v4909_v3 }
 0x49b   : > { %v3741_v46 = vadd.f32 %v3707_v47, %v3443_v0  ;;  %v4091_v12 = vmax.f32 %v4059_v36, 0.0  ;;  %v4882_v47 = vunpack.c.h.bf16 %v4909_v3 }
 0x49d   : > { %4123 = vst [vmem:[%s7429_s21 + $0x60] sm:$0xff] %v4091_v12  ;;  %v3777_v43 = vadd.f32 %v7230_v22, %v3741_v46 }
 0x49e   : > { %v3935_v24 = vpop.f32.mrf.mxu2 }
 0x49f   : > { %v3936_v63 = vadd.f32 %v7418_v37, %v3935_v24  ;;  %v3809_v11 = vmax.f32 %v3777_v43, 0.0 }
 0x4a1   : > { %v4060_v44 = vadd.f32 %v4862_v8, %v3936_v63  ;;  %v3825_v19 = vpack.c.bf16 %v3809_v11, %v3808_v54  ;;  %v4910_v8 = vld [vmem:[%s5395_s23 + $0x60] sm:$0xff]  }
 0x4a2   : > { %v4885_v24 = vunpack.c.l.bf16 %v4910_v8 }
 0x4a3   : > { %v4092_v62 = vmax.f32 %v4060_v44, 0.0  ;;  %3977 = vmatmul.bf16.gmra.mxu2 %v3825_v19  ;;  %v4886_v19 = vunpack.c.h.bf16 %v4910_v8 }
 0x4a5   : > { %4124 = vst [vmem:[%s7429_s21 + $0x68] sm:$0xff] %v4092_v62 }
 0x4a6   : > { %v3938_v39 = vpop.f32.mrf.mxu2 }
 0x4a7   : > { %v3939_v17 = vadd.f32 %v7418_v37, %v3938_v39  ;;  %v4911_v39 = vld [vmem:[%s5395_s23 + $0x68] sm:$0xff]  }
 0x4a9   : > { %v4061_v22 = vadd.f32 %v4865_v41, %v3939_v17 }
 0x4ab   : > { %v4093_v61 = vmax.f32 %v4061_v22, 0.0  ;;  %v4889_v22 = vunpack.c.l.bf16 %v4911_v39 }
 0x4ad   : > { %4125 = vst [vmem:[%s7429_s21 + $0x70] sm:$0xff] %v4093_v61 }
 0x4ae   : > { %v3940_v59 = vpop.f32.mrf.mxu2 }
 0x4af   : > { %v3941_v49 = vadd.f32 %v7418_v37, %v3940_v59 }
 0x4b1   : > { %v4062_v38 = vadd.f32 %v4866_v6, %v3941_v49 }
 0x4b3   : > { %v4094_v13 = vmax.f32 %v4062_v38, 0.0  ;;  %v4890_v38 = vunpack.c.h.bf16 %v4911_v39 }
 0x4b5   : > { %4126 = vst [vmem:[%s7429_s21 + $0x78] sm:$0xff] %v4094_v13 }
 0x4b6   : > { %v3943_v26 = vpop.f32.mrf.mxu2 }
 0x4b7   : > { %v3944_v31 = vadd.f32 %v7418_v37, %v3943_v26  ;;  %v4912_v26 = vld [vmem:[%s5395_s23 + $0x70] sm:$0xff]  }
 0x4b9   : > { %v4063_v60 = vadd.f32 %v4869_v48, %v3944_v31 }
 0x4bb   : > { %v4095_v9 = vmax.f32 %v4063_v60, 0.0  ;;  %v4893_v60 = vunpack.c.l.bf16 %v4912_v26 }
 0x4bd   : > { %4127 = vst [vmem:[%s7429_s21 + $0x80] sm:$0xff] %v4095_v9 }
 0x4be   : > { %v3945_v5 = vpop.f32.mrf.mxu2 }
 0x4bf   : > { %v3946_v16 = vadd.f32 %v7418_v37, %v3945_v5 }
 0x4c1   : > { %v4064_v20 = vadd.f32 %v4870_v45, %v3946_v16 }
 0x4c3   : > { %v4096_v23 = vmax.f32 %v4064_v20, 0.0  ;;  %v4894_v20 = vunpack.c.h.bf16 %v4912_v26 }
 0x4c5   : > { %4128 = vst [vmem:[%s7429_s21 + $0x88] sm:$0xff] %v4096_v23 }
 0x4c6   : > { %v3948_v27 = vpop.f32.mrf.mxu2 }
 0x4c7   : > { %v3949_v35 = vadd.f32 %v7418_v37, %v3948_v27  ;;  %v4913_v27 = vld [vmem:[%s5395_s23 + $0x78] sm:$0xff]   ;;  %s4156_s23 = sshll.u32 %s7429_s21, 4  ;;  %s4157_s23 = int_to_ptr.vmem [resolvable:$true] %s4156_s23 }
 0x4c9   : > { %v4065_v55 = vadd.f32 %v4873_v51, %v3949_v35 }
 0x4cb   : > { %v4097_v21 = vmax.f32 %v4065_v55, 0.0  ;;  %v4897_v55 = vunpack.c.l.bf16 %v4913_v27 }
 0x4cd   : > { %4129 = vst [vmem:[%s7429_s21 + $0x90] sm:$0xff] %v4097_v21 }
 0x4ce   : > { %v3950_v25 = vpop.f32.mrf.mxu2 }
 0x4cf   : > { %v3951_v33 = vadd.f32 %v7418_v37, %v3950_v25 }
 0x4d1   : > { %v4066_v52 = vadd.f32 %v4874_v18, %v3951_v33 }
 0x4d3   : > { %v4098_v32 = vmax.f32 %v4066_v52, 0.0  ;;  %v4898_v52 = vunpack.c.h.bf16 %v4913_v27 }
 0x4d5   : > { %4130 = vst [vmem:[%s7429_s21 + $0x98] sm:$0xff] %v4098_v32 }
 0x4d6   : > { %v3953_v40 = vpop.f32.mrf.mxu2 }
 0x4d7   : > { %v3954_v57 = vadd.f32 %v7418_v37, %v3953_v40 }
 0x4d9   : > { %v4067_v15 = vadd.f32 %v4877_v50, %v3954_v57 }
 0x4db   : > { %v4099_v4 = vmax.f32 %v4067_v15, 0.0 }
 0x4dd   : > { %4131 = vst [vmem:[%s7429_s21 + $0xa0] sm:$0xff] %v4099_v4 }
 0x4de   : > { %v3955_v42 = vpop.f32.mrf.mxu2 }
 0x4df   : > { %v3956_v34 = vadd.f32 %v7418_v37, %v3955_v42 }
 0x4e1   : > { %v4068_v2 = vadd.f32 %v4878_v10, %v3956_v34 }
 0x4e3   : > { %v4100_v58 = vmax.f32 %v4068_v2, 0.0 }
 0x4e5   : > { %4132 = vst [vmem:[%s7429_s21 + $0xa8] sm:$0xff] %v4100_v58 }
 0x4e6   : > { %v3958_v53 = vpop.f32.mrf.mxu2 }
 0x4e7   : > { %v3959_v1 = vadd.f32 %v7418_v37, %v3958_v53 }
 0x4e9   : > { %v4069_v0 = vadd.f32 %v4881_v14, %v3959_v1 }
 0x4eb   : > { %v4101_v36 = vmax.f32 %v4069_v0, 0.0 }
 0x4ed   : > { %4133 = vst [vmem:[%s7429_s21 + $0xb0] sm:$0xff] %v4101_v36 }
 0x4ee   : > { %v3960_v46 = vpop.f32.mrf.mxu2 }
 0x4ef   : > { %v3961_v12 = vadd.f32 %v7418_v37, %v3960_v46 }
 0x4f1   : > { %v4070_v28 = vadd.f32 %v4882_v47, %v3961_v12 }
 0x4f3   : > { %v4102_v43 = vmax.f32 %v4070_v28, 0.0 }
 0x4f5   : > { %4134 = vst [vmem:[%s7429_s21 + $0xb8] sm:$0xff] %v4102_v43 }
 0x4f6   : > { %v3963_v63 = vpop.f32.mrf.mxu2 }
 0x4f7   : > { %v3964_v54 = vadd.f32 %v7418_v37, %v3963_v63 }
 0x4f9   : > { %v4071_v11 = vadd.f32 %v4885_v24, %v3964_v54 }
 0x4fb   : > { %v4103_v44 = vmax.f32 %v4071_v11, 0.0 }
 0x4fd   : > { %4135 = vst [vmem:[%s7429_s21 + $0xc0] sm:$0xff] %v4103_v44 }
 0x4fe   : > { %v3965_v30 = vpop.f32.mrf.mxu2 }
 0x4ff   : > { %v3966_v62 = vadd.f32 %v7418_v37, %v3965_v30 }
 0x501   : > { %v4072_v41 = vadd.f32 %v4886_v19, %v3966_v62 }
 0x503   : > { %v4104_v17 = vmax.f32 %v4072_v41, 0.0 }
 0x505   : > { %4136 = vst [vmem:[%s7429_s21 + $0xc8] sm:$0xff] %v4104_v17 }
 0x506   : > { %v3968_v61 = vpop.f32.mrf.mxu2 }
 0x507   : > { %v3969_v6 = vadd.f32 %v7418_v37, %v3968_v61 }
 0x509   : > { %v4073_v59 = vadd.f32 %v4889_v22, %v3969_v6 }
 0x50b   : > { %v4105_v49 = vmax.f32 %v4073_v59, 0.0 }
 0x50d   : > { %4137 = vst [vmem:[%s7429_s21 + $0xd0] sm:$0xff] %v4105_v49 }
 0x50e   : > { %v3970_v56 = vpop.f32.mrf.mxu2 }
 0x50f   : > { %v3971_v13 = vadd.f32 %v7418_v37, %v3970_v56 }
 0x511   : > { %v4074_v48 = vadd.f32 %v4890_v38, %v3971_v13 }
 0x513   : > { %v4106_v31 = vmax.f32 %v4074_v48, 0.0 }
 0x515   : > { %4138 = vst [vmem:[%s7429_s21 + $0xd8] sm:$0xff] %v4106_v31 }
 0x516   : > { %v3973_v9 = vpop.f32.mrf.mxu2 }
 0x517   : > { %v3974_v45 = vadd.f32 %v7418_v37, %v3973_v9 }
 0x519   : > { %v4075_v5 = vadd.f32 %v4893_v60, %v3974_v45 }
 0x51b   : > { %v4107_v16 = vmax.f32 %v4075_v5, 0.0 }
 0x51d   : > { %4139 = vst [vmem:[%s7429_s21 + $0xe0] sm:$0xff] %v4107_v16 }
 0x51e   : > { %v3975_v7 = vpop.f32.mrf.mxu2 }
 0x51f   : > { %v3976_v23 = vadd.f32 %v7418_v37, %v3975_v7 }
 0x521   : > { %v4076_v51 = vadd.f32 %v4894_v20, %v3976_v23 }
 0x523   : > { %v4108_v35 = vmax.f32 %v4076_v51, 0.0 }
 0x525   : > { %4140 = vst [vmem:[%s7429_s21 + $0xe8] sm:$0xff] %v4108_v35 }
 0x526   : > { %v3978_v21 = vpop.f32.mrf.mxu2 }
 0x527   : > { %v3979_v18 = vadd.f32 %v7418_v37, %v3978_v21 }
 0x529   : > { %v4077_v25 = vadd.f32 %v4897_v55, %v3979_v18 }
 0x52b   : > { %v4109_v33 = vmax.f32 %v4077_v25, 0.0 }
 0x52d   : > { %4141 = vst [vmem:[%s7429_s21 + $0xf0] sm:$0xff] %v4109_v33 }
 0x52e   : > { %v3980_v29 = vpop.f32.mrf.mxu2 }
 0x52f   : > { %v3981_v32 = vadd.f32 %v7418_v37, %v3980_v29 }
 0x531   : > { %v4078_v50 = vadd.f32 %v4898_v52, %v3981_v32 }
 0x533   : > { %v4110_v40 = vmax.f32 %v4078_v50, 0.0 }
 0x535   : > { %4142 = vst [vmem:[%s7429_s21 + $0xf8] sm:$0xff] %v4110_v40 }
 0x536   : > { %5172 = shalt.err (!%p5169_p10)
}
 0x537   : > { %s5228_s15 = smov 128   ;;  %s5229_s21 = smov 8  }
 0x538   : > { %4952 = dma.vmem_to_hbm [thread:$0]  (%p5361_p3), %s4157_s23, 4096, %s4159_s12, %s4144_s19, %s5228_s15, %s5228_s15, %s5229_s21  }
 0x539 PF: > { %s4173_s11 = sand.u32 1, %s5207_s24   ;;  %p8280_p12 = scmp.ge.s32.totalorder %s5219_s27, 2 }
 0x53a   : > { %s4174_s20 = scalar_lea.sflag [#allocation5], %s4173_s11 }
 0x53b   : > { %p4969_p13 = pnand %p8280_p12, %p5305_p6 }
 0x53d   : > { %p4970_p0 = pneg %p4969_p13 }
 0x53f   : > { %5202 = dma.done.wait (%p4970_p0), %s4174_s20, 4096  }
 0x540   : > { %5204 = vsyncadd (%p4970_p0), %s4174_s20, 4294963200  ;;  %p22_p5 = scmp.ge.s32.totalorder %s5343_s13, 4   ;;  %s8281_s24 = smov %s5211_s25 }
 0x541   : > { %s8282_s25 = smov %s5215_s26  ;;  %s8283_s26 = smov %s5357_s17 }
 0x542   : > { %s8284_s27 = smov %s5343_s13  ;;  %24 = sbr.rel (!%p22_p5) target bundleno = 9 (0x9), region = 113 }
 0x547   :  { %4180 = vsyncpa [#allocation4], 1 }
 0x548   :  { %4182 = vsyncpa [#allocation4 + $0x1], 1 }
 0x549   :  { %4183 = vsyncpa [#allocation7], 1 }
 0x54a   :  { %4184 = vsyncpa [#allocation10], 1 }
 0x54b   :  { %4185 = vsyncpa [#allocation5], 1 }
 0x54c   :  { %4187 = vsyncpa [#allocation5 + $0x1], 1 }

</bundles_post_ra>
